<compile_context>
chip_gen: v7x
topology: tpu7x:2x2x1
jax: 0.10.0
libtpu: 0.0.40
codegen_flags: <defaults>
</compile_context>

<pallas_src>
from typing import NamedTuple

import jax
import jax.numpy as jnp
from jax.experimental import pallas as pl
from jax.experimental.pallas import tpu as pltpu

# ----------------------------- model dimensions -----------------------------
VOCAB = 64          # text vocab
T_SEQ = 8           # text sequence length
D_MODEL = 64        # transformer hidden size
N_HEADS = 4
D_HEAD = D_MODEL // N_HEADS
D_MLP = 4 * D_MODEL
N_LAYERS = 2        # per tower
D_PROJ = 32         # projection dim (text_embeds / image_embeds)
IMG = 16            # image spatial size
PATCH = 8           # patch size
C_IN = 3            # image channels
N_PATCH = (IMG // PATCH) ** 2      # 4
S_VIS = N_PATCH + 1                # + CLS token = 5
LN_EPS = 1e-5
NEG_INF = -1e9

_VMEM = pl.BlockSpec(memory_space=pltpu.MemorySpace.VMEM)


class Output(NamedTuple):
    text_embeds: jax.Array
    image_embeds: jax.Array


# ----------------------- in-kernel building blocks (traced) -------------------
def _ln(x2d, g, b):
    """LayerNorm over the last dim. x2d: (M, D), g/b: (1, D)."""
    mu = jnp.mean(x2d, axis=-1, keepdims=True)
    xc = x2d - mu
    var = jnp.mean(xc * xc, axis=-1, keepdims=True)
    return xc * jax.lax.rsqrt(var + LN_EPS) * g + b


def _l2_normalize(emb):
    """Unit-normalize rows; eps under the rsqrt guards zero embeddings."""
    ss = jnp.sum(emb * emb, axis=-1, keepdims=True)
    return emb * jax.lax.rsqrt(ss + 1e-12)


def _encoder_block(x, bias, lw):
    """One pre-LN CLIP encoder block, fully in-kernel.

    x: (B, S, D) float32; bias: (B, S, S) additive mask or None; lw: weight dict.
    """
    b, s, d = x.shape
    res = x
    h = _ln(x.reshape(b * s, d), lw["ln1_g"], lw["ln1_b"])
    # fused QKV projection: one matmul, lane-dense (B*S, 3D) output
    qkv = jnp.dot(h, lw["qkv_w"], preferred_element_type=jnp.float32) + lw["qkv_b"]
    qkv = qkv.reshape(b, s, 3 * d)
    q = qkv[:, :, 0 * d:1 * d]
    k = qkv[:, :, 1 * d:2 * d]
    v = qkv[:, :, 2 * d:3 * d]

    scale = D_HEAD ** -0.5
    ctx_heads = []
    for hd in range(N_HEADS):                       # static unroll over heads
        lo, hi = hd * D_HEAD, (hd + 1) * D_HEAD
        qh = q[:, :, lo:hi]                         # (B, S, Dh)
        kh = k[:, :, lo:hi]
        vh = v[:, :, lo:hi]
        # batched einsum keeps the MXU path (no explicit k.T transpose)
        sc = jnp.einsum("bqd,bkd->bqk", qh, kh,
                        preferred_element_type=jnp.float32) * scale
        if bias is not None:
            sc = sc + bias
        sc = sc - jnp.max(sc, axis=-1, keepdims=True)
        p = jnp.exp(sc)
        p = p * pl.reciprocal(jnp.sum(p, axis=-1, keepdims=True), approx=True)
        ctx_heads.append(jnp.einsum("bqk,bkd->bqd", p, vh,
                                    preferred_element_type=jnp.float32))
    ctx = jnp.concatenate(ctx_heads, axis=-1).reshape(b * s, d)
    attn = jnp.dot(ctx, lw["o_w"], preferred_element_type=jnp.float32) + lw["o_b"]
    x = res + attn.reshape(b, s, d)

    res = x
    h = _ln(x.reshape(b * s, d), lw["ln2_g"], lw["ln2_b"])
    h = jnp.dot(h, lw["fc1_w"], preferred_element_type=jnp.float32) + lw["fc1_b"]
    h = h * jax.nn.sigmoid(1.702 * h)               # quick-GELU (f32 VPU/EUP)
    h = jnp.dot(h, lw["fc2_w"], preferred_element_type=jnp.float32) + lw["fc2_b"]
    return res + h.reshape(b, s, d)


def _layer_weights(l, stacked_refs):
    """Load layer-l weights from the stacked (L, ...) refs (static index)."""
    (ln1_g, ln1_b, qkv_w, qkv_b, o_w, o_b,
     ln2_g, ln2_b, fc1_w, fc1_b, fc2_w, fc2_b) = stacked_refs
    return dict(
        ln1_g=ln1_g[l], ln1_b=ln1_b[l],
        qkv_w=qkv_w[l], qkv_b=qkv_b[l],
        o_w=o_w[l], o_b=o_b[l],
        ln2_g=ln2_g[l], ln2_b=ln2_b[l],
        fc1_w=fc1_w[l], fc1_b=fc1_b[l],
        fc2_w=fc2_w[l], fc2_b=fc2_b[l],
    )


# ------------------------------ fused tower kernels ---------------------------
def _text_tower_kernel(x_ref, bias_ref, eos_sel_ref,
                       ln1_g, ln1_b, qkv_w, qkv_b, o_w, o_b,
                       ln2_g, ln2_b, fc1_w, fc1_b, fc2_w, fc2_b,
                       fln_g, fln_b, proj_w,
                       o_ref):
    x = x_ref[...]                                   # (B, T, D)
    bias = bias_ref[...]                             # (B, T, T) additive mask
    b, t, d = x.shape
    stacked = (ln1_g, ln1_b, qkv_w, qkv_b, o_w, o_b,
               ln2_g, ln2_b, fc1_w, fc1_b, fc2_w, fc2_b)
    for l in range(N_LAYERS):                        # static unroll over layers
        x = _encoder_block(x, bias, _layer_weights(l, stacked))
    xf = _ln(x.reshape(b * t, d), fln_g[...], fln_b[...])       # (B*T, D)
    # EOS pooling as a tiny selection matmul (row b of eos_sel picks b*T+eos[b])
    pooled = jnp.dot(eos_sel_ref[...], xf,
                     preferred_element_type=jnp.float32)        # (B, D)
    emb = jnp.dot(pooled, proj_w[...],
                  preferred_element_type=jnp.float32)           # (B, P)
    o_ref[...] = _l2_normalize(emb)


def _vision_tower_kernel(patches_ref, base_ref, patch_w_ref,
                         pre_g, pre_b,
                         ln1_g, ln1_b, qkv_w, qkv_b, o_w, o_b,
                         ln2_g, ln2_b, fc1_w, fc1_b, fc2_w, fc2_b,
                         post_g, post_b, proj_w,
                         o_ref):
    b, s, d = base_ref.shape                         # (B, S_VIS, D)
    # patch embedding; the prepended all-zero "patch" row per image makes the
    # CLS position fall out of the same matmul (its embedding lives in `base`)
    pe = jnp.dot(patches_ref[...], patch_w_ref[...],
                 preferred_element_type=jnp.float32)             # (B*S_VIS, D)
    x = pe.reshape(b, s, d) + base_ref[...]
    x = _ln(x.reshape(b * s, d), pre_g[...], pre_b[...]).reshape(b, s, d)
    stacked = (ln1_g, ln1_b, qkv_w, qkv_b, o_w, o_b,
               ln2_g, ln2_b, fc1_w, fc1_b, fc2_w, fc2_b)
    for l in range(N_LAYERS):                        # static unroll over layers
        x = _encoder_block(x, None, _layer_weights(l, stacked))  # no mask needed
    pooled = x[:, 0:1, :].reshape(b, d)              # CLS token
    pooled = _ln(pooled, post_g[...], post_b[...])
    emb = jnp.dot(pooled, proj_w[...], preferred_element_type=jnp.float32)
    o_ref[...] = _l2_normalize(emb)


# ---------------------------- parameter initialization -----------------------
def _dense(key, k_in, k_out, scale=0.02):
    return scale * jax.random.normal(key, (k_in, k_out), jnp.float32)


def _init_layer_stack(key, n_layers):
    ks = jax.random.split(key, 4 * n_layers)
    qkv_w = jnp.stack([_dense(ks[4 * l + 0], D_MODEL, 3 * D_MODEL)
                       for l in range(n_layers)])
    o_w = jnp.stack([_dense(ks[4 * l + 1], D_MODEL, D_MODEL)
                     for l in range(n_layers)])
    fc1_w = jnp.stack([_dense(ks[4 * l + 2], D_MODEL, D_MLP)
                       for l in range(n_layers)])
    fc2_w = jnp.stack([_dense(ks[4 * l + 3], D_MLP, D_MODEL)
                       for l in range(n_layers)])
    L = n_layers
    ones = lambda *s: jnp.ones(s, jnp.float32)
    zeros = lambda *s: jnp.zeros(s, jnp.float32)
    return dict(
        ln1_g=ones(L, 1, D_MODEL), ln1_b=zeros(L, 1, D_MODEL),
        qkv_w=qkv_w, qkv_b=zeros(L, 1, 3 * D_MODEL),
        o_w=o_w, o_b=zeros(L, 1, D_MODEL),
        ln2_g=ones(L, 1, D_MODEL), ln2_b=zeros(L, 1, D_MODEL),
        fc1_w=fc1_w, fc1_b=zeros(L, 1, D_MLP),
        fc2_w=fc2_w, fc2_b=zeros(L, 1, D_MODEL),
    )


def init_params(key):
    ks = jax.random.split(key, 10)
    text = _init_layer_stack(ks[2], N_LAYERS)
    text.update(
        final_ln_g=jnp.ones((1, D_MODEL), jnp.float32),
        final_ln_b=jnp.zeros((1, D_MODEL), jnp.float32),
        proj_w=_dense(ks[3], D_MODEL, D_PROJ),
    )
    vision = _init_layer_stack(ks[4], N_LAYERS)
    vision.update(
        patch_w=_dense(ks[5], C_IN * PATCH * PATCH, D_MODEL),
        cls_emb=0.02 * jax.random.normal(ks[6], (D_MODEL,), jnp.float32),
        pos_emb=0.02 * jax.random.normal(ks[7], (S_VIS, D_MODEL), jnp.float32),
        pre_ln_g=jnp.ones((1, D_MODEL), jnp.float32),
        pre_ln_b=jnp.zeros((1, D_MODEL), jnp.float32),
        post_ln_g=jnp.ones((1, D_MODEL), jnp.float32),
        post_ln_b=jnp.zeros((1, D_MODEL), jnp.float32),
        proj_w=_dense(ks[8], D_MODEL, D_PROJ),
    )
    return dict(
        tok_emb=0.02 * jax.random.normal(ks[0], (VOCAB, D_MODEL), jnp.float32),
        txt_pos_emb=0.02 * jax.random.normal(ks[1], (T_SEQ, D_MODEL), jnp.float32),
        text=text,
        vision=vision,
    )


# ------------------------------- model forward --------------------------------
def _tower_layer_args(tw):
    return (tw["ln1_g"], tw["ln1_b"], tw["qkv_w"], tw["qkv_b"],
            tw["o_w"], tw["o_b"], tw["ln2_g"], tw["ln2_b"],
            tw["fc1_w"], tw["fc1_b"], tw["fc2_w"], tw["fc2_b"])


def text_tower(params, input_ids, attention_mask):
    b, t = input_ids.shape
    # embedding gather + positional add stay in plain JAX (data prep, not compute)
    x = params["tok_emb"][input_ids] + params["txt_pos_emb"][None, :t]
    # single (B, T, T) additive bias — NOT replicated per head, NOT per grid step
    causal = jnp.where(jnp.tril(jnp.ones((t, t), dtype=bool)), 0.0, NEG_INF)
    pad = jnp.where(attention_mask[:, None, :] > 0, 0.0, NEG_INF)
    bias = (causal[None, :, :] + pad).astype(jnp.float32)
    # EOS pooling selector: row b is one-hot at flat index b*T + (last non-pad pos)
    eos_pos = jnp.sum(attention_mask, axis=-1).astype(jnp.int32) - 1
    eos_sel = jax.nn.one_hot(jnp.arange(b) * t + eos_pos, b * t, dtype=jnp.float32)
    tw = params["text"]
    n_in = 3 + 12 + 3
    return pl.pallas_call(
        _text_tower_kernel,
        out_shape=jax.ShapeDtypeStruct((b, D_PROJ), jnp.float32),
        in_specs=[_VMEM] * n_in,
        out_specs=_VMEM,
    )(x, bias, eos_sel, *_tower_layer_args(tw),
      tw["final_ln_g"], tw["final_ln_b"], tw["proj_w"])


def vision_tower(params, pixel_values):
    # layout: pixel_values NCHW (B, C, H, W), exactly like the PyTorch model
    b, c, hh, ww = pixel_values.shape
    gh, gw = hh // PATCH, ww // PATCH
    vw = params["vision"]
    # NCHW -> (B, n_patch, C*P*P) re-tiling stays in plain JAX (pure layout)
    patches = (pixel_values.reshape(b, c, gh, PATCH, gw, PATCH)
               .transpose(0, 2, 4, 1, 3, 5)
               .reshape(b, gh * gw, c * PATCH * PATCH))
    # prepend an all-zero "patch" per image so the CLS row is produced by the
    # same in-kernel matmul (avoids an in-kernel concat); CLS/pos come via base
    patches_ext = jnp.concatenate(
        [jnp.zeros((b, 1, c * PATCH * PATCH), jnp.float32), patches],
        axis=1).reshape(b * (gh * gw + 1), c * PATCH * PATCH)
    base = jnp.concatenate(
        [vw["cls_emb"][None, :] + vw["pos_emb"][0:1], vw["pos_emb"][1:]],
        axis=0)                                                   # (S_VIS, D)
    base = jnp.broadcast_to(base[None], (b, S_VIS, D_MODEL))
    n_in = 5 + 12 + 3
    return pl.pallas_call(
        _vision_tower_kernel,
        out_shape=jax.ShapeDtypeStruct((b, D_PROJ), jnp.float32),
        in_specs=[_VMEM] * n_in,
        out_specs=_VMEM,
    )(patches_ext, base, vw["patch_w"], vw["pre_ln_g"], vw["pre_ln_b"],
      *_tower_layer_args(vw),
      vw["post_ln_g"], vw["post_ln_b"], vw["proj_w"])


def contrastive_forward(params, input_ids, attention_mask, pixel_values):
    # L2 normalization is fused into each tower kernel
    text_embeds = text_tower(params, input_ids, attention_mask)
    image_embeds = vision_tower(params, pixel_values)
    return Output(text_embeds=text_embeds, image_embeds=image_embeds)


# ------------------------------------ main ------------------------------------
if __name__ == "__main__":
    key = jax.random.PRNGKey(0)
    k_param, k_ids, k_pix = jax.random.split(key, 3)

    params = init_params(k_param)

    B = 2
    input_ids = jax.random.randint(k_ids, (B, T_SEQ), 0, VOCAB, dtype=jnp.int32)
    attention_mask = jnp.array([[1] * T_SEQ,
                                [1] * (T_SEQ - 2) + [0] * 2], dtype=jnp.int32)
    pixel_values = jax.random.normal(k_pix, (B, C_IN, IMG, IMG), jnp.float32)

    fwd = jax.jit(contrastive_forward)
    out = fwd(params, input_ids, attention_mask, pixel_values)
    out = jax.block_until_ready(out)

    assert out.text_embeds.shape == (B, D_PROJ)
    assert out.image_embeds.shape == (B, D_PROJ)
    # embeddings must be unit-norm after the fused in-kernel L2 normalize
    tn = jnp.linalg.norm(out.text_embeds, axis=-1)
    im = jnp.linalg.norm(out.image_embeds, axis=-1)
    assert bool(jnp.all(jnp.abs(tn - 1.0) < 1e-4)) and bool(jnp.all(jnp.abs(im - 1.0) < 1e-4))

    print("KERNEL_OK")
</pallas_src>

<mosaic_0001>
module attributes {stable_mosaic.version = 11 : i64} {
  func.func @_text_tower_kernel(%arg0: memref<2x8x64xf32, #tpu.memory_space<vmem>>, %arg1: memref<2x8x8xf32, #tpu.memory_space<vmem>>, %arg2: memref<2x16xf32, #tpu.memory_space<vmem>>, %arg3: memref<2x1x64xf32, #tpu.memory_space<vmem>>, %arg4: memref<2x1x64xf32, #tpu.memory_space<vmem>>, %arg5: memref<2x64x192xf32, #tpu.memory_space<vmem>>, %arg6: memref<2x1x192xf32, #tpu.memory_space<vmem>>, %arg7: memref<2x64x64xf32, #tpu.memory_space<vmem>>, %arg8: memref<2x1x64xf32, #tpu.memory_space<vmem>>, %arg9: memref<2x1x64xf32, #tpu.memory_space<vmem>>, %arg10: memref<2x1x64xf32, #tpu.memory_space<vmem>>, %arg11: memref<2x64x256xf32, #tpu.memory_space<vmem>>, %arg12: memref<2x1x256xf32, #tpu.memory_space<vmem>>, %arg13: memref<2x256x64xf32, #tpu.memory_space<vmem>>, %arg14: memref<2x1x64xf32, #tpu.memory_space<vmem>>, %arg15: memref<1x64xf32, #tpu.memory_space<vmem>>, %arg16: memref<1x64xf32, #tpu.memory_space<vmem>>, %arg17: memref<64x32xf32, #tpu.memory_space<vmem>>, %arg18: memref<2x32xf32, #tpu.memory_space<vmem>>) attributes {dimension_semantics = [], scalar_prefetch = 0 : i64, scratch_operands = 0 : i64, tpu.core_type = #tpu.core_type<tc>} {
    %c0 = arith.constant 0 : index
    %c0_0 = arith.constant 0 : index
    %c0_1 = arith.constant 0 : index
    %0 = vector.load %arg0[%c0, %c0_0, %c0_1] : memref<2x8x64xf32, #tpu.memory_space<vmem>>, vector<2x8x64xf32>
    %c0_2 = arith.constant 0 : index
    %c0_3 = arith.constant 0 : index
    %c0_4 = arith.constant 0 : index
    %1 = vector.load %arg1[%c0_2, %c0_3, %c0_4] : memref<2x8x8xf32, #tpu.memory_space<vmem>>, vector<2x8x8xf32>
    %c0_5 = arith.constant 0 : index
    %c0_6 = arith.constant 0 : index
    %c0_7 = arith.constant 0 : index
    %2 = vector.load %arg3[%c0_5, %c0_6, %c0_7] : memref<2x1x64xf32, #tpu.memory_space<vmem>>, vector<1x1x64xf32>
    %3 = vector.shape_cast %2 : vector<1x1x64xf32> to vector<1x64xf32>
    %c0_8 = arith.constant 0 : index
    %c0_9 = arith.constant 0 : index
    %c0_10 = arith.constant 0 : index
    %4 = vector.load %arg4[%c0_8, %c0_9, %c0_10] : memref<2x1x64xf32, #tpu.memory_space<vmem>>, vector<1x1x64xf32>
    %5 = vector.shape_cast %4 : vector<1x1x64xf32> to vector<1x64xf32>
    %c0_11 = arith.constant 0 : index
    %c0_12 = arith.constant 0 : index
    %c0_13 = arith.constant 0 : index
    %6 = vector.load %arg5[%c0_11, %c0_12, %c0_13] : memref<2x64x192xf32, #tpu.memory_space<vmem>>, vector<1x64x192xf32>
    %7 = vector.shape_cast %6 : vector<1x64x192xf32> to vector<64x192xf32>
    %c0_14 = arith.constant 0 : index
    %c0_15 = arith.constant 0 : index
    %c0_16 = arith.constant 0 : index
    %8 = vector.load %arg6[%c0_14, %c0_15, %c0_16] : memref<2x1x192xf32, #tpu.memory_space<vmem>>, vector<1x1x192xf32>
    %9 = vector.shape_cast %8 : vector<1x1x192xf32> to vector<1x192xf32>
    %c0_17 = arith.constant 0 : index
    %c0_18 = arith.constant 0 : index
    %c0_19 = arith.constant 0 : index
    %10 = vector.load %arg7[%c0_17, %c0_18, %c0_19] : memref<2x64x64xf32, #tpu.memory_space<vmem>>, vector<1x64x64xf32>
    %11 = vector.shape_cast %10 : vector<1x64x64xf32> to vector<64x64xf32>
    %c0_20 = arith.constant 0 : index
    %c0_21 = arith.constant 0 : index
    %c0_22 = arith.constant 0 : index
    %12 = vector.load %arg8[%c0_20, %c0_21, %c0_22] : memref<2x1x64xf32, #tpu.memory_space<vmem>>, vector<1x1x64xf32>
    %13 = vector.shape_cast %12 : vector<1x1x64xf32> to vector<1x64xf32>
    %c0_23 = arith.constant 0 : index
    %c0_24 = arith.constant 0 : index
    %c0_25 = arith.constant 0 : index
    %14 = vector.load %arg9[%c0_23, %c0_24, %c0_25] : memref<2x1x64xf32, #tpu.memory_space<vmem>>, vector<1x1x64xf32>
    %15 = vector.shape_cast %14 : vector<1x1x64xf32> to vector<1x64xf32>
    %c0_26 = arith.constant 0 : index
    %c0_27 = arith.constant 0 : index
    %c0_28 = arith.constant 0 : index
    %16 = vector.load %arg10[%c0_26, %c0_27, %c0_28] : memref<2x1x64xf32, #tpu.memory_space<vmem>>, vector<1x1x64xf32>
    %17 = vector.shape_cast %16 : vector<1x1x64xf32> to vector<1x64xf32>
    %c0_29 = arith.constant 0 : index
    %c0_30 = arith.constant 0 : index
    %c0_31 = arith.constant 0 : index
    %18 = vector.load %arg11[%c0_29, %c0_30, %c0_31] : memref<2x64x256xf32, #tpu.memory_space<vmem>>, vector<1x64x256xf32>
    %19 = vector.shape_cast %18 : vector<1x64x256xf32> to vector<64x256xf32>
    %c0_32 = arith.constant 0 : index
    %c0_33 = arith.constant 0 : index
    %c0_34 = arith.constant 0 : index
    %20 = vector.load %arg12[%c0_32, %c0_33, %c0_34] : memref<2x1x256xf32, #tpu.memory_space<vmem>>, vector<1x1x256xf32>
    %21 = vector.shape_cast %20 : vector<1x1x256xf32> to vector<1x256xf32>
    %c0_35 = arith.constant 0 : index
    %c0_36 = arith.constant 0 : index
    %c0_37 = arith.constant 0 : index
    %22 = vector.load %arg13[%c0_35, %c0_36, %c0_37] : memref<2x256x64xf32, #tpu.memory_space<vmem>>, vector<1x256x64xf32>
    %23 = vector.shape_cast %22 : vector<1x256x64xf32> to vector<256x64xf32>
    %c0_38 = arith.constant 0 : index
    %c0_39 = arith.constant 0 : index
    %c0_40 = arith.constant 0 : index
    %24 = vector.load %arg14[%c0_38, %c0_39, %c0_40] : memref<2x1x64xf32, #tpu.memory_space<vmem>>, vector<1x1x64xf32>
    %25 = vector.shape_cast %24 : vector<1x1x64xf32> to vector<1x64xf32>
    %26 = vector.shape_cast %0 : vector<2x8x64xf32> to vector<16x64xf32>
    %cst = arith.constant dense<0.000000e+00> : vector<16xf32>
    %27 = vector.multi_reduction <add>, %26, %cst [1] : vector<16x64xf32> to vector<16xf32>
    %28 = vector.shape_cast %27 : vector<16xf32> to vector<16x1xf32>
    %cst_41 = arith.constant 6.400000e+01 : f32
    %29 = vector.broadcast %cst_41 : f32 to vector<16x1xf32>
    %30 = arith.divf %28, %29 : vector<16x1xf32>
    %31 = vector.broadcast %30 : vector<16x1xf32> to vector<16x64xf32>
    %32 = arith.subf %26, %31 : vector<16x64xf32>
    %33 = arith.mulf %32, %32 : vector<16x64xf32>
    %cst_42 = arith.constant dense<0.000000e+00> : vector<16xf32>
    %34 = vector.multi_reduction <add>, %33, %cst_42 [1] : vector<16x64xf32> to vector<16xf32>
    %35 = vector.shape_cast %34 : vector<16xf32> to vector<16x1xf32>
    %cst_43 = arith.constant 6.400000e+01 : f32
    %36 = vector.broadcast %cst_43 : f32 to vector<16x1xf32>
    %37 = arith.divf %35, %36 : vector<16x1xf32>
    %cst_44 = arith.constant 9.99999974E-6 : f32
    %38 = vector.broadcast %cst_44 : f32 to vector<16x1xf32>
    %39 = arith.addf %37, %38 : vector<16x1xf32>
    %40 = math.rsqrt %39 : vector<16x1xf32>
    %41 = vector.broadcast %40 : vector<16x1xf32> to vector<16x64xf32>
    %42 = arith.mulf %32, %41 : vector<16x64xf32>
    %43 = vector.broadcast %3 : vector<1x64xf32> to vector<16x64xf32>
    %44 = arith.mulf %42, %43 : vector<16x64xf32>
    %45 = vector.broadcast %5 : vector<1x64xf32> to vector<16x64xf32>
    %46 = arith.addf %44, %45 : vector<16x64xf32>
    %cst_45 = arith.constant dense<0.000000e+00> : vector<16x192xf32>
    %47 = tpu.matmul %46, %7, %cst_45 {dimension_numbers = #tpu.dot_dimension_numbers<[1], [0], [0], [1], [0, 0, 1, 1], [], []>} : vector<16x64xf32>, vector<64x192xf32>, vector<16x192xf32> -> vector<16x192xf32>
    %48 = vector.broadcast %9 : vector<1x192xf32> to vector<16x192xf32>
    %49 = arith.addf %47, %48 : vector<16x192xf32>
    %50 = vector.shape_cast %49 : vector<16x192xf32> to vector<2x8x192xf32>
    %51 = vector.extract_strided_slice %50 {offsets = [0, 0, 0], sizes = [2, 8, 64], strides = [1, 1, 1]} : vector<2x8x192xf32> to vector<2x8x64xf32>
    %52 = vector.extract_strided_slice %50 {offsets = [0, 0, 64], sizes = [2, 8, 64], strides = [1, 1, 1]} : vector<2x8x192xf32> to vector<2x8x64xf32>
    %53 = vector.extract_strided_slice %50 {offsets = [0, 0, 128], sizes = [2, 8, 64], strides = [1, 1, 1]} : vector<2x8x192xf32> to vector<2x8x64xf32>
    %54 = vector.extract_strided_slice %51 {offsets = [0, 0, 0], sizes = [2, 8, 16], strides = [1, 1, 1]} : vector<2x8x64xf32> to vector<2x8x16xf32>
    %55 = vector.extract_strided_slice %52 {offsets = [0, 0, 0], sizes = [2, 8, 16], strides = [1, 1, 1]} : vector<2x8x64xf32> to vector<2x8x16xf32>
    %56 = vector.extract_strided_slice %53 {offsets = [0, 0, 0], sizes = [2, 8, 16], strides = [1, 1, 1]} : vector<2x8x64xf32> to vector<2x8x16xf32>
    "tpu.trace_start"() <{level = 10 : i32, message = "bqd,bkd->bqk"}> : () -> ()
    %cst_46 = arith.constant dense<0.000000e+00> : vector<2x8x8xf32>
    %57 = tpu.matmul %54, %55, %cst_46 {dimension_numbers = #tpu.dot_dimension_numbers<[2], [2], [1], [1], [0, 0, 0, 1, 1, 1], [0], [0]>} : vector<2x8x16xf32>, vector<2x8x16xf32>, vector<2x8x8xf32> -> vector<2x8x8xf32>
    "tpu.trace_stop"() : () -> ()
    %cst_47 = arith.constant 2.500000e-01 : f32
    %58 = vector.broadcast %cst_47 : f32 to vector<2x8x8xf32>
    %59 = arith.mulf %57, %58 : vector<2x8x8xf32>
    %60 = arith.addf %59, %1 : vector<2x8x8xf32>
    %cst_48 = arith.constant dense<0xFF800000> : vector<2x8xf32>
    %61 = vector.multi_reduction <maximumf>, %60, %cst_48 [2] : vector<2x8x8xf32> to vector<2x8xf32>
    %62 = vector.shape_cast %61 : vector<2x8xf32> to vector<2x8x1xf32>
    %63 = vector.broadcast %62 : vector<2x8x1xf32> to vector<2x8x8xf32>
    %64 = arith.subf %60, %63 : vector<2x8x8xf32>
    %65 = math.exp %64 : vector<2x8x8xf32>
    %cst_49 = arith.constant dense<0.000000e+00> : vector<2x8xf32>
    %66 = vector.multi_reduction <add>, %65, %cst_49 [2] : vector<2x8x8xf32> to vector<2x8xf32>
    %67 = vector.shape_cast %66 : vector<2x8xf32> to vector<2x8x1xf32>
    %68 = tpu.reciprocal %67 {approx = true} : vector<2x8x1xf32> -> vector<2x8x1xf32>
    %69 = vector.broadcast %68 : vector<2x8x1xf32> to vector<2x8x8xf32>
    %70 = arith.mulf %65, %69 : vector<2x8x8xf32>
    "tpu.trace_start"() <{level = 10 : i32, message = "bqk,bkd->bqd"}> : () -> ()
    %cst_50 = arith.constant dense<0.000000e+00> : vector<2x8x16xf32>
    %71 = tpu.matmul %70, %56, %cst_50 {dimension_numbers = #tpu.dot_dimension_numbers<[2], [1], [1], [2], [0, 0, 0, 1, 1, 2], [0], [0]>} : vector<2x8x8xf32>, vector<2x8x16xf32>, vector<2x8x16xf32> -> vector<2x8x16xf32>
    "tpu.trace_stop"() : () -> ()
    %72 = vector.extract_strided_slice %51 {offsets = [0, 0, 16], sizes = [2, 8, 16], strides = [1, 1, 1]} : vector<2x8x64xf32> to vector<2x8x16xf32>
    %73 = vector.extract_strided_slice %52 {offsets = [0, 0, 16], sizes = [2, 8, 16], strides = [1, 1, 1]} : vector<2x8x64xf32> to vector<2x8x16xf32>
    %74 = vector.extract_strided_slice %53 {offsets = [0, 0, 16], sizes = [2, 8, 16], strides = [1, 1, 1]} : vector<2x8x64xf32> to vector<2x8x16xf32>
    "tpu.trace_start"() <{level = 10 : i32, message = "bqd,bkd->bqk"}> : () -> ()
    %cst_51 = arith.constant dense<0.000000e+00> : vector<2x8x8xf32>
    %75 = tpu.matmul %72, %73, %cst_51 {dimension_numbers = #tpu.dot_dimension_numbers<[2], [2], [1], [1], [0, 0, 0, 1, 1, 1], [0], [0]>} : vector<2x8x16xf32>, vector<2x8x16xf32>, vector<2x8x8xf32> -> vector<2x8x8xf32>
    "tpu.trace_stop"() : () -> ()
    %cst_52 = arith.constant 2.500000e-01 : f32
    %76 = vector.broadcast %cst_52 : f32 to vector<2x8x8xf32>
    %77 = arith.mulf %75, %76 : vector<2x8x8xf32>
    %78 = arith.addf %77, %1 : vector<2x8x8xf32>
    %cst_53 = arith.constant dense<0xFF800000> : vector<2x8xf32>
    %79 = vector.multi_reduction <maximumf>, %78, %cst_53 [2] : vector<2x8x8xf32> to vector<2x8xf32>
    %80 = vector.shape_cast %79 : vector<2x8xf32> to vector<2x8x1xf32>
    %81 = vector.broadcast %80 : vector<2x8x1xf32> to vector<2x8x8xf32>
    %82 = arith.subf %78, %81 : vector<2x8x8xf32>
    %83 = math.exp %82 : vector<2x8x8xf32>
    %cst_54 = arith.constant dense<0.000000e+00> : vector<2x8xf32>
    %84 = vector.multi_reduction <add>, %83, %cst_54 [2] : vector<2x8x8xf32> to vector<2x8xf32>
    %85 = vector.shape_cast %84 : vector<2x8xf32> to vector<2x8x1xf32>
    %86 = tpu.reciprocal %85 {approx = true} : vector<2x8x1xf32> -> vector<2x8x1xf32>
    %87 = vector.broadcast %86 : vector<2x8x1xf32> to vector<2x8x8xf32>
    %88 = arith.mulf %83, %87 : vector<2x8x8xf32>
    "tpu.trace_start"() <{level = 10 : i32, message = "bqk,bkd->bqd"}> : () -> ()
    %cst_55 = arith.constant dense<0.000000e+00> : vector<2x8x16xf32>
    %89 = tpu.matmul %88, %74, %cst_55 {dimension_numbers = #tpu.dot_dimension_numbers<[2], [1], [1], [2], [0, 0, 0, 1, 1, 2], [0], [0]>} : vector<2x8x8xf32>, vector<2x8x16xf32>, vector<2x8x16xf32> -> vector<2x8x16xf32>
    "tpu.trace_stop"() : () -> ()
    %90 = vector.extract_strided_slice %51 {offsets = [0, 0, 32], sizes = [2, 8, 16], strides = [1, 1, 1]} : vector<2x8x64xf32> to vector<2x8x16xf32>
    %91 = vector.extract_strided_slice %52 {offsets = [0, 0, 32], sizes = [2, 8, 16], strides = [1, 1, 1]} : vector<2x8x64xf32> to vector<2x8x16xf32>
    %92 = vector.extract_strided_slice %53 {offsets = [0, 0, 32], sizes = [2, 8, 16], strides = [1, 1, 1]} : vector<2x8x64xf32> to vector<2x8x16xf32>
    "tpu.trace_start"() <{level = 10 : i32, message = "bqd,bkd->bqk"}> : () -> ()
    %cst_56 = arith.constant dense<0.000000e+00> : vector<2x8x8xf32>
    %93 = tpu.matmul %90, %91, %cst_56 {dimension_numbers = #tpu.dot_dimension_numbers<[2], [2], [1], [1], [0, 0, 0, 1, 1, 1], [0], [0]>} : vector<2x8x16xf32>, vector<2x8x16xf32>, vector<2x8x8xf32> -> vector<2x8x8xf32>
    "tpu.trace_stop"() : () -> ()
    %cst_57 = arith.constant 2.500000e-01 : f32
    %94 = vector.broadcast %cst_57 : f32 to vector<2x8x8xf32>
    %95 = arith.mulf %93, %94 : vector<2x8x8xf32>
    %96 = arith.addf %95, %1 : vector<2x8x8xf32>
    %cst_58 = arith.constant dense<0xFF800000> : vector<2x8xf32>
    %97 = vector.multi_reduction <maximumf>, %96, %cst_58 [2] : vector<2x8x8xf32> to vector<2x8xf32>
    %98 = vector.shape_cast %97 : vector<2x8xf32> to vector<2x8x1xf32>
    %99 = vector.broadcast %98 : vector<2x8x1xf32> to vector<2x8x8xf32>
    %100 = arith.subf %96, %99 : vector<2x8x8xf32>
    %101 = math.exp %100 : vector<2x8x8xf32>
    %cst_59 = arith.constant dense<0.000000e+00> : vector<2x8xf32>
    %102 = vector.multi_reduction <add>, %101, %cst_59 [2] : vector<2x8x8xf32> to vector<2x8xf32>
    %103 = vector.shape_cast %102 : vector<2x8xf32> to vector<2x8x1xf32>
    %104 = tpu.reciprocal %103 {approx = true} : vector<2x8x1xf32> -> vector<2x8x1xf32>
    %105 = vector.broadcast %104 : vector<2x8x1xf32> to vector<2x8x8xf32>
    %106 = arith.mulf %101, %105 : vector<2x8x8xf32>
    "tpu.trace_start"() <{level = 10 : i32, message = "bqk,bkd->bqd"}> : () -> ()
    %cst_60 = arith.constant dense<0.000000e+00> : vector<2x8x16xf32>
    %107 = tpu.matmul %106, %92, %cst_60 {dimension_numbers = #tpu.dot_dimension_numbers<[2], [1], [1], [2], [0, 0, 0, 1, 1, 2], [0], [0]>} : vector<2x8x8xf32>, vector<2x8x16xf32>, vector<2x8x16xf32> -> vector<2x8x16xf32>
    "tpu.trace_stop"() : () -> ()
    %108 = vector.extract_strided_slice %51 {offsets = [0, 0, 48], sizes = [2, 8, 16], strides = [1, 1, 1]} : vector<2x8x64xf32> to vector<2x8x16xf32>
    %109 = vector.extract_strided_slice %52 {offsets = [0, 0, 48], sizes = [2, 8, 16], strides = [1, 1, 1]} : vector<2x8x64xf32> to vector<2x8x16xf32>
    %110 = vector.extract_strided_slice %53 {offsets = [0, 0, 48], sizes = [2, 8, 16], strides = [1, 1, 1]} : vector<2x8x64xf32> to vector<2x8x16xf32>
    "tpu.trace_start"() <{level = 10 : i32, message = "bqd,bkd->bqk"}> : () -> ()
    %cst_61 = arith.constant dense<0.000000e+00> : vector<2x8x8xf32>
    %111 = tpu.matmul %108, %109, %cst_61 {dimension_numbers = #tpu.dot_dimension_numbers<[2], [2], [1], [1], [0, 0, 0, 1, 1, 1], [0], [0]>} : vector<2x8x16xf32>, vector<2x8x16xf32>, vector<2x8x8xf32> -> vector<2x8x8xf32>
    "tpu.trace_stop"() : () -> ()
    %cst_62 = arith.constant 2.500000e-01 : f32
    %112 = vector.broadcast %cst_62 : f32 to vector<2x8x8xf32>
    %113 = arith.mulf %111, %112 : vector<2x8x8xf32>
    %114 = arith.addf %113, %1 : vector<2x8x8xf32>
    %cst_63 = arith.constant dense<0xFF800000> : vector<2x8xf32>
    %115 = vector.multi_reduction <maximumf>, %114, %cst_63 [2] : vector<2x8x8xf32> to vector<2x8xf32>
    %116 = vector.shape_cast %115 : vector<2x8xf32> to vector<2x8x1xf32>
    %117 = vector.broadcast %116 : vector<2x8x1xf32> to vector<2x8x8xf32>
    %118 = arith.subf %114, %117 : vector<2x8x8xf32>
    %119 = math.exp %118 : vector<2x8x8xf32>
    %cst_64 = arith.constant dense<0.000000e+00> : vector<2x8xf32>
    %120 = vector.multi_reduction <add>, %119, %cst_64 [2] : vector<2x8x8xf32> to vector<2x8xf32>
    %121 = vector.shape_cast %120 : vector<2x8xf32> to vector<2x8x1xf32>
    %122 = tpu.reciprocal %121 {approx = true} : vector<2x8x1xf32> -> vector<2x8x1xf32>
    %123 = vector.broadcast %122 : vector<2x8x1xf32> to vector<2x8x8xf32>
    %124 = arith.mulf %119, %123 : vector<2x8x8xf32>
    "tpu.trace_start"() <{level = 10 : i32, message = "bqk,bkd->bqd"}> : () -> ()
    %cst_65 = arith.constant dense<0.000000e+00> : vector<2x8x16xf32>
    %125 = tpu.matmul %124, %110, %cst_65 {dimension_numbers = #tpu.dot_dimension_numbers<[2], [1], [1], [2], [0, 0, 0, 1, 1, 2], [0], [0]>} : vector<2x8x8xf32>, vector<2x8x16xf32>, vector<2x8x16xf32> -> vector<2x8x16xf32>
    "tpu.trace_stop"() : () -> ()
    %126 = tpu.concatenate %71, %89, %107, %125 in 2 : vector<2x8x16xf32>, vector<2x8x16xf32>, vector<2x8x16xf32>, vector<2x8x16xf32> -> vector<2x8x64xf32>
    %127 = vector.shape_cast %126 : vector<2x8x64xf32> to vector<16x64xf32>
    %cst_66 = arith.constant dense<0.000000e+00> : vector<16x64xf32>
    %128 = tpu.matmul %127, %11, %cst_66 {dimension_numbers = #tpu.dot_dimension_numbers<[1], [0], [0], [1], [0, 0, 1, 1], [], []>} : vector<16x64xf32>, vector<64x64xf32>, vector<16x64xf32> -> vector<16x64xf32>
    %129 = vector.broadcast %13 : vector<1x64xf32> to vector<16x64xf32>
    %130 = arith.addf %128, %129 : vector<16x64xf32>
    %131 = vector.shape_cast %130 : vector<16x64xf32> to vector<2x8x64xf32>
    %132 = arith.addf %0, %131 : vector<2x8x64xf32>
    %133 = vector.shape_cast %132 : vector<2x8x64xf32> to vector<16x64xf32>
    %cst_67 = arith.constant dense<0.000000e+00> : vector<16xf32>
    %134 = vector.multi_reduction <add>, %133, %cst_67 [1] : vector<16x64xf32> to vector<16xf32>
    %135 = vector.shape_cast %134 : vector<16xf32> to vector<16x1xf32>
    %cst_68 = arith.constant 6.400000e+01 : f32
    %136 = vector.broadcast %cst_68 : f32 to vector<16x1xf32>
    %137 = arith.divf %135, %136 : vector<16x1xf32>
    %138 = vector.broadcast %137 : vector<16x1xf32> to vector<16x64xf32>
    %139 = arith.subf %133, %138 : vector<16x64xf32>
    %140 = arith.mulf %139, %139 : vector<16x64xf32>
    %cst_69 = arith.constant dense<0.000000e+00> : vector<16xf32>
    %141 = vector.multi_reduction <add>, %140, %cst_69 [1] : vector<16x64xf32> to vector<16xf32>
    %142 = vector.shape_cast %141 : vector<16xf32> to vector<16x1xf32>
    %cst_70 = arith.constant 6.400000e+01 : f32
    %143 = vector.broadcast %cst_70 : f32 to vector<16x1xf32>
    %144 = arith.divf %142, %143 : vector<16x1xf32>
    %cst_71 = arith.constant 9.99999974E-6 : f32
    %145 = vector.broadcast %cst_71 : f32 to vector<16x1xf32>
    %146 = arith.addf %144, %145 : vector<16x1xf32>
    %147 = math.rsqrt %146 : vector<16x1xf32>
    %148 = vector.broadcast %147 : vector<16x1xf32> to vector<16x64xf32>
    %149 = arith.mulf %139, %148 : vector<16x64xf32>
    %150 = vector.broadcast %15 : vector<1x64xf32> to vector<16x64xf32>
    %151 = arith.mulf %149, %150 : vector<16x64xf32>
    %152 = vector.broadcast %17 : vector<1x64xf32> to vector<16x64xf32>
    %153 = arith.addf %151, %152 : vector<16x64xf32>
    %cst_72 = arith.constant dense<0.000000e+00> : vector<16x256xf32>
    %154 = tpu.matmul %153, %19, %cst_72 {dimension_numbers = #tpu.dot_dimension_numbers<[1], [0], [0], [1], [0, 0, 1, 1], [], []>} : vector<16x64xf32>, vector<64x256xf32>, vector<16x256xf32> -> vector<16x256xf32>
    %155 = vector.broadcast %21 : vector<1x256xf32> to vector<16x256xf32>
    %156 = arith.addf %154, %155 : vector<16x256xf32>
    %cst_73 = arith.constant 1.702000e+00 : f32
    %157 = vector.broadcast %cst_73 : f32 to vector<16x256xf32>
    %158 = arith.mulf %157, %156 : vector<16x256xf32>
    %159 = arith.negf %158 : vector<16x256xf32>
    %160 = math.exp %159 : vector<16x256xf32>
    %cst_74 = arith.constant 1.000000e+00 : f32
    %161 = vector.broadcast %cst_74 : f32 to vector<16x256xf32>
    %162 = arith.addf %161, %160 : vector<16x256xf32>
    %163 = arith.divf %161, %162 : vector<16x256xf32>
    %164 = arith.mulf %156, %163 : vector<16x256xf32>
    %cst_75 = arith.constant dense<0.000000e+00> : vector<16x64xf32>
    %165 = tpu.matmul %164, %23, %cst_75 {dimension_numbers = #tpu.dot_dimension_numbers<[1], [0], [0], [1], [0, 0, 1, 1], [], []>} : vector<16x256xf32>, vector<256x64xf32>, vector<16x64xf32> -> vector<16x64xf32>
    %166 = vector.broadcast %25 : vector<1x64xf32> to vector<16x64xf32>
    %167 = arith.addf %165, %166 : vector<16x64xf32>
    %168 = vector.shape_cast %167 : vector<16x64xf32> to vector<2x8x64xf32>
    %169 = arith.addf %132, %168 : vector<2x8x64xf32>
    %c1 = arith.constant 1 : index
    %c0_76 = arith.constant 0 : index
    %c0_77 = arith.constant 0 : index
    %170 = vector.load %arg3[%c1, %c0_76, %c0_77] : memref<2x1x64xf32, #tpu.memory_space<vmem>>, vector<1x1x64xf32>
    %171 = vector.shape_cast %170 : vector<1x1x64xf32> to vector<1x64xf32>
    %c1_78 = arith.constant 1 : index
    %c0_79 = arith.constant 0 : index
    %c0_80 = arith.constant 0 : index
    %172 = vector.load %arg4[%c1_78, %c0_79, %c0_80] : memref<2x1x64xf32, #tpu.memory_space<vmem>>, vector<1x1x64xf32>
    %173 = vector.shape_cast %172 : vector<1x1x64xf32> to vector<1x64xf32>
    %c1_81 = arith.constant 1 : index
    %c0_82 = arith.constant 0 : index
    %c0_83 = arith.constant 0 : index
    %174 = vector.load %arg5[%c1_81, %c0_82, %c0_83] : memref<2x64x192xf32, #tpu.memory_space<vmem>>, vector<1x64x192xf32>
    %175 = vector.shape_cast %174 : vector<1x64x192xf32> to vector<64x192xf32>
    %c1_84 = arith.constant 1 : index
    %c0_85 = arith.constant 0 : index
    %c0_86 = arith.constant 0 : index
    %176 = vector.load %arg6[%c1_84, %c0_85, %c0_86] : memref<2x1x192xf32, #tpu.memory_space<vmem>>, vector<1x1x192xf32>
    %177 = vector.shape_cast %176 : vector<1x1x192xf32> to vector<1x192xf32>
    %c1_87 = arith.constant 1 : index
    %c0_88 = arith.constant 0 : index
    %c0_89 = arith.constant 0 : index
    %178 = vector.load %arg7[%c1_87, %c0_88, %c0_89] : memref<2x64x64xf32, #tpu.memory_space<vmem>>, vector<1x64x64xf32>
    %179 = vector.shape_cast %178 : vector<1x64x64xf32> to vector<64x64xf32>
    %c1_90 = arith.constant 1 : index
    %c0_91 = arith.constant 0 : index
    %c0_92 = arith.constant 0 : index
    %180 = vector.load %arg8[%c1_90, %c0_91, %c0_92] : memref<2x1x64xf32, #tpu.memory_space<vmem>>, vector<1x1x64xf32>
    %181 = vector.shape_cast %180 : vector<1x1x64xf32> to vector<1x64xf32>
    %c1_93 = arith.constant 1 : index
    %c0_94 = arith.constant 0 : index
    %c0_95 = arith.constant 0 : index
    %182 = vector.load %arg9[%c1_93, %c0_94, %c0_95] : memref<2x1x64xf32, #tpu.memory_space<vmem>>, vector<1x1x64xf32>
    %183 = vector.shape_cast %182 : vector<1x1x64xf32> to vector<1x64xf32>
    %c1_96 = arith.constant 1 : index
    %c0_97 = arith.constant 0 : index
    %c0_98 = arith.constant 0 : index
    %184 = vector.load %arg10[%c1_96, %c0_97, %c0_98] : memref<2x1x64xf32, #tpu.memory_space<vmem>>, vector<1x1x64xf32>
    %185 = vector.shape_cast %184 : vector<1x1x64xf32> to vector<1x64xf32>
    %c1_99 = arith.constant 1 : index
    %c0_100 = arith.constant 0 : index
    %c0_101 = arith.constant 0 : index
    %186 = vector.load %arg11[%c1_99, %c0_100, %c0_101] : memref<2x64x256xf32, #tpu.memory_space<vmem>>, vector<1x64x256xf32>
    %187 = vector.shape_cast %186 : vector<1x64x256xf32> to vector<64x256xf32>
    %c1_102 = arith.constant 1 : index
    %c0_103 = arith.constant 0 : index
    %c0_104 = arith.constant 0 : index
    %188 = vector.load %arg12[%c1_102, %c0_103, %c0_104] : memref<2x1x256xf32, #tpu.memory_space<vmem>>, vector<1x1x256xf32>
    %189 = vector.shape_cast %188 : vector<1x1x256xf32> to vector<1x256xf32>
    %c1_105 = arith.constant 1 : index
    %c0_106 = arith.constant 0 : index
    %c0_107 = arith.constant 0 : index
    %190 = vector.load %arg13[%c1_105, %c0_106, %c0_107] : memref<2x256x64xf32, #tpu.memory_space<vmem>>, vector<1x256x64xf32>
    %191 = vector.shape_cast %190 : vector<1x256x64xf32> to vector<256x64xf32>
    %c1_108 = arith.constant 1 : index
    %c0_109 = arith.constant 0 : index
    %c0_110 = arith.constant 0 : index
    %192 = vector.load %arg14[%c1_108, %c0_109, %c0_110] : memref<2x1x64xf32, #tpu.memory_space<vmem>>, vector<1x1x64xf32>
    %193 = vector.shape_cast %192 : vector<1x1x64xf32> to vector<1x64xf32>
    %194 = vector.shape_cast %169 : vector<2x8x64xf32> to vector<16x64xf32>
    %cst_111 = arith.constant dense<0.000000e+00> : vector<16xf32>
    %195 = vector.multi_reduction <add>, %194, %cst_111 [1] : vector<16x64xf32> to vector<16xf32>
    %196 = vector.shape_cast %195 : vector<16xf32> to vector<16x1xf32>
    %cst_112 = arith.constant 6.400000e+01 : f32
    %197 = vector.broadcast %cst_112 : f32 to vector<16x1xf32>
    %198 = arith.divf %196, %197 : vector<16x1xf32>
    %199 = vector.broadcast %198 : vector<16x1xf32> to vector<16x64xf32>
    %200 = arith.subf %194, %199 : vector<16x64xf32>
    %201 = arith.mulf %200, %200 : vector<16x64xf32>
    %cst_113 = arith.constant dense<0.000000e+00> : vector<16xf32>
    %202 = vector.multi_reduction <add>, %201, %cst_113 [1] : vector<16x64xf32> to vector<16xf32>
    %203 = vector.shape_cast %202 : vector<16xf32> to vector<16x1xf32>
    %cst_114 = arith.constant 6.400000e+01 : f32
    %204 = vector.broadcast %cst_114 : f32 to vector<16x1xf32>
    %205 = arith.divf %203, %204 : vector<16x1xf32>
    %cst_115 = arith.constant 9.99999974E-6 : f32
    %206 = vector.broadcast %cst_115 : f32 to vector<16x1xf32>
    %207 = arith.addf %205, %206 : vector<16x1xf32>
    %208 = math.rsqrt %207 : vector<16x1xf32>
    %209 = vector.broadcast %208 : vector<16x1xf32> to vector<16x64xf32>
    %210 = arith.mulf %200, %209 : vector<16x64xf32>
    %211 = vector.broadcast %171 : vector<1x64xf32> to vector<16x64xf32>
    %212 = arith.mulf %210, %211 : vector<16x64xf32>
    %213 = vector.broadcast %173 : vector<1x64xf32> to vector<16x64xf32>
    %214 = arith.addf %212, %213 : vector<16x64xf32>
    %cst_116 = arith.constant dense<0.000000e+00> : vector<16x192xf32>
    %215 = tpu.matmul %214, %175, %cst_116 {dimension_numbers = #tpu.dot_dimension_numbers<[1], [0], [0], [1], [0, 0, 1, 1], [], []>} : vector<16x64xf32>, vector<64x192xf32>, vector<16x192xf32> -> vector<16x192xf32>
    %216 = vector.broadcast %177 : vector<1x192xf32> to vector<16x192xf32>
    %217 = arith.addf %215, %216 : vector<16x192xf32>
    %218 = vector.shape_cast %217 : vector<16x192xf32> to vector<2x8x192xf32>
    %219 = vector.extract_strided_slice %218 {offsets = [0, 0, 0], sizes = [2, 8, 64], strides = [1, 1, 1]} : vector<2x8x192xf32> to vector<2x8x64xf32>
    %220 = vector.extract_strided_slice %218 {offsets = [0, 0, 64], sizes = [2, 8, 64], strides = [1, 1, 1]} : vector<2x8x192xf32> to vector<2x8x64xf32>
    %221 = vector.extract_strided_slice %218 {offsets = [0, 0, 128], sizes = [2, 8, 64], strides = [1, 1, 1]} : vector<2x8x192xf32> to vector<2x8x64xf32>
    %222 = vector.extract_strided_slice %219 {offsets = [0, 0, 0], sizes = [2, 8, 16], strides = [1, 1, 1]} : vector<2x8x64xf32> to vector<2x8x16xf32>
    %223 = vector.extract_strided_slice %220 {offsets = [0, 0, 0], sizes = [2, 8, 16], strides = [1, 1, 1]} : vector<2x8x64xf32> to vector<2x8x16xf32>
    %224 = vector.extract_strided_slice %221 {offsets = [0, 0, 0], sizes = [2, 8, 16], strides = [1, 1, 1]} : vector<2x8x64xf32> to vector<2x8x16xf32>
    "tpu.trace_start"() <{level = 10 : i32, message = "bqd,bkd->bqk"}> : () -> ()
    %cst_117 = arith.constant dense<0.000000e+00> : vector<2x8x8xf32>
    %225 = tpu.matmul %222, %223, %cst_117 {dimension_numbers = #tpu.dot_dimension_numbers<[2], [2], [1], [1], [0, 0, 0, 1, 1, 1], [0], [0]>} : vector<2x8x16xf32>, vector<2x8x16xf32>, vector<2x8x8xf32> -> vector<2x8x8xf32>
    "tpu.trace_stop"() : () -> ()
    %cst_118 = arith.constant 2.500000e-01 : f32
    %226 = vector.broadcast %cst_118 : f32 to vector<2x8x8xf32>
    %227 = arith.mulf %225, %226 : vector<2x8x8xf32>
    %228 = arith.addf %227, %1 : vector<2x8x8xf32>
    %cst_119 = arith.constant dense<0xFF800000> : vector<2x8xf32>
    %229 = vector.multi_reduction <maximumf>, %228, %cst_119 [2] : vector<2x8x8xf32> to vector<2x8xf32>
    %230 = vector.shape_cast %229 : vector<2x8xf32> to vector<2x8x1xf32>
    %231 = vector.broadcast %230 : vector<2x8x1xf32> to vector<2x8x8xf32>
    %232 = arith.subf %228, %231 : vector<2x8x8xf32>
    %233 = math.exp %232 : vector<2x8x8xf32>
    %cst_120 = arith.constant dense<0.000000e+00> : vector<2x8xf32>
    %234 = vector.multi_reduction <add>, %233, %cst_120 [2] : vector<2x8x8xf32> to vector<2x8xf32>
    %235 = vector.shape_cast %234 : vector<2x8xf32> to vector<2x8x1xf32>
    %236 = tpu.reciprocal %235 {approx = true} : vector<2x8x1xf32> -> vector<2x8x1xf32>
    %237 = vector.broadcast %236 : vector<2x8x1xf32> to vector<2x8x8xf32>
    %238 = arith.mulf %233, %237 : vector<2x8x8xf32>
    "tpu.trace_start"() <{level = 10 : i32, message = "bqk,bkd->bqd"}> : () -> ()
    %cst_121 = arith.constant dense<0.000000e+00> : vector<2x8x16xf32>
    %239 = tpu.matmul %238, %224, %cst_121 {dimension_numbers = #tpu.dot_dimension_numbers<[2], [1], [1], [2], [0, 0, 0, 1, 1, 2], [0], [0]>} : vector<2x8x8xf32>, vector<2x8x16xf32>, vector<2x8x16xf32> -> vector<2x8x16xf32>
    "tpu.trace_stop"() : () -> ()
    %240 = vector.extract_strided_slice %219 {offsets = [0, 0, 16], sizes = [2, 8, 16], strides = [1, 1, 1]} : vector<2x8x64xf32> to vector<2x8x16xf32>
    %241 = vector.extract_strided_slice %220 {offsets = [0, 0, 16], sizes = [2, 8, 16], strides = [1, 1, 1]} : vector<2x8x64xf32> to vector<2x8x16xf32>
    %242 = vector.extract_strided_slice %221 {offsets = [0, 0, 16], sizes = [2, 8, 16], strides = [1, 1, 1]} : vector<2x8x64xf32> to vector<2x8x16xf32>
    "tpu.trace_start"() <{level = 10 : i32, message = "bqd,bkd->bqk"}> : () -> ()
    %cst_122 = arith.constant dense<0.000000e+00> : vector<2x8x8xf32>
    %243 = tpu.matmul %240, %241, %cst_122 {dimension_numbers = #tpu.dot_dimension_numbers<[2], [2], [1], [1], [0, 0, 0, 1, 1, 1], [0], [0]>} : vector<2x8x16xf32>, vector<2x8x16xf32>, vector<2x8x8xf32> -> vector<2x8x8xf32>
    "tpu.trace_stop"() : () -> ()
    %cst_123 = arith.constant 2.500000e-01 : f32
    %244 = vector.broadcast %cst_123 : f32 to vector<2x8x8xf32>
    %245 = arith.mulf %243, %244 : vector<2x8x8xf32>
    %246 = arith.addf %245, %1 : vector<2x8x8xf32>
    %cst_124 = arith.constant dense<0xFF800000> : vector<2x8xf32>
    %247 = vector.multi_reduction <maximumf>, %246, %cst_124 [2] : vector<2x8x8xf32> to vector<2x8xf32>
    %248 = vector.shape_cast %247 : vector<2x8xf32> to vector<2x8x1xf32>
    %249 = vector.broadcast %248 : vector<2x8x1xf32> to vector<2x8x8xf32>
    %250 = arith.subf %246, %249 : vector<2x8x8xf32>
    %251 = math.exp %250 : vector<2x8x8xf32>
    %cst_125 = arith.constant dense<0.000000e+00> : vector<2x8xf32>
    %252 = vector.multi_reduction <add>, %251, %cst_125 [2] : vector<2x8x8xf32> to vector<2x8xf32>
    %253 = vector.shape_cast %252 : vector<2x8xf32> to vector<2x8x1xf32>
    %254 = tpu.reciprocal %253 {approx = true} : vector<2x8x1xf32> -> vector<2x8x1xf32>
    %255 = vector.broadcast %254 : vector<2x8x1xf32> to vector<2x8x8xf32>
    %256 = arith.mulf %251, %255 : vector<2x8x8xf32>
    "tpu.trace_start"() <{level = 10 : i32, message = "bqk,bkd->bqd"}> : () -> ()
    %cst_126 = arith.constant dense<0.000000e+00> : vector<2x8x16xf32>
    %257 = tpu.matmul %256, %242, %cst_126 {dimension_numbers = #tpu.dot_dimension_numbers<[2], [1], [1], [2], [0, 0, 0, 1, 1, 2], [0], [0]>} : vector<2x8x8xf32>, vector<2x8x16xf32>, vector<2x8x16xf32> -> vector<2x8x16xf32>
    "tpu.trace_stop"() : () -> ()
    %258 = vector.extract_strided_slice %219 {offsets = [0, 0, 32], sizes = [2, 8, 16], strides = [1, 1, 1]} : vector<2x8x64xf32> to vector<2x8x16xf32>
    %259 = vector.extract_strided_slice %220 {offsets = [0, 0, 32], sizes = [2, 8, 16], strides = [1, 1, 1]} : vector<2x8x64xf32> to vector<2x8x16xf32>
    %260 = vector.extract_strided_slice %221 {offsets = [0, 0, 32], sizes = [2, 8, 16], strides = [1, 1, 1]} : vector<2x8x64xf32> to vector<2x8x16xf32>
    "tpu.trace_start"() <{level = 10 : i32, message = "bqd,bkd->bqk"}> : () -> ()
    %cst_127 = arith.constant dense<0.000000e+00> : vector<2x8x8xf32>
    %261 = tpu.matmul %258, %259, %cst_127 {dimension_numbers = #tpu.dot_dimension_numbers<[2], [2], [1], [1], [0, 0, 0, 1, 1, 1], [0], [0]>} : vector<2x8x16xf32>, vector<2x8x16xf32>, vector<2x8x8xf32> -> vector<2x8x8xf32>
    "tpu.trace_stop"() : () -> ()
    %cst_128 = arith.constant 2.500000e-01 : f32
    %262 = vector.broadcast %cst_128 : f32 to vector<2x8x8xf32>
    %263 = arith.mulf %261, %262 : vector<2x8x8xf32>
    %264 = arith.addf %263, %1 : vector<2x8x8xf32>
    %cst_129 = arith.constant dense<0xFF800000> : vector<2x8xf32>
    %265 = vector.multi_reduction <maximumf>, %264, %cst_129 [2] : vector<2x8x8xf32> to vector<2x8xf32>
    %266 = vector.shape_cast %265 : vector<2x8xf32> to vector<2x8x1xf32>
    %267 = vector.broadcast %266 : vector<2x8x1xf32> to vector<2x8x8xf32>
    %268 = arith.subf %264, %267 : vector<2x8x8xf32>
    %269 = math.exp %268 : vector<2x8x8xf32>
    %cst_130 = arith.constant dense<0.000000e+00> : vector<2x8xf32>
    %270 = vector.multi_reduction <add>, %269, %cst_130 [2] : vector<2x8x8xf32> to vector<2x8xf32>
    %271 = vector.shape_cast %270 : vector<2x8xf32> to vector<2x8x1xf32>
    %272 = tpu.reciprocal %271 {approx = true} : vector<2x8x1xf32> -> vector<2x8x1xf32>
    %273 = vector.broadcast %272 : vector<2x8x1xf32> to vector<2x8x8xf32>
    %274 = arith.mulf %269, %273 : vector<2x8x8xf32>
    "tpu.trace_start"() <{level = 10 : i32, message = "bqk,bkd->bqd"}> : () -> ()
    %cst_131 = arith.constant dense<0.000000e+00> : vector<2x8x16xf32>
    %275 = tpu.matmul %274, %260, %cst_131 {dimension_numbers = #tpu.dot_dimension_numbers<[2], [1], [1], [2], [0, 0, 0, 1, 1, 2], [0], [0]>} : vector<2x8x8xf32>, vector<2x8x16xf32>, vector<2x8x16xf32> -> vector<2x8x16xf32>
    "tpu.trace_stop"() : () -> ()
    %276 = vector.extract_strided_slice %219 {offsets = [0, 0, 48], sizes = [2, 8, 16], strides = [1, 1, 1]} : vector<2x8x64xf32> to vector<2x8x16xf32>
    %277 = vector.extract_strided_slice %220 {offsets = [0, 0, 48], sizes = [2, 8, 16], strides = [1, 1, 1]} : vector<2x8x64xf32> to vector<2x8x16xf32>
    %278 = vector.extract_strided_slice %221 {offsets = [0, 0, 48], sizes = [2, 8, 16], strides = [1, 1, 1]} : vector<2x8x64xf32> to vector<2x8x16xf32>
    "tpu.trace_start"() <{level = 10 : i32, message = "bqd,bkd->bqk"}> : () -> ()
    %cst_132 = arith.constant dense<0.000000e+00> : vector<2x8x8xf32>
    %279 = tpu.matmul %276, %277, %cst_132 {dimension_numbers = #tpu.dot_dimension_numbers<[2], [2], [1], [1], [0, 0, 0, 1, 1, 1], [0], [0]>} : vector<2x8x16xf32>, vector<2x8x16xf32>, vector<2x8x8xf32> -> vector<2x8x8xf32>
    "tpu.trace_stop"() : () -> ()
    %cst_133 = arith.constant 2.500000e-01 : f32
    %280 = vector.broadcast %cst_133 : f32 to vector<2x8x8xf32>
    %281 = arith.mulf %279, %280 : vector<2x8x8xf32>
    %282 = arith.addf %281, %1 : vector<2x8x8xf32>
    %cst_134 = arith.constant dense<0xFF800000> : vector<2x8xf32>
    %283 = vector.multi_reduction <maximumf>, %282, %cst_134 [2] : vector<2x8x8xf32> to vector<2x8xf32>
    %284 = vector.shape_cast %283 : vector<2x8xf32> to vector<2x8x1xf32>
    %285 = vector.broadcast %284 : vector<2x8x1xf32> to vector<2x8x8xf32>
    %286 = arith.subf %282, %285 : vector<2x8x8xf32>
    %287 = math.exp %286 : vector<2x8x8xf32>
    %cst_135 = arith.constant dense<0.000000e+00> : vector<2x8xf32>
    %288 = vector.multi_reduction <add>, %287, %cst_135 [2] : vector<2x8x8xf32> to vector<2x8xf32>
    %289 = vector.shape_cast %288 : vector<2x8xf32> to vector<2x8x1xf32>
    %290 = tpu.reciprocal %289 {approx = true} : vector<2x8x1xf32> -> vector<2x8x1xf32>
    %291 = vector.broadcast %290 : vector<2x8x1xf32> to vector<2x8x8xf32>
    %292 = arith.mulf %287, %291 : vector<2x8x8xf32>
    "tpu.trace_start"() <{level = 10 : i32, message = "bqk,bkd->bqd"}> : () -> ()
    %cst_136 = arith.constant dense<0.000000e+00> : vector<2x8x16xf32>
    %293 = tpu.matmul %292, %278, %cst_136 {dimension_numbers = #tpu.dot_dimension_numbers<[2], [1], [1], [2], [0, 0, 0, 1, 1, 2], [0], [0]>} : vector<2x8x8xf32>, vector<2x8x16xf32>, vector<2x8x16xf32> -> vector<2x8x16xf32>
    "tpu.trace_stop"() : () -> ()
    %294 = tpu.concatenate %239, %257, %275, %293 in 2 : vector<2x8x16xf32>, vector<2x8x16xf32>, vector<2x8x16xf32>, vector<2x8x16xf32> -> vector<2x8x64xf32>
    %295 = vector.shape_cast %294 : vector<2x8x64xf32> to vector<16x64xf32>
    %cst_137 = arith.constant dense<0.000000e+00> : vector<16x64xf32>
    %296 = tpu.matmul %295, %179, %cst_137 {dimension_numbers = #tpu.dot_dimension_numbers<[1], [0], [0], [1], [0, 0, 1, 1], [], []>} : vector<16x64xf32>, vector<64x64xf32>, vector<16x64xf32> -> vector<16x64xf32>
    %297 = vector.broadcast %181 : vector<1x64xf32> to vector<16x64xf32>
    %298 = arith.addf %296, %297 : vector<16x64xf32>
    %299 = vector.shape_cast %298 : vector<16x64xf32> to vector<2x8x64xf32>
    %300 = arith.addf %169, %299 : vector<2x8x64xf32>
    %301 = vector.shape_cast %300 : vector<2x8x64xf32> to vector<16x64xf32>
    %cst_138 = arith.constant dense<0.000000e+00> : vector<16xf32>
    %302 = vector.multi_reduction <add>, %301, %cst_138 [1] : vector<16x64xf32> to vector<16xf32>
    %303 = vector.shape_cast %302 : vector<16xf32> to vector<16x1xf32>
    %cst_139 = arith.constant 6.400000e+01 : f32
    %304 = vector.broadcast %cst_139 : f32 to vector<16x1xf32>
    %305 = arith.divf %303, %304 : vector<16x1xf32>
    %306 = vector.broadcast %305 : vector<16x1xf32> to vector<16x64xf32>
    %307 = arith.subf %301, %306 : vector<16x64xf32>
    %308 = arith.mulf %307, %307 : vector<16x64xf32>
    %cst_140 = arith.constant dense<0.000000e+00> : vector<16xf32>
    %309 = vector.multi_reduction <add>, %308, %cst_140 [1] : vector<16x64xf32> to vector<16xf32>
    %310 = vector.shape_cast %309 : vector<16xf32> to vector<16x1xf32>
    %cst_141 = arith.constant 6.400000e+01 : f32
    %311 = vector.broadcast %cst_141 : f32 to vector<16x1xf32>
    %312 = arith.divf %310, %311 : vector<16x1xf32>
    %cst_142 = arith.constant 9.99999974E-6 : f32
    %313 = vector.broadcast %cst_142 : f32 to vector<16x1xf32>
    %314 = arith.addf %312, %313 : vector<16x1xf32>
    %315 = math.rsqrt %314 : vector<16x1xf32>
    %316 = vector.broadcast %315 : vector<16x1xf32> to vector<16x64xf32>
    %317 = arith.mulf %307, %316 : vector<16x64xf32>
    %318 = vector.broadcast %183 : vector<1x64xf32> to vector<16x64xf32>
    %319 = arith.mulf %317, %318 : vector<16x64xf32>
    %320 = vector.broadcast %185 : vector<1x64xf32> to vector<16x64xf32>
    %321 = arith.addf %319, %320 : vector<16x64xf32>
    %cst_143 = arith.constant dense<0.000000e+00> : vector<16x256xf32>
    %322 = tpu.matmul %321, %187, %cst_143 {dimension_numbers = #tpu.dot_dimension_numbers<[1], [0], [0], [1], [0, 0, 1, 1], [], []>} : vector<16x64xf32>, vector<64x256xf32>, vector<16x256xf32> -> vector<16x256xf32>
    %323 = vector.broadcast %189 : vector<1x256xf32> to vector<16x256xf32>
    %324 = arith.addf %322, %323 : vector<16x256xf32>
    %cst_144 = arith.constant 1.702000e+00 : f32
    %325 = vector.broadcast %cst_144 : f32 to vector<16x256xf32>
    %326 = arith.mulf %325, %324 : vector<16x256xf32>
    %327 = arith.negf %326 : vector<16x256xf32>
    %328 = math.exp %327 : vector<16x256xf32>
    %cst_145 = arith.constant 1.000000e+00 : f32
    %329 = vector.broadcast %cst_145 : f32 to vector<16x256xf32>
    %330 = arith.addf %329, %328 : vector<16x256xf32>
    %331 = arith.divf %329, %330 : vector<16x256xf32>
    %332 = arith.mulf %324, %331 : vector<16x256xf32>
    %cst_146 = arith.constant dense<0.000000e+00> : vector<16x64xf32>
    %333 = tpu.matmul %332, %191, %cst_146 {dimension_numbers = #tpu.dot_dimension_numbers<[1], [0], [0], [1], [0, 0, 1, 1], [], []>} : vector<16x256xf32>, vector<256x64xf32>, vector<16x64xf32> -> vector<16x64xf32>
    %334 = vector.broadcast %193 : vector<1x64xf32> to vector<16x64xf32>
    %335 = arith.addf %333, %334 : vector<16x64xf32>
    %336 = vector.shape_cast %335 : vector<16x64xf32> to vector<2x8x64xf32>
    %337 = arith.addf %300, %336 : vector<2x8x64xf32>
    %338 = vector.shape_cast %337 : vector<2x8x64xf32> to vector<16x64xf32>
    %c0_147 = arith.constant 0 : index
    %c0_148 = arith.constant 0 : index
    %339 = vector.load %arg15[%c0_147, %c0_148] : memref<1x64xf32, #tpu.memory_space<vmem>>, vector<1x64xf32>
    %c0_149 = arith.constant 0 : index
    %c0_150 = arith.constant 0 : index
    %340 = vector.load %arg16[%c0_149, %c0_150] : memref<1x64xf32, #tpu.memory_space<vmem>>, vector<1x64xf32>
    %cst_151 = arith.constant dense<0.000000e+00> : vector<16xf32>
    %341 = vector.multi_reduction <add>, %338, %cst_151 [1] : vector<16x64xf32> to vector<16xf32>
    %342 = vector.shape_cast %341 : vector<16xf32> to vector<16x1xf32>
    %cst_152 = arith.constant 6.400000e+01 : f32
    %343 = vector.broadcast %cst_152 : f32 to vector<16x1xf32>
    %344 = arith.divf %342, %343 : vector<16x1xf32>
    %345 = vector.broadcast %344 : vector<16x1xf32> to vector<16x64xf32>
    %346 = arith.subf %338, %345 : vector<16x64xf32>
    %347 = arith.mulf %346, %346 : vector<16x64xf32>
    %cst_153 = arith.constant dense<0.000000e+00> : vector<16xf32>
    %348 = vector.multi_reduction <add>, %347, %cst_153 [1] : vector<16x64xf32> to vector<16xf32>
    %349 = vector.shape_cast %348 : vector<16xf32> to vector<16x1xf32>
    %cst_154 = arith.constant 6.400000e+01 : f32
    %350 = vector.broadcast %cst_154 : f32 to vector<16x1xf32>
    %351 = arith.divf %349, %350 : vector<16x1xf32>
    %cst_155 = arith.constant 9.99999974E-6 : f32
    %352 = vector.broadcast %cst_155 : f32 to vector<16x1xf32>
    %353 = arith.addf %351, %352 : vector<16x1xf32>
    %354 = math.rsqrt %353 : vector<16x1xf32>
    %355 = vector.broadcast %354 : vector<16x1xf32> to vector<16x64xf32>
    %356 = arith.mulf %346, %355 : vector<16x64xf32>
    %357 = vector.broadcast %339 : vector<1x64xf32> to vector<16x64xf32>
    %358 = arith.mulf %356, %357 : vector<16x64xf32>
    %359 = vector.broadcast %340 : vector<1x64xf32> to vector<16x64xf32>
    %360 = arith.addf %358, %359 : vector<16x64xf32>
    %c0_156 = arith.constant 0 : index
    %c0_157 = arith.constant 0 : index
    %361 = vector.load %arg2[%c0_156, %c0_157] : memref<2x16xf32, #tpu.memory_space<vmem>>, vector<2x16xf32>
    %cst_158 = arith.constant dense<0.000000e+00> : vector<2x64xf32>
    %362 = tpu.matmul %361, %360, %cst_158 {dimension_numbers = #tpu.dot_dimension_numbers<[1], [0], [0], [1], [0, 0, 1, 1], [], []>} : vector<2x16xf32>, vector<16x64xf32>, vector<2x64xf32> -> vector<2x64xf32>
    %c0_159 = arith.constant 0 : index
    %c0_160 = arith.constant 0 : index
    %363 = vector.load %arg17[%c0_159, %c0_160] : memref<64x32xf32, #tpu.memory_space<vmem>>, vector<64x32xf32>
    %cst_161 = arith.constant dense<0.000000e+00> : vector<2x32xf32>
    %364 = tpu.matmul %362, %363, %cst_161 {dimension_numbers = #tpu.dot_dimension_numbers<[1], [0], [0], [1], [0, 0, 1, 1], [], []>} : vector<2x64xf32>, vector<64x32xf32>, vector<2x32xf32> -> vector<2x32xf32>
    %365 = arith.mulf %364, %364 : vector<2x32xf32>
    %cst_162 = arith.constant dense<0.000000e+00> : vector<2xf32>
    %366 = vector.multi_reduction <add>, %365, %cst_162 [1] : vector<2x32xf32> to vector<2xf32>
    %367 = vector.shape_cast %366 : vector<2xf32> to vector<2x1xf32>
    %cst_163 = arith.constant 9.99999996E-13 : f32
    %368 = vector.broadcast %cst_163 : f32 to vector<2x1xf32>
    %369 = arith.addf %367, %368 : vector<2x1xf32>
    %370 = math.rsqrt %369 : vector<2x1xf32>
    %371 = vector.broadcast %370 : vector<2x1xf32> to vector<2x32xf32>
    %372 = arith.mulf %364, %371 : vector<2x32xf32>
    %c0_164 = arith.constant 0 : index
    %c0_165 = arith.constant 0 : index
    %373 = vector.load %arg18[%c0_164, %c0_165] : memref<2x32xf32, #tpu.memory_space<vmem>>, vector<2x32xf32>
    tpu.vector_store %arg18[%c0_164, %c0_165], %372 {strides = array<i32>} : memref<2x32xf32, #tpu.memory_space<vmem>>, vector<2x32xf32>,
    return
  }
}

module attributes {stable_mosaic.version = 11 : i64} {
  func.func @_vision_tower_kernel(%arg0: memref<10x192xf32, #tpu.memory_space<vmem>>, %arg1: memref<2x5x64xf32, #tpu.memory_space<vmem>>, %arg2: memref<192x64xf32, #tpu.memory_space<vmem>>, %arg3: memref<1x64xf32, #tpu.memory_space<vmem>>, %arg4: memref<1x64xf32, #tpu.memory_space<vmem>>, %arg5: memref<2x1x64xf32, #tpu.memory_space<vmem>>, %arg6: memref<2x1x64xf32, #tpu.memory_space<vmem>>, %arg7: memref<2x64x192xf32, #tpu.memory_space<vmem>>, %arg8: memref<2x1x192xf32, #tpu.memory_space<vmem>>, %arg9: memref<2x64x64xf32, #tpu.memory_space<vmem>>, %arg10: memref<2x1x64xf32, #tpu.memory_space<vmem>>, %arg11: memref<2x1x64xf32, #tpu.memory_space<vmem>>, %arg12: memref<2x1x64xf32, #tpu.memory_space<vmem>>, %arg13: memref<2x64x256xf32, #tpu.memory_space<vmem>>, %arg14: memref<2x1x256xf32, #tpu.memory_space<vmem>>, %arg15: memref<2x256x64xf32, #tpu.memory_space<vmem>>, %arg16: memref<2x1x64xf32, #tpu.memory_space<vmem>>, %arg17: memref<1x64xf32, #tpu.memory_space<vmem>>, %arg18: memref<1x64xf32, #tpu.memory_space<vmem>>, %arg19: memref<64x32xf32, #tpu.memory_space<vmem>>, %arg20: memref<2x32xf32, #tpu.memory_space<vmem>>) attributes {dimension_semantics = [], scalar_prefetch = 0 : i64, scratch_operands = 0 : i64, tpu.core_type = #tpu.core_type<tc>} {
    %c0 = arith.constant 0 : index
    %c0_0 = arith.constant 0 : index
    %0 = vector.load %arg0[%c0, %c0_0] : memref<10x192xf32, #tpu.memory_space<vmem>>, vector<10x192xf32>
    %c0_1 = arith.constant 0 : index
    %c0_2 = arith.constant 0 : index
    %1 = vector.load %arg2[%c0_1, %c0_2] : memref<192x64xf32, #tpu.memory_space<vmem>>, vector<192x64xf32>
    %cst = arith.constant dense<0.000000e+00> : vector<10x64xf32>
    %2 = tpu.matmul %0, %1, %cst {dimension_numbers = #tpu.dot_dimension_numbers<[1], [0], [0], [1], [0, 0, 1, 1], [], []>} : vector<10x192xf32>, vector<192x64xf32>, vector<10x64xf32> -> vector<10x64xf32>
    %3 = vector.shape_cast %2 : vector<10x64xf32> to vector<2x5x64xf32>
    %c0_3 = arith.constant 0 : index
    %c0_4 = arith.constant 0 : index
    %c0_5 = arith.constant 0 : index
    %4 = vector.load %arg1[%c0_3, %c0_4, %c0_5] : memref<2x5x64xf32, #tpu.memory_space<vmem>>, vector<2x5x64xf32>
    %5 = arith.addf %3, %4 : vector<2x5x64xf32>
    %6 = vector.shape_cast %5 : vector<2x5x64xf32> to vector<10x64xf32>
    %c0_6 = arith.constant 0 : index
    %c0_7 = arith.constant 0 : index
    %7 = vector.load %arg3[%c0_6, %c0_7] : memref<1x64xf32, #tpu.memory_space<vmem>>, vector<1x64xf32>
    %c0_8 = arith.constant 0 : index
    %c0_9 = arith.constant 0 : index
    %8 = vector.load %arg4[%c0_8, %c0_9] : memref<1x64xf32, #tpu.memory_space<vmem>>, vector<1x64xf32>
    %cst_10 = arith.constant dense<0.000000e+00> : vector<10xf32>
    %9 = vector.multi_reduction <add>, %6, %cst_10 [1] : vector<10x64xf32> to vector<10xf32>
    %10 = vector.shape_cast %9 : vector<10xf32> to vector<10x1xf32>
    %cst_11 = arith.constant 6.400000e+01 : f32
    %11 = vector.broadcast %cst_11 : f32 to vector<10x1xf32>
    %12 = arith.divf %10, %11 : vector<10x1xf32>
    %13 = vector.broadcast %12 : vector<10x1xf32> to vector<10x64xf32>
    %14 = arith.subf %6, %13 : vector<10x64xf32>
    %15 = arith.mulf %14, %14 : vector<10x64xf32>
    %cst_12 = arith.constant dense<0.000000e+00> : vector<10xf32>
    %16 = vector.multi_reduction <add>, %15, %cst_12 [1] : vector<10x64xf32> to vector<10xf32>
    %17 = vector.shape_cast %16 : vector<10xf32> to vector<10x1xf32>
    %cst_13 = arith.constant 6.400000e+01 : f32
    %18 = vector.broadcast %cst_13 : f32 to vector<10x1xf32>
    %19 = arith.divf %17, %18 : vector<10x1xf32>
    %cst_14 = arith.constant 9.99999974E-6 : f32
    %20 = vector.broadcast %cst_14 : f32 to vector<10x1xf32>
    %21 = arith.addf %19, %20 : vector<10x1xf32>
    %22 = math.rsqrt %21 : vector<10x1xf32>
    %23 = vector.broadcast %22 : vector<10x1xf32> to vector<10x64xf32>
    %24 = arith.mulf %14, %23 : vector<10x64xf32>
    %25 = vector.broadcast %7 : vector<1x64xf32> to vector<10x64xf32>
    %26 = arith.mulf %24, %25 : vector<10x64xf32>
    %27 = vector.broadcast %8 : vector<1x64xf32> to vector<10x64xf32>
    %28 = arith.addf %26, %27 : vector<10x64xf32>
    %29 = vector.shape_cast %28 : vector<10x64xf32> to vector<2x5x64xf32>
    %c0_15 = arith.constant 0 : index
    %c0_16 = arith.constant 0 : index
    %c0_17 = arith.constant 0 : index
    %30 = vector.load %arg5[%c0_15, %c0_16, %c0_17] : memref<2x1x64xf32, #tpu.memory_space<vmem>>, vector<1x1x64xf32>
    %31 = vector.shape_cast %30 : vector<1x1x64xf32> to vector<1x64xf32>
    %c0_18 = arith.constant 0 : index
    %c0_19 = arith.constant 0 : index
    %c0_20 = arith.constant 0 : index
    %32 = vector.load %arg6[%c0_18, %c0_19, %c0_20] : memref<2x1x64xf32, #tpu.memory_space<vmem>>, vector<1x1x64xf32>
    %33 = vector.shape_cast %32 : vector<1x1x64xf32> to vector<1x64xf32>
    %c0_21 = arith.constant 0 : index
    %c0_22 = arith.constant 0 : index
    %c0_23 = arith.constant 0 : index
    %34 = vector.load %arg7[%c0_21, %c0_22, %c0_23] : memref<2x64x192xf32, #tpu.memory_space<vmem>>, vector<1x64x192xf32>
    %35 = vector.shape_cast %34 : vector<1x64x192xf32> to vector<64x192xf32>
    %c0_24 = arith.constant 0 : index
    %c0_25 = arith.constant 0 : index
    %c0_26 = arith.constant 0 : index
    %36 = vector.load %arg8[%c0_24, %c0_25, %c0_26] : memref<2x1x192xf32, #tpu.memory_space<vmem>>, vector<1x1x192xf32>
    %37 = vector.shape_cast %36 : vector<1x1x192xf32> to vector<1x192xf32>
    %c0_27 = arith.constant 0 : index
    %c0_28 = arith.constant 0 : index
    %c0_29 = arith.constant 0 : index
    %38 = vector.load %arg9[%c0_27, %c0_28, %c0_29] : memref<2x64x64xf32, #tpu.memory_space<vmem>>, vector<1x64x64xf32>
    %39 = vector.shape_cast %38 : vector<1x64x64xf32> to vector<64x64xf32>
    %c0_30 = arith.constant 0 : index
    %c0_31 = arith.constant 0 : index
    %c0_32 = arith.constant 0 : index
    %40 = vector.load %arg10[%c0_30, %c0_31, %c0_32] : memref<2x1x64xf32, #tpu.memory_space<vmem>>, vector<1x1x64xf32>
    %41 = vector.shape_cast %40 : vector<1x1x64xf32> to vector<1x64xf32>
    %c0_33 = arith.constant 0 : index
    %c0_34 = arith.constant 0 : index
    %c0_35 = arith.constant 0 : index
    %42 = vector.load %arg11[%c0_33, %c0_34, %c0_35] : memref<2x1x64xf32, #tpu.memory_space<vmem>>, vector<1x1x64xf32>
    %43 = vector.shape_cast %42 : vector<1x1x64xf32> to vector<1x64xf32>
    %c0_36 = arith.constant 0 : index
    %c0_37 = arith.constant 0 : index
    %c0_38 = arith.constant 0 : index
    %44 = vector.load %arg12[%c0_36, %c0_37, %c0_38] : memref<2x1x64xf32, #tpu.memory_space<vmem>>, vector<1x1x64xf32>
    %45 = vector.shape_cast %44 : vector<1x1x64xf32> to vector<1x64xf32>
    %c0_39 = arith.constant 0 : index
    %c0_40 = arith.constant 0 : index
    %c0_41 = arith.constant 0 : index
    %46 = vector.load %arg13[%c0_39, %c0_40, %c0_41] : memref<2x64x256xf32, #tpu.memory_space<vmem>>, vector<1x64x256xf32>
    %47 = vector.shape_cast %46 : vector<1x64x256xf32> to vector<64x256xf32>
    %c0_42 = arith.constant 0 : index
    %c0_43 = arith.constant 0 : index
    %c0_44 = arith.constant 0 : index
    %48 = vector.load %arg14[%c0_42, %c0_43, %c0_44] : memref<2x1x256xf32, #tpu.memory_space<vmem>>, vector<1x1x256xf32>
    %49 = vector.shape_cast %48 : vector<1x1x256xf32> to vector<1x256xf32>
    %c0_45 = arith.constant 0 : index
    %c0_46 = arith.constant 0 : index
    %c0_47 = arith.constant 0 : index
    %50 = vector.load %arg15[%c0_45, %c0_46, %c0_47] : memref<2x256x64xf32, #tpu.memory_space<vmem>>, vector<1x256x64xf32>
    %51 = vector.shape_cast %50 : vector<1x256x64xf32> to vector<256x64xf32>
    %c0_48 = arith.constant 0 : index
    %c0_49 = arith.constant 0 : index
    %c0_50 = arith.constant 0 : index
    %52 = vector.load %arg16[%c0_48, %c0_49, %c0_50] : memref<2x1x64xf32, #tpu.memory_space<vmem>>, vector<1x1x64xf32>
    %53 = vector.shape_cast %52 : vector<1x1x64xf32> to vector<1x64xf32>
    %54 = vector.shape_cast %29 : vector<2x5x64xf32> to vector<10x64xf32>
    %cst_51 = arith.constant dense<0.000000e+00> : vector<10xf32>
    %55 = vector.multi_reduction <add>, %54, %cst_51 [1] : vector<10x64xf32> to vector<10xf32>
    %56 = vector.shape_cast %55 : vector<10xf32> to vector<10x1xf32>
    %cst_52 = arith.constant 6.400000e+01 : f32
    %57 = vector.broadcast %cst_52 : f32 to vector<10x1xf32>
    %58 = arith.divf %56, %57 : vector<10x1xf32>
    %59 = vector.broadcast %58 : vector<10x1xf32> to vector<10x64xf32>
    %60 = arith.subf %54, %59 : vector<10x64xf32>
    %61 = arith.mulf %60, %60 : vector<10x64xf32>
    %cst_53 = arith.constant dense<0.000000e+00> : vector<10xf32>
    %62 = vector.multi_reduction <add>, %61, %cst_53 [1] : vector<10x64xf32> to vector<10xf32>
    %63 = vector.shape_cast %62 : vector<10xf32> to vector<10x1xf32>
    %cst_54 = arith.constant 6.400000e+01 : f32
    %64 = vector.broadcast %cst_54 : f32 to vector<10x1xf32>
    %65 = arith.divf %63, %64 : vector<10x1xf32>
    %cst_55 = arith.constant 9.99999974E-6 : f32
    %66 = vector.broadcast %cst_55 : f32 to vector<10x1xf32>
    %67 = arith.addf %65, %66 : vector<10x1xf32>
    %68 = math.rsqrt %67 : vector<10x1xf32>
    %69 = vector.broadcast %68 : vector<10x1xf32> to vector<10x64xf32>
    %70 = arith.mulf %60, %69 : vector<10x64xf32>
    %71 = vector.broadcast %31 : vector<1x64xf32> to vector<10x64xf32>
    %72 = arith.mulf %70, %71 : vector<10x64xf32>
    %73 = vector.broadcast %33 : vector<1x64xf32> to vector<10x64xf32>
    %74 = arith.addf %72, %73 : vector<10x64xf32>
    %cst_56 = arith.constant dense<0.000000e+00> : vector<10x192xf32>
    %75 = tpu.matmul %74, %35, %cst_56 {dimension_numbers = #tpu.dot_dimension_numbers<[1], [0], [0], [1], [0, 0, 1, 1], [], []>} : vector<10x64xf32>, vector<64x192xf32>, vector<10x192xf32> -> vector<10x192xf32>
    %76 = vector.broadcast %37 : vector<1x192xf32> to vector<10x192xf32>
    %77 = arith.addf %75, %76 : vector<10x192xf32>
    %78 = vector.shape_cast %77 : vector<10x192xf32> to vector<2x5x192xf32>
    %79 = vector.extract_strided_slice %78 {offsets = [0, 0, 0], sizes = [2, 5, 64], strides = [1, 1, 1]} : vector<2x5x192xf32> to vector<2x5x64xf32>
    %80 = vector.extract_strided_slice %78 {offsets = [0, 0, 64], sizes = [2, 5, 64], strides = [1, 1, 1]} : vector<2x5x192xf32> to vector<2x5x64xf32>
    %81 = vector.extract_strided_slice %78 {offsets = [0, 0, 128], sizes = [2, 5, 64], strides = [1, 1, 1]} : vector<2x5x192xf32> to vector<2x5x64xf32>
    %82 = vector.extract_strided_slice %79 {offsets = [0, 0, 0], sizes = [2, 5, 16], strides = [1, 1, 1]} : vector<2x5x64xf32> to vector<2x5x16xf32>
    %83 = vector.extract_strided_slice %80 {offsets = [0, 0, 0], sizes = [2, 5, 16], strides = [1, 1, 1]} : vector<2x5x64xf32> to vector<2x5x16xf32>
    %84 = vector.extract_strided_slice %81 {offsets = [0, 0, 0], sizes = [2, 5, 16], strides = [1, 1, 1]} : vector<2x5x64xf32> to vector<2x5x16xf32>
    "tpu.trace_start"() <{level = 10 : i32, message = "bqd,bkd->bqk"}> : () -> ()
    %cst_57 = arith.constant dense<0.000000e+00> : vector<2x5x5xf32>
    %85 = tpu.matmul %82, %83, %cst_57 {dimension_numbers = #tpu.dot_dimension_numbers<[2], [2], [1], [1], [0, 0, 0, 1, 1, 1], [0], [0]>} : vector<2x5x16xf32>, vector<2x5x16xf32>, vector<2x5x5xf32> -> vector<2x5x5xf32>
    "tpu.trace_stop"() : () -> ()
    %cst_58 = arith.constant 2.500000e-01 : f32
    %86 = vector.broadcast %cst_58 : f32 to vector<2x5x5xf32>
    %87 = arith.mulf %85, %86 : vector<2x5x5xf32>
    %cst_59 = arith.constant dense<0xFF800000> : vector<2x5xf32>
    %88 = vector.multi_reduction <maximumf>, %87, %cst_59 [2] : vector<2x5x5xf32> to vector<2x5xf32>
    %89 = vector.shape_cast %88 : vector<2x5xf32> to vector<2x5x1xf32>
    %90 = vector.broadcast %89 : vector<2x5x1xf32> to vector<2x5x5xf32>
    %91 = arith.subf %87, %90 : vector<2x5x5xf32>
    %92 = math.exp %91 : vector<2x5x5xf32>
    %cst_60 = arith.constant dense<0.000000e+00> : vector<2x5xf32>
    %93 = vector.multi_reduction <add>, %92, %cst_60 [2] : vector<2x5x5xf32> to vector<2x5xf32>
    %94 = vector.shape_cast %93 : vector<2x5xf32> to vector<2x5x1xf32>
    %95 = tpu.reciprocal %94 {approx = true} : vector<2x5x1xf32> -> vector<2x5x1xf32>
    %96 = vector.broadcast %95 : vector<2x5x1xf32> to vector<2x5x5xf32>
    %97 = arith.mulf %92, %96 : vector<2x5x5xf32>
    "tpu.trace_start"() <{level = 10 : i32, message = "bqk,bkd->bqd"}> : () -> ()
    %cst_61 = arith.constant dense<0.000000e+00> : vector<2x5x16xf32>
    %98 = tpu.matmul %97, %84, %cst_61 {dimension_numbers = #tpu.dot_dimension_numbers<[2], [1], [1], [2], [0, 0, 0, 1, 1, 2], [0], [0]>} : vector<2x5x5xf32>, vector<2x5x16xf32>, vector<2x5x16xf32> -> vector<2x5x16xf32>
    "tpu.trace_stop"() : () -> ()
    %99 = vector.extract_strided_slice %79 {offsets = [0, 0, 16], sizes = [2, 5, 16], strides = [1, 1, 1]} : vector<2x5x64xf32> to vector<2x5x16xf32>
    %100 = vector.extract_strided_slice %80 {offsets = [0, 0, 16], sizes = [2, 5, 16], strides = [1, 1, 1]} : vector<2x5x64xf32> to vector<2x5x16xf32>
    %101 = vector.extract_strided_slice %81 {offsets = [0, 0, 16], sizes = [2, 5, 16], strides = [1, 1, 1]} : vector<2x5x64xf32> to vector<2x5x16xf32>
    "tpu.trace_start"() <{level = 10 : i32, message = "bqd,bkd->bqk"}> : () -> ()
    %cst_62 = arith.constant dense<0.000000e+00> : vector<2x5x5xf32>
    %102 = tpu.matmul %99, %100, %cst_62 {dimension_numbers = #tpu.dot_dimension_numbers<[2], [2], [1], [1], [0, 0, 0, 1, 1, 1], [0], [0]>} : vector<2x5x16xf32>, vector<2x5x16xf32>, vector<2x5x5xf32> -> vector<2x5x5xf32>
    "tpu.trace_stop"() : () -> ()
    %cst_63 = arith.constant 2.500000e-01 : f32
    %103 = vector.broadcast %cst_63 : f32 to vector<2x5x5xf32>
    %104 = arith.mulf %102, %103 : vector<2x5x5xf32>
    %cst_64 = arith.constant dense<0xFF800000> : vector<2x5xf32>
    %105 = vector.multi_reduction <maximumf>, %104, %cst_64 [2] : vector<2x5x5xf32> to vector<2x5xf32>
    %106 = vector.shape_cast %105 : vector<2x5xf32> to vector<2x5x1xf32>
    %107 = vector.broadcast %106 : vector<2x5x1xf32> to vector<2x5x5xf32>
    %108 = arith.subf %104, %107 : vector<2x5x5xf32>
    %109 = math.exp %108 : vector<2x5x5xf32>
    %cst_65 = arith.constant dense<0.000000e+00> : vector<2x5xf32>
    %110 = vector.multi_reduction <add>, %109, %cst_65 [2] : vector<2x5x5xf32> to vector<2x5xf32>
    %111 = vector.shape_cast %110 : vector<2x5xf32> to vector<2x5x1xf32>
    %112 = tpu.reciprocal %111 {approx = true} : vector<2x5x1xf32> -> vector<2x5x1xf32>
    %113 = vector.broadcast %112 : vector<2x5x1xf32> to vector<2x5x5xf32>
    %114 = arith.mulf %109, %113 : vector<2x5x5xf32>
    "tpu.trace_start"() <{level = 10 : i32, message = "bqk,bkd->bqd"}> : () -> ()
    %cst_66 = arith.constant dense<0.000000e+00> : vector<2x5x16xf32>
    %115 = tpu.matmul %114, %101, %cst_66 {dimension_numbers = #tpu.dot_dimension_numbers<[2], [1], [1], [2], [0, 0, 0, 1, 1, 2], [0], [0]>} : vector<2x5x5xf32>, vector<2x5x16xf32>, vector<2x5x16xf32> -> vector<2x5x16xf32>
    "tpu.trace_stop"() : () -> ()
    %116 = vector.extract_strided_slice %79 {offsets = [0, 0, 32], sizes = [2, 5, 16], strides = [1, 1, 1]} : vector<2x5x64xf32> to vector<2x5x16xf32>
    %117 = vector.extract_strided_slice %80 {offsets = [0, 0, 32], sizes = [2, 5, 16], strides = [1, 1, 1]} : vector<2x5x64xf32> to vector<2x5x16xf32>
    %118 = vector.extract_strided_slice %81 {offsets = [0, 0, 32], sizes = [2, 5, 16], strides = [1, 1, 1]} : vector<2x5x64xf32> to vector<2x5x16xf32>
    "tpu.trace_start"() <{level = 10 : i32, message = "bqd,bkd->bqk"}> : () -> ()
    %cst_67 = arith.constant dense<0.000000e+00> : vector<2x5x5xf32>
    %119 = tpu.matmul %116, %117, %cst_67 {dimension_numbers = #tpu.dot_dimension_numbers<[2], [2], [1], [1], [0, 0, 0, 1, 1, 1], [0], [0]>} : vector<2x5x16xf32>, vector<2x5x16xf32>, vector<2x5x5xf32> -> vector<2x5x5xf32>
    "tpu.trace_stop"() : () -> ()
    %cst_68 = arith.constant 2.500000e-01 : f32
    %120 = vector.broadcast %cst_68 : f32 to vector<2x5x5xf32>
    %121 = arith.mulf %119, %120 : vector<2x5x5xf32>
    %cst_69 = arith.constant dense<0xFF800000> : vector<2x5xf32>
    %122 = vector.multi_reduction <maximumf>, %121, %cst_69 [2] : vector<2x5x5xf32> to vector<2x5xf32>
    %123 = vector.shape_cast %122 : vector<2x5xf32> to vector<2x5x1xf32>
    %124 = vector.broadcast %123 : vector<2x5x1xf32> to vector<2x5x5xf32>
    %125 = arith.subf %121, %124 : vector<2x5x5xf32>
    %126 = math.exp %125 : vector<2x5x5xf32>
    %cst_70 = arith.constant dense<0.000000e+00> : vector<2x5xf32>
    %127 = vector.multi_reduction <add>, %126, %cst_70 [2] : vector<2x5x5xf32> to vector<2x5xf32>
    %128 = vector.shape_cast %127 : vector<2x5xf32> to vector<2x5x1xf32>
    %129 = tpu.reciprocal %128 {approx = true} : vector<2x5x1xf32> -> vector<2x5x1xf32>
    %130 = vector.broadcast %129 : vector<2x5x1xf32> to vector<2x5x5xf32>
    %131 = arith.mulf %126, %130 : vector<2x5x5xf32>
    "tpu.trace_start"() <{level = 10 : i32, message = "bqk,bkd->bqd"}> : () -> ()
    %cst_71 = arith.constant dense<0.000000e+00> : vector<2x5x16xf32>
    %132 = tpu.matmul %131, %118, %cst_71 {dimension_numbers = #tpu.dot_dimension_numbers<[2], [1], [1], [2], [0, 0, 0, 1, 1, 2], [0], [0]>} : vector<2x5x5xf32>, vector<2x5x16xf32>, vector<2x5x16xf32> -> vector<2x5x16xf32>
    "tpu.trace_stop"() : () -> ()
    %133 = vector.extract_strided_slice %79 {offsets = [0, 0, 48], sizes = [2, 5, 16], strides = [1, 1, 1]} : vector<2x5x64xf32> to vector<2x5x16xf32>
    %134 = vector.extract_strided_slice %80 {offsets = [0, 0, 48], sizes = [2, 5, 16], strides = [1, 1, 1]} : vector<2x5x64xf32> to vector<2x5x16xf32>
    %135 = vector.extract_strided_slice %81 {offsets = [0, 0, 48], sizes = [2, 5, 16], strides = [1, 1, 1]} : vector<2x5x64xf32> to vector<2x5x16xf32>
    "tpu.trace_start"() <{level = 10 : i32, message = "bqd,bkd->bqk"}> : () -> ()
    %cst_72 = arith.constant dense<0.000000e+00> : vector<2x5x5xf32>
    %136 = tpu.matmul %133, %134, %cst_72 {dimension_numbers = #tpu.dot_dimension_numbers<[2], [2], [1], [1], [0, 0, 0, 1, 1, 1], [0], [0]>} : vector<2x5x16xf32>, vector<2x5x16xf32>, vector<2x5x5xf32> -> vector<2x5x5xf32>
    "tpu.trace_stop"() : () -> ()
    %cst_73 = arith.constant 2.500000e-01 : f32
    %137 = vector.broadcast %cst_73 : f32 to vector<2x5x5xf32>
    %138 = arith.mulf %136, %137 : vector<2x5x5xf32>
    %cst_74 = arith.constant dense<0xFF800000> : vector<2x5xf32>
    %139 = vector.multi_reduction <maximumf>, %138, %cst_74 [2] : vector<2x5x5xf32> to vector<2x5xf32>
    %140 = vector.shape_cast %139 : vector<2x5xf32> to vector<2x5x1xf32>
    %141 = vector.broadcast %140 : vector<2x5x1xf32> to vector<2x5x5xf32>
    %142 = arith.subf %138, %141 : vector<2x5x5xf32>
    %143 = math.exp %142 : vector<2x5x5xf32>
    %cst_75 = arith.constant dense<0.000000e+00> : vector<2x5xf32>
    %144 = vector.multi_reduction <add>, %143, %cst_75 [2] : vector<2x5x5xf32> to vector<2x5xf32>
    %145 = vector.shape_cast %144 : vector<2x5xf32> to vector<2x5x1xf32>
    %146 = tpu.reciprocal %145 {approx = true} : vector<2x5x1xf32> -> vector<2x5x1xf32>
    %147 = vector.broadcast %146 : vector<2x5x1xf32> to vector<2x5x5xf32>
    %148 = arith.mulf %143, %147 : vector<2x5x5xf32>
    "tpu.trace_start"() <{level = 10 : i32, message = "bqk,bkd->bqd"}> : () -> ()
    %cst_76 = arith.constant dense<0.000000e+00> : vector<2x5x16xf32>
    %149 = tpu.matmul %148, %135, %cst_76 {dimension_numbers = #tpu.dot_dimension_numbers<[2], [1], [1], [2], [0, 0, 0, 1, 1, 2], [0], [0]>} : vector<2x5x5xf32>, vector<2x5x16xf32>, vector<2x5x16xf32> -> vector<2x5x16xf32>
    "tpu.trace_stop"() : () -> ()
    %150 = tpu.concatenate %98, %115, %132, %149 in 2 : vector<2x5x16xf32>, vector<2x5x16xf32>, vector<2x5x16xf32>, vector<2x5x16xf32> -> vector<2x5x64xf32>
    %151 = vector.shape_cast %150 : vector<2x5x64xf32> to vector<10x64xf32>
    %cst_77 = arith.constant dense<0.000000e+00> : vector<10x64xf32>
    %152 = tpu.matmul %151, %39, %cst_77 {dimension_numbers = #tpu.dot_dimension_numbers<[1], [0], [0], [1], [0, 0, 1, 1], [], []>} : vector<10x64xf32>, vector<64x64xf32>, vector<10x64xf32> -> vector<10x64xf32>
    %153 = vector.broadcast %41 : vector<1x64xf32> to vector<10x64xf32>
    %154 = arith.addf %152, %153 : vector<10x64xf32>
    %155 = vector.shape_cast %154 : vector<10x64xf32> to vector<2x5x64xf32>
    %156 = arith.addf %29, %155 : vector<2x5x64xf32>
    %157 = vector.shape_cast %156 : vector<2x5x64xf32> to vector<10x64xf32>
    %cst_78 = arith.constant dense<0.000000e+00> : vector<10xf32>
    %158 = vector.multi_reduction <add>, %157, %cst_78 [1] : vector<10x64xf32> to vector<10xf32>
    %159 = vector.shape_cast %158 : vector<10xf32> to vector<10x1xf32>
    %cst_79 = arith.constant 6.400000e+01 : f32
    %160 = vector.broadcast %cst_79 : f32 to vector<10x1xf32>
    %161 = arith.divf %159, %160 : vector<10x1xf32>
    %162 = vector.broadcast %161 : vector<10x1xf32> to vector<10x64xf32>
    %163 = arith.subf %157, %162 : vector<10x64xf32>
    %164 = arith.mulf %163, %163 : vector<10x64xf32>
    %cst_80 = arith.constant dense<0.000000e+00> : vector<10xf32>
    %165 = vector.multi_reduction <add>, %164, %cst_80 [1] : vector<10x64xf32> to vector<10xf32>
    %166 = vector.shape_cast %165 : vector<10xf32> to vector<10x1xf32>
    %cst_81 = arith.constant 6.400000e+01 : f32
    %167 = vector.broadcast %cst_81 : f32 to vector<10x1xf32>
    %168 = arith.divf %166, %167 : vector<10x1xf32>
    %cst_82 = arith.constant 9.99999974E-6 : f32
    %169 = vector.broadcast %cst_82 : f32 to vector<10x1xf32>
    %170 = arith.addf %168, %169 : vector<10x1xf32>
    %171 = math.rsqrt %170 : vector<10x1xf32>
    %172 = vector.broadcast %171 : vector<10x1xf32> to vector<10x64xf32>
    %173 = arith.mulf %163, %172 : vector<10x64xf32>
    %174 = vector.broadcast %43 : vector<1x64xf32> to vector<10x64xf32>
    %175 = arith.mulf %173, %174 : vector<10x64xf32>
    %176 = vector.broadcast %45 : vector<1x64xf32> to vector<10x64xf32>
    %177 = arith.addf %175, %176 : vector<10x64xf32>
    %cst_83 = arith.constant dense<0.000000e+00> : vector<10x256xf32>
    %178 = tpu.matmul %177, %47, %cst_83 {dimension_numbers = #tpu.dot_dimension_numbers<[1], [0], [0], [1], [0, 0, 1, 1], [], []>} : vector<10x64xf32>, vector<64x256xf32>, vector<10x256xf32> -> vector<10x256xf32>
    %179 = vector.broadcast %49 : vector<1x256xf32> to vector<10x256xf32>
    %180 = arith.addf %178, %179 : vector<10x256xf32>
    %cst_84 = arith.constant 1.702000e+00 : f32
    %181 = vector.broadcast %cst_84 : f32 to vector<10x256xf32>
    %182 = arith.mulf %181, %180 : vector<10x256xf32>
    %183 = arith.negf %182 : vector<10x256xf32>
    %184 = math.exp %183 : vector<10x256xf32>
    %cst_85 = arith.constant 1.000000e+00 : f32
    %185 = vector.broadcast %cst_85 : f32 to vector<10x256xf32>
    %186 = arith.addf %185, %184 : vector<10x256xf32>
    %187 = arith.divf %185, %186 : vector<10x256xf32>
    %188 = arith.mulf %180, %187 : vector<10x256xf32>
    %cst_86 = arith.constant dense<0.000000e+00> : vector<10x64xf32>
    %189 = tpu.matmul %188, %51, %cst_86 {dimension_numbers = #tpu.dot_dimension_numbers<[1], [0], [0], [1], [0, 0, 1, 1], [], []>} : vector<10x256xf32>, vector<256x64xf32>, vector<10x64xf32> -> vector<10x64xf32>
    %190 = vector.broadcast %53 : vector<1x64xf32> to vector<10x64xf32>
    %191 = arith.addf %189, %190 : vector<10x64xf32>
    %192 = vector.shape_cast %191 : vector<10x64xf32> to vector<2x5x64xf32>
    %193 = arith.addf %156, %192 : vector<2x5x64xf32>
    %c1 = arith.constant 1 : index
    %c0_87 = arith.constant 0 : index
    %c0_88 = arith.constant 0 : index
    %194 = vector.load %arg5[%c1, %c0_87, %c0_88] : memref<2x1x64xf32, #tpu.memory_space<vmem>>, vector<1x1x64xf32>
    %195 = vector.shape_cast %194 : vector<1x1x64xf32> to vector<1x64xf32>
    %c1_89 = arith.constant 1 : index
    %c0_90 = arith.constant 0 : index
    %c0_91 = arith.constant 0 : index
    %196 = vector.load %arg6[%c1_89, %c0_90, %c0_91] : memref<2x1x64xf32, #tpu.memory_space<vmem>>, vector<1x1x64xf32>
    %197 = vector.shape_cast %196 : vector<1x1x64xf32> to vector<1x64xf32>
    %c1_92 = arith.constant 1 : index
    %c0_93 = arith.constant 0 : index
    %c0_94 = arith.constant 0 : index
    %198 = vector.load %arg7[%c1_92, %c0_93, %c0_94] : memref<2x64x192xf32, #tpu.memory_space<vmem>>, vector<1x64x192xf32>
    %199 = vector.shape_cast %198 : vector<1x64x192xf32> to vector<64x192xf32>
    %c1_95 = arith.constant 1 : index
    %c0_96 = arith.constant 0 : index
    %c0_97 = arith.constant 0 : index
    %200 = vector.load %arg8[%c1_95, %c0_96, %c0_97] : memref<2x1x192xf32, #tpu.memory_space<vmem>>, vector<1x1x192xf32>
    %201 = vector.shape_cast %200 : vector<1x1x192xf32> to vector<1x192xf32>
    %c1_98 = arith.constant 1 : index
    %c0_99 = arith.constant 0 : index
    %c0_100 = arith.constant 0 : index
    %202 = vector.load %arg9[%c1_98, %c0_99, %c0_100] : memref<2x64x64xf32, #tpu.memory_space<vmem>>, vector<1x64x64xf32>
    %203 = vector.shape_cast %202 : vector<1x64x64xf32> to vector<64x64xf32>
    %c1_101 = arith.constant 1 : index
    %c0_102 = arith.constant 0 : index
    %c0_103 = arith.constant 0 : index
    %204 = vector.load %arg10[%c1_101, %c0_102, %c0_103] : memref<2x1x64xf32, #tpu.memory_space<vmem>>, vector<1x1x64xf32>
    %205 = vector.shape_cast %204 : vector<1x1x64xf32> to vector<1x64xf32>
    %c1_104 = arith.constant 1 : index
    %c0_105 = arith.constant 0 : index
    %c0_106 = arith.constant 0 : index
    %206 = vector.load %arg11[%c1_104, %c0_105, %c0_106] : memref<2x1x64xf32, #tpu.memory_space<vmem>>, vector<1x1x64xf32>
    %207 = vector.shape_cast %206 : vector<1x1x64xf32> to vector<1x64xf32>
    %c1_107 = arith.constant 1 : index
    %c0_108 = arith.constant 0 : index
    %c0_109 = arith.constant 0 : index
    %208 = vector.load %arg12[%c1_107, %c0_108, %c0_109] : memref<2x1x64xf32, #tpu.memory_space<vmem>>, vector<1x1x64xf32>
    %209 = vector.shape_cast %208 : vector<1x1x64xf32> to vector<1x64xf32>
    %c1_110 = arith.constant 1 : index
    %c0_111 = arith.constant 0 : index
    %c0_112 = arith.constant 0 : index
    %210 = vector.load %arg13[%c1_110, %c0_111, %c0_112] : memref<2x64x256xf32, #tpu.memory_space<vmem>>, vector<1x64x256xf32>
    %211 = vector.shape_cast %210 : vector<1x64x256xf32> to vector<64x256xf32>
    %c1_113 = arith.constant 1 : index
    %c0_114 = arith.constant 0 : index
    %c0_115 = arith.constant 0 : index
    %212 = vector.load %arg14[%c1_113, %c0_114, %c0_115] : memref<2x1x256xf32, #tpu.memory_space<vmem>>, vector<1x1x256xf32>
    %213 = vector.shape_cast %212 : vector<1x1x256xf32> to vector<1x256xf32>
    %c1_116 = arith.constant 1 : index
    %c0_117 = arith.constant 0 : index
    %c0_118 = arith.constant 0 : index
    %214 = vector.load %arg15[%c1_116, %c0_117, %c0_118] : memref<2x256x64xf32, #tpu.memory_space<vmem>>, vector<1x256x64xf32>
    %215 = vector.shape_cast %214 : vector<1x256x64xf32> to vector<256x64xf32>
    %c1_119 = arith.constant 1 : index
    %c0_120 = arith.constant 0 : index
    %c0_121 = arith.constant 0 : index
    %216 = vector.load %arg16[%c1_119, %c0_120, %c0_121] : memref<2x1x64xf32, #tpu.memory_space<vmem>>, vector<1x1x64xf32>
    %217 = vector.shape_cast %216 : vector<1x1x64xf32> to vector<1x64xf32>
    %218 = vector.shape_cast %193 : vector<2x5x64xf32> to vector<10x64xf32>
    %cst_122 = arith.constant dense<0.000000e+00> : vector<10xf32>
    %219 = vector.multi_reduction <add>, %218, %cst_122 [1] : vector<10x64xf32> to vector<10xf32>
    %220 = vector.shape_cast %219 : vector<10xf32> to vector<10x1xf32>
    %cst_123 = arith.constant 6.400000e+01 : f32
    %221 = vector.broadcast %cst_123 : f32 to vector<10x1xf32>
    %222 = arith.divf %220, %221 : vector<10x1xf32>
    %223 = vector.broadcast %222 : vector<10x1xf32> to vector<10x64xf32>
    %224 = arith.subf %218, %223 : vector<10x64xf32>
    %225 = arith.mulf %224, %224 : vector<10x64xf32>
    %cst_124 = arith.constant dense<0.000000e+00> : vector<10xf32>
    %226 = vector.multi_reduction <add>, %225, %cst_124 [1] : vector<10x64xf32> to vector<10xf32>
    %227 = vector.shape_cast %226 : vector<10xf32> to vector<10x1xf32>
    %cst_125 = arith.constant 6.400000e+01 : f32
    %228 = vector.broadcast %cst_125 : f32 to vector<10x1xf32>
    %229 = arith.divf %227, %228 : vector<10x1xf32>
    %cst_126 = arith.constant 9.99999974E-6 : f32
    %230 = vector.broadcast %cst_126 : f32 to vector<10x1xf32>
    %231 = arith.addf %229, %230 : vector<10x1xf32>
    %232 = math.rsqrt %231 : vector<10x1xf32>
    %233 = vector.broadcast %232 : vector<10x1xf32> to vector<10x64xf32>
    %234 = arith.mulf %224, %233 : vector<10x64xf32>
    %235 = vector.broadcast %195 : vector<1x64xf32> to vector<10x64xf32>
    %236 = arith.mulf %234, %235 : vector<10x64xf32>
    %237 = vector.broadcast %197 : vector<1x64xf32> to vector<10x64xf32>
    %238 = arith.addf %236, %237 : vector<10x64xf32>
    %cst_127 = arith.constant dense<0.000000e+00> : vector<10x192xf32>
    %239 = tpu.matmul %238, %199, %cst_127 {dimension_numbers = #tpu.dot_dimension_numbers<[1], [0], [0], [1], [0, 0, 1, 1], [], []>} : vector<10x64xf32>, vector<64x192xf32>, vector<10x192xf32> -> vector<10x192xf32>
    %240 = vector.broadcast %201 : vector<1x192xf32> to vector<10x192xf32>
    %241 = arith.addf %239, %240 : vector<10x192xf32>
    %242 = vector.shape_cast %241 : vector<10x192xf32> to vector<2x5x192xf32>
    %243 = vector.extract_strided_slice %242 {offsets = [0, 0, 0], sizes = [2, 5, 64], strides = [1, 1, 1]} : vector<2x5x192xf32> to vector<2x5x64xf32>
    %244 = vector.extract_strided_slice %242 {offsets = [0, 0, 64], sizes = [2, 5, 64], strides = [1, 1, 1]} : vector<2x5x192xf32> to vector<2x5x64xf32>
    %245 = vector.extract_strided_slice %242 {offsets = [0, 0, 128], sizes = [2, 5, 64], strides = [1, 1, 1]} : vector<2x5x192xf32> to vector<2x5x64xf32>
    %246 = vector.extract_strided_slice %243 {offsets = [0, 0, 0], sizes = [2, 5, 16], strides = [1, 1, 1]} : vector<2x5x64xf32> to vector<2x5x16xf32>
    %247 = vector.extract_strided_slice %244 {offsets = [0, 0, 0], sizes = [2, 5, 16], strides = [1, 1, 1]} : vector<2x5x64xf32> to vector<2x5x16xf32>
    %248 = vector.extract_strided_slice %245 {offsets = [0, 0, 0], sizes = [2, 5, 16], strides = [1, 1, 1]} : vector<2x5x64xf32> to vector<2x5x16xf32>
    "tpu.trace_start"() <{level = 10 : i32, message = "bqd,bkd->bqk"}> : () -> ()
    %cst_128 = arith.constant dense<0.000000e+00> : vector<2x5x5xf32>
    %249 = tpu.matmul %246, %247, %cst_128 {dimension_numbers = #tpu.dot_dimension_numbers<[2], [2], [1], [1], [0, 0, 0, 1, 1, 1], [0], [0]>} : vector<2x5x16xf32>, vector<2x5x16xf32>, vector<2x5x5xf32> -> vector<2x5x5xf32>
    "tpu.trace_stop"() : () -> ()
    %cst_129 = arith.constant 2.500000e-01 : f32
    %250 = vector.broadcast %cst_129 : f32 to vector<2x5x5xf32>
    %251 = arith.mulf %249, %250 : vector<2x5x5xf32>
    %cst_130 = arith.constant dense<0xFF800000> : vector<2x5xf32>
    %252 = vector.multi_reduction <maximumf>, %251, %cst_130 [2] : vector<2x5x5xf32> to vector<2x5xf32>
    %253 = vector.shape_cast %252 : vector<2x5xf32> to vector<2x5x1xf32>
    %254 = vector.broadcast %253 : vector<2x5x1xf32> to vector<2x5x5xf32>
    %255 = arith.subf %251, %254 : vector<2x5x5xf32>
    %256 = math.exp %255 : vector<2x5x5xf32>
    %cst_131 = arith.constant dense<0.000000e+00> : vector<2x5xf32>
    %257 = vector.multi_reduction <add>, %256, %cst_131 [2] : vector<2x5x5xf32> to vector<2x5xf32>
    %258 = vector.shape_cast %257 : vector<2x5xf32> to vector<2x5x1xf32>
    %259 = tpu.reciprocal %258 {approx = true} : vector<2x5x1xf32> -> vector<2x5x1xf32>
    %260 = vector.broadcast %259 : vector<2x5x1xf32> to vector<2x5x5xf32>
    %261 = arith.mulf %256, %260 : vector<2x5x5xf32>
    "tpu.trace_start"() <{level = 10 : i32, message = "bqk,bkd->bqd"}> : () -> ()
    %cst_132 = arith.constant dense<0.000000e+00> : vector<2x5x16xf32>
    %262 = tpu.matmul %261, %248, %cst_132 {dimension_numbers = #tpu.dot_dimension_numbers<[2], [1], [1], [2], [0, 0, 0, 1, 1, 2], [0], [0]>} : vector<2x5x5xf32>, vector<2x5x16xf32>, vector<2x5x16xf32> -> vector<2x5x16xf32>
    "tpu.trace_stop"() : () -> ()
    %263 = vector.extract_strided_slice %243 {offsets = [0, 0, 16], sizes = [2, 5, 16], strides = [1, 1, 1]} : vector<2x5x64xf32> to vector<2x5x16xf32>
    %264 = vector.extract_strided_slice %244 {offsets = [0, 0, 16], sizes = [2, 5, 16], strides = [1, 1, 1]} : vector<2x5x64xf32> to vector<2x5x16xf32>
    %265 = vector.extract_strided_slice %245 {offsets = [0, 0, 16], sizes = [2, 5, 16], strides = [1, 1, 1]} : vector<2x5x64xf32> to vector<2x5x16xf32>
    "tpu.trace_start"() <{level = 10 : i32, message = "bqd,bkd->bqk"}> : () -> ()
    %cst_133 = arith.constant dense<0.000000e+00> : vector<2x5x5xf32>
    %266 = tpu.matmul %263, %264, %cst_133 {dimension_numbers = #tpu.dot_dimension_numbers<[2], [2], [1], [1], [0, 0, 0, 1, 1, 1], [0], [0]>} : vector<2x5x16xf32>, vector<2x5x16xf32>, vector<2x5x5xf32> -> vector<2x5x5xf32>
    "tpu.trace_stop"() : () -> ()
    %cst_134 = arith.constant 2.500000e-01 : f32
    %267 = vector.broadcast %cst_134 : f32 to vector<2x5x5xf32>
    %268 = arith.mulf %266, %267 : vector<2x5x5xf32>
    %cst_135 = arith.constant dense<0xFF800000> : vector<2x5xf32>
    %269 = vector.multi_reduction <maximumf>, %268, %cst_135 [2] : vector<2x5x5xf32> to vector<2x5xf32>
    %270 = vector.shape_cast %269 : vector<2x5xf32> to vector<2x5x1xf32>
    %271 = vector.broadcast %270 : vector<2x5x1xf32> to vector<2x5x5xf32>
    %272 = arith.subf %268, %271 : vector<2x5x5xf32>
    %273 = math.exp %272 : vector<2x5x5xf32>
    %cst_136 = arith.constant dense<0.000000e+00> : vector<2x5xf32>
    %274 = vector.multi_reduction <add>, %273, %cst_136 [2] : vector<2x5x5xf32> to vector<2x5xf32>
    %275 = vector.shape_cast %274 : vector<2x5xf32> to vector<2x5x1xf32>
    %276 = tpu.reciprocal %275 {approx = true} : vector<2x5x1xf32> -> vector<2x5x1xf32>
    %277 = vector.broadcast %276 : vector<2x5x1xf32> to vector<2x5x5xf32>
    %278 = arith.mulf %273, %277 : vector<2x5x5xf32>
    "tpu.trace_start"() <{level = 10 : i32, message = "bqk,bkd->bqd"}> : () -> ()
    %cst_137 = arith.constant dense<0.000000e+00> : vector<2x5x16xf32>
    %279 = tpu.matmul %278, %265, %cst_137 {dimension_numbers = #tpu.dot_dimension_numbers<[2], [1], [1], [2], [0, 0, 0, 1, 1, 2], [0], [0]>} : vector<2x5x5xf32>, vector<2x5x16xf32>, vector<2x5x16xf32> -> vector<2x5x16xf32>
    "tpu.trace_stop"() : () -> ()
    %280 = vector.extract_strided_slice %243 {offsets = [0, 0, 32], sizes = [2, 5, 16], strides = [1, 1, 1]} : vector<2x5x64xf32> to vector<2x5x16xf32>
    %281 = vector.extract_strided_slice %244 {offsets = [0, 0, 32], sizes = [2, 5, 16], strides = [1, 1, 1]} : vector<2x5x64xf32> to vector<2x5x16xf32>
    %282 = vector.extract_strided_slice %245 {offsets = [0, 0, 32], sizes = [2, 5, 16], strides = [1, 1, 1]} : vector<2x5x64xf32> to vector<2x5x16xf32>
    "tpu.trace_start"() <{level = 10 : i32, message = "bqd,bkd->bqk"}> : () -> ()
    %cst_138 = arith.constant dense<0.000000e+00> : vector<2x5x5xf32>
    %283 = tpu.matmul %280, %281, %cst_138 {dimension_numbers = #tpu.dot_dimension_numbers<[2], [2], [1], [1], [0, 0, 0, 1, 1, 1], [0], [0]>} : vector<2x5x16xf32>, vector<2x5x16xf32>, vector<2x5x5xf32> -> vector<2x5x5xf32>
    "tpu.trace_stop"() : () -> ()
    %cst_139 = arith.constant 2.500000e-01 : f32
    %284 = vector.broadcast %cst_139 : f32 to vector<2x5x5xf32>
    %285 = arith.mulf %283, %284 : vector<2x5x5xf32>
    %cst_140 = arith.constant dense<0xFF800000> : vector<2x5xf32>
    %286 = vector.multi_reduction <maximumf>, %285, %cst_140 [2] : vector<2x5x5xf32> to vector<2x5xf32>
    %287 = vector.shape_cast %286 : vector<2x5xf32> to vector<2x5x1xf32>
    %288 = vector.broadcast %287 : vector<2x5x1xf32> to vector<2x5x5xf32>
    %289 = arith.subf %285, %288 : vector<2x5x5xf32>
    %290 = math.exp %289 : vector<2x5x5xf32>
    %cst_141 = arith.constant dense<0.000000e+00> : vector<2x5xf32>
    %291 = vector.multi_reduction <add>, %290, %cst_141 [2] : vector<2x5x5xf32> to vector<2x5xf32>
    %292 = vector.shape_cast %291 : vector<2x5xf32> to vector<2x5x1xf32>
    %293 = tpu.reciprocal %292 {approx = true} : vector<2x5x1xf32> -> vector<2x5x1xf32>
    %294 = vector.broadcast %293 : vector<2x5x1xf32> to vector<2x5x5xf32>
    %295 = arith.mulf %290, %294 : vector<2x5x5xf32>
    "tpu.trace_start"() <{level = 10 : i32, message = "bqk,bkd->bqd"}> : () -> ()
    %cst_142 = arith.constant dense<0.000000e+00> : vector<2x5x16xf32>
    %296 = tpu.matmul %295, %282, %cst_142 {dimension_numbers = #tpu.dot_dimension_numbers<[2], [1], [1], [2], [0, 0, 0, 1, 1, 2], [0], [0]>} : vector<2x5x5xf32>, vector<2x5x16xf32>, vector<2x5x16xf32> -> vector<2x5x16xf32>
    "tpu.trace_stop"() : () -> ()
    %297 = vector.extract_strided_slice %243 {offsets = [0, 0, 48], sizes = [2, 5, 16], strides = [1, 1, 1]} : vector<2x5x64xf32> to vector<2x5x16xf32>
    %298 = vector.extract_strided_slice %244 {offsets = [0, 0, 48], sizes = [2, 5, 16], strides = [1, 1, 1]} : vector<2x5x64xf32> to vector<2x5x16xf32>
    %299 = vector.extract_strided_slice %245 {offsets = [0, 0, 48], sizes = [2, 5, 16], strides = [1, 1, 1]} : vector<2x5x64xf32> to vector<2x5x16xf32>
    "tpu.trace_start"() <{level = 10 : i32, message = "bqd,bkd->bqk"}> : () -> ()
    %cst_143 = arith.constant dense<0.000000e+00> : vector<2x5x5xf32>
    %300 = tpu.matmul %297, %298, %cst_143 {dimension_numbers = #tpu.dot_dimension_numbers<[2], [2], [1], [1], [0, 0, 0, 1, 1, 1], [0], [0]>} : vector<2x5x16xf32>, vector<2x5x16xf32>, vector<2x5x5xf32> -> vector<2x5x5xf32>
    "tpu.trace_stop"() : () -> ()
    %cst_144 = arith.constant 2.500000e-01 : f32
    %301 = vector.broadcast %cst_144 : f32 to vector<2x5x5xf32>
    %302 = arith.mulf %300, %301 : vector<2x5x5xf32>
    %cst_145 = arith.constant dense<0xFF800000> : vector<2x5xf32>
    %303 = vector.multi_reduction <maximumf>, %302, %cst_145 [2] : vector<2x5x5xf32> to vector<2x5xf32>
    %304 = vector.shape_cast %303 : vector<2x5xf32> to vector<2x5x1xf32>
    %305 = vector.broadcast %304 : vector<2x5x1xf32> to vector<2x5x5xf32>
    %306 = arith.subf %302, %305 : vector<2x5x5xf32>
    %307 = math.exp %306 : vector<2x5x5xf32>
    %cst_146 = arith.constant dense<0.000000e+00> : vector<2x5xf32>
    %308 = vector.multi_reduction <add>, %307, %cst_146 [2] : vector<2x5x5xf32> to vector<2x5xf32>
    %309 = vector.shape_cast %308 : vector<2x5xf32> to vector<2x5x1xf32>
    %310 = tpu.reciprocal %309 {approx = true} : vector<2x5x1xf32> -> vector<2x5x1xf32>
    %311 = vector.broadcast %310 : vector<2x5x1xf32> to vector<2x5x5xf32>
    %312 = arith.mulf %307, %311 : vector<2x5x5xf32>
    "tpu.trace_start"() <{level = 10 : i32, message = "bqk,bkd->bqd"}> : () -> ()
    %cst_147 = arith.constant dense<0.000000e+00> : vector<2x5x16xf32>
    %313 = tpu.matmul %312, %299, %cst_147 {dimension_numbers = #tpu.dot_dimension_numbers<[2], [1], [1], [2], [0, 0, 0, 1, 1, 2], [0], [0]>} : vector<2x5x5xf32>, vector<2x5x16xf32>, vector<2x5x16xf32> -> vector<2x5x16xf32>
    "tpu.trace_stop"() : () -> ()
    %314 = tpu.concatenate %262, %279, %296, %313 in 2 : vector<2x5x16xf32>, vector<2x5x16xf32>, vector<2x5x16xf32>, vector<2x5x16xf32> -> vector<2x5x64xf32>
    %315 = vector.shape_cast %314 : vector<2x5x64xf32> to vector<10x64xf32>
    %cst_148 = arith.constant dense<0.000000e+00> : vector<10x64xf32>
    %316 = tpu.matmul %315, %203, %cst_148 {dimension_numbers = #tpu.dot_dimension_numbers<[1], [0], [0], [1], [0, 0, 1, 1], [], []>} : vector<10x64xf32>, vector<64x64xf32>, vector<10x64xf32> -> vector<10x64xf32>
    %317 = vector.broadcast %205 : vector<1x64xf32> to vector<10x64xf32>
    %318 = arith.addf %316, %317 : vector<10x64xf32>
    %319 = vector.shape_cast %318 : vector<10x64xf32> to vector<2x5x64xf32>
    %320 = arith.addf %193, %319 : vector<2x5x64xf32>
    %321 = vector.shape_cast %320 : vector<2x5x64xf32> to vector<10x64xf32>
    %cst_149 = arith.constant dense<0.000000e+00> : vector<10xf32>
    %322 = vector.multi_reduction <add>, %321, %cst_149 [1] : vector<10x64xf32> to vector<10xf32>
    %323 = vector.shape_cast %322 : vector<10xf32> to vector<10x1xf32>
    %cst_150 = arith.constant 6.400000e+01 : f32
    %324 = vector.broadcast %cst_150 : f32 to vector<10x1xf32>
    %325 = arith.divf %323, %324 : vector<10x1xf32>
    %326 = vector.broadcast %325 : vector<10x1xf32> to vector<10x64xf32>
    %327 = arith.subf %321, %326 : vector<10x64xf32>
    %328 = arith.mulf %327, %327 : vector<10x64xf32>
    %cst_151 = arith.constant dense<0.000000e+00> : vector<10xf32>
    %329 = vector.multi_reduction <add>, %328, %cst_151 [1] : vector<10x64xf32> to vector<10xf32>
    %330 = vector.shape_cast %329 : vector<10xf32> to vector<10x1xf32>
    %cst_152 = arith.constant 6.400000e+01 : f32
    %331 = vector.broadcast %cst_152 : f32 to vector<10x1xf32>
    %332 = arith.divf %330, %331 : vector<10x1xf32>
    %cst_153 = arith.constant 9.99999974E-6 : f32
    %333 = vector.broadcast %cst_153 : f32 to vector<10x1xf32>
    %334 = arith.addf %332, %333 : vector<10x1xf32>
    %335 = math.rsqrt %334 : vector<10x1xf32>
    %336 = vector.broadcast %335 : vector<10x1xf32> to vector<10x64xf32>
    %337 = arith.mulf %327, %336 : vector<10x64xf32>
    %338 = vector.broadcast %207 : vector<1x64xf32> to vector<10x64xf32>
    %339 = arith.mulf %337, %338 : vector<10x64xf32>
    %340 = vector.broadcast %209 : vector<1x64xf32> to vector<10x64xf32>
    %341 = arith.addf %339, %340 : vector<10x64xf32>
    %cst_154 = arith.constant dense<0.000000e+00> : vector<10x256xf32>
    %342 = tpu.matmul %341, %211, %cst_154 {dimension_numbers = #tpu.dot_dimension_numbers<[1], [0], [0], [1], [0, 0, 1, 1], [], []>} : vector<10x64xf32>, vector<64x256xf32>, vector<10x256xf32> -> vector<10x256xf32>
    %343 = vector.broadcast %213 : vector<1x256xf32> to vector<10x256xf32>
    %344 = arith.addf %342, %343 : vector<10x256xf32>
    %cst_155 = arith.constant 1.702000e+00 : f32
    %345 = vector.broadcast %cst_155 : f32 to vector<10x256xf32>
    %346 = arith.mulf %345, %344 : vector<10x256xf32>
    %347 = arith.negf %346 : vector<10x256xf32>
    %348 = math.exp %347 : vector<10x256xf32>
    %cst_156 = arith.constant 1.000000e+00 : f32
    %349 = vector.broadcast %cst_156 : f32 to vector<10x256xf32>
    %350 = arith.addf %349, %348 : vector<10x256xf32>
    %351 = arith.divf %349, %350 : vector<10x256xf32>
    %352 = arith.mulf %344, %351 : vector<10x256xf32>
    %cst_157 = arith.constant dense<0.000000e+00> : vector<10x64xf32>
    %353 = tpu.matmul %352, %215, %cst_157 {dimension_numbers = #tpu.dot_dimension_numbers<[1], [0], [0], [1], [0, 0, 1, 1], [], []>} : vector<10x256xf32>, vector<256x64xf32>, vector<10x64xf32> -> vector<10x64xf32>
    %354 = vector.broadcast %217 : vector<1x64xf32> to vector<10x64xf32>
    %355 = arith.addf %353, %354 : vector<10x64xf32>
    %356 = vector.shape_cast %355 : vector<10x64xf32> to vector<2x5x64xf32>
    %357 = arith.addf %320, %356 : vector<2x5x64xf32>
    %358 = vector.extract_strided_slice %357 {offsets = [0, 0, 0], sizes = [2, 1, 64], strides = [1, 1, 1]} : vector<2x5x64xf32> to vector<2x1x64xf32>
    %359 = vector.shape_cast %358 : vector<2x1x64xf32> to vector<2x64xf32>
    %c0_158 = arith.constant 0 : index
    %c0_159 = arith.constant 0 : index
    %360 = vector.load %arg17[%c0_158, %c0_159] : memref<1x64xf32, #tpu.memory_space<vmem>>, vector<1x64xf32>
    %c0_160 = arith.constant 0 : index
    %c0_161 = arith.constant 0 : index
    %361 = vector.load %arg18[%c0_160, %c0_161] : memref<1x64xf32, #tpu.memory_space<vmem>>, vector<1x64xf32>
    %cst_162 = arith.constant dense<0.000000e+00> : vector<2xf32>
    %362 = vector.multi_reduction <add>, %359, %cst_162 [1] : vector<2x64xf32> to vector<2xf32>
    %363 = vector.shape_cast %362 : vector<2xf32> to vector<2x1xf32>
    %cst_163 = arith.constant 6.400000e+01 : f32
    %364 = vector.broadcast %cst_163 : f32 to vector<2x1xf32>
    %365 = arith.divf %363, %364 : vector<2x1xf32>
    %366 = vector.broadcast %365 : vector<2x1xf32> to vector<2x64xf32>
    %367 = arith.subf %359, %366 : vector<2x64xf32>
    %368 = arith.mulf %367, %367 : vector<2x64xf32>
    %cst_164 = arith.constant dense<0.000000e+00> : vector<2xf32>
    %369 = vector.multi_reduction <add>, %368, %cst_164 [1] : vector<2x64xf32> to vector<2xf32>
    %370 = vector.shape_cast %369 : vector<2xf32> to vector<2x1xf32>
    %cst_165 = arith.constant 6.400000e+01 : f32
    %371 = vector.broadcast %cst_165 : f32 to vector<2x1xf32>
    %372 = arith.divf %370, %371 : vector<2x1xf32>
    %cst_166 = arith.constant 9.99999974E-6 : f32
    %373 = vector.broadcast %cst_166 : f32 to vector<2x1xf32>
    %374 = arith.addf %372, %373 : vector<2x1xf32>
    %375 = math.rsqrt %374 : vector<2x1xf32>
    %376 = vector.broadcast %375 : vector<2x1xf32> to vector<2x64xf32>
    %377 = arith.mulf %367, %376 : vector<2x64xf32>
    %378 = vector.broadcast %360 : vector<1x64xf32> to vector<2x64xf32>
    %379 = arith.mulf %377, %378 : vector<2x64xf32>
    %380 = vector.broadcast %361 : vector<1x64xf32> to vector<2x64xf32>
    %381 = arith.addf %379, %380 : vector<2x64xf32>
    %c0_167 = arith.constant 0 : index
    %c0_168 = arith.constant 0 : index
    %382 = vector.load %arg19[%c0_167, %c0_168] : memref<64x32xf32, #tpu.memory_space<vmem>>, vector<64x32xf32>
    %cst_169 = arith.constant dense<0.000000e+00> : vector<2x32xf32>
    %383 = tpu.matmul %381, %382, %cst_169 {dimension_numbers = #tpu.dot_dimension_numbers<[1], [0], [0], [1], [0, 0, 1, 1], [], []>} : vector<2x64xf32>, vector<64x32xf32>, vector<2x32xf32> -> vector<2x32xf32>
    %384 = arith.mulf %383, %383 : vector<2x32xf32>
    %cst_170 = arith.constant dense<0.000000e+00> : vector<2xf32>
    %385 = vector.multi_reduction <add>, %384, %cst_170 [1] : vector<2x32xf32> to vector<2xf32>
    %386 = vector.shape_cast %385 : vector<2xf32> to vector<2x1xf32>
    %cst_171 = arith.constant 9.99999996E-13 : f32
    %387 = vector.broadcast %cst_171 : f32 to vector<2x1xf32>
    %388 = arith.addf %386, %387 : vector<2x1xf32>
    %389 = math.rsqrt %388 : vector<2x1xf32>
    %390 = vector.broadcast %389 : vector<2x1xf32> to vector<2x32xf32>
    %391 = arith.mulf %383, %390 : vector<2x32xf32>
    %c0_172 = arith.constant 0 : index
    %c0_173 = arith.constant 0 : index
    %392 = vector.load %arg20[%c0_172, %c0_173] : memref<2x32xf32, #tpu.memory_space<vmem>>, vector<2x32xf32>
    tpu.vector_store %arg20[%c0_172, %c0_173], %391 {strides = array<i32>} : memref<2x32xf32, #tpu.memory_space<vmem>>, vector<2x32xf32>,
    return
  }
}

</mosaic_0001>

<bundles_post_ra>
// kernel: contrastive_forward.2
= control target key start
LH: loop header
LB: loop body
LE: loop exit
PB: predicated region body
PF: predicated region fallthrough
CT: control target
= control target key end

     0   :  { %s6122_s0 = inlined_call_operand.vmem [shape: f32[2,8,64], index: 0, kind: input, shape index: {}]   ;;  %s6123_s1 = inlined_call_operand.vmem [shape: f32[2,8,8], index: 1, kind: input, shape index: {}]   ;;  %s6124_s2 = inlined_call_operand.vmem [shape: f32[2,16], index: 2, kind: input, shape index: {}]   ;;  %s6125_s3 = inlined_call_operand.vmem [shape: f32[2,1,64], index: 3, kind: input, shape index: {}]   ;;  %s6126_s4 = inlined_call_operand.vmem [shape: f32[2,1,64], index: 4, kind: input, shape index: {}]   ;;  %s6127_s5 = inlined_call_operand.vmem [shape: f32[2,64,192], index: 5, kind: input, shape index: {}]   ;;  %s6128_s6 = inlined_call_operand.vmem [shape: f32[2,1,192], index: 6, kind: input, shape index: {}]   ;;  %s6129_s7 = inlined_call_operand.vmem [shape: f32[2,64,64], index: 7, kind: input, shape index: {}]   ;;  %s6130_s8 = inlined_call_operand.vmem [shape: f32[2,1,64], index: 8, kind: input, shape index: {}]   ;;  %s6131_s9 = inlined_call_operand.vmem [shape: f32[2,1,64], index: 9, kind: input, shape index: {}]   ;;  %s6132_s10 = inlined_call_operand.vmem [shape: f32[2,1,64], index: 10, kind: input, shape index: {}]   ;;  %s6133_s11 = inlined_call_operand.vmem [shape: f32[2,64,256], index: 11, kind: input, shape index: {}]   ;;  %s6134_s12 = inlined_call_operand.vmem [shape: f32[2,1,256], index: 12, kind: input, shape index: {}]   ;;  %s6135_s13 = inlined_call_operand.vmem [shape: f32[2,256,64], index: 13, kind: input, shape index: {}]   ;;  %s6136_s14 = inlined_call_operand.vmem [shape: f32[2,1,64], index: 14, kind: input, shape index: {}]   ;;  %s6137_s15 = inlined_call_operand.vmem [shape: f32[1,64], index: 15, kind: input, shape index: {}]   ;;  %s6138_s16 = inlined_call_operand.vmem [shape: f32[1,64], index: 16, kind: input, shape index: {}]   ;;  %s6139_s17 = inlined_call_operand.vmem [shape: f32[64,32], index: 17, kind: input, shape index: {}]   ;;  %s6140_s18 = inlined_call_operand.hbm [shape: f32[2,32], index: 18, kind: output, shape index: {}]  }
   0x1   :  { %6149 = sst [smem:[#allocation5_spill]] %s6122_s0 }
   0x2   :  { %6150 = sst [smem:[#allocation6_spill]] %s6123_s1 }
   0x3   :  { %6151 = sst [smem:[#allocation7_spill]] %s6124_s2 }
   0x4   :  { %s6152_s29 = sld [smem:[#allocation5_spill]]  ;;  %vm144_vm0 = vcmask 523264  }
   0xa   :  { %v5135_v0 = vld [vmem:[%s6152_s29] sm:$0xff]  ;;  %v5140_v1 = vld [vmem:[%s6152_s29 + $0x8] sm:$0xff] }
   0xb   :  { %23 = vsyncpa [#allocation3], 0  ;;  %v145_v2 = vsel %vm144_vm0, %v5135_v0, 0.0  ;;  %v148_v3 = vsel %vm144_vm0, %v5140_v1, 0.0  ;;  %v67_v14 = vld [vmem:[%s6127_s5 + $0x8] sm:$0xff]  ;;  %v69_v15 = vld [vmem:[%s6127_s5 + $0x18] sm:$0xff]  ;;  %v189_v55 = vlaneseq }
   0xc   :  { %146 = vadd.xlane.f32.xlu0 %v145_v2  ;;  %v4696_v16 = vpack.c.bf16 %v69_v15, %v67_v14  ;;  %v66_v17 = vld [vmem:[%s6127_s5] sm:$0xff]  ;;  %v68_v18 = vld [vmem:[%s6127_s5 + $0x10] sm:$0xff]  ;;  %v71_v20 = vld [vmem:[%s6127_s5 + $0x28] sm:$0xff]  ;;  %v5026_v33 = vmov 0.0   ;;  %vm5027_vm1 = vmmov 0   ;;  %s5028_s25 = smov 64  }
   0xd   :  { %v4698_v19 = vpack.c.bf16 %v68_v18, %v66_v17  ;;  %v73_v21 = vld [vmem:[%s6127_s5 + $0x38] sm:$0xff]  ;;  %v70_v23 = vld [vmem:[%s6127_s5 + $0x20] sm:$0xff]  ;;  %v72_v24 = vld [vmem:[%s6127_s5 + $0x30] sm:$0xff]  ;;  %269 = vmatprep.mubr.f32.mxu0 %v5026_v33  ;;  %4477 = vmatprep.subr.mxu1 %v5026_v33  ;;  %v190_v56 = vshrl.u32 %v189_v55, 7  ;;  %vm285_vm2 = vcmask 130048   ;;  %s6153_s28 = sld [smem:[#allocation6_spill]] }
   0xe   :  { %4697 = vmatprep.subr.bf16.mxu0 %v4696_v16  ;;  %v4700_v22 = vpack.c.bf16 %v73_v21, %v71_v20  ;;  %v4702_v25 = vpack.c.bf16 %v72_v24, %v70_v23  ;;  %v75_v26 = vld [vmem:[%s6127_s5 + $0x48] sm:$0xff]  ;;  %v77_v27 = vld [vmem:[%s6127_s5 + $0x58] sm:$0xff]  ;;  %v74_v28 = vld [vmem:[%s6127_s5 + $0x40] sm:$0xff]  ;;  %4479 = vmatprep.mubr.msk.f32.mxu1 %vm5027_vm1, %v5026_v33  ;;  %vm441_vm3 = vcmask 64512   ;;  %s5029_s0 = smov 48   ;;  %s5030_s19 = smov 112  }
   0xf   :  { %4699 = vmatpush1.bf16.msra.mxu0 %v4698_v19  ;;  %v4704_v29 = vpack.c.bf16 %v77_v27, %v75_v26  ;;  %v76_v30 = vld [vmem:[%s6127_s5 + $0x50] sm:$0xff]  ;;  %v79_v31 = vld [vmem:[%s6127_s5 + $0x68] sm:$0xff]  ;;  %v81_v32 = vld [vmem:[%s6127_s5 + $0x78] sm:$0xff]  ;;  %v5214_v57 = vsub.s32 0, %v190_v56  ;;  %v5220_v61 = vsub.s32 1, %v190_v56  ;;  %s5031_s1 = smov 32  }
  0x10   :  { %149 = vadd.xlane.f32.xlu0 %v148_v3  ;;  %4701 = vmatprep.subr.bf16.mxu0 %v4700_v22  ;;  %v4706_v34 = vpack.c.bf16 %v76_v30, %v74_v28  ;;  %v4708_v35 = vpack.c.bf16 %v81_v32, %v79_v31  ;;  %v78_v36 = vld [vmem:[%s6127_s5 + $0x60] sm:$0xff]  ;;  %v80_v37 = vld [vmem:[%s6127_s5 + $0x70] sm:$0xff]  ;;  %s6147_s20 = smov 96   ;;  %s6145_s21 = smov 16   ;;  %vm1640_vm4 = vcmask 261120   ;;  %vm1643_vm5 = vcmask 392192  }
  0x11   :  { %v4710_v38 = vpack.c.bf16 %v80_v37, %v78_v36  ;;  %v4136_v46 = vld [vmem:[%s6125_s3] ss:$0 sm:$0xff]  ;;  %s6143_s22 = smov 80   ;;  %s6156_s30 = smov 80   ;;  %vm4114_vm6 = vcmask 254976  }
  0x12   :  { %v4137_v48 = vld [vmem:[%s6126_s4] ss:$0 sm:$0xff] }
  0x13   :  { %4703 = vmatpush1.bf16.msra.mxu0 %v4702_v25  ;;  %v82_v58 = vld [vmem:[%s6128_s6] sm:$0x3]  ;;  %v5258_v16 = vld [vmem:[%s6153_s28 + $0x8] sm:$0xff] }
  0x14   :  { %4705 = vmatprep.subr.bf16.mxu0 %v4704_v29  ;;  %v192_v59 = vrot.slane %v82_v58, %v5214_v57  ;;  %v196_v2 = vrot.slane %v82_v58, %v5220_v61 }
  0x17   :  { %4707 = vmatpush1.bf16.msra.mxu0 %v4706_v34 }
  0x18   :  { %4709 = vmatprep.subr.bf16.mxu0 %v4708_v35 }
  0x1b   :  { %4711 = vmatpush1.bf16.msra.mxu0 %v4710_v38 }
  0x1c   :  { %4472 = vmatprep.subr.mxu0 %v5026_v33 }
  0x99   :  { %v147_v4 = vpop.xlane.xlu0 %146 }
  0x9a   :  { %v152_v5 = vmul.f32 0.015625, %v147_v4 }
  0x9c   :  { %v154_v6 = vsub.f32 %v5135_v0, %v152_v5 }
  0x9d   :  { %v150_v7 = vpop.xlane.xlu0 %149 }
  0x9e   :  { %v153_v8 = vmul.f32 0.015625, %v150_v7  ;;  %v156_v9 = vmul.f32 %v154_v6, %v154_v6 }
  0xa0   :  { %v155_v10 = vsub.f32 %v5140_v1, %v153_v8  ;;  %v158_v11 = vsel %vm144_vm0, %v156_v9, 0.0 }
  0xa1   :  { %159 = vadd.xlane.f32.xlu1 %v158_v11  ;;  %v5252_v11 = vld [vmem:[%s6153_s28] sm:$0xff] }
  0xa2   :  { %v157_v12 = vmul.f32 %v155_v10, %v155_v10 }
  0xa4   :  { %v161_v13 = vsel %vm144_vm0, %v157_v12, 0.0 }
  0xa5   :  { %162 = vadd.xlane.f32.xlu1 %v161_v13 }
 0x12e   :  { %v160_v39 = vpop.xlane.xlu1 %159 }
 0x12f   :  { %v164_v40 = vmul.f32 0.015625, %v160_v39 }
 0x131   :  { %v166_v41 = vadd.f32 1e-05, %v164_v40 }
 0x132   :  { %v163_v42 = vpop.xlane.xlu1 %162 }
 0x133   :  { %4882 = vrsqrt.f32 %v166_v41  ;;  %v165_v43 = vmul.f32 0.015625, %v163_v42 }
 0x135   :  { %v167_v44 = vadd.f32 1e-05, %v165_v43 }
 0x137   :  { %4884 = vrsqrt.f32 %v167_v44 }
 0x13d   :  { %v4883_v45 = vpop.eup %4882 }
 0x13e   :  { %v170_v47 = vmul.f32 %v4883_v45, %v154_v6 }
 0x140   :  { %v178_v49 = vmul.f32 %v4136_v46, %v170_v47 }
 0x141   :  { %v4885_v50 = vpop.eup %4884 }
 0x142   :  { %v186_v51 = vadd.f32 %v4137_v48, %v178_v49  ;;  %v171_v52 = vmul.f32 %v4885_v50, %v155_v10 }
 0x144   :  { %4138 = vmatmul.mubr.msk.f32.vlgmr.msra.gmra.mrb[0].mxu0 %vm144_vm0, %v186_v51  ;;  %v179_v53 = vmul.f32 %v4136_v46, %v171_v52 }
 0x145   :  { %275 = vmatprep.mubr.f32.mxu0 %v5026_v33 }
 0x146   :  { %v187_v54 = vadd.f32 %v4137_v48, %v179_v53 }
 0x148   :  { %4139 = vmatmul.mubr.msk.f32.gmra.mrb[2].mxu0 %vm144_vm0, %v187_v54 }
 0x149   :  { %4474 = vmatprep.mubr.msk.f32.mxu0 %vm5027_vm1, %v5026_v33 }
 0x217   :  { %v271_v60 = vpop.f32.mrb[0].mxu0 }
 0x218   :  { %v5222_v62 = vadd.f32 %v271_v60, %v192_v59  ;;  %v273_v63 = vpop.f32.mrb[1].mxu0 }
 0x219   :  { %v5241_v9 = vadd.f32 %v273_v63, %v196_v2 }
 0x21a   :  { %283 = vrot.lane.b32.xlu0 %v5222_v62, %s5028_s25 }
 0x21b   :  { %v277_v3 = vpop.f32.mrb[2].mxu0 }
 0x21c   :  { %v5227_v4 = vadd.f32 %v277_v3, %v192_v59  ;;  %v279_v5 = vpop.f32.mrb[3].mxu0 }
 0x21d   :  { %v5229_v6 = vadd.f32 %v279_v5, %v196_v2 }
 0x21e   :  { %361 = vrot.lane.b32.xlu1 %v5227_v4, %s5028_s25 }
 0x28c   :  { %v284_v7 = vpop.permute.xlu0 %283 }
 0x28d   :  { %4473 = vmatpush3.xpose.msk.msra.mxu0 %vm285_vm2, %v284_v7 }
 0x28e   :  { %4497 = vmatprep.subr.mxu0 %v5026_v33 }
 0x290   :  { %v362_v8 = vpop.permute.xlu1 %361  ;;  %4475 = vmatmul.mubr.msk.f32.vlgmr.msra.gmra.mrb[4].mxu0 %vm285_vm2, %v5222_v62 }
 0x291   :  { %4478 = vmatpush3.xpose.msk.msra.mxu1 %vm285_vm2, %v362_v8  ;;  %4499 = vmatprep.mubr.msk.f32.mxu0 %vm5027_vm1, %v5026_v33 }
 0x292   :  { %4482 = vmatprep.subr.mxu1 %v5026_v33 }
 0x294   :  { %4480 = vmatmul.mubr.msk.f32.vlgmr.msra.gmra.mrb[0].mxu1 %vm285_vm2, %v5227_v4 }
 0x295   :  { %4483 = vmatpush3.msra.mxu1 %v5241_v9  ;;  %4484 = vmatprep.mubr.msk.f32.mxu1 %vm5027_vm1, %v5026_v33 }
 0x296   :  { %4487 = vmatprep.subr.mxu1 %v5026_v33 }
 0x363   :  { %v356_v10 = vpop.f32.mrb[4].mxu0 }
 0x364   :  { %v437_v12 = vmul.f32 0.25, %v356_v10  ;;  %v4476_v13 = vpop.f32.mrb[5].mxu0 }
 0x366   :  { %v439_v14 = vadd.f32 %v437_v12, %v5252_v11 }
 0x367   :  { %v433_v15 = vpop.f32.mrb[0].mxu1 }
 0x368   :  { %v438_v17 = vmul.f32 0.25, %v433_v15  ;;  %v4481_v18 = vpop.f32.mrb[1].mxu1  ;;  %v442_v19 = vsel %vm441_vm3, %v439_v14, -inf }
 0x369   :  { %443 = vmax.xlane.f32.xlu1 %v442_v19 }
 0x36a   :  { %v440_v20 = vadd.f32 %v438_v17, %v5258_v16 }
 0x36c   :  { %v445_v21 = vsel %vm441_vm3, %v440_v20, -inf }
 0x36d   :  { %446 = vmax.xlane.f32.xlu0 %v445_v21 }
 0x37a   :  { %690 = vrot.lane.b32.xlu1 %v5227_v4, %s5029_s0 }
 0x37e   :  { %610 = vrot.lane.b32.xlu1 %v5222_v62, %s5030_s19 }
 0x3f6   :  { %v444_v22 = vpop.xlane.xlu1 %443 }
 0x3f7   :  { %v448_v23 = vsub.f32 %v439_v14, %v444_v22 }
 0x3f9   :  { %v450_v24 = vmul.f32 1.442695, %v448_v23 }
 0x3fa   :  { %v691_v25 = vpop.permute.xlu1 %690  ;;  %v447_v26 = vpop.xlane.xlu0 %446 }
 0x3fb   :  { %4886 = vpow2.f32 %v450_v24  ;;  %v449_v27 = vsub.f32 %v440_v20, %v447_v26  ;;  %4498 = vmatpush3.xpose.msk.msra.mxu0 %vm285_vm2, %v691_v25 }
 0x3fc   :  { %4507 = vmatprep.subr.mxu0 %v5026_v33 }
 0x3fd   :  { %v452_v28 = vmul.f32 1.442695, %v449_v27 }
 0x3fe   :  { %v611_v34 = vpop.permute.xlu1 %610 }
 0x3ff   :  { %4888 = vpow2.f32 %v452_v28 }
 0x405   :  { %v4887_v29 = vpop.eup %4886 }
 0x406   :  { %v454_v30 = vsel %vm441_vm3, %v4887_v29, 0.0 }
 0x407   :  { %455 = vadd.xlane.f32.xlu0 %v454_v30 }
 0x409   :  { %v4889_v31 = vpop.eup %4888 }
 0x40a   :  { %v457_v32 = vsel %vm441_vm3, %v4889_v31, 0.0 }
 0x40b   :  { %458 = vadd.xlane.f32.xlu1 %v457_v32 }
 0x41c   :  { %688 = vrot.lane.b32.xlu1 %v5227_v4, %s5030_s19 }
 0x41d   :  { %612 = vrot.lane.b32.xlu0 %v5222_v62, %s5029_s0 }
 0x494   :  { %v456_v35 = vpop.xlane.xlu0 %455 }
 0x495   :  { %4890 = vrcp.f32 %v456_v35 }
 0x498   :  { %v459_v36 = vpop.xlane.xlu1 %458  ;;  %v613_v42 = vpop.permute.xlu0 %612 }
 0x499   :  { %4892 = vrcp.f32 %v459_v36 }
 0x49c   :  { %v689_v37 = vpop.permute.xlu1 %688 }
 0x49d   :  { %4500 = vmatmul.mubr.msk.f32.vlgmr.msra.gmra.mrb[6].mxu0 %vm285_vm2, %v689_v37 }
 0x49e   :  { %4509 = vmatprep.mubr.msk.f32.mxu0 %vm5027_vm1, %v5026_v33 }
 0x49f   :  { %v4891_v38 = vpop.eup %4890 }
 0x4a0   :  { %v462_v39 = vmul.f32 %v4891_v38, %v4887_v29 }
 0x4a2   :  { %4485 = vmatmul.mubr.msk.f32.vlgmr.msra.gmra.mrb[2].mxu1 %vm441_vm3, %v462_v39 }
 0x4a3   :  { %v4893_v40 = vpop.eup %4892  ;;  %4488 = vmatpush3.msra.mxu1 %v5229_v6  ;;  %4489 = vmatprep.mubr.msk.f32.mxu1 %vm5027_vm1, %v5026_v33 }
 0x4a4   :  { %v463_v41 = vmul.f32 %v4893_v40, %v4889_v31  ;;  %4492 = vmatprep.subr.mxu1 %v5026_v33 }
 0x4a6   :  { %4490 = vmatmul.mubr.msk.f32.vlgmr.msra.gmra.mrb[4].mxu1 %vm441_vm3, %v463_v41 }
 0x4a7   :  { %4494 = vmatprep.mubr.msk.f32.mxu1 %vm5027_vm1, %v5026_v33 }
 0x4aa   :  { %4493 = vmatpush3.xpose.msk.msra.mxu1 %vm285_vm2, %v613_v42 }
 0x4ab   :  { %4502 = vmatprep.subr.mxu1 %v5026_v33 }
 0x4ad   :  { %4495 = vmatmul.mubr.msk.f32.vlgmr.msra.gmra.mrb[6].mxu1 %vm285_vm2, %v611_v34 }
 0x4ae   :  { %4504 = vmatprep.mubr.msk.f32.mxu1 %vm5027_vm1, %v5026_v33 }
 0x570   :  { %v762_v43 = vpop.f32.mrb[6].mxu0 }
 0x571   :  { %v767_v44 = vmul.f32 0.25, %v762_v43  ;;  %v4501_v45 = vpop.f32.mrb[7].mxu0 }
 0x573   :  { %v769_v46 = vadd.f32 %v767_v44, %v5258_v16 }
 0x575   :  { %v5292_v47 = vpop.f32.mrb[2].mxu1  ;;  %v773_v48 = vsel %vm441_vm3, %v769_v46, -inf }
 0x576   :  { %774 = vmax.xlane.f32.xlu1 %v773_v48  ;;  %v4486_v49 = vpop.f32.mrb[3].mxu1 }
 0x579   :  { %v5295_v50 = vpop.f32.mrb[4].mxu1 }
 0x57a   :  { %v4491_v51 = vpop.f32.mrb[5].mxu1 }
 0x580   :  { %v684_v52 = vpop.f32.mrb[6].mxu1 }
 0x581   :  { %v766_v53 = vmul.f32 0.25, %v684_v52  ;;  %v4496_v54 = vpop.f32.mrb[7].mxu1 }
 0x583   :  { %v768_v55 = vadd.f32 %v766_v53, %v5252_v11 }
 0x585   :  { %v770_v56 = vsel %vm441_vm3, %v768_v55, -inf }
 0x586   :  { %771 = vmax.xlane.f32.xlu0 %v770_v56 }
 0x587   :  { %870 = vrot.lane.b32.xlu1 %v5229_v6, %s5030_s19 }
 0x58b   :  { %948 = vrot.lane.b32.xlu1 %v5222_v62, %s5031_s1 }
 0x58f   :  { %1026 = vrot.lane.b32.xlu1 %v5227_v4, %s5031_s1 }
 0x593   :  { %1024 = vrot.lane.b32.xlu1 %v5227_v4, %s6147_s20 }
 0x603   :  { %v775_v58 = vpop.xlane.xlu1 %774 }
 0x604   :  { %v777_v59 = vsub.f32 %v769_v46, %v775_v58 }
 0x606   :  { %v780_v60 = vmul.f32 1.442695, %v777_v59 }
 0x607   :  { %v871_v63 = vpop.permute.xlu1 %870 }
 0x608   :  { %4894 = vpow2.f32 %v780_v60  ;;  %4508 = vmatpush3.msra.mxu0 %v871_v63 }
 0x609   :  { %4517 = vmatprep.subr.mxu0 %v5026_v33 }
 0x60b   :  { %v949_v15 = vpop.permute.xlu1 %948 }
 0x60f   :  { %v1027_v18 = vpop.permute.xlu1 %1026 }
 0x612   :  { %v4895_v2 = vpop.eup %4894 }
 0x613   :  { %v785_v3 = vsel %vm441_vm3, %v4895_v2, 0.0  ;;  %v772_v5 = vpop.xlane.xlu0 %771  ;;  %v1025_v20 = vpop.permute.xlu1 %1024 }
 0x614   :  { %786 = vadd.xlane.f32.xlu0 %v785_v3  ;;  %v776_v7 = vsub.f32 %v768_v55, %v772_v5 }
 0x616   :  { %v778_v8 = vmul.f32 1.442695, %v776_v7 }
 0x618   :  { %4896 = vpow2.f32 %v778_v8 }
 0x622   :  { %v4897_v10 = vpop.eup %4896 }
 0x623   :  { %v782_v12 = vsel %vm441_vm3, %v4897_v10, 0.0 }
 0x62a   :  { %793 = vrot.lane.b32.xlu0 %v5241_v9, %s5030_s19 }
 0x649   :  { %783 = vadd.xlane.f32.xlu0 %v782_v12 }
 0x65f   :  { %946 = vrot.lane.b32.xlu0 %v5222_v62, %s6147_s20 }
 0x6a1   :  { %v787_v13 = vpop.xlane.xlu0 %786 }
 0x6a2   :  { %4898 = vrcp.f32 %v787_v13 }
 0x6a5   :  { %v794_v14 = vpop.permute.xlu0 %793 }
 0x6a6   :  { %4503 = vmatpush3.msra.mxu1 %v794_v14 }
 0x6a7   :  { %4512 = vmatprep.subr.mxu1 %v5026_v33 }
 0x6ac   :  { %v4899_v17 = vpop.eup %4898 }
 0x6ad   :  { %v791_v19 = vmul.f32 %v4899_v17, %v4895_v2 }
 0x6af   :  { %4510 = vmatmul.mubr.msk.f32.vlgmr.msra.gmra.mrb[8].mxu0 %vm441_vm3, %v791_v19 }
 0x6b0   :  { %4518 = vmatpush3.xpose.msk.msra.mxu0 %vm285_vm2, %v1027_v18  ;;  %4519 = vmatprep.mubr.msk.f32.mxu0 %vm5027_vm1, %v5026_v33 }
 0x6b1   :  { %4527 = vmatprep.subr.mxu0 %v5026_v33 }
 0x6b3   :  { %4520 = vmatmul.mubr.msk.f32.vlgmr.msra.gmra.mrb[10].mxu0 %vm285_vm2, %v1025_v20 }
 0x6b4   :  { %4529 = vmatprep.mubr.msk.f32.mxu0 %vm5027_vm1, %v5026_v33 }
 0x6d6   :  { %v784_v21 = vpop.xlane.xlu0 %783 }
 0x6d7   :  { %4900 = vrcp.f32 %v784_v21 }
 0x6da   :  { %v947_v24 = vpop.permute.xlu0 %946 }
 0x6e1   :  { %v4901_v22 = vpop.eup %4900 }
 0x6e2   :  { %v790_v23 = vmul.f32 %v4901_v22, %v4897_v10 }
 0x6e4   :  { %4505 = vmatmul.mubr.msk.f32.vlgmr.msra.gmra.mrb[8].mxu1 %vm441_vm3, %v790_v23 }
 0x6e5   :  { %4513 = vmatpush3.xpose.msk.msra.mxu1 %vm285_vm2, %v949_v15  ;;  %4514 = vmatprep.mubr.msk.f32.mxu1 %vm5027_vm1, %v5026_v33 }
 0x6e6   :  { %4522 = vmatprep.subr.mxu1 %v5026_v33 }
 0x6e8   :  { %4515 = vmatmul.mubr.msk.f32.vlgmr.msra.gmra.mrb[10].mxu1 %vm285_vm2, %v947_v24 }
 0x6e9   :  { %4524 = vmatprep.mubr.msk.f32.mxu1 %vm5027_vm1, %v5026_v33 }
 0x782   :  { %v5331_v25 = vpop.f32.mrb[8].mxu0 }
 0x783   :  { %v4511_v26 = vpop.f32.mrb[9].mxu0 }
 0x786   :  { %v1098_v27 = vpop.f32.mrb[10].mxu0 }
 0x787   :  { %v1103_v28 = vmul.f32 0.25, %v1098_v27  ;;  %v4521_v29 = vpop.f32.mrb[11].mxu0 }
 0x789   :  { %v1105_v30 = vadd.f32 %v1103_v28, %v5258_v16 }
 0x78b   :  { %v1109_v31 = vsel %vm441_vm3, %v1105_v30, -inf }
 0x78c   :  { %1110 = vmax.xlane.f32.xlu1 %v1109_v31 }
 0x79d   :  { %1204 = vrot.lane.b32.xlu1 %v5229_v6, %s6147_s20 }
 0x7a1   :  { %1282 = vrot.lane.b32.xlu1 %v5222_v62, %s6145_s21 }
 0x7a5   :  { %1360 = vrot.lane.b32.xlu1 %v5227_v4, %s6145_s21 }
 0x7a9   :  { %1358 = vrot.lane.b32.xlu1 %v5227_v4, %s6143_s22 }
 0x7b7   :  { %v865_v32 = vpop.f32.mrb[8].mxu1 }
 0x7b8   :  { %v4506_v34 = vpop.f32.mrb[9].mxu1 }
 0x7bb   :  { %v1020_v35 = vpop.f32.mrb[10].mxu1 }
 0x7bc   :  { %v1102_v36 = vmul.f32 0.25, %v1020_v35  ;;  %v4516_v37 = vpop.f32.mrb[11].mxu1 }
 0x7be   :  { %v1104_v38 = vadd.f32 %v1102_v36, %v5252_v11 }
 0x7c0   :  { %v1106_v39 = vsel %vm441_vm3, %v1104_v38, -inf }
 0x7c1   :  { %1107 = vmax.xlane.f32.xlu0 %v1106_v39  ;;  %v85_v39 = vld [vmem:[%s6129_s7 + $0x10] sm:$0xff] }
 0x819   :  { %v1111_v40 = vpop.xlane.xlu1 %1110 }
 0x81a   :  { %v1113_v41 = vsub.f32 %v1105_v30, %v1111_v40 }
 0x81c   :  { %v1116_v42 = vmul.f32 1.442695, %v1113_v41  ;;  %v86_v41 = vld [vmem:[%s6129_s7 + $0x18] sm:$0xff] }
 0x81d   :  { %v1205_v43 = vpop.permute.xlu1 %1204 }
 0x81e   :  { %4902 = vpow2.f32 %v1116_v42  ;;  %4528 = vmatpush3.msra.mxu0 %v1205_v43  ;;  %v4716_v42 = vpack.c.bf16 %v86_v41, %v85_v39  ;;  %v87_v43 = vld [vmem:[%s6129_s7 + $0x20] sm:$0xff]  ;;  %v104_v39 = vld [vmem:[%s6133_s11 + $0x50] sm:$0xff]  ;;  %v107_v41 = vld [vmem:[%s6133_s11 + $0x68] sm:$0xff] }
 0x81f   :  { %4537 = vmatprep.subr.mxu0 %v5026_v33 }
 0x821   :  { %v1283_v54 = vpop.permute.xlu1 %1282 }
 0x825   :  { %v1361_v56 = vpop.permute.xlu1 %1360 }
 0x828   :  { %v4903_v44 = vpop.eup %4902 }
 0x829   :  { %v1121_v4 = vsel %vm441_vm3, %v4903_v44, 0.0 }
 0x82a   :  { %1122 = vadd.xlane.f32.xlu0 %v1121_v4 }
 0x840   :  { %1128 = vrot.lane.b32.xlu0 %v5241_v9, %s6147_s20 }
 0x84e   :  { %v1108_v45 = vpop.xlane.xlu0 %1107 }
 0x84f   :  { %v1112_v46 = vsub.f32 %v1104_v38, %v1108_v45  ;;  %v84_v38 = vld [vmem:[%s6129_s7 + $0x8] sm:$0xff]  ;;  %v89_v45 = vld [vmem:[%s6129_s7 + $0x30] sm:$0xff] }
 0x851   :  { %v1114_v48 = vmul.f32 1.442695, %v1112_v46  ;;  %v90_v46 = vld [vmem:[%s6129_s7 + $0x38] sm:$0xff] }
 0x853   :  { %4904 = vpow2.f32 %v1114_v48  ;;  %v4724_v48 = vpack.c.bf16 %v90_v46, %v89_v45 }
 0x85d   :  { %v4905_v49 = vpop.eup %4904 }
 0x85e   :  { %v1118_v51 = vsel %vm441_vm3, %v4905_v49, 0.0 }
 0x85f   :  { %1119 = vadd.xlane.f32.xlu0 %v1118_v51 }
 0x875   :  { %1280 = vrot.lane.b32.xlu0 %v5222_v62, %s6143_s22  ;;  %v1359_v62 = vpop.permute.xlu1 %1358 }
 0x8b7   :  { %v1123_v52 = vpop.xlane.xlu0 %1122 }
 0x8b8   :  { %4906 = vrcp.f32 %v1123_v52 }
 0x8bb   :  { %v1129_v53 = vpop.permute.xlu0 %1128 }
 0x8bc   :  { %4523 = vmatpush3.msra.mxu1 %v1129_v53 }
 0x8bd   :  { %4532 = vmatprep.subr.mxu1 %v5026_v33 }
 0x8c2   :  { %v4907_v55 = vpop.eup %4906 }
 0x8c3   :  { %v1127_v58 = vmul.f32 %v4907_v55, %v4903_v44  ;;  %v88_v44 = vld [vmem:[%s6129_s7 + $0x28] sm:$0xff] }
 0x8c4   :  { %v4720_v4 = vpack.c.bf16 %v88_v44, %v87_v43  ;;  %v106_v43 = vld [vmem:[%s6133_s11 + $0x60] sm:$0xff] }
 0x8c5   :  { %4530 = vmatmul.mubr.msk.f32.vlgmr.msra.gmra.mrb[12].mxu0 %vm441_vm3, %v1127_v58 }
 0x8c6   :  { %4538 = vmatpush3.xpose.msk.msra.mxu0 %vm285_vm2, %v1361_v56  ;;  %4539 = vmatprep.mubr.msk.f32.mxu0 %vm5027_vm1, %v5026_v33 }
 0x8c7   :  { %4547 = vmatprep.subr.mxu0 %v5026_v33 }
 0x8c9   :  { %4540 = vmatmul.mubr.msk.f32.vlgmr.msra.gmra.mrb[14].mxu0 %vm285_vm2, %v1359_v62 }
 0x8ca   :  { %4549 = vmatprep.mubr.msk.f32.mxu0 %vm5027_vm1, %v5026_v33 }
 0x8ec   :  { %v1120_v59 = vpop.xlane.xlu0 %1119 }
 0x8ed   :  { %4908 = vrcp.f32 %v1120_v59 }
 0x8f0   :  { %v1281_v2 = vpop.permute.xlu0 %1280 }
 0x8f7   :  { %v4909_v60 = vpop.eup %4908 }
 0x8f8   :  { %v1126_v63 = vmul.f32 %v4909_v60, %v4905_v49 }
 0x8fa   :  { %4525 = vmatmul.mubr.msk.f32.vlgmr.msra.gmra.mrb[12].mxu1 %vm441_vm3, %v1126_v63 }
 0x8fb   :  { %4533 = vmatpush3.xpose.msk.msra.mxu1 %vm285_vm2, %v1283_v54  ;;  %4534 = vmatprep.mubr.msk.f32.mxu1 %vm5027_vm1, %v5026_v33 }
 0x8fc   :  { %4542 = vmatprep.subr.mxu1 %v5026_v33 }
 0x8fe   :  { %4535 = vmatmul.mubr.msk.f32.vlgmr.msra.gmra.mrb[14].mxu1 %vm285_vm2, %v1281_v2 }
 0x8ff   :  { %4544 = vmatprep.mubr.msk.f32.mxu1 %vm5027_vm1, %v5026_v33 }
 0x998   :  { %v1276_v3 = vpop.f32.mrb[12].mxu0 }
 0x999   :  { %v4531_v5 = vpop.f32.mrb[13].mxu0 }
 0x99c   :  { %v1432_v7 = vpop.f32.mrb[14].mxu0 }
 0x99d   :  { %v1437_v8 = vmul.f32 0.25, %v1432_v7  ;;  %v4541_v10 = vpop.f32.mrb[15].mxu0 }
 0x99f   :  { %v1439_v12 = vadd.f32 %v1437_v8, %v5258_v16 }
 0x9a1   :  { %v1443_v13 = vsel %vm441_vm3, %v1439_v12, -inf }
 0x9a2   :  { %1444 = vmax.xlane.f32.xlu1 %v1443_v13 }
 0x9b3   :  { %1538 = vrot.lane.b32.xlu1 %v5229_v6, %s6143_s22 }
 0x9b7   :  { %1616 = vrot.lane.b32.xlu1 %v865_v32, %s6145_s21 }
 0x9bb   :  { %1618 = vrot.lane.b32.xlu1 %v5331_v25, %s6145_s21 }
 0x9bf   :  { %1626 = vrot.lane.b32.xlu1 %v1276_v3, %s5031_s1 }
 0x9cd   :  { %v1200_v14 = vpop.f32.mrb[12].mxu1 }
 0x9ce   :  { %v4526_v15 = vpop.f32.mrb[13].mxu1 }
 0x9d1   :  { %v1354_v17 = vpop.f32.mrb[14].mxu1 }
 0x9d2   :  { %v1436_v18 = vmul.f32 0.25, %v1354_v17  ;;  %v4536_v19 = vpop.f32.mrb[15].mxu1 }
 0x9d4   :  { %v1438_v16 = vadd.f32 %v1436_v18, %v5252_v11 }
 0x9d6   :  { %v1440_v20 = vsel %vm441_vm3, %v1438_v16, -inf }
 0x9d7   :  { %1441 = vmax.xlane.f32.xlu0 %v1440_v20 }
 0xa2f   :  { %v1445_v21 = vpop.xlane.xlu1 %1444 }
 0xa30   :  { %v1447_v22 = vsub.f32 %v1439_v12, %v1445_v21 }
 0xa32   :  { %v1450_v6 = vmul.f32 1.442695, %v1447_v22 }
 0xa33   :  { %v1539_v23 = vpop.permute.xlu1 %1538 }
 0xa34   :  { %4910 = vpow2.f32 %v1450_v6  ;;  %4548 = vmatpush3.msra.mxu0 %v1539_v23 }
 0xa37   :  { %v1617_v54 = vpop.permute.xlu1 %1616 }
 0xa38   :  { %v1638_v62 = vsel %vm285_vm2, %v5292_v47, %v1617_v54  ;;  %v4164_v47 = vld [vmem:[%s6130_s8] ss:$0 sm:$0xff] }
 0xa3b   :  { %v1619_v55 = vpop.permute.xlu1 %1618 }
 0xa3c   :  { %v1639_v60 = vsel %vm285_vm2, %v5295_v50, %v1619_v55  ;;  %v4167_v55 = vld [vmem:[%s6131_s9] ss:$0 sm:$0xff] }
 0xa3e   :  { %v4911_v24 = vpop.eup %4910 }
 0xa3f   :  { %v1455_v25 = vsel %vm441_vm3, %v4911_v24, 0.0  ;;  %v1627_v56 = vpop.permute.xlu1 %1626 }
 0xa40   :  { %1456 = vadd.xlane.f32.xlu0 %v1455_v25  ;;  %v1642_v3 = vsel %vm1640_vm4, %v1639_v60, %v1627_v56  ;;  %v97_v25 = vld [vmem:[%s6133_s11 + $0x18] sm:$0xff] }
 0xa64   :  { %v1442_v26 = vpop.xlane.xlu0 %1441 }
 0xa65   :  { %v1446_v27 = vsub.f32 %v1438_v16, %v1442_v26 }
 0xa67   :  { %v1448_v28 = vmul.f32 1.442695, %v1446_v27  ;;  %v94_v27 = vld [vmem:[%s6133_s11] sm:$0xff] }
 0xa69   :  { %4912 = vpow2.f32 %v1448_v28  ;;  %v96_v28 = vld [vmem:[%s6133_s11 + $0x10] sm:$0xff] }
 0xa73   :  { %v4913_v29 = vpop.eup %4912 }
 0xa74   :  { %v1452_v11 = vsel %vm441_vm3, %v4913_v29, 0.0 }
 0xa75   :  { %1453 = vadd.xlane.f32.xlu0 %v1452_v11  ;;  %v99_v11 = vld [vmem:[%s6133_s11 + $0x28] sm:$0xff] }
 0xa8b   :  { %1462 = vrot.lane.b32.xlu0 %v5241_v9, %s6143_s22  ;;  %v83_v9 = vld [vmem:[%s6129_s7] sm:$0xff] }
 0xa8c   :  { %v4712_v40 = vpack.c.bf16 %v84_v38, %v83_v9  ;;  %v102_v38 = vld [vmem:[%s6133_s11 + $0x40] sm:$0xff] }
 0xa8f   :  { %1624 = vrot.lane.b32.xlu0 %v1200_v14, %s5031_s1 }
 0xacd   :  { %v1457_v30 = vpop.xlane.xlu0 %1456 }
 0xace   :  { %4914 = vrcp.f32 %v1457_v30  ;;  %v101_v30 = vld [vmem:[%s6133_s11 + $0x38] sm:$0xff] }
 0xad8   :  { %v4915_v31 = vpop.eup %4914 }
 0xad9   :  { %v1461_v32 = vmul.f32 %v4915_v31, %v4911_v24  ;;  %v95_v24 = vld [vmem:[%s6133_s11 + $0x8] sm:$0xff]  ;;  %v4732_v31 = vpack.c.bf16 %v101_v30, %v99_v11 }
 0xada   :  { %v4728_v26 = vpack.c.bf16 %v97_v25, %v95_v24  ;;  %v134_v24 = vld [vmem:[%s6135_s13 + $0xb8] sm:$0xff]  ;;  %v136_v11 = vld [vmem:[%s6135_s13 + $0xc8] sm:$0xff] }
 0xadb   :  { %4550 = vmatmul.mubr.msk.f32.vlgmr.msra.gmra.mrb[16].mxu0 %vm441_vm3, %v1461_v32  ;;  %v98_v32 = vld [vmem:[%s6133_s11 + $0x20] sm:$0xff] }
 0xadc   :  { %1858 = vmatprep.mubr.f32.mxu0 %v5026_v33  ;;  %4729 = vmatprep.subr.bf16.mxu0 %v4728_v26  ;;  %v117_v26 = vld [vmem:[%s6135_s13 + $0x30] sm:$0xff] }
 0xb02   :  { %v1454_v34 = vpop.xlane.xlu0 %1453 }
 0xb03   :  { %4916 = vrcp.f32 %v1454_v34  ;;  %v100_v34 = vld [vmem:[%s6133_s11 + $0x30] sm:$0xff] }
 0xb06   :  { %v1463_v35 = vpop.permute.xlu0 %1462 }
 0xb07   :  { %4543 = vmatpush3.msra.mxu1 %v1463_v35  ;;  %v4734_v35 = vpack.c.bf16 %v100_v34, %v98_v32  ;;  %v120_v32 = vld [vmem:[%s6135_s13 + $0x48] sm:$0xff] }
 0xb08   :  { %4713 = vmatprep.subr.bf16.mxu1 %v4712_v40 }
 0xb0a   :  { %v1625_v58 = vpop.permute.xlu0 %1624 }
 0xb0b   :  { %v1641_v63 = vsel %vm1640_vm4, %v1638_v62, %v1625_v58  ;;  %v4168_v58 = vld [vmem:[%s6132_s10] ss:$0 sm:$0xff] }
 0xb0d   :  { %v4917_v36 = vpop.eup %4916 }
 0xb0e   :  { %v1460_v37 = vmul.f32 %v4917_v36, %v4913_v29  ;;  %v4730_v29 = vpack.c.bf16 %v96_v28, %v94_v27  ;;  %v103_v36 = vld [vmem:[%s6133_s11 + $0x48] sm:$0xff]  ;;  %v118_v27 = vld [vmem:[%s6135_s13 + $0x38] sm:$0xff] }
 0xb0f   :  { %v4758_v28 = vpack.c.bf16 %v118_v27, %v117_v26 }
 0xb10   :  { %4545 = vmatmul.mubr.msk.f32.vlgmr.msra.gmra.mrb[16].mxu1 %vm441_vm3, %v1460_v37  ;;  %4731 = vmatpush1.bf16.msra.mxu0 %v4730_v29  ;;  %v105_v37 = vld [vmem:[%s6133_s11 + $0x58] sm:$0xff]  ;;  %v135_v29 = vld [vmem:[%s6135_s13 + $0xc0] sm:$0xff] }
 0xb11   :  { %4715 = vmatpush3.bf16.msra.mxu1 %v4712_v40  ;;  %4733 = vmatprep.subr.bf16.mxu0 %v4732_v31  ;;  %v4736_v9 = vpack.c.bf16 %v105_v37, %v103_v36  ;;  %v4738_v40 = vpack.c.bf16 %v104_v39, %v102_v38  ;;  %v4760_v30 = vpack.c.bf16 %v136_v11, %v135_v29  ;;  %v119_v31 = vld [vmem:[%s6135_s13 + $0x40] sm:$0xff]  ;;  %v138_v36 = vld [vmem:[%s6135_s13 + $0xd8] sm:$0xff] }
 0xb12   :  { %4717 = vmatprep.subr.bf16.mxu1 %v4716_v42  ;;  %v4762_v34 = vpack.c.bf16 %v120_v32, %v119_v31  ;;  %v122_v38 = vld [vmem:[%s6135_s13 + $0x58] sm:$0xff]  ;;  %v4175_v11 = vld [vmem:[%s6136_s14] ss:$0 sm:$0xff] }
 0xb14   :  { %4735 = vmatpush1.bf16.msra.mxu0 %v4734_v35  ;;  %v137_v35 = vld [vmem:[%s6135_s13 + $0xd0] sm:$0xff] }
 0xb15   :  { %4719 = vmatpush3.bf16.msra.mxu1 %v4716_v42  ;;  %4737 = vmatprep.subr.bf16.mxu0 %v4736_v9  ;;  %v109_v42 = vld [vmem:[%s6133_s11 + $0x78] sm:$0xff]  ;;  %v4764_v37 = vpack.c.bf16 %v138_v36, %v137_v35  ;;  %v121_v9 = vld [vmem:[%s6135_s13 + $0x50] sm:$0xff] }
 0xb16   :  { %4721 = vmatprep.subr.bf16.mxu1 %v4720_v4  ;;  %v4740_v44 = vpack.c.bf16 %v109_v42, %v107_v41  ;;  %v4766_v39 = vpack.c.bf16 %v122_v38, %v121_v9  ;;  %v140_v41 = vld [vmem:[%s6135_s13 + $0xe8] sm:$0xff] }
 0xb18   :  { %4739 = vmatpush1.bf16.msra.mxu0 %v4738_v40  ;;  %v139_v40 = vld [vmem:[%s6135_s13 + $0xe0] sm:$0xff] }
 0xb19   :  { %4723 = vmatpush3.bf16.msra.mxu1 %v4720_v4  ;;  %v108_v4 = vld [vmem:[%s6133_s11 + $0x70] sm:$0xff]  ;;  %4741 = vmatprep.subr.bf16.mxu0 %v4740_v44  ;;  %v4768_v42 = vpack.c.bf16 %v140_v41, %v139_v40  ;;  %v124_v44 = vld [vmem:[%s6135_s13 + $0x68] sm:$0xff] }
 0xb1a   :  { %4725 = vmatprep.subr.bf16.mxu1 %v4724_v48  ;;  %v4742_v45 = vpack.c.bf16 %v108_v4, %v106_v43  ;;  %v123_v43 = vld [vmem:[%s6135_s13 + $0x60] sm:$0xff] }
 0xb1b   :  { %v4770_v4 = vpack.c.bf16 %v124_v44, %v123_v43 }
 0xb1c   :  { %4743 = vmatpush1.bf16.msra.mxu0 %v4742_v45  ;;  %v141_v45 = vld [vmem:[%s6135_s13 + $0xf0] sm:$0xff] }
 0xb1d   :  { %4727 = vmatpush3.bf16.msra.mxu1 %v4724_v48 }
 0xbae   :  { %v1610_v49 = vpop.f32.mrb[16].mxu0 }
 0xbaf   :  { %1634 = vrot.lane.b32.xlu1 %v1610_v49, %s5029_s0  ;;  %v4551_v51 = vpop.f32.mrb[17].mxu0 }
 0xbe3   :  { %v1534_v52 = vpop.f32.mrb[16].mxu1 }
 0xbe4   :  { %1632 = vrot.lane.b32.xlu0 %v1534_v52, %s5029_s0  ;;  %v4546_v53 = vpop.f32.mrb[17].mxu1 }
 0xc21   :  { %v1635_v59 = vpop.permute.xlu1 %1634 }
 0xc22   :  { %v1645_v7 = vsel %vm1643_vm5, %v1642_v3, %v1635_v59 }
 0xc56   :  { %v1633_v2 = vpop.permute.xlu0 %1632 }
 0xc57   :  { %v1644_v5 = vsel %vm1643_vm5, %v1641_v63, %v1633_v2 }
 0xc58   :  { %4568 = vmatprep.mubr.msk.f32.mxu1 %vm144_vm0, %v1644_v5  ;;  %v127_v5 = vld [vmem:[%s6135_s13 + $0x80] sm:$0xff] }
 0xc59   :  { %4569 = vmatmul.mubr.msk.f32.vlgmr.msra.gmra.mrb[18].mxu1 %vm144_vm0, %v1645_v7  ;;  %v128_v7 = vld [vmem:[%s6135_s13 + $0x88] sm:$0xff] }
 0xd2c   :  { %v4570_v8 = vpop.f32.mrb[18].mxu1 }
 0xd2d   :  { %v1730_v10 = vadd.f32 %v4570_v8, %v4164_v47  ;;  %v1724_v50 = vpop.f32.mrb[19].mxu1  ;;  %v111_v8 = vld [vmem:[%s6135_s13] sm:$0xff] }
 0xd2e   :  { %v1725_v12 = vadd.f32 %v4164_v47, %v1724_v50  ;;  %v4744_v47 = vpack.c.bf16 %v128_v7, %v127_v5 }
 0xd2f   :  { %v5427_v13 = vadd.f32 %v1730_v10, %v5140_v1  ;;  %v112_v10 = vld [vmem:[%s6135_s13 + $0x8] sm:$0xff] }
 0xd30   :  { %v5430_v14 = vadd.f32 %v1725_v12, %v5135_v0  ;;  %v4746_v50 = vpack.c.bf16 %v112_v10, %v111_v8  ;;  %4745 = vmatprep.subr.bf16.mxu1 %v4744_v47  ;;  %v129_v12 = vld [vmem:[%s6135_s13 + $0x90] sm:$0xff] }
 0xd31   :  { %v1738_v15 = vsel %vm144_vm0, %v5427_v13, 0.0 }
 0xd32   :  { %1739 = vadd.xlane.f32.xlu1 %v1738_v15  ;;  %v1735_v17 = vsel %vm144_vm0, %v5430_v14, 0.0  ;;  %4747 = vmatpush3.bf16.msra.mxu1 %v4746_v50  ;;  %v130_v15 = vld [vmem:[%s6135_s13 + $0x98] sm:$0xff] }
 0xd33   :  { %1736 = vadd.xlane.f32.xlu0 %v1735_v17  ;;  %v4748_v17 = vpack.c.bf16 %v130_v15, %v129_v12 }
 0xd35   :  { %4749 = vmatprep.subr.bf16.mxu1 %v4748_v17 }
 0xdbf   :  { %v1740_v18 = vpop.xlane.xlu1 %1739 }
 0xdc0   :  { %v1742_v19 = vmul.f32 0.015625, %v1740_v18  ;;  %v1737_v16 = vpop.xlane.xlu0 %1736  ;;  %v113_v18 = vld [vmem:[%s6135_s13 + $0x10] sm:$0xff] }
 0xdc1   :  { %v1741_v20 = vmul.f32 0.015625, %v1737_v16 }
 0xdc2   :  { %v1744_v21 = vsub.f32 %v5427_v13, %v1742_v19  ;;  %v114_v19 = vld [vmem:[%s6135_s13 + $0x18] sm:$0xff] }
 0xdc3   :  { %v1743_v1 = vsub.f32 %v5430_v14, %v1741_v20  ;;  %v4750_v16 = vpack.c.bf16 %v114_v19, %v113_v18  ;;  %v131_v20 = vld [vmem:[%s6135_s13 + $0xa0] sm:$0xff] }
 0xdc4   :  { %v1746_v6 = vmul.f32 %v1744_v21, %v1744_v21 }
 0xdc5   :  { %v1745_v22 = vmul.f32 %v1743_v1, %v1743_v1  ;;  %4751 = vmatpush3.bf16.msra.mxu1 %v4750_v16 }
 0xdc6   :  { %v1750_v23 = vsel %vm144_vm0, %v1746_v6, 0.0 }
 0xdc7   :  { %v1747_v0 = vsel %vm144_vm0, %v1745_v22, 0.0  ;;  %v115_v22 = vld [vmem:[%s6135_s13 + $0x20] sm:$0xff] }
 0xdc8   :  { %1748 = vadd.xlane.f32.xlu0 %v1747_v0  ;;  %v116_v0 = vld [vmem:[%s6135_s13 + $0x28] sm:$0xff] }
 0xdc9   :  { %v4754_v6 = vpack.c.bf16 %v116_v0, %v115_v22 }
 0xdcc   :  { %1751 = vadd.xlane.f32.xlu0 %v1750_v23  ;;  %v133_v23 = vld [vmem:[%s6135_s13 + $0xb0] sm:$0xff] }
 0xdcd   :  { %v4756_v25 = vpack.c.bf16 %v134_v24, %v133_v23 }
 0xe55   :  { %v1749_v46 = vpop.xlane.xlu0 %1748 }
 0xe56   :  { %v1753_v48 = vmul.f32 0.015625, %v1749_v46  ;;  %v142_v46 = vld [vmem:[%s6135_s13 + $0xf8] sm:$0xff] }
 0xe58   :  { %v1755_v49 = vadd.f32 1e-05, %v1753_v48  ;;  %v4772_v48 = vpack.c.bf16 %v142_v46, %v141_v45 }
 0xe59   :  { %v1752_v51 = vpop.xlane.xlu0 %1751 }
 0xe5a   :  { %4918 = vrsqrt.f32 %v1755_v49  ;;  %v1754_v52 = vmul.f32 0.015625, %v1752_v51  ;;  %v125_v49 = vld [vmem:[%s6135_s13 + $0x70] sm:$0xff]  ;;  %v126_v51 = vld [vmem:[%s6135_s13 + $0x78] sm:$0xff] }
 0xe5c   :  { %v1756_v53 = vadd.f32 1e-05, %v1754_v52  ;;  %v4774_v52 = vpack.c.bf16 %v126_v51, %v125_v49  ;;  %v4179_v49 = vld [vmem:[%s6127_s5 + $0x88] sm:$0xff]  ;;  %v4181_v51 = vld [vmem:[%s6127_s5 + $0x98] sm:$0xff] }
 0xe5e   :  { %4920 = vrsqrt.f32 %v1756_v53  ;;  %v110_v53 = vld [vmem:[%s6134_s12] sm:$0x3] }
 0xe64   :  { %v4919_v54 = vpop.eup %4918 }
 0xe65   :  { %v1759_v56 = vmul.f32 %v4919_v54, %v1743_v1  ;;  %v1781_v54 = vrot.slane %v110_v53, %v5214_v57 }
 0xe67   :  { %v1767_v62 = vmul.f32 %v4167_v55, %v1759_v56 }
 0xe68   :  { %v4921_v59 = vpop.eup %4920 }
 0xe69   :  { %v1775_v60 = vadd.f32 %v4168_v58, %v1767_v62  ;;  %v1760_v63 = vmul.f32 %v4921_v59, %v1744_v21  ;;  %v132_v21 = vld [vmem:[%s6135_s13 + $0xa8] sm:$0xff] }
 0xe6a   :  { %v4752_v1 = vpack.c.bf16 %v132_v21, %v131_v20 }
 0xe6b   :  { %4169 = vmatmul.mubr.msk.f32.vlgmr.msra.gmra.mrb[18].mxu0 %vm144_vm0, %v1775_v60  ;;  %v1768_v2 = vmul.f32 %v4167_v55, %v1760_v63  ;;  %v1785_v55 = vrot.slane %v110_v53, %v5220_v61  ;;  %v4178_v53 = vld [vmem:[%s6127_s5 + $0x80] sm:$0xff] }
 0xe6c   :  { %1864 = vmatprep.mubr.f32.mxu0 %v5026_v33  ;;  %4753 = vmatprep.subr.bf16.mxu1 %v4752_v1 }
 0xe6d   :  { %v1776_v3 = vadd.f32 %v4168_v58, %v1768_v2  ;;  %4755 = vmatpush3.bf16.msra.mxu1 %v4754_v6 }
 0xe6e   :  { %4757 = vmatprep.subr.bf16.mxu1 %v4756_v25 }
 0xe6f   :  { %4170 = vmatmul.mubr.msk.f32.gmra.mrb[20].mxu0 %vm144_vm0, %v1776_v3 }
 0xe70   :  { %2201 = vmatprep.mubr.f32.mxu0 %v5026_v33 }
 0xe71   :  { %4759 = vmatpush3.bf16.msra.mxu1 %v4758_v28 }
 0xe72   :  { %4761 = vmatprep.subr.bf16.mxu1 %v4760_v30 }
 0xe75   :  { %4763 = vmatpush3.bf16.msra.mxu1 %v4762_v34 }
 0xe76   :  { %4765 = vmatprep.subr.bf16.mxu1 %v4764_v37 }
 0xe79   :  { %4767 = vmatpush3.bf16.msra.mxu1 %v4766_v39 }
 0xe7a   :  { %4769 = vmatprep.subr.bf16.mxu1 %v4768_v42 }
 0xe7d   :  { %4771 = vmatpush3.bf16.msra.mxu1 %v4770_v4 }
 0xe7e   :  { %4773 = vmatprep.subr.bf16.mxu1 %v4772_v48 }
 0xe81   :  { %4775 = vmatpush3.bf16.msra.mxu1 %v4774_v52  ;;  %v4776_v52 = vpack.c.bf16 %v4181_v51, %v4179_v49 }
 0xe82   :  { %4591 = vmatprep.subr.mxu1 %v5026_v33 }
 0xe83   :  { %4777 = vmatprep.subr.bf16.mxu0 %v4776_v52 }
 0xf3e   :  { %v1860_v56 = vpop.f32.mrb[18].mxu0 }
 0xf3f   :  { %v1861_v58 = vadd.f32 %v1860_v56, %v1781_v54  ;;  %v1862_v62 = vpop.f32.mrb[19].mxu0  ;;  %v4183_v56 = vld [vmem:[%s6127_s5 + $0xa8] sm:$0xff] }
 0xf40   :  { %v1863_v59 = vadd.f32 %v1862_v62, %v1785_v55 }
 0xf41   :  { %v4171_v60 = vmul.f32 -1.702, %v1861_v58 }
 0xf42   :  { %v4172_v63 = vmul.f32 -1.702, %v1863_v59  ;;  %v1866_v2 = vpop.f32.mrb[20].mxu0 }
 0xf43   :  { %v1879_v3 = vmul.f32 1.442695, %v4171_v60  ;;  %v1867_v5 = vadd.f32 %v1866_v2, %v1781_v54  ;;  %v1868_v7 = vpop.f32.mrb[21].mxu0  ;;  %v4180_v54 = vld [vmem:[%s6127_s5 + $0x90] sm:$0xff]  ;;  %v4187_v2 = vld [vmem:[%s6127_s5 + $0xc8] sm:$0xff] }
 0xf44   :  { %v1881_v47 = vmul.f32 1.442695, %v4172_v63  ;;  %v1869_v8 = vadd.f32 %v1868_v7, %v1785_v55  ;;  %v4778_v55 = vpack.c.bf16 %v4180_v54, %v4178_v53  ;;  %v4184_v60 = vld [vmem:[%s6127_s5 + $0xb0] sm:$0xff]  ;;  %v4186_v7 = vld [vmem:[%s6127_s5 + $0xc0] sm:$0xff]  ;;  %v5720_v53 = vld [vmem:[%s6153_s28 + $0x8] sm:$0xff] }
 0xf45   :  { %4922 = vpow2.f32 %v1879_v3  ;;  %v4173_v10 = vmul.f32 -1.702, %v1867_v5  ;;  %v4189_v3 = vld [vmem:[%s6127_s5 + $0xd8] sm:$0xff] }
 0xf46   :  { %4924 = vpow2.f32 %v1881_v47  ;;  %v4174_v50 = vmul.f32 -1.702, %v1869_v8  ;;  %4779 = vmatpush1.bf16.msra.mxu0 %v4778_v55  ;;  %v4188_v47 = vld [vmem:[%s6127_s5 + $0xd0] sm:$0xff] }
 0xf47   :  { %v1883_v12 = vmul.f32 1.442695, %v4173_v10  ;;  %v4191_v10 = vld [vmem:[%s6127_s5 + $0xe8] sm:$0xff] }
 0xf48   :  { %v1885_v15 = vmul.f32 1.442695, %v4174_v50  ;;  %v4193_v50 = vld [vmem:[%s6127_s5 + $0xf8] sm:$0xff] }
 0xf49   :  { %4926 = vpow2.f32 %v1883_v12  ;;  %v4788_v12 = vpack.c.bf16 %v4193_v50, %v4191_v10 }
 0xf4a   :  { %4928 = vpow2.f32 %v1885_v15  ;;  %v4190_v15 = vld [vmem:[%s6127_s5 + $0xe0] sm:$0xff] }
 0xf4f   :  { %v4923_v17 = vpop.eup %4922 }
 0xf50   :  { %v4925_v18 = vpop.eup %4924  ;;  %v1887_v19 = vadd.f32 1.0, %v4923_v17  ;;  %v4192_v17 = vld [vmem:[%s6127_s5 + $0xf0] sm:$0xff] }
 0xf51   :  { %v1888_v16 = vadd.f32 1.0, %v4925_v18  ;;  %v4790_v18 = vpack.c.bf16 %v4192_v17, %v4190_v15 }
 0xf52   :  { %4930 = vrcp.f32 %v1887_v19 }
 0xf53   :  { %v4927_v20 = vpop.eup %4926  ;;  %4932 = vrcp.f32 %v1888_v16 }
 0xf54   :  { %v4929_v21 = vpop.eup %4928  ;;  %v1889_v1 = vadd.f32 1.0, %v4927_v20 }
 0xf55   :  { %v1890_v22 = vadd.f32 1.0, %v4929_v21 }
 0xf56   :  { %4934 = vrcp.f32 %v1889_v1 }
 0xf57   :  { %4936 = vrcp.f32 %v1890_v22 }
 0xf5c   :  { %v4931_v0 = vpop.eup %4930 }
 0xf5d   :  { %v4933_v6 = vpop.eup %4932  ;;  %v1899_v24 = vmul.f32 %v4931_v0, %v1861_v58  ;;  %v4185_v58 = vld [vmem:[%s6127_s5 + $0xb8] sm:$0xff] }
 0xf5e   :  { %v1900_v23 = vmul.f32 %v4933_v6, %v1863_v59  ;;  %v4780_v62 = vpack.c.bf16 %v4185_v58, %v4183_v56  ;;  %v4182_v59 = vld [vmem:[%s6127_s5 + $0xa0] sm:$0xff] }
 0xf5f   :  { %v4782_v63 = vpack.c.bf16 %v4184_v60, %v4182_v59  ;;  %v4256_v6 = vld [vmem:[%s6125_s3 + $0x1] ss:$0 sm:$0xff] }
 0xf60   :  { %v4935_v25 = vpop.eup %4934  ;;  %1973 = vmatprep.mubr.f32.mxu1 %v1900_v23  ;;  %4781 = vmatprep.subr.bf16.mxu0 %v4780_v62 }
 0xf61   :  { %v4937_v26 = vpop.eup %4936  ;;  %1974 = vmatmul.mubr.f32.vlgmr.msra.gmra.mrb[20].mxu1 %v1899_v24  ;;  %v1901_v28 = vmul.f32 %v4935_v25, %v1867_v5  ;;  %4783 = vmatpush1.bf16.msra.mxu0 %v4782_v63  ;;  %v4784_v5 = vpack.c.bf16 %v4189_v3, %v4187_v2  ;;  %v4257_v24 = vld [vmem:[%s6126_s4 + $0x1] ss:$0 sm:$0xff] }
 0xf62   :  { %v1902_v27 = vmul.f32 %v4937_v26, %v1869_v8  ;;  %v4786_v8 = vpack.c.bf16 %v4188_v47, %v4186_v7 }
 0xf63   :  { %4785 = vmatprep.subr.bf16.mxu0 %v4784_v5 }
 0xf64   :  { %1978 = vmatprep.mubr.f32.mxu1 %v1902_v27 }
 0xf65   :  { %1979 = vmatmul.mubr.f32.gmra.mrb[22].mxu1 %v1901_v28  ;;  %4787 = vmatpush1.bf16.msra.mxu0 %v4786_v8 }
 0xf66   :  { %4593 = vmatprep.mubr.msk.f32.mxu1 %vm5027_vm1, %v5026_v33  ;;  %4789 = vmatprep.subr.bf16.mxu0 %v4788_v12 }
 0xf69   :  { %4791 = vmatpush1.bf16.msra.mxu0 %v4790_v18 }
 0xf6a   :  { %4571 = vmatprep.subr.mxu0 %v5026_v33 }
0x1034   :  { %v4374_v29 = vpop.f32.mrb[20].mxu1 }
0x1035   :  { %v4375_v30 = vpop.f32.mrb[21].mxu1 }
0x1036   :  { %v4376_v31 = vadd.f32 %v4375_v30, %v4374_v29  ;;  %v4194_v30 = vld [vmem:[%s6128_s6 + $0x2] sm:$0x3] }
0x1038   :  { %v1976_v32 = vadd.f32 %v4376_v31, %v4175_v11  ;;  %v4377_v34 = vpop.f32.mrb[22].mxu1  ;;  %v2124_v31 = vrot.slane %v4194_v30, %v5214_v57 }
0x1039   :  { %v4378_v35 = vpop.f32.mrb[23].mxu1 }
0x103a   :  { %v5606_v36 = vadd.f32 %v1976_v32, %v5430_v14  ;;  %v4379_v37 = vadd.f32 %v4378_v35, %v4377_v34 }
0x103c   :  { %v1981_v9 = vadd.f32 %v4379_v37, %v4175_v11  ;;  %v2078_v38 = vsel %vm144_vm0, %v5606_v36, 0.0  ;;  %v2128_v37 = vrot.slane %v4194_v30, %v5220_v61 }
0x103d   :  { %2079 = vadd.xlane.f32.xlu0 %v2078_v38 }
0x103e   :  { %v5611_v39 = vadd.f32 %v1981_v9, %v5427_v13 }
0x1040   :  { %v2081_v40 = vsel %vm144_vm0, %v5611_v39, 0.0 }
0x1041   :  { %2082 = vadd.xlane.f32.xlu1 %v2081_v40 }
0x10ca   :  { %v2080_v41 = vpop.xlane.xlu0 %2079 }
0x10cb   :  { %v2084_v42 = vmul.f32 0.015625, %v2080_v41 }
0x10cd   :  { %v2086_v43 = vsub.f32 %v5606_v36, %v2084_v42 }
0x10ce   :  { %v2083_v44 = vpop.xlane.xlu1 %2082 }
0x10cf   :  { %v2085_v14 = vmul.f32 0.015625, %v2083_v44  ;;  %v2088_v4 = vmul.f32 %v2086_v43, %v2086_v43 }
0x10d1   :  { %v2087_v45 = vsub.f32 %v5611_v39, %v2085_v14  ;;  %v2090_v46 = vsel %vm144_vm0, %v2088_v4, 0.0 }
0x10d2   :  { %2091 = vadd.xlane.f32.xlu0 %v2090_v46  ;;  %v5713_v46 = vld [vmem:[%s6153_s28] sm:$0xff]  ;;  %s6154_s28 = smov 96  }
0x10d3   :  { %v2089_v48 = vmul.f32 %v2087_v45, %v2087_v45 }
0x10d5   :  { %v2093_v13 = vsel %vm144_vm0, %v2089_v48, 0.0 }
0x10d6   :  { %2094 = vadd.xlane.f32.xlu1 %v2093_v13 }
0x115f   :  { %v2092_v19 = vpop.xlane.xlu0 %2091 }
0x1160   :  { %v2096_v16 = vmul.f32 0.015625, %v2092_v19 }
0x1162   :  { %v2098_v20 = vadd.f32 1e-05, %v2096_v16 }
0x1163   :  { %v2095_v21 = vpop.xlane.xlu1 %2094 }
0x1164   :  { %4938 = vrsqrt.f32 %v2098_v20  ;;  %v2097_v1 = vmul.f32 0.015625, %v2095_v21 }
0x1166   :  { %v2099_v22 = vadd.f32 1e-05, %v2097_v1 }
0x1168   :  { %4940 = vrsqrt.f32 %v2099_v22 }
0x116e   :  { %v4939_v0 = vpop.eup %4938 }
0x116f   :  { %v2102_v23 = vmul.f32 %v4939_v0, %v2086_v43 }
0x1171   :  { %v2110_v25 = vmul.f32 %v4256_v6, %v2102_v23 }
0x1172   :  { %v4941_v26 = vpop.eup %4940 }
0x1173   :  { %v2118_v27 = vadd.f32 %v4257_v24, %v2110_v25  ;;  %v2103_v28 = vmul.f32 %v4941_v26, %v2087_v45 }
0x1175   :  { %4258 = vmatmul.mubr.msk.f32.vlgmr.msra.gmra.mrb[22].mxu0 %vm144_vm0, %v2118_v27  ;;  %v2111_v29 = vmul.f32 %v4256_v6, %v2103_v28 }
0x1176   :  { %2207 = vmatprep.mubr.f32.mxu0 %v5026_v33 }
0x1177   :  { %v2119_v11 = vadd.f32 %v4257_v24, %v2111_v29 }
0x1179   :  { %4259 = vmatmul.mubr.msk.f32.gmra.mrb[24].mxu0 %vm144_vm0, %v2119_v11 }
0x117a   :  { %4573 = vmatprep.mubr.msk.f32.mxu0 %vm5027_vm1, %v5026_v33 }
0x1248   :  { %v2203_v32 = vpop.f32.mrb[22].mxu0 }
0x1249   :  { %v5683_v34 = vadd.f32 %v2203_v32, %v2124_v31  ;;  %v2205_v35 = vpop.f32.mrb[23].mxu0 }
0x124a   :  { %v5702_v44 = vadd.f32 %v2205_v35, %v2128_v37 }
0x124b   :  { %2215 = vrot.lane.b32.xlu0 %v5683_v34, %s5028_s25 }
0x124c   :  { %v2209_v9 = vpop.f32.mrb[24].mxu0 }
0x124d   :  { %v5688_v38 = vadd.f32 %v2209_v9, %v2124_v31  ;;  %v2211_v40 = vpop.f32.mrb[25].mxu0 }
0x124e   :  { %v5690_v41 = vadd.f32 %v2211_v40, %v2128_v37 }
0x124f   :  { %2292 = vrot.lane.b32.xlu1 %v5688_v38, %s5028_s25 }
0x12bd   :  { %v2216_v42 = vpop.permute.xlu0 %2215 }
0x12be   :  { %4572 = vmatpush3.xpose.msk.msra.mxu0 %vm285_vm2, %v2216_v42 }
0x12bf   :  { %4576 = vmatprep.subr.mxu0 %v5026_v33 }
0x12c1   :  { %v2293_v43 = vpop.permute.xlu1 %2292  ;;  %4574 = vmatmul.mubr.msk.f32.vlgmr.msra.gmra.mrb[26].mxu0 %vm285_vm2, %v5683_v34 }
0x12c2   :  { %4577 = vmatpush3.xpose.msk.msra.mxu0 %vm285_vm2, %v2293_v43  ;;  %4578 = vmatprep.mubr.msk.f32.mxu0 %vm5027_vm1, %v5026_v33 }
0x12c3   :  { %4581 = vmatprep.subr.mxu0 %v5026_v33 }
0x12c5   :  { %4579 = vmatmul.mubr.msk.f32.vlgmr.msra.gmra.mrb[28].mxu0 %vm285_vm2, %v5688_v38 }
0x12c6   :  { %4582 = vmatpush3.msra.mxu0 %v5702_v44  ;;  %4583 = vmatprep.mubr.msk.f32.mxu0 %vm5027_vm1, %v5026_v33 }
0x12c7   :  { %4586 = vmatprep.subr.mxu0 %v5026_v33 }
0x1394   :  { %v2287_v14 = vpop.f32.mrb[26].mxu0 }
0x1395   :  { %v2368_v4 = vmul.f32 0.25, %v2287_v14  ;;  %v4575_v45 = vpop.f32.mrb[27].mxu0 }
0x1397   :  { %v2370_v48 = vadd.f32 %v5713_v46, %v2368_v4 }
0x1398   :  { %v2364_v13 = vpop.f32.mrb[28].mxu0 }
0x1399   :  { %v2369_v49 = vmul.f32 0.25, %v2364_v13  ;;  %v4580_v51 = vpop.f32.mrb[29].mxu0  ;;  %v2372_v52 = vsel %vm441_vm3, %v2370_v48, -inf }
0x139a   :  { %2373 = vmax.xlane.f32.xlu1 %v2372_v52 }
0x139b   :  { %v2371_v54 = vadd.f32 %v5720_v53, %v2369_v49 }
0x139d   :  { %v2375_v55 = vsel %vm441_vm3, %v2371_v54, -inf }
0x139e   :  { %2376 = vmax.xlane.f32.xlu0 %v2375_v55 }
0x13ab   :  { %2620 = vrot.lane.b32.xlu1 %v5688_v38, %s5029_s0 }
0x13af   :  { %2540 = vrot.lane.b32.xlu1 %v5683_v34, %s5030_s19 }
0x1427   :  { %v2374_v56 = vpop.xlane.xlu1 %2373 }
0x1428   :  { %v2378_v58 = vsub.f32 %v2370_v48, %v2374_v56 }
0x142a   :  { %v2380_v62 = vmul.f32 1.442695, %v2378_v58 }
0x142b   :  { %v2377_v59 = vpop.xlane.xlu0 %2376  ;;  %v2621_v47 = vpop.permute.xlu1 %2620 }
0x142c   :  { %4942 = vpow2.f32 %v2380_v62  ;;  %v2379_v60 = vsub.f32 %v2371_v54, %v2377_v59 }
0x142e   :  { %v2382_v63 = vmul.f32 1.442695, %v2379_v60 }
0x142f   :  { %v2541_v8 = vpop.permute.xlu1 %2540 }
0x1430   :  { %4944 = vpow2.f32 %v2382_v63 }
0x1436   :  { %v4943_v2 = vpop.eup %4942 }
0x1437   :  { %v2384_v3 = vsel %vm441_vm3, %v4943_v2, 0.0 }
0x1438   :  { %2385 = vadd.xlane.f32.xlu0 %v2384_v3 }
0x143a   :  { %v4945_v5 = vpop.eup %4944 }
0x143b   :  { %v2387_v7 = vsel %vm441_vm3, %v4945_v5, 0.0 }
0x143c   :  { %2388 = vadd.xlane.f32.xlu1 %v2387_v7 }
0x144d   :  { %2618 = vrot.lane.b32.xlu1 %v5688_v38, %s5030_s19 }
0x144e   :  { %2542 = vrot.lane.b32.xlu0 %v5683_v34, %s5029_s0 }
0x14c5   :  { %v2386_v10 = vpop.xlane.xlu0 %2385 }
0x14c6   :  { %4946 = vrcp.f32 %v2386_v10 }
0x14c9   :  { %v2389_v50 = vpop.xlane.xlu1 %2388  ;;  %v2543_v12 = vpop.permute.xlu0 %2542 }
0x14ca   :  { %4948 = vrcp.f32 %v2389_v50  ;;  %4592 = vmatpush3.xpose.msk.msra.mxu1 %vm285_vm2, %v2543_v12 }
0x14cb   :  { %4601 = vmatprep.subr.mxu1 %v5026_v33 }
0x14cd   :  { %4594 = vmatmul.mubr.msk.f32.vlgmr.msra.gmra.mrb[24].mxu1 %vm285_vm2, %v2541_v8  ;;  %v2619_v16 = vpop.permute.xlu1 %2618 }
0x14ce   :  { %4603 = vmatprep.mubr.msk.f32.mxu1 %vm5027_vm1, %v5026_v33 }
0x14d0   :  { %v4947_v15 = vpop.eup %4946 }
0x14d1   :  { %v2392_v17 = vmul.f32 %v4947_v15, %v4943_v2 }
0x14d3   :  { %4584 = vmatmul.mubr.msk.f32.vlgmr.msra.gmra.mrb[30].mxu0 %vm441_vm3, %v2392_v17 }
0x14d4   :  { %v4949_v18 = vpop.eup %4948  ;;  %4587 = vmatpush3.msra.mxu0 %v5690_v41  ;;  %4588 = vmatprep.mubr.msk.f32.mxu0 %vm5027_vm1, %v5026_v33 }
0x14d5   :  { %v2393_v19 = vmul.f32 %v4949_v18, %v4945_v5  ;;  %4596 = vmatprep.subr.mxu0 %v5026_v33 }
0x14d7   :  { %4589 = vmatmul.mubr.msk.f32.vlgmr.msra.gmra.mrb[32].mxu0 %vm441_vm3, %v2393_v19 }
0x14d8   :  { %4598 = vmatprep.mubr.msk.f32.mxu0 %vm5027_vm1, %v5026_v33 }
0x14db   :  { %4597 = vmatpush3.xpose.msk.msra.mxu0 %vm285_vm2, %v2621_v47 }
0x14dc   :  { %4606 = vmatprep.subr.mxu0 %v5026_v33 }
0x14de   :  { %4599 = vmatmul.mubr.msk.f32.vlgmr.msra.gmra.mrb[34].mxu0 %vm285_vm2, %v2619_v16 }
0x14df   :  { %4608 = vmatprep.mubr.msk.f32.mxu0 %vm5027_vm1, %v5026_v33 }
0x15a0   :  { %v2614_v20 = vpop.f32.mrb[24].mxu1 }
0x15a1   :  { %v2696_v21 = vmul.f32 0.25, %v2614_v20  ;;  %v4595_v1 = vpop.f32.mrb[25].mxu1 }
0x15a3   :  { %v2698_v22 = vadd.f32 %v5713_v46, %v2696_v21 }
0x15a5   :  { %v2700_v0 = vsel %vm441_vm3, %v2698_v22, -inf }
0x15a6   :  { %2701 = vmax.xlane.f32.xlu0 %v2700_v0  ;;  %v5754_v6 = vpop.f32.mrb[30].mxu0 }
0x15a7   :  { %v4585_v23 = vpop.f32.mrb[31].mxu0 }
0x15aa   :  { %v5756_v24 = vpop.f32.mrb[32].mxu0 }
0x15ab   :  { %v4590_v25 = vpop.f32.mrb[33].mxu0 }
0x15b1   :  { %v2692_v26 = vpop.f32.mrb[34].mxu0 }
0x15b2   :  { %v2697_v27 = vmul.f32 0.25, %v2692_v26  ;;  %v4600_v28 = vpop.f32.mrb[35].mxu0 }
0x15b4   :  { %v2699_v29 = vadd.f32 %v5720_v53, %v2697_v27 }
0x15b6   :  { %v2703_v11 = vsel %vm441_vm3, %v2699_v29, -inf }
0x15b7   :  { %2704 = vmax.xlane.f32.xlu1 %v2703_v11 }
0x15c8   :  { %2800 = vrot.lane.b32.xlu1 %v5690_v41, %s5030_s19 }
0x15cc   :  { %2878 = vrot.lane.b32.xlu1 %v5683_v34, %s5031_s1 }
0x15d0   :  { %2956 = vrot.lane.b32.xlu1 %v5688_v38, %s5031_s1 }
0x15d4   :  { %2954 = vrot.lane.b32.xlu1 %v5688_v38, %s6154_s28 }
0x1633   :  { %v2702_v30 = vpop.xlane.xlu0 %2701 }
0x1634   :  { %v2706_v31 = vsub.f32 %v2698_v22, %v2702_v30 }
0x1636   :  { %v2708_v32 = vmul.f32 1.442695, %v2706_v31 }
0x1638   :  { %4950 = vpow2.f32 %v2708_v32 }
0x1642   :  { %v4951_v35 = vpop.eup %4950 }
0x1643   :  { %v2712_v37 = vsel %vm441_vm3, %v4951_v35, 0.0 }
0x1644   :  { %v2705_v9 = vpop.xlane.xlu1 %2704  ;;  %2713 = vadd.xlane.f32.xlu0 %v2712_v37 }
0x1645   :  { %v2707_v42 = vsub.f32 %v2699_v29, %v2705_v9 }
0x1647   :  { %v2710_v43 = vmul.f32 1.442695, %v2707_v42 }
0x1648   :  { %v2801_v40 = vpop.permute.xlu1 %2800 }
0x1649   :  { %4607 = vmatpush3.msra.mxu0 %v2801_v40  ;;  %4952 = vpow2.f32 %v2710_v43 }
0x164a   :  { %4616 = vmatprep.subr.mxu0 %v5026_v33 }
0x164c   :  { %v2879_v51 = vpop.permute.xlu1 %2878 }
0x1650   :  { %v2957_v56 = vpop.permute.xlu1 %2956 }
0x1653   :  { %v4953_v14 = vpop.eup %4952 }
0x1654   :  { %v2715_v4 = vsel %vm441_vm3, %v4953_v14, 0.0  ;;  %v2955_v62 = vpop.permute.xlu1 %2954 }
0x165a   :  { %2723 = vrot.lane.b32.xlu0 %v5702_v44, %s5030_s19  ;;  %s6155_s19 = smov 16  }
0x1679   :  { %2716 = vadd.xlane.f32.xlu0 %v2715_v4 }
0x168f   :  { %2876 = vrot.lane.b32.xlu0 %v5683_v34, %s6154_s28 }
0x16d1   :  { %v2714_v45 = vpop.xlane.xlu0 %2713 }
0x16d2   :  { %4954 = vrcp.f32 %v2714_v45 }
0x16d5   :  { %v2724_v48 = vpop.permute.xlu0 %2723 }
0x16d6   :  { %4602 = vmatpush3.msra.mxu1 %v2724_v48 }
0x16d7   :  { %4611 = vmatprep.subr.mxu1 %v5026_v33 }
0x16dc   :  { %v4955_v13 = vpop.eup %4954 }
0x16dd   :  { %v2720_v49 = vmul.f32 %v4955_v13, %v4951_v35 }
0x16df   :  { %4604 = vmatmul.mubr.msk.f32.vlgmr.msra.gmra.mrb[26].mxu1 %vm441_vm3, %v2720_v49 }
0x16e0   :  { %4612 = vmatpush3.xpose.msk.msra.mxu1 %vm285_vm2, %v2879_v51  ;;  %4613 = vmatprep.mubr.msk.f32.mxu1 %vm5027_vm1, %v5026_v33 }
0x16e1   :  { %4621 = vmatprep.subr.mxu1 %v5026_v33 }
0x1706   :  { %v2717_v52 = vpop.xlane.xlu0 %2716 }
0x1707   :  { %4956 = vrcp.f32 %v2717_v52 }
0x170a   :  { %v2877_v54 = vpop.permute.xlu0 %2876 }
0x170b   :  { %4614 = vmatmul.mubr.msk.f32.vlgmr.msra.gmra.mrb[28].mxu1 %vm285_vm2, %v2877_v54 }
0x170c   :  { %4623 = vmatprep.mubr.msk.f32.mxu1 %vm5027_vm1, %v5026_v33 }
0x1711   :  { %v4957_v55 = vpop.eup %4956 }
0x1712   :  { %v2721_v58 = vmul.f32 %v4957_v55, %v4953_v14 }
0x1714   :  { %4609 = vmatmul.mubr.msk.f32.vlgmr.msra.gmra.mrb[36].mxu0 %vm441_vm3, %v2721_v58 }
0x1715   :  { %4617 = vmatpush3.xpose.msk.msra.mxu0 %vm285_vm2, %v2957_v56  ;;  %4618 = vmatprep.mubr.msk.f32.mxu0 %vm5027_vm1, %v5026_v33 }
0x1716   :  { %4626 = vmatprep.subr.mxu0 %v5026_v33 }
0x1718   :  { %4619 = vmatmul.mubr.msk.f32.vlgmr.msra.gmra.mrb[38].mxu0 %vm285_vm2, %v2955_v62 }
0x1719   :  { %4628 = vmatprep.mubr.msk.f32.mxu0 %vm5027_vm1, %v5026_v33 }
0x17b2   :  { %v5792_v59 = vpop.f32.mrb[26].mxu1 }
0x17b3   :  { %v4605_v60 = vpop.f32.mrb[27].mxu1 }
0x17de   :  { %v2950_v63 = vpop.f32.mrb[28].mxu1 }
0x17df   :  { %v3032_v2 = vmul.f32 0.25, %v2950_v63  ;;  %v4615_v3 = vpop.f32.mrb[29].mxu1 }
0x17e1   :  { %v3034_v5 = vadd.f32 %v5713_v46, %v3032_v2 }
0x17e3   :  { %v3036_v7 = vsel %vm441_vm3, %v3034_v5, -inf }
0x17e4   :  { %3037 = vmax.xlane.f32.xlu0 %v3036_v7 }
0x17e7   :  { %v5796_v47 = vpop.f32.mrb[36].mxu0 }
0x17e8   :  { %v4610_v8 = vpop.f32.mrb[37].mxu0 }
0x17eb   :  { %v3028_v10 = vpop.f32.mrb[38].mxu0 }
0x17ec   :  { %v3033_v50 = vmul.f32 0.25, %v3028_v10  ;;  %v4620_v12 = vpop.f32.mrb[39].mxu0 }
0x17ee   :  { %v3035_v15 = vadd.f32 %v5720_v53, %v3033_v50 }
0x17f0   :  { %v3039_v17 = vsel %vm441_vm3, %v3035_v15, -inf }
0x17f1   :  { %3040 = vmax.xlane.f32.xlu1 %v3039_v17  ;;  %v4197_v17 = vld [vmem:[%s6129_s7 + $0x50] sm:$0xff] }
0x1802   :  { %3134 = vrot.lane.b32.xlu1 %v5690_v41, %s6154_s28 }
0x1806   :  { %3212 = vrot.lane.b32.xlu1 %v5683_v34, %s6155_s19 }
0x180a   :  { %3290 = vrot.lane.b32.xlu1 %v5688_v38, %s6155_s19 }
0x180e   :  { %3288 = vrot.lane.b32.xlu1 %v5688_v38, %s6156_s30 }
0x1871   :  { %v3038_v18 = vpop.xlane.xlu0 %3037 }
0x1872   :  { %v3042_v19 = vsub.f32 %v3034_v5, %v3038_v18 }
0x1874   :  { %v3044_v16 = vmul.f32 1.442695, %v3042_v19  ;;  %v4198_v19 = vld [vmem:[%s6129_s7 + $0x58] sm:$0xff] }
0x1876   :  { %4958 = vpow2.f32 %v3044_v16  ;;  %v4796_v16 = vpack.c.bf16 %v4198_v19, %v4197_v17  ;;  %v4216_v17 = vld [vmem:[%s6133_s11 + $0xd0] sm:$0xff]  ;;  %v4219_v19 = vld [vmem:[%s6133_s11 + $0xe8] sm:$0xff] }
0x187e   :  { %v3041_v20 = vpop.xlane.xlu1 %3040 }
0x187f   :  { %v3043_v0 = vsub.f32 %v3035_v15, %v3041_v20  ;;  %v4196_v15 = vld [vmem:[%s6129_s7 + $0x48] sm:$0xff]  ;;  %v4199_v20 = vld [vmem:[%s6129_s7 + $0x60] sm:$0xff] }
0x1880   :  { %v4959_v21 = vpop.eup %4958 }
0x1881   :  { %v3048_v1 = vsel %vm441_vm3, %v4959_v21, 0.0  ;;  %v3046_v23 = vmul.f32 1.442695, %v3043_v0  ;;  %v4202_v0 = vld [vmem:[%s6129_s7 + $0x78] sm:$0xff] }
0x1882   :  { %3049 = vadd.xlane.f32.xlu0 %v3048_v1  ;;  %v3135_v22 = vpop.permute.xlu1 %3134 }
0x1883   :  { %4627 = vmatpush3.msra.mxu0 %v3135_v22  ;;  %4960 = vpow2.f32 %v3046_v23  ;;  %v4201_v22 = vld [vmem:[%s6129_s7 + $0x70] sm:$0xff] }
0x1884   :  { %4636 = vmatprep.subr.mxu0 %v5026_v33  ;;  %v4804_v23 = vpack.c.bf16 %v4202_v0, %v4201_v22 }
0x1886   :  { %v3213_v11 = vpop.permute.xlu1 %3212 }
0x188a   :  { %v3291_v32 = vpop.permute.xlu1 %3290 }
0x188d   :  { %v4961_v38 = vpop.eup %4960 }
0x188e   :  { %v3051_v25 = vsel %vm441_vm3, %v4961_v38, 0.0  ;;  %v3289_v37 = vpop.permute.xlu1 %3288 }
0x1898   :  { %3058 = vrot.lane.b32.xlu0 %v5702_v44, %s6154_s28 }
0x18b7   :  { %3052 = vadd.xlane.f32.xlu0 %v3051_v25 }
0x18cd   :  { %3210 = vrot.lane.b32.xlu0 %v5683_v34, %s6156_s30 }
0x190f   :  { %v3050_v26 = vpop.xlane.xlu0 %3049 }
0x1910   :  { %4962 = vrcp.f32 %v3050_v26 }
0x1913   :  { %v3059_v27 = vpop.permute.xlu0 %3058 }
0x1914   :  { %4622 = vmatpush3.msra.mxu1 %v3059_v27 }
0x1915   :  { %4631 = vmatprep.subr.mxu1 %v5026_v33 }
0x191a   :  { %v4963_v28 = vpop.eup %4962 }
0x191b   :  { %v3056_v29 = vmul.f32 %v4963_v28, %v4959_v21  ;;  %v4200_v21 = vld [vmem:[%s6129_s7 + $0x68] sm:$0xff] }
0x191c   :  { %v4800_v1 = vpack.c.bf16 %v4200_v21, %v4199_v20  ;;  %v4218_v20 = vld [vmem:[%s6133_s11 + $0xe0] sm:$0xff] }
0x191d   :  { %4624 = vmatmul.mubr.msk.f32.vlgmr.msra.gmra.mrb[30].mxu1 %vm441_vm3, %v3056_v29 }
0x191e   :  { %4632 = vmatpush3.xpose.msk.msra.mxu1 %vm285_vm2, %v3213_v11  ;;  %4633 = vmatprep.mubr.msk.f32.mxu1 %vm5027_vm1, %v5026_v33 }
0x191f   :  { %4641 = vmatprep.subr.mxu1 %v5026_v33 }
0x1944   :  { %v3053_v30 = vpop.xlane.xlu0 %3052 }
0x1945   :  { %4964 = vrcp.f32 %v3053_v30 }
0x1948   :  { %v3211_v34 = vpop.permute.xlu0 %3210 }
0x1949   :  { %4634 = vmatmul.mubr.msk.f32.vlgmr.msra.gmra.mrb[32].mxu1 %vm285_vm2, %v3211_v34 }
0x194a   :  { %4643 = vmatprep.mubr.msk.f32.mxu1 %vm5027_vm1, %v5026_v33 }
0x194f   :  { %v4965_v31 = vpop.eup %4964 }
0x1950   :  { %v3057_v35 = vmul.f32 %v4965_v31, %v4961_v38 }
0x1952   :  { %4629 = vmatmul.mubr.msk.f32.vlgmr.msra.gmra.mrb[40].mxu0 %vm441_vm3, %v3057_v35 }
0x1953   :  { %4637 = vmatpush3.xpose.msk.msra.mxu0 %vm285_vm2, %v3291_v32  ;;  %4638 = vmatprep.mubr.msk.f32.mxu0 %vm5027_vm1, %v5026_v33 }
0x1954   :  { %4646 = vmatprep.subr.mxu0 %v5026_v33 }
0x1956   :  { %4639 = vmatmul.mubr.msk.f32.vlgmr.msra.gmra.mrb[42].mxu0 %vm285_vm2, %v3289_v37 }
0x1957   :  { %4648 = vmatprep.mubr.msk.f32.mxu0 %vm5027_vm1, %v5026_v33 }
0x19f0   :  { %v3130_v9 = vpop.f32.mrb[30].mxu1 }
0x19f1   :  { %v4625_v40 = vpop.f32.mrb[31].mxu1 }
0x1a1c   :  { %v3284_v42 = vpop.f32.mrb[32].mxu1 }
0x1a1d   :  { %v3366_v43 = vmul.f32 0.25, %v3284_v42  ;;  %v4635_v14 = vpop.f32.mrb[33].mxu1 }
0x1a1f   :  { %v3368_v4 = vadd.f32 %v5713_v46, %v3366_v43 }
0x1a21   :  { %v3370_v45 = vsel %vm441_vm3, %v3368_v4, -inf }
0x1a22   :  { %3371 = vmax.xlane.f32.xlu0 %v3370_v45 }
0x1a25   :  { %v3206_v48 = vpop.f32.mrb[40].mxu0 }
0x1a26   :  { %v4630_v13 = vpop.f32.mrb[41].mxu0 }
0x1a29   :  { %v3362_v49 = vpop.f32.mrb[42].mxu0 }
0x1a2a   :  { %v3367_v51 = vmul.f32 0.25, %v3362_v49  ;;  %v4640_v52 = vpop.f32.mrb[43].mxu0 }
0x1a2c   :  { %v3369_v54 = vadd.f32 %v5720_v53, %v3367_v51 }
0x1a2e   :  { %v3373_v55 = vsel %vm441_vm3, %v3369_v54, -inf }
0x1a2f   :  { %3374 = vmax.xlane.f32.xlu1 %v3373_v55 }
0x1a40   :  { %3468 = vrot.lane.b32.xlu1 %v5690_v41, %s6156_s30 }
0x1a44   :  { %3546 = vrot.lane.b32.xlu1 %v5792_v59, %s6155_s19 }
0x1a48   :  { %3548 = vrot.lane.b32.xlu1 %v5796_v47, %s6155_s19 }
0x1a4c   :  { %3556 = vrot.lane.b32.xlu1 %v3206_v48, %s5031_s1 }
0x1aaf   :  { %v3372_v46 = vpop.xlane.xlu0 %3371 }
0x1ab0   :  { %v3376_v56 = vsub.f32 %v3368_v4, %v3372_v46 }
0x1ab2   :  { %v3378_v58 = vmul.f32 1.442695, %v3376_v56 }
0x1ab4   :  { %4966 = vpow2.f32 %v3378_v58 }
0x1abc   :  { %v3375_v62 = vpop.xlane.xlu1 %3374 }
0x1abd   :  { %v3377_v53 = vsub.f32 %v3369_v54, %v3375_v62 }
0x1abe   :  { %v4967_v60 = vpop.eup %4966 }
0x1abf   :  { %v3380_v63 = vmul.f32 1.442695, %v3377_v53  ;;  %v3382_v2 = vsel %vm441_vm3, %v4967_v60, 0.0  ;;  %v4207_v53 = vld [vmem:[%s6133_s11 + $0x88] sm:$0xff] }
0x1ac0   :  { %3383 = vadd.xlane.f32.xlu0 %v3382_v2  ;;  %v3469_v41 = vpop.permute.xlu1 %3468  ;;  %v4206_v2 = vld [vmem:[%s6133_s11 + $0x80] sm:$0xff] }
0x1ac1   :  { %4968 = vpow2.f32 %v3380_v63  ;;  %4647 = vmatpush3.msra.mxu0 %v3469_v41  ;;  %v4208_v41 = vld [vmem:[%s6133_s11 + $0x90] sm:$0xff] }
0x1ac4   :  { %v3547_v28 = vpop.permute.xlu1 %3546 }
0x1ac5   :  { %v3568_v30 = vsel %vm285_vm2, %v5754_v6, %v3547_v28  ;;  %v4284_v6 = vld [vmem:[%s6130_s8 + $0x1] ss:$0 sm:$0xff] }
0x1ac8   :  { %v3549_v11 = vpop.permute.xlu1 %3548 }
0x1ac9   :  { %v3569_v37 = vsel %vm285_vm2, %v5756_v24, %v3549_v11 }
0x1acb   :  { %v4969_v59 = vpop.eup %4968 }
0x1acc   :  { %v3385_v3 = vsel %vm441_vm3, %v4969_v59, 0.0  ;;  %v3557_v35 = vpop.permute.xlu1 %3556 }
0x1acd   :  { %3386 = vadd.xlane.f32.xlu0 %v3385_v3  ;;  %v4211_v3 = vld [vmem:[%s6133_s11 + $0xa8] sm:$0xff] }
0x1ae3   :  { %3392 = vrot.lane.b32.xlu0 %v5702_v44, %s6156_s30  ;;  %v4195_v44 = vld [vmem:[%s6129_s7 + $0x40] sm:$0xff] }
0x1ae4   :  { %v4792_v18 = vpack.c.bf16 %v4196_v15, %v4195_v44  ;;  %v4214_v15 = vld [vmem:[%s6133_s11 + $0xc0] sm:$0xff] }
0x1ae7   :  { %3554 = vrot.lane.b32.xlu0 %v3130_v9, %s5031_s1  ;;  %v3571_v9 = vsel %vm1640_vm4, %v3569_v37, %v3557_v35  ;;  %s5036_s1 = smov [#allocation2]  }
0x1ae8   :  { %s4128_s24 = sshll.u32 %s5036_s1, 4  ;;  %s4129_s24 = int_to_ptr.vmem [resolvable:$true] %s4128_s24 }
0x1ae9   :  { %p5007_p1 = scmp.lt.s32.totalorder %s4129_s24, %s4129_s24 }
0x1b4d   :  { %v3384_v5 = vpop.xlane.xlu0 %3383 }
0x1b4e   :  { %4970 = vrcp.f32 %v3384_v5  ;;  %v4213_v5 = vld [vmem:[%s6133_s11 + $0xb8] sm:$0xff] }
0x1b58   :  { %v4971_v47 = vpop.eup %4970 }
0x1b59   :  { %v3390_v8 = vmul.f32 %v4971_v47, %v4967_v60  ;;  %v4209_v60 = vld [vmem:[%s6133_s11 + $0x98] sm:$0xff]  ;;  %v4210_v47 = vld [vmem:[%s6133_s11 + $0xa0] sm:$0xff] }
0x1b5a   :  { %v3387_v7 = vpop.xlane.xlu0 %3386  ;;  %v4808_v63 = vpack.c.bf16 %v4209_v60, %v4207_v53  ;;  %v4246_v53 = vld [vmem:[%s6135_s13 + $0x1b8] sm:$0xff] }
0x1b5b   :  { %4972 = vrcp.f32 %v3387_v7  ;;  %v4812_v7 = vpack.c.bf16 %v4213_v5, %v4211_v3  ;;  %v4248_v3 = vld [vmem:[%s6135_s13 + $0x1c8] sm:$0xff] }
0x1b5c   :  { %4809 = vmatprep.subr.bf16.mxu0 %v4808_v63  ;;  %v4229_v63 = vld [vmem:[%s6135_s13 + $0x130] sm:$0xff] }
0x1b5e   :  { %v3393_v10 = vpop.permute.xlu0 %3392 }
0x1b5f   :  { %4642 = vmatpush3.msra.mxu1 %v3393_v10 }
0x1b60   :  { %4644 = vmatmul.mubr.msk.f32.vlgmr.msra.gmra.mrb[34].mxu1 %vm441_vm3, %v3390_v8  ;;  %4793 = vmatprep.subr.bf16.mxu1 %v4792_v18  ;;  %v4212_v8 = vld [vmem:[%s6133_s11 + $0xb0] sm:$0xff] }
0x1b61   :  { %4795 = vmatpush3.bf16.msra.mxu1 %v4792_v18  ;;  %v4814_v10 = vpack.c.bf16 %v4212_v8, %v4210_v47  ;;  %v4818_v18 = vpack.c.bf16 %v4216_v17, %v4214_v15  ;;  %v4232_v47 = vld [vmem:[%s6135_s13 + $0x148] sm:$0xff]  ;;  %v4234_v15 = vld [vmem:[%s6135_s13 + $0x158] sm:$0xff] }
0x1b62   :  { %4797 = vmatprep.subr.bf16.mxu1 %v4796_v16  ;;  %v3555_v29 = vpop.permute.xlu0 %3554 }
0x1b63   :  { %v3570_v34 = vsel %vm1640_vm4, %v3568_v30, %v3555_v29  ;;  %v4287_v29 = vld [vmem:[%s6131_s9 + $0x1] ss:$0 sm:$0xff] }
0x1b64   :  { %v4288_v30 = vld [vmem:[%s6132_s10 + $0x1] ss:$0 sm:$0xff]  ;;  %s6157_s10 = sld [smem:[#allocation7_spill]] }
0x1b65   :  { %v4973_v50 = vpop.eup %4972  ;;  %4799 = vmatpush3.bf16.msra.mxu1 %v4796_v16  ;;  %v4221_v16 = vld [vmem:[%s6133_s11 + $0xf8] sm:$0xff] }
0x1b66   :  { %v3391_v12 = vmul.f32 %v4973_v50, %v4969_v59  ;;  %4801 = vmatprep.subr.bf16.mxu1 %v4800_v1  ;;  %v4810_v59 = vpack.c.bf16 %v4208_v41, %v4206_v2  ;;  %v4215_v50 = vld [vmem:[%s6133_s11 + $0xc8] sm:$0xff]  ;;  %v4820_v21 = vpack.c.bf16 %v4221_v16, %v4219_v19  ;;  %v4230_v2 = vld [vmem:[%s6135_s13 + $0x138] sm:$0xff] }
0x1b67   :  { %v4838_v41 = vpack.c.bf16 %v4230_v2, %v4229_v63  ;;  %v4252_v19 = vld [vmem:[%s6135_s13 + $0x1e8] sm:$0xff] }
0x1b68   :  { %4649 = vmatmul.mubr.msk.f32.vlgmr.msra.gmra.mrb[44].mxu0 %vm441_vm3, %v3391_v12  ;;  %v4217_v12 = vld [vmem:[%s6133_s11 + $0xd8] sm:$0xff] }
0x1b69   :  { %3786 = vmatprep.mubr.f32.mxu0 %v5026_v33  ;;  %4803 = vmatpush3.bf16.msra.mxu1 %v4800_v1  ;;  %v4816_v44 = vpack.c.bf16 %v4217_v12, %v4215_v50  ;;  %v4220_v1 = vld [vmem:[%s6133_s11 + $0xf0] sm:$0xff]  ;;  %v4250_v50 = vld [vmem:[%s6135_s13 + $0x1d8] sm:$0xff] }
0x1b6a   :  { %4805 = vmatprep.subr.bf16.mxu1 %v4804_v23  ;;  %4811 = vmatpush1.bf16.msra.mxu0 %v4810_v59  ;;  %v4822_v22 = vpack.c.bf16 %v4220_v1, %v4218_v20  ;;  %v4247_v59 = vld [vmem:[%s6135_s13 + $0x1c0] sm:$0xff] }
0x1b6b   :  { %4813 = vmatprep.subr.bf16.mxu0 %v4812_v7  ;;  %v4840_v5 = vpack.c.bf16 %v4248_v3, %v4247_v59  ;;  %v4231_v7 = vld [vmem:[%s6135_s13 + $0x140] sm:$0xff] }
0x1b6c   :  { %v4842_v8 = vpack.c.bf16 %v4232_v47, %v4231_v7  ;;  %v4235_v20 = vld [vmem:[%s6135_s13 + $0x160] sm:$0xff] }
0x1b6d   :  { %4807 = vmatpush3.bf16.msra.mxu1 %v4804_v23 }
0x1b6e   :  { %4815 = vmatpush1.bf16.msra.mxu0 %v4814_v10  ;;  %v4249_v10 = vld [vmem:[%s6135_s13 + $0x1d0] sm:$0xff] }
0x1b6f   :  { %4817 = vmatprep.subr.bf16.mxu0 %v4816_v44  ;;  %v4844_v12 = vpack.c.bf16 %v4250_v50, %v4249_v10  ;;  %v4233_v44 = vld [vmem:[%s6135_s13 + $0x150] sm:$0xff] }
0x1b70   :  { %v4846_v17 = vpack.c.bf16 %v4234_v15, %v4233_v44 }
0x1b72   :  { %4819 = vmatpush1.bf16.msra.mxu0 %v4818_v18  ;;  %v4251_v18 = vld [vmem:[%s6135_s13 + $0x1e0] sm:$0xff] }
0x1b73   :  { %4821 = vmatprep.subr.bf16.mxu0 %v4820_v21  ;;  %v4848_v16 = vpack.c.bf16 %v4252_v19, %v4251_v18  ;;  %v4236_v21 = vld [vmem:[%s6135_s13 + $0x168] sm:$0xff] }
0x1b74   :  { %v4850_v1 = vpack.c.bf16 %v4236_v21, %v4235_v20 }
0x1b76   :  { %4823 = vmatpush1.bf16.msra.mxu0 %v4822_v22  ;;  %v4253_v22 = vld [vmem:[%s6135_s13 + $0x1f0] sm:$0xff] }
0x1c33   :  { %v3464_v38 = vpop.f32.mrb[34].mxu1 }
0x1c34   :  { %3562 = vrot.lane.b32.xlu0 %v3464_v38, %s5029_s0  ;;  %v4645_v25 = vpop.f32.mrb[35].mxu1 }
0x1c3b   :  { %v3540_v26 = vpop.f32.mrb[44].mxu0 }
0x1c3c   :  { %3564 = vrot.lane.b32.xlu1 %v3540_v26, %s5029_s0  ;;  %v4650_v27 = vpop.f32.mrb[45].mxu0 }
0x1ca6   :  { %v3563_v31 = vpop.permute.xlu0 %3562 }
0x1ca7   :  { %v3572_v32 = vsel %vm1643_vm5, %v3570_v34, %v3563_v31 }
0x1ca8   :  { %4667 = vmatprep.mubr.msk.f32.mxu1 %vm144_vm0, %v3572_v32 }
0x1cae   :  { %v3565_v40 = vpop.permute.xlu1 %3564 }
0x1caf   :  { %v3573_v42 = vsel %vm1643_vm5, %v3571_v9, %v3565_v40  ;;  %v4239_v40 = vld [vmem:[%s6135_s13 + $0x180] sm:$0xff] }
0x1cb0   :  { %4668 = vmatmul.mubr.msk.f32.vlgmr.msra.gmra.mrb[36].mxu1 %vm144_vm0, %v3573_v42  ;;  %v4240_v42 = vld [vmem:[%s6135_s13 + $0x188] sm:$0xff] }
0x1d83   :  { %v4669_v43 = vpop.f32.mrb[36].mxu1 }
0x1d84   :  { %v3658_v14 = vadd.f32 %v4669_v43, %v4284_v6  ;;  %v3652_v4 = vpop.f32.mrb[37].mxu1  ;;  %v4223_v43 = vld [vmem:[%s6135_s13 + $0x100] sm:$0xff] }
0x1d85   :  { %v3653_v45 = vadd.f32 %v4284_v6, %v3652_v4  ;;  %v4824_v6 = vpack.c.bf16 %v4240_v42, %v4239_v40 }
0x1d86   :  { %v5891_v48 = vadd.f32 %v3658_v14, %v5611_v39  ;;  %v4224_v14 = vld [vmem:[%s6135_s13 + $0x108] sm:$0xff] }
0x1d87   :  { %v5894_v24 = vadd.f32 %v3653_v45, %v5606_v36  ;;  %v4826_v4 = vpack.c.bf16 %v4224_v14, %v4223_v43  ;;  %4825 = vmatprep.subr.bf16.mxu1 %v4824_v6  ;;  %v4241_v45 = vld [vmem:[%s6135_s13 + $0x190] sm:$0xff] }
0x1d88   :  { %v3666_v13 = vsel %vm144_vm0, %v5891_v48, 0.0 }
0x1d89   :  { %3667 = vadd.xlane.f32.xlu1 %v3666_v13  ;;  %v3663_v49 = vsel %vm144_vm0, %v5894_v24, 0.0  ;;  %4827 = vmatpush3.bf16.msra.mxu1 %v4826_v4  ;;  %v4242_v13 = vld [vmem:[%s6135_s13 + $0x198] sm:$0xff] }
0x1d8a   :  { %3664 = vadd.xlane.f32.xlu0 %v3663_v49  ;;  %v4828_v49 = vpack.c.bf16 %v4242_v13, %v4241_v45 }
0x1d8c   :  { %4829 = vmatprep.subr.bf16.mxu1 %v4828_v49 }
0x1e16   :  { %v3668_v51 = vpop.xlane.xlu1 %3667 }
0x1e17   :  { %v3670_v52 = vmul.f32 0.015625, %v3668_v51  ;;  %v3665_v54 = vpop.xlane.xlu0 %3664  ;;  %v4225_v51 = vld [vmem:[%s6135_s13 + $0x110] sm:$0xff] }
0x1e18   :  { %v3669_v55 = vmul.f32 0.015625, %v3665_v54 }
0x1e19   :  { %v3672_v46 = vsub.f32 %v5891_v48, %v3670_v52  ;;  %v4226_v52 = vld [vmem:[%s6135_s13 + $0x118] sm:$0xff] }
0x1e1a   :  { %v3671_v39 = vsub.f32 %v5894_v24, %v3669_v55  ;;  %v4830_v54 = vpack.c.bf16 %v4226_v52, %v4225_v51  ;;  %v4243_v55 = vld [vmem:[%s6135_s13 + $0x1a0] sm:$0xff] }
0x1e1b   :  { %v3674_v58 = vmul.f32 %v3672_v46, %v3672_v46 }
0x1e1c   :  { %v3673_v56 = vmul.f32 %v3671_v39, %v3671_v39  ;;  %4831 = vmatpush3.bf16.msra.mxu1 %v4830_v54 }
0x1e1d   :  { %v3678_v62 = vsel %vm144_vm0, %v3674_v58, 0.0 }
0x1e1e   :  { %v3675_v36 = vsel %vm144_vm0, %v3673_v56, 0.0  ;;  %v4227_v56 = vld [vmem:[%s6135_s13 + $0x120] sm:$0xff] }
0x1e1f   :  { %3676 = vadd.xlane.f32.xlu0 %v3675_v36  ;;  %v4228_v36 = vld [vmem:[%s6135_s13 + $0x128] sm:$0xff] }
0x1e20   :  { %v4834_v58 = vpack.c.bf16 %v4228_v36, %v4227_v56 }
0x1e23   :  { %3679 = vadd.xlane.f32.xlu0 %v3678_v62  ;;  %v4245_v62 = vld [vmem:[%s6135_s13 + $0x1b0] sm:$0xff] }
0x1e24   :  { %v4836_v60 = vpack.c.bf16 %v4246_v53, %v4245_v62 }
0x1eac   :  { %v3677_v0 = vpop.xlane.xlu0 %3676 }
0x1ead   :  { %v3681_v23 = vmul.f32 0.015625, %v3677_v0  ;;  %v4254_v0 = vld [vmem:[%s6135_s13 + $0x1f8] sm:$0xff] }
0x1eaf   :  { %v3683_v38 = vadd.f32 1e-05, %v3681_v23  ;;  %v4852_v23 = vpack.c.bf16 %v4254_v0, %v4253_v22 }
0x1eb0   :  { %v3680_v25 = vpop.xlane.xlu0 %3679 }
0x1eb1   :  { %4974 = vrsqrt.f32 %v3683_v38  ;;  %v3682_v26 = vmul.f32 0.015625, %v3680_v25  ;;  %v4237_v38 = vld [vmem:[%s6135_s13 + $0x170] sm:$0xff]  ;;  %v4238_v25 = vld [vmem:[%s6135_s13 + $0x178] sm:$0xff] }
0x1eb3   :  { %v3684_v27 = vadd.f32 1e-05, %v3682_v26  ;;  %v4854_v26 = vpack.c.bf16 %v4238_v25, %v4237_v38 }
0x1eb5   :  { %4976 = vrsqrt.f32 %v3684_v27  ;;  %v4222_v27 = vld [vmem:[%s6134_s12 + $0x2] sm:$0x3] }
0x1ebb   :  { %v4975_v28 = vpop.eup %4974 }
0x1ebc   :  { %v3687_v11 = vmul.f32 %v4975_v28, %v3671_v39  ;;  %v3709_v28 = vrot.slane %v4222_v27, %v5214_v57 }
0x1ebe   :  { %v3695_v34 = vmul.f32 %v4287_v29, %v3687_v11 }
0x1ebf   :  { %v4977_v31 = vpop.eup %4976 }
0x1ec0   :  { %v3703_v32 = vadd.f32 %v4288_v30, %v3695_v34  ;;  %v3688_v35 = vmul.f32 %v4977_v31, %v3672_v46  ;;  %v4244_v46 = vld [vmem:[%s6135_s13 + $0x1a8] sm:$0xff] }
0x1ec1   :  { %v4832_v39 = vpack.c.bf16 %v4244_v46, %v4243_v55 }
0x1ec2   :  { %4289 = vmatmul.mubr.msk.f32.vlgmr.msra.gmra.mrb[46].mxu0 %vm144_vm0, %v3703_v32  ;;  %v3696_v37 = vmul.f32 %v4287_v29, %v3688_v35  ;;  %v3713_v29 = vrot.slane %v4222_v27, %v5220_v61 }
0x1ec3   :  { %3792 = vmatprep.mubr.f32.mxu0 %v5026_v33  ;;  %4833 = vmatprep.subr.bf16.mxu1 %v4832_v39 }
0x1ec4   :  { %v3704_v9 = vadd.f32 %v4288_v30, %v3696_v37  ;;  %4835 = vmatpush3.bf16.msra.mxu1 %v4834_v58 }
0x1ec5   :  { %4837 = vmatprep.subr.bf16.mxu1 %v4836_v60 }
0x1ec6   :  { %4290 = vmatmul.mubr.msk.f32.gmra.mrb[48].mxu0 %vm144_vm0, %v3704_v9 }
0x1ec7   :  { %4674 = vmatprep.mubr.msk.f32.mxu0 %vm5027_vm1, %v5026_v33 }
0x1ec8   :  { %4839 = vmatpush3.bf16.msra.mxu1 %v4838_v41  ;;  %v4295_v41 = vld [vmem:[%s6136_s14 + $0x1] ss:$0 sm:$0xff] }
0x1ec9   :  { %4841 = vmatprep.subr.bf16.mxu1 %v4840_v5 }
0x1ecc   :  { %4843 = vmatpush3.bf16.msra.mxu1 %v4842_v8 }
0x1ecd   :  { %4845 = vmatprep.subr.bf16.mxu1 %v4844_v12 }
0x1ed0   :  { %4847 = vmatpush3.bf16.msra.mxu1 %v4846_v17 }
0x1ed1   :  { %4849 = vmatprep.subr.bf16.mxu1 %v4848_v16 }
0x1ed4   :  { %4851 = vmatpush3.bf16.msra.mxu1 %v4850_v1 }
0x1ed5   :  { %4853 = vmatprep.subr.bf16.mxu1 %v4852_v23  ;;  %v5035_v23 = vmov 0.0|0.0  }
0x1ed6   :  { %4856 = vmatprep.subr.bf16.mxu0 %v5035_v23 }
0x1ed8   :  { %4855 = vmatpush3.bf16.msra.mxu1 %v4854_v26 }
0x1f95   :  { %v3788_v11 = vpop.f32.mrb[46].mxu0 }
0x1f96   :  { %v3789_v30 = vadd.f32 %v3788_v11, %v3709_v28  ;;  %v3790_v34 = vpop.f32.mrb[47].mxu0 }
0x1f97   :  { %v3791_v31 = vadd.f32 %v3790_v34, %v3713_v29 }
0x1f98   :  { %v4291_v32 = vmul.f32 -1.702, %v3789_v30 }
0x1f99   :  { %v4292_v35 = vmul.f32 -1.702, %v3791_v31  ;;  %v3794_v37 = vpop.f32.mrb[48].mxu0 }
0x1f9a   :  { %v3807_v9 = vmul.f32 1.442695, %v4291_v32  ;;  %v3795_v40 = vadd.f32 %v3794_v37, %v3709_v28  ;;  %v3796_v42 = vpop.f32.mrb[49].mxu0 }
0x1f9b   :  { %v3809_v6 = vmul.f32 1.442695, %v4292_v35  ;;  %v3797_v43 = vadd.f32 %v3796_v42, %v3713_v29  ;;  %v4297_v35 = vld [vmem:[%s6138_s16] ss:$0 sm:$0xff] }
0x1f9c   :  { %4978 = vpow2.f32 %v3807_v9  ;;  %v4293_v14 = vmul.f32 -1.702, %v3795_v40  ;;  %v4032_v42 = vld [vmem:[%s6139_s17] sm:$0xff] }
0x1f9d   :  { %4980 = vpow2.f32 %v3809_v6  ;;  %v4294_v4 = vmul.f32 -1.702, %v3797_v43  ;;  %v4033_v6 = vld [vmem:[%s6139_s17 + $0x8] sm:$0xff] }
0x1f9e   :  { %v3811_v45 = vmul.f32 1.442695, %v4293_v14  ;;  %v3958_v14 = vld [vmem:[%s6157_s10] sm:$0x3] }
0x1f9f   :  { %v3813_v57 = vmul.f32 1.442695, %v4294_v4  ;;  %v4860_v4 = vpack.c.bf16 %v4033_v6, %v4032_v42 }
0x1fa0   :  { %4982 = vpow2.f32 %v3811_v45  ;;  %v4034_v45 = vld [vmem:[%s6139_s17 + $0x10] sm:$0xff] }
0x1fa1   :  { %4984 = vpow2.f32 %v3813_v57  ;;  %v4035_v57 = vld [vmem:[%s6139_s17 + $0x18] sm:$0xff] }
0x1fa6   :  { %v4979_v61 = vpop.eup %4978 }
0x1fa7   :  { %v4981_v13 = vpop.eup %4980  ;;  %v3815_v49 = vadd.f32 1.0, %v4979_v61  ;;  %v4863_v61 = vpack.c.bf16 %v4035_v57, %v4034_v45 }
0x1fa8   :  { %v3816_v51 = vadd.f32 1.0, %v4981_v13  ;;  %v4036_v13 = vld [vmem:[%s6139_s17 + $0x20] sm:$0xff] }
0x1fa9   :  { %4986 = vrcp.f32 %v3815_v49  ;;  %v4037_v49 = vld [vmem:[%s6139_s17 + $0x28] sm:$0xff] }
0x1faa   :  { %v4983_v52 = vpop.eup %4982  ;;  %4988 = vrcp.f32 %v3816_v51  ;;  %v4866_v51 = vpack.c.bf16 %v4037_v49, %v4036_v13 }
0x1fab   :  { %v4985_v54 = vpop.eup %4984  ;;  %v3817_v55 = vadd.f32 1.0, %v4983_v52  ;;  %v4038_v52 = vld [vmem:[%s6139_s17 + $0x30] sm:$0xff] }
0x1fac   :  { %v3818_v46 = vadd.f32 1.0, %v4985_v54 }
0x1fad   :  { %4990 = vrcp.f32 %v3817_v55 }
0x1fae   :  { %4992 = vrcp.f32 %v3818_v46 }
0x1fb3   :  { %v4987_v39 = vpop.eup %4986 }
0x1fb4   :  { %v4989_v56 = vpop.eup %4988  ;;  %v3827_v58 = vmul.f32 %v4987_v39, %v3789_v30  ;;  %v4296_v30 = vld [vmem:[%s6137_s15] ss:$0 sm:$0xff] }
0x1fb5   :  { %v3828_v36 = vmul.f32 %v4989_v56, %v3791_v31 }
0x1fb7   :  { %v4991_v62 = vpop.eup %4990  ;;  %3901 = vmatprep.mubr.f32.mxu1 %v3828_v36 }
0x1fb8   :  { %v4993_v53 = vpop.eup %4992  ;;  %3902 = vmatmul.mubr.f32.vlgmr.msra.gmra.mrb[38].mxu1 %v3827_v58  ;;  %v3829_v63 = vmul.f32 %v4991_v62, %v3795_v40 }
0x1fb9   :  { %v3830_v60 = vmul.f32 %v4993_v53, %v3797_v43 }
0x1fbb   :  { %3906 = vmatprep.mubr.f32.mxu1 %v3830_v60 }
0x1fbc   :  { %3907 = vmatmul.mubr.f32.gmra.mrb[40].mxu1 %v3829_v63 }
0x208b   :  { %v4454_v2 = vpop.f32.mrb[38].mxu1 }
0x208c   :  { %v4455_v59 = vpop.f32.mrb[39].mxu1 }
0x208d   :  { %v4456_v3 = vadd.f32 %v4455_v59, %v4454_v2 }
0x208f   :  { %v3904_v5 = vadd.f32 %v4456_v3, %v4295_v41  ;;  %v4457_v7 = vpop.f32.mrb[40].mxu1 }
0x2090   :  { %v4458_v47 = vpop.f32.mrb[41].mxu1 }
0x2091   :  { %v4459_v8 = vadd.f32 %v4458_v47, %v4457_v7  ;;  %v3912_v10 = vadd.f32 %v3904_v5, %v5894_v24 }
0x2093   :  { %v3909_v50 = vadd.f32 %v4459_v8, %v4295_v41  ;;  %v3916_v12 = vsel %vm144_vm0, %v3912_v10, 0.0 }
0x2094   :  { %3917 = vadd.xlane.f32.xlu0 %v3916_v12 }
0x2095   :  { %v3913_v44 = vadd.f32 %v3909_v50, %v5891_v48 }
0x2097   :  { %v3919_v15 = vsel %vm144_vm0, %v3913_v44, 0.0 }
0x2098   :  { %3920 = vadd.xlane.f32.xlu1 %v3919_v15 }
0x2121   :  { %v3918_v17 = vpop.xlane.xlu0 %3917 }
0x2122   :  { %v3922_v18 = vmul.f32 0.015625, %v3918_v17 }
0x2124   :  { %v3924_v19 = vsub.f32 %v3912_v10, %v3922_v18 }
0x2125   :  { %v3921_v16 = vpop.xlane.xlu1 %3920 }
0x2126   :  { %v3923_v20 = vmul.f32 0.015625, %v3921_v16  ;;  %v3926_v21 = vmul.f32 %v3924_v19, %v3924_v19 }
0x2128   :  { %v3925_v1 = vsub.f32 %v3913_v44, %v3923_v20  ;;  %v3928_v22 = vsel %vm144_vm0, %v3926_v21, 0.0 }
0x2129   :  { %3929 = vadd.xlane.f32.xlu0 %v3928_v22 }
0x212a   :  { %v3927_v24 = vmul.f32 %v3925_v1, %v3925_v1 }
0x212c   :  { %v3931_v0 = vsel %vm144_vm0, %v3927_v24, 0.0 }
0x212d   :  { %3932 = vadd.xlane.f32.xlu1 %v3931_v0 }
0x21b6   :  { %v3930_v48 = vpop.xlane.xlu0 %3929 }
0x21b7   :  { %v3934_v38 = vmul.f32 0.015625, %v3930_v48 }
0x21b9   :  { %v3936_v25 = vadd.f32 1e-05, %v3934_v38 }
0x21ba   :  { %v3933_v26 = vpop.xlane.xlu1 %3932 }
0x21bb   :  { %4994 = vrsqrt.f32 %v3936_v25  ;;  %v3935_v27 = vmul.f32 0.015625, %v3933_v26 }
0x21bd   :  { %v3937_v28 = vadd.f32 1e-05, %v3935_v27 }
0x21bf   :  { %4996 = vrsqrt.f32 %v3937_v28 }
0x21c5   :  { %v4995_v29 = vpop.eup %4994 }
0x21c6   :  { %v3940_v11 = vmul.f32 %v4995_v29, %v3924_v19 }
0x21c8   :  { %v3948_v32 = vmul.f32 %v4296_v30, %v3940_v11 }
0x21c9   :  { %v4997_v34 = vpop.eup %4996 }
0x21ca   :  { %v3941_v31 = vmul.f32 %v4997_v34, %v3925_v1  ;;  %v3956_v9 = vadd.f32 %v4297_v35, %v3948_v32 }
0x21cc   :  { %v3949_v37 = vmul.f32 %v4296_v30, %v3941_v31 }
0x21ce   :  { %v3957_v40 = vadd.f32 %v4297_v35, %v3949_v37 }
0x21d0   :  { %v4857_v43 = vpack.c.bf16 %v3957_v40, %v3956_v9 }
0x21d2   :  { %4858 = vmatpush3.bf16.msra.mxu0 %v4857_v43 }
0x21d3   :  { %4859 = vmatprep.subr.bf16.mxu0 %v5035_v23 }
0x21d5   :  { %4675 = vmatmul.mubr.msk.f32.vlgmr.msra.gmra.mrb[50].mxu0 %vm285_vm2, %v3958_v14 }
0x21d6   :  { %4861 = vmatpush3.bf16.msra.mxu0 %v4860_v4  ;;  %4693 = vmatprep.mubr.msk.f32.mxu0 %vm5027_vm1, %v5026_v33  ;;  %v4039_v33 = vld [vmem:[%s6139_s17 + $0x38] sm:$0xff]  ;;  %s5002_s17 = scalar_lea.vmem %s4129_s24, 32 }
0x21d7   :  { %4862 = vmatprep.subr.bf16.mxu0 %v5035_v23  ;;  %v4869_v54 = vpack.c.bf16 %v4039_v33, %v4038_v52  ;;  %p5003_p0 = scmp.ne.s32.totalorder %s4129_s24, %s5002_s17  ;;  %p5008_p2 = scmp.lt.s32.totalorder %s5002_s17, %s5002_s17 }
0x21d9   :  { %p5009_p3 = por %p5008_p2, %p5007_p1 }
0x21da   :  { %4864 = vmatpush3.bf16.msra.mxu0 %v4863_v61 }
0x21db   :  { %4865 = vmatprep.subr.bf16.mxu0 %v5035_v23  ;;  %p5010_p4 = pnand %p5009_p3, %p5003_p0 }
0x21de   :  { %4867 = vmatpush3.bf16.msra.mxu0 %v4866_v51 }
0x21df   :  { %4868 = vmatprep.subr.bf16.mxu0 %v5035_v23 }
0x21e2   :  { %4870 = vmatpush3.bf16.msra.mxu0 %v4869_v54 }
0x22a8   :  { %v4028_v55 = vpop.f32.mrb[50].mxu0 }
0x22a9   :  { %4694 = vmatmul.mubr.msk.f32.vlgmr.msra.gmra.mrb[52].mxu0 %vm144_vm0, %v4028_v55  ;;  %v4676_v46 = vpop.f32.mrb[51].mxu0 }
0x237c   :  { %v4109_v39 = vpop.f32.mrb[52].mxu0 }
0x237d   :  { %v4113_v56 = vmul.f32 %v4109_v39, %v4109_v39  ;;  %v4695_v36 = vpop.f32.mrb[53].mxu0 }
0x237f   :  { %v4115_v58 = vsel %vm4114_vm6, %v4113_v56, 0.0 }
0x2380   :  { %4116 = vadd.xlane.f32.xlu0 %v4115_v58 }
0x240d   :  { %v4117_v62 = vpop.xlane.xlu0 %4116 }
0x240e   :  { %v4118_v53 = vadd.f32 1e-12, %v4117_v62 }
0x2410   :  { %4998 = vrsqrt.f32 %v4118_v53 }
0x241a   :  { %v4999_v60 = vpop.eup %4998 }
0x241b   :  { %v4120_v63 = vmul.f32 %v4999_v60, %v4109_v39 }
0x241d   :  { %4121 = vst.msk [vmem:[#allocation2] sm:$0x3] %vm4114_vm6, %v4120_v63 }
0x241e   :  { %5013 = shalt.err (!%p5010_p4)
}
0x241f   :  { %s5014_s12 = scalar_lea.hbm %s6140_s18, 32 }
0x2420   :  { %p5015_p5 = scmp.ne.s32.totalorder %s6140_s18, %s5014_s12  ;;  %p5018_p6 = scmp.lt.u32.totalorder %s5014_s12, %s6140_s18 }
0x2422   :  { %p5020_p7 = pnand %p5018_p6, %p5015_p5 }
0x2424   :  { %5023 = shalt.err (!%p5020_p7)
}
0x2425   :  { %4131 = dma.vmem_to_hbm [thread:$0]  %s4129_s24, 32, %s6140_s18, [#allocation3]  }
0x2426   :  { %5024 = dma.done.wait [#allocation3], 32  }
0x2427   :  { %5025 = vsyncadd [#allocation3], 4294967264 }
0x2428   :  { %4135 = vsyncpa [#allocation3], 1 }

// kernel: contrastive_forward.3
= control target key start
LH: loop header
LB: loop body
LE: loop exit
PB: predicated region body
PF: predicated region fallthrough
CT: control target
= control target key end

     0   :  { %s11738_s0 = inlined_call_operand.vmem [shape: f32[10,192], index: 0, kind: input, shape index: {}]   ;;  %s11739_s1 = inlined_call_operand.vmem [shape: f32[2,5,64], index: 1, kind: input, shape index: {}]   ;;  %s11740_s2 = inlined_call_operand.vmem [shape: f32[192,64], index: 2, kind: input, shape index: {}]   ;;  %s11741_s3 = inlined_call_operand.vmem [shape: f32[1,64], index: 3, kind: input, shape index: {}]   ;;  %s11742_s4 = inlined_call_operand.vmem [shape: f32[1,64], index: 4, kind: input, shape index: {}]   ;;  %s11743_s5 = inlined_call_operand.vmem [shape: f32[2,1,64], index: 5, kind: input, shape index: {}]   ;;  %s11744_s6 = inlined_call_operand.vmem [shape: f32[2,1,64], index: 6, kind: input, shape index: {}]   ;;  %s11745_s7 = inlined_call_operand.vmem [shape: f32[2,64,192], index: 7, kind: input, shape index: {}]   ;;  %s11746_s8 = inlined_call_operand.vmem [shape: f32[2,1,192], index: 8, kind: input, shape index: {}]   ;;  %s11747_s9 = inlined_call_operand.vmem [shape: f32[2,64,64], index: 9, kind: input, shape index: {}]   ;;  %s11748_s10 = inlined_call_operand.vmem [shape: f32[2,1,64], index: 10, kind: input, shape index: {}]   ;;  %s11749_s11 = inlined_call_operand.vmem [shape: f32[2,1,64], index: 11, kind: input, shape index: {}]   ;;  %s11750_s12 = inlined_call_operand.vmem [shape: f32[2,1,64], index: 12, kind: input, shape index: {}]   ;;  %s11751_s13 = inlined_call_operand.vmem [shape: f32[2,64,256], index: 13, kind: input, shape index: {}]   ;;  %s11752_s14 = inlined_call_operand.vmem [shape: f32[2,1,256], index: 14, kind: input, shape index: {}]   ;;  %s11753_s15 = inlined_call_operand.vmem [shape: f32[2,256,64], index: 15, kind: input, shape index: {}]   ;;  %s11754_s16 = inlined_call_operand.vmem [shape: f32[2,1,64], index: 16, kind: input, shape index: {}]   ;;  %s11755_s17 = inlined_call_operand.vmem [shape: f32[1,64], index: 17, kind: input, shape index: {}]   ;;  %s11756_s18 = inlined_call_operand.vmem [shape: f32[1,64], index: 18, kind: input, shape index: {}]   ;;  %s11757_s19 = inlined_call_operand.vmem [shape: f32[64,32], index: 19, kind: input, shape index: {}]   ;;  %s11758_s20 = inlined_call_operand.hbm [shape: f32[2,32], index: 20, kind: output, shape index: {}]  }
   0x1   :  { %11782 = sst [smem:[#allocation8_spill]] %s11738_s0 }
   0x2   :  { %11783 = sst [smem:[#allocation9_spill]] %s11739_s1 }
   0x3   :  { %11784 = sst [smem:[#allocation10_spill]] %s11740_s2 }
   0x4   :  { %11785 = sst [smem:[#allocation11_spill]] %s11741_s3 }
   0x5   :  { %11786 = sst [smem:[#allocation12_spill]] %s11742_s4 }
   0x6   :  { %s11787_s23 = sld [smem:[#allocation10_spill]]  ;;  %v11762_v3 = vmov 0.0|0.0   ;;  %vm94_vm0 = vcmask 523264   ;;  %s11788_s25 = sld [smem:[#allocation8_spill]] }
   0x7   :  { %9111 = vmatprep.subr.bf16.mxu0 %v11762_v3 }
   0xc   :  { %v70_v0 = vld [vmem:[%s11787_s23] sm:$0xff]  ;;  %v71_v1 = vld [vmem:[%s11787_s23 + $0x8] sm:$0xff]  ;;  %v72_v2 = vld [vmem:[%s11787_s23 + $0x10] sm:$0xff] }
   0xd   :  { %v9112_v4 = vpack.c.bf16 %v71_v1, %v70_v0  ;;  %v73_v5 = vld [vmem:[%s11787_s23 + $0x18] sm:$0xff]  ;;  %v74_v7 = vld [vmem:[%s11787_s23 + $0x20] sm:$0xff]  ;;  %v75_v8 = vld [vmem:[%s11787_s23 + $0x28] sm:$0xff] }
   0xe   :  { %v9115_v6 = vpack.c.bf16 %v73_v5, %v72_v2  ;;  %v9118_v9 = vpack.c.bf16 %v75_v8, %v74_v7  ;;  %v76_v10 = vld [vmem:[%s11787_s23 + $0x30] sm:$0xff]  ;;  %v77_v11 = vld [vmem:[%s11787_s23 + $0x38] sm:$0xff]  ;;  %v67_v12 = vld [vmem:[%s11788_s25 + $0x8] sm:$0xff] }
   0xf   :  { %9113 = vmatpush1.bf16.msra.mxu0 %v9112_v4  ;;  %8538 = vmatprep.mubr.msk.f32.mxu0 %vm94_vm0, %v67_v12 }
  0x10   :  { %9114 = vmatprep.subr.bf16.mxu0 %v11762_v3 }
  0x13   :  { %9116 = vmatpush1.bf16.msra.mxu0 %v9115_v6 }
  0x14   :  { %9117 = vmatprep.subr.bf16.mxu0 %v11762_v3 }
  0x15   :  { %25 = vsyncpa [#allocation3], 0  ;;  %v9121_v13 = vpack.c.bf16 %v77_v11, %v76_v10  ;;  %v78_v14 = vld [vmem:[%s11787_s23 + $0x40] sm:$0xff]  ;;  %v79_v15 = vld [vmem:[%s11787_s23 + $0x48] sm:$0xff]  ;;  %v9478_v41 = vmov 1966171168   ;;  %v182_v43 = vlaneseq }
  0x16   :  { %v9124_v16 = vpack.c.bf16 %v79_v15, %v78_v14  ;;  %v80_v17 = vld [vmem:[%s11787_s23 + $0x50] sm:$0xff]  ;;  %v81_v18 = vld [vmem:[%s11787_s23 + $0x58] sm:$0xff]  ;;  %v82_v20 = vld [vmem:[%s11787_s23 + $0x60] sm:$0xff]  ;;  %v180_v42 = vunpack.c.l.s4 %v9478_v41  ;;  %s11789_s3 = sld [smem:[#allocation9_spill]]  ;;  %vm442_vm1 = vcmask 517120   ;;  %s11793_s4 = sld [smem:[#allocation11_spill]] }
  0x17   :  { %9119 = vmatpush1.bf16.msra.mxu0 %v9118_v9  ;;  %v9127_v19 = vpack.c.bf16 %v81_v18, %v80_v17  ;;  %v83_v21 = vld [vmem:[%s11787_s23 + $0x68] sm:$0xff]  ;;  %v84_v23 = vld [vmem:[%s11787_s23 + $0x70] sm:$0xff]  ;;  %v85_v24 = vld [vmem:[%s11787_s23 + $0x78] sm:$0xff]  ;;  %v9692_v45 = vshrl.u32 %v182_v43, 7  ;;  %s11794_s0 = sld [smem:[#allocation12_spill]]  ;;  %vm9480_vm2 = vmmov 0  }
  0x18   :  { %9120 = vmatprep.subr.bf16.mxu0 %v11762_v3  ;;  %v9130_v22 = vpack.c.bf16 %v83_v21, %v82_v20  ;;  %v9133_v25 = vpack.c.bf16 %v85_v24, %v84_v23  ;;  %v86_v26 = vld [vmem:[%s11787_s23 + $0x80] sm:$0xff]  ;;  %v87_v27 = vld [vmem:[%s11787_s23 + $0x88] sm:$0xff]  ;;  %v88_v29 = vld [vmem:[%s11787_s23 + $0x90] sm:$0xff]  ;;  %v181_v44 = vunpack.c.0.s8 %v180_v42  ;;  %s9481_s27 = smov 64   ;;  %vm1629_vm3 = vcmask 130048   ;;  %s9483_s28 = smov 48  }
  0x19   :  { %v9136_v28 = vpack.c.bf16 %v87_v27, %v86_v26  ;;  %v89_v30 = vld [vmem:[%s11787_s23 + $0x98] sm:$0xff]  ;;  %v90_v32 = vld [vmem:[%s11787_s23 + $0xa0] sm:$0xff]  ;;  %v91_v33 = vld [vmem:[%s11787_s23 + $0xa8] sm:$0xff]  ;;  %vm1892_vm4 = vcmask 1044480   ;;  %vm1821_vm5 = vcmask 36864   ;;  %vm1888_vm6 = vcmask 39936  }
  0x1a   :  { %v9139_v31 = vpack.c.bf16 %v89_v30, %v88_v29  ;;  %v9142_v34 = vpack.c.bf16 %v91_v33, %v90_v32  ;;  %v92_v35 = vld [vmem:[%s11787_s23 + $0xb0] sm:$0xff]  ;;  %v93_v36 = vld [vmem:[%s11787_s23 + $0xb8] sm:$0xff]  ;;  %v66_v38 = vld [vmem:[%s11788_s25] sm:$0xff]  ;;  %v9695_v46 = vsub.s32 %v181_v44, %v9692_v45  ;;  %s9485_s29 = smov 32   ;;  %s11772_s30 = smov 16   ;;  %vm3424_vm7 = vcmask 261120  }
  0x1b   :  { %9122 = vmatpush1.bf16.msra.mxu0 %v9121_v13  ;;  %v9145_v37 = vpack.c.bf16 %v93_v36, %v92_v35  ;;  %v69_v39 = vld [vmem:[%s11788_s25 + $0x18] sm:$0x3]  ;;  %v68_v40 = vld [vmem:[%s11788_s25 + $0x10] sm:$0x3]  ;;  %s9482_s25 = smov 112   ;;  %vm3427_vm8 = vcmask 392192  }
  0x1c   :  { %9123 = vmatprep.subr.bf16.mxu0 %v11762_v3  ;;  %v259_v47 = vld [vmem:[%s11789_s3] sm:$0x1f]  ;;  %v260_v48 = vld [vmem:[%s11789_s3 + $0x8] sm:$0x1f]  ;;  %vm8516_vm9 = vcmask 254976  }
  0x1d   :  { %v270_v49 = vrot.slane %v259_v47, %v9695_v46  ;;  %v309_v50 = vrot.slane %v260_v48, %v9695_v46  ;;  %v263_v51 = vcombine.high %v259_v47, %v259_v47  ;;  %v302_v53 = vcombine.high %v260_v48, %v260_v48 }
  0x1f   :  { %9125 = vmatpush1.bf16.msra.mxu0 %v9124_v16  ;;  %v278_v52 = vcombine.high %v270_v49, %v270_v49  ;;  %v317_v54 = vcombine.high %v309_v50, %v309_v50  ;;  %v277_v56 = vrot.slane %v263_v51, %v9695_v46  ;;  %v285_v57 = vrot.slane %v270_v49, %v9695_v46 }
  0x20   :  { %9126 = vmatprep.subr.bf16.mxu0 %v11762_v3  ;;  %v324_v62 = vrot.slane %v309_v50, %v9695_v46  ;;  %v316_v63 = vrot.slane %v302_v53, %v9695_v46 }
  0x21   :  { %v299_v58 = vrot.slane %v278_v52, %v9695_v46  ;;  %v338_v0 = vrot.slane %v317_v54, %v9695_v46  ;;  %v292_v5 = vrot.slane %v277_v56, %v9695_v46  ;;  %v300_v6 = vcombine.high %v285_v57, %v285_v57 }
  0x22   :  { %v331_v17 = vrot.slane %v316_v63, %v9695_v46  ;;  %v339_v18 = vcombine.high %v324_v62, %v324_v62  ;;  %v9736_v56 = vsub.s32 1, %v9692_v45  ;;  %v9754_v63 = vsub.s32 7, %v9692_v45 }
  0x23   :  { %9128 = vmatpush1.bf16.msra.mxu0 %v9127_v19  ;;  %v301_v7 = vcombine.high %v299_v58, %v299_v58  ;;  %v340_v9 = vcombine.high %v338_v0, %v338_v0 }
  0x24   :  { %9129 = vmatprep.subr.bf16.mxu0 %v11762_v3  ;;  %11792 = vst [vmem:[#allocation7_spill] sm:$0xff] %v9754_v63 }
  0x27   :  { %9131 = vmatpush1.bf16.msra.mxu0 %v9130_v22 }
  0x28   :  { %9132 = vmatprep.subr.bf16.mxu0 %v11762_v3 }
  0x2b   :  { %9134 = vmatpush1.bf16.msra.mxu0 %v9133_v25 }
  0x2c   :  { %9135 = vmatprep.subr.bf16.mxu0 %v11762_v3 }
  0x2f   :  { %9137 = vmatpush1.bf16.msra.mxu0 %v9136_v28 }
  0x30   :  { %9138 = vmatprep.subr.bf16.mxu0 %v11762_v3 }
  0x33   :  { %9140 = vmatpush1.bf16.msra.mxu0 %v9139_v31 }
  0x34   :  { %9141 = vmatprep.subr.bf16.mxu0 %v11762_v3 }
  0x37   :  { %9143 = vmatpush1.bf16.msra.mxu0 %v9142_v34 }
  0x38   :  { %9144 = vmatprep.subr.bf16.mxu0 %v11762_v3 }
  0x3b   :  { %9146 = vmatpush1.bf16.msra.mxu0 %v9145_v37 }
  0x3e   :  { %166 = vmatmul.mubr.f32.vlgmr.msra.gmra.mrb[0].mxu0 %v66_v38 }
  0x3f   :  { %8539 = vmatprep.mubr.msk.f32.mxu0 %vm94_vm0, %v69_v39 }
  0x42   :  { %171 = vmatmul.mubr.f32.gmra.mrb[2].mxu0 %v68_v40 }
 0x111   :  { %v167_v55 = vpop.f32.mrb[0].mxu0 }
 0x112   :  { %v178_v59 = vcombine.high %v167_v55, %v167_v55  ;;  %v185_v60 = vrot.slane %v167_v55, %v9695_v46  ;;  %v169_v61 = vpop.f32.mrb[1].mxu0  ;;  %v9733_v55 = vsub.s32 0, %v9692_v45 }
 0x113   :  { %v9748_v61 = vsub.s32 5, %v9692_v45 }
 0x114   :  { %v192_v1 = vrot.slane %v178_v59, %v9695_v46  ;;  %v193_v2 = vcombine.high %v185_v60, %v185_v60  ;;  %v201_v4 = vrot.slane %v185_v60, %v9695_v46  ;;  %v9745_v60 = vsub.s32 4, %v9692_v45 }
 0x115   :  { %v172_v8 = vpop.f32.mrb[2].mxu0  ;;  %11790 = vst [vmem:[#allocation5_spill] sm:$0xff] %v9748_v61 }
 0x116   :  { %v194_v10 = vcombine.high %v192_v1, %v192_v1  ;;  %v208_v11 = vrot.slane %v192_v1, %v9695_v46  ;;  %v215_v12 = vrot.slane %v193_v2, %v9695_v46  ;;  %v223_v13 = vcombine.high %v201_v4, %v201_v4  ;;  %v174_v14 = vpop.f32.mrb[3].mxu0 }
 0x117   :  { %v351_v15 = vadd.f32 %v285_v57, %v201_v4  ;;  %v233_v16 = vrot.slane %v172_v8, %v9695_v46  ;;  %v9739_v57 = vsub.s32 2, %v9692_v45 }
 0x118   :  { %v222_v19 = vrot.slane %v194_v10, %v9695_v46  ;;  %v224_v20 = vcombine.high %v208_v11, %v208_v11  ;;  %v225_v21 = vcombine.high %v215_v12, %v215_v12  ;;  %v352_v22 = vadd.f32 %v299_v58, %v215_v12 }
 0x119   :  { %v353_v23 = vadd.f32 %v300_v6, %v223_v13  ;;  %v355_v24 = vadd.f32 %v292_v5, %v208_v11  ;;  %v234_v25 = vcombine.high %v233_v16, %v233_v16  ;;  %v241_v26 = vrot.slane %v233_v16, %v9695_v46 }
 0x11a   :  { %v226_v27 = vcombine.high %v222_v19, %v222_v19  ;;  %v354_v28 = vadd.f32 %v301_v7, %v225_v21  ;;  %v356_v29 = vadd.f32 %v324_v62, %v222_v19  ;;  %v373_v30 = vcombine.low %v351_v15, %v352_v22 }
 0x11b   :  { %v248_v31 = vrot.slane %v234_v25, %v9695_v46  ;;  %v359_v32 = vadd.f32 %v340_v9, %v241_v26  ;;  %v357_v33 = vadd.f32 %v338_v0, %v224_v20  ;;  %v9742_v58 = vsub.s32 3, %v9692_v45 }
 0x11c   :  { %v358_v34 = vadd.f32 %v339_v18, %v226_v27  ;;  %v374_v35 = vcombine.low %v353_v23, %v354_v28  ;;  %v375_v36 = vcombine.low %v355_v24, %v356_v29  ;;  %v383_v39 = vrot.slane %v373_v30, %v9695_v46 }
 0x11d   :  { %v360_v37 = vadd.f32 %v331_v17, %v248_v31  ;;  %v9751_v62 = vsub.s32 6, %v9692_v45 }
 0x11e   :  { %v376_v38 = vcombine.low %v357_v33, %v358_v34  ;;  %v390_v40 = vrot.slane %v374_v35, %v9695_v46  ;;  %v397_v42 = vrot.slane %v375_v36, %v9695_v46 }
 0x11f   :  { %v422_v41 = vcombine.low %v359_v32, %v360_v37  ;;  %11791 = vst [vmem:[#allocation6_spill] sm:$0xff] %v9751_v62 }
 0x120   :  { %v404_v43 = vrot.slane %v376_v38, %v9695_v46  ;;  %v405_v44 = vcombine.low %v383_v39, %v390_v40 }
 0x121   :  { %v429_v48 = vrot.slane %v422_v41, %v9695_v46 }
 0x122   :  { %v406_v47 = vcombine.low %v397_v42, %v404_v43  ;;  %v413_v49 = vrot.slane %v405_v44, %v9695_v46 }
 0x123   :  { %v436_v52 = vrot.slane %v429_v48, %v9695_v46 }
 0x124   :  { %v420_v50 = vrot.slane %v406_v47, %v9695_v46 }
 0x125   :  { %v443_v54 = vsel %vm442_vm1, %v436_v52, 0.0 }
 0x126   :  { %v421_v51 = vcombine.low %v413_v49, %v420_v50 }
 0x128   :  { %v439_v53 = vsel %vm94_vm0, %v421_v51, 0.0 }
 0x129   :  { %440 = vadd.xlane.f32.xlu0 %v439_v53  ;;  %v8540_v53 = vld [vmem:[%s11793_s4] ss:$0 sm:$0xff]  ;;  %s11776_s4 = smov 96  }
 0x12d   :  { %444 = vadd.xlane.f32.xlu0 %v443_v54  ;;  %v8541_v54 = vld [vmem:[%s11794_s0] ss:$0 sm:$0xff]  ;;  %s11770_s0 = smov 80  }
 0x1b6   :  { %v441_v59 = vpop.xlane.xlu0 %440 }
 0x1b7   :  { %v447_v0 = vmul.f32 0.015625, %v441_v59  ;;  %v676_v59 = vcombine.high %v8540_v53, %v8540_v53 }
 0x1b9   :  { %v454_v1 = vrot.slane %v447_v0, %v9733_v55  ;;  %v458_v2 = vrot.slane %v447_v0, %v9736_v56  ;;  %v462_v4 = vrot.slane %v447_v0, %v9739_v57  ;;  %v466_v5 = vrot.slane %v447_v0, %v9742_v58 }
 0x1ba   :  { %v445_v6 = vpop.xlane.xlu0 %444  ;;  %v470_v7 = vrot.slane %v447_v0, %v9745_v60  ;;  %v474_v8 = vrot.slane %v447_v0, %v9748_v61  ;;  %v478_v9 = vrot.slane %v447_v0, %v9751_v62  ;;  %v482_v10 = vrot.slane %v447_v0, %v9754_v63 }
 0x1bb   :  { %v448_v45 = vmul.f32 0.015625, %v445_v6  ;;  %v9764_v11 = vsub.f32 %v351_v15, %v454_v1  ;;  %v9766_v12 = vsub.f32 %v352_v22, %v458_v2  ;;  %v9768_v13 = vsub.f32 %v353_v23, %v462_v4 }
 0x1bc   :  { %v9770_v14 = vsub.f32 %v354_v28, %v466_v5  ;;  %v9772_v16 = vsub.f32 %v355_v24, %v470_v7  ;;  %v9774_v17 = vsub.f32 %v356_v29, %v474_v8  ;;  %v9776_v18 = vsub.f32 %v357_v33, %v478_v9 }
 0x1bd   :  { %v486_v19 = vrot.slane %v448_v45, %v9733_v55  ;;  %v490_v20 = vrot.slane %v448_v45, %v9736_v56  ;;  %v9780_v21 = vsub.f32 %v358_v34, %v482_v10  ;;  %v511_v15 = vmul.f32 %v9764_v11, %v9764_v11 }
 0x1be   :  { %v512_v22 = vmul.f32 %v9766_v12, %v9766_v12  ;;  %v513_v23 = vmul.f32 %v9768_v13, %v9768_v13  ;;  %v514_v24 = vmul.f32 %v9770_v14, %v9770_v14  ;;  %v515_v25 = vmul.f32 %v9772_v16, %v9772_v16 }
 0x1bf   :  { %v9792_v26 = vsub.f32 %v359_v32, %v486_v19  ;;  %v9794_v27 = vsub.f32 %v360_v37, %v490_v20  ;;  %v516_v28 = vmul.f32 %v9774_v17, %v9774_v17  ;;  %v517_v29 = vmul.f32 %v9776_v18, %v9776_v18 }
 0x1c0   :  { %v518_v30 = vmul.f32 %v9780_v21, %v9780_v21  ;;  %v531_v31 = vcombine.low %v511_v15, %v512_v22  ;;  %v532_v33 = vcombine.low %v513_v23, %v514_v24  ;;  %v748_v0 = vcombine.high %v8541_v54, %v8541_v54 }
 0x1c1   :  { %v519_v34 = vmul.f32 %v9792_v26, %v9792_v26  ;;  %v520_v32 = vmul.f32 %v9794_v27, %v9794_v27  ;;  %v533_v35 = vcombine.low %v515_v25, %v516_v28  ;;  %v683_v4 = vrot.slane %v8540_v53, %v9695_v46 }
 0x1c2   :  { %v534_v36 = vcombine.low %v517_v29, %v518_v30  ;;  %v541_v37 = vrot.slane %v531_v31, %v9695_v46  ;;  %v548_v38 = vrot.slane %v532_v33, %v9695_v46  ;;  %v690_v5 = vrot.slane %v676_v59, %v9695_v46 }
 0x1c3   :  { %v555_v39 = vrot.slane %v533_v35, %v9695_v46  ;;  %v580_v42 = vcombine.low %v519_v34, %v520_v32  ;;  %v755_v7 = vrot.slane %v8541_v54, %v9695_v46  ;;  %v762_v8 = vrot.slane %v748_v0, %v9695_v46 }
 0x1c4   :  { %v562_v40 = vrot.slane %v534_v36, %v9695_v46  ;;  %v563_v41 = vcombine.low %v541_v37, %v548_v38  ;;  %v691_v45 = vcombine.high %v683_v4, %v683_v4  ;;  %v692_v19 = vcombine.high %v690_v5, %v690_v5 }
 0x1c5   :  { %v587_v48 = vrot.slane %v580_v42, %v9695_v46  ;;  %v763_v15 = vcombine.high %v755_v7, %v755_v7  ;;  %v764_v22 = vcombine.high %v762_v8, %v762_v8  ;;  %v699_v23 = vrot.slane %v683_v4, %v9695_v46 }
 0x1c6   :  { %v564_v43 = vcombine.low %v555_v39, %v562_v40  ;;  %v571_v44 = vrot.slane %v563_v41, %v9695_v46  ;;  %v706_v24 = vrot.slane %v690_v5, %v9695_v46  ;;  %v713_v25 = vrot.slane %v691_v45, %v9695_v46 }
 0x1c7   :  { %v594_v51 = vrot.slane %v587_v48, %v9695_v46  ;;  %v720_v28 = vrot.slane %v692_v19, %v9695_v46  ;;  %v771_v29 = vrot.slane %v755_v7, %v9695_v46  ;;  %v778_v30 = vrot.slane %v762_v8, %v9695_v46 }
 0x1c8   :  { %v578_v47 = vrot.slane %v564_v43, %v9695_v46  ;;  %v785_v31 = vrot.slane %v763_v15, %v9695_v46  ;;  %v792_v33 = vrot.slane %v764_v22, %v9695_v46  ;;  %v721_v34 = vcombine.high %v699_v23, %v699_v23 }
 0x1c9   :  { %v600_v52 = vsel %vm442_vm1, %v594_v51, 0.0  ;;  %v722_v32 = vcombine.high %v706_v24, %v706_v24  ;;  %v723_v35 = vcombine.high %v713_v25, %v713_v25  ;;  %v724_v36 = vcombine.high %v720_v28, %v720_v28 }
 0x1ca   :  { %v579_v49 = vcombine.low %v571_v44, %v578_v47  ;;  %v793_v38 = vcombine.high %v771_v29, %v771_v29  ;;  %v794_v39 = vcombine.high %v778_v30, %v778_v30  ;;  %v795_v40 = vcombine.high %v785_v31, %v785_v31 }
 0x1cb   :  { %v796_v41 = vcombine.high %v792_v33, %v792_v33 }
 0x1cc   :  { %v597_v50 = vsel %vm94_vm0, %v579_v49, 0.0 }
 0x1cd   :  { %598 = vadd.xlane.f32.xlu1 %v597_v50 }
 0x1d1   :  { %601 = vadd.xlane.f32.xlu1 %v600_v52 }
 0x25a   :  { %v599_v1 = vpop.xlane.xlu1 %598 }
 0x25b   :  { %v603_v2 = vmul.f32 0.015625, %v599_v1 }
 0x25d   :  { %v605_v6 = vadd.f32 1e-05, %v603_v2 }
 0x25e   :  { %v602_v9 = vpop.xlane.xlu1 %601 }
 0x25f   :  { %9333 = vrsqrt.f32 %v605_v6  ;;  %v604_v10 = vmul.f32 0.015625, %v602_v9 }
 0x261   :  { %v606_v20 = vadd.f32 1e-05, %v604_v10 }
 0x263   :  { %9335 = vrsqrt.f32 %v606_v20 }
 0x269   :  { %v9334_v37 = vpop.eup %9333 }
 0x26a   :  { %v614_v42 = vrot.slane %v9334_v37, %v9733_v55  ;;  %v618_v43 = vrot.slane %v9334_v37, %v9736_v56  ;;  %v622_v44 = vrot.slane %v9334_v37, %v9739_v57  ;;  %v626_v47 = vrot.slane %v9334_v37, %v9742_v58 }
 0x26b   :  { %v630_v48 = vrot.slane %v9334_v37, %v9745_v60  ;;  %v634_v49 = vrot.slane %v9334_v37, %v9748_v61  ;;  %v638_v50 = vrot.slane %v9334_v37, %v9751_v62  ;;  %v642_v51 = vrot.slane %v9334_v37, %v9754_v63 }
 0x26c   :  { %v661_v52 = vmul.f32 %v614_v42, %v9764_v11  ;;  %v662_v53 = vmul.f32 %v618_v43, %v9766_v12  ;;  %v663_v54 = vmul.f32 %v622_v44, %v9768_v13  ;;  %v664_v59 = vmul.f32 %v626_v47, %v9770_v14 }
 0x26d   :  { %v9336_v0 = vpop.eup %9335  ;;  %v665_v1 = vmul.f32 %v630_v48, %v9772_v16  ;;  %v666_v2 = vmul.f32 %v634_v49, %v9774_v17  ;;  %v667_v4 = vmul.f32 %v638_v50, %v9776_v18  ;;  %v668_v5 = vmul.f32 %v642_v51, %v9780_v21 }
 0x26e   :  { %v646_v6 = vrot.slane %v9336_v0, %v9733_v55  ;;  %v650_v7 = vrot.slane %v9336_v0, %v9736_v56  ;;  %v733_v11 = vmul.f32 %v699_v23, %v661_v52  ;;  %v734_v8 = vmul.f32 %v713_v25, %v662_v53 }
 0x26f   :  { %v735_v12 = vmul.f32 %v721_v34, %v663_v54  ;;  %v736_v9 = vmul.f32 %v723_v35, %v664_v59  ;;  %v737_v13 = vmul.f32 %v706_v24, %v665_v1  ;;  %v738_v10 = vmul.f32 %v720_v28, %v666_v2 }
 0x270   :  { %v739_v14 = vmul.f32 %v722_v32, %v667_v4  ;;  %v740_v45 = vmul.f32 %v724_v36, %v668_v5  ;;  %v9852_v19 = vadd.f32 %v771_v29, %v733_v11  ;;  %v9854_v16 = vadd.f32 %v785_v31, %v734_v8 }
 0x271   :  { %v9856_v17 = vadd.f32 %v793_v38, %v735_v12  ;;  %v9858_v18 = vadd.f32 %v795_v40, %v736_v9  ;;  %v9860_v21 = vadd.f32 %v778_v30, %v737_v13  ;;  %v9862_v20 = vadd.f32 %v792_v33, %v738_v10 }
 0x272   :  { %v9864_v15 = vadd.f32 %v794_v39, %v739_v14  ;;  %v9866_v22 = vadd.f32 %v796_v41, %v740_v45  ;;  %v905_v24 = vcombine.low %v9852_v19, %v9854_v16  ;;  %v669_v28 = vmul.f32 %v646_v6, %v9792_v26 }
 0x273   :  { %v906_v34 = vcombine.low %v9856_v17, %v9858_v18  ;;  %v907_v32 = vcombine.low %v9860_v21, %v9862_v20  ;;  %v670_v30 = vmul.f32 %v650_v7, %v9794_v27 }
 0x274   :  { %v908_v33 = vcombine.low %v9864_v15, %v9866_v22  ;;  %v915_v35 = vrot.slane %v905_v24, %v9695_v46  ;;  %v741_v36 = vmul.f32 %v699_v23, %v669_v28 }
 0x275   :  { %v922_v37 = vrot.slane %v906_v34, %v9695_v46  ;;  %v929_v38 = vrot.slane %v907_v32, %v9695_v46  ;;  %v742_v39 = vmul.f32 %v713_v25, %v670_v30 }
 0x276   :  { %v936_v26 = vrot.slane %v908_v33, %v9695_v46  ;;  %v9882_v40 = vadd.f32 %v771_v29, %v741_v36 }
 0x277   :  { %v937_v41 = vcombine.low %v915_v35, %v922_v37  ;;  %v9884_v42 = vadd.f32 %v785_v31, %v742_v39 }
 0x278   :  { %v938_v43 = vcombine.low %v929_v38, %v936_v26 }
 0x279   :  { %v945_v27 = vrot.slane %v937_v41, %v9695_v46  ;;  %v954_v44 = vcombine.low %v9882_v40, %v9884_v42 }
 0x27a   :  { %v952_v23 = vrot.slane %v938_v43, %v9695_v46 }
 0x27b   :  { %v961_v47 = vrot.slane %v954_v44, %v9695_v46 }
 0x27c   :  { %v953_v48 = vcombine.low %v945_v27, %v952_v23 }
 0x27d   :  { %v968_v25 = vrot.slane %v961_v47, %v9695_v46 }
 0x27e   :  { %v971_v49 = vsel %vm94_vm0, %v953_v48, 0.0 }
 0x27f   :  { %972 = vadd.xlane.f32.xlu0 %v971_v49  ;;  %v974_v29 = vsel %vm442_vm1, %v968_v25, 0.0 }
 0x280   :  { %975 = vadd.xlane.f32.xlu1 %v974_v29 }
 0x30c   :  { %v973_v31 = vpop.xlane.xlu0 %972 }
 0x30d   :  { %v976_v50 = vpop.xlane.xlu1 %975  ;;  %v977_v51 = vmul.f32 0.015625, %v973_v31 }
 0x30e   :  { %v978_v52 = vmul.f32 0.015625, %v976_v50 }
 0x30f   :  { %v984_v53 = vrot.slane %v977_v51, %v9733_v55  ;;  %v988_v54 = vrot.slane %v977_v51, %v9736_v56  ;;  %v992_v59 = vrot.slane %v977_v51, %v9739_v57  ;;  %v996_v0 = vrot.slane %v977_v51, %v9742_v58 }
 0x310   :  { %v1016_v1 = vrot.slane %v978_v52, %v9733_v55  ;;  %v1020_v2 = vrot.slane %v978_v52, %v9736_v56  ;;  %v1000_v4 = vrot.slane %v977_v51, %v9745_v60  ;;  %v1004_v5 = vrot.slane %v977_v51, %v9748_v61 }
 0x311   :  { %v1008_v6 = vrot.slane %v977_v51, %v9751_v62  ;;  %v1012_v7 = vrot.slane %v977_v51, %v9754_v63  ;;  %v9905_v11 = vsub.f32 %v9852_v19, %v984_v53  ;;  %v9908_v8 = vsub.f32 %v9854_v16, %v988_v54 }
 0x312   :  { %v9911_v12 = vsub.f32 %v9882_v40, %v1016_v1  ;;  %v9914_v9 = vsub.f32 %v9884_v42, %v1020_v2  ;;  %v9917_v13 = vsub.f32 %v9856_v17, %v992_v59  ;;  %v9920_v10 = vsub.f32 %v9858_v18, %v996_v0  ;;  %v818_v1 = vld [vmem:[%s11745_s7 + $0x8] sm:$0xff]  ;;  %v820_v2 = vld [vmem:[%s11745_s7 + $0x18] sm:$0xff] }
 0x313   :  { %v9923_v14 = vsub.f32 %v9860_v21, %v1000_v4  ;;  %v9926_v45 = vsub.f32 %v9862_v20, %v1004_v5  ;;  %v9929_v24 = vsub.f32 %v9864_v15, %v1008_v6  ;;  %v9932_v28 = vsub.f32 %v9866_v22, %v1012_v7  ;;  %v817_v4 = vld [vmem:[%s11745_s7] sm:$0xff]  ;;  %v819_v6 = vld [vmem:[%s11745_s7 + $0x10] sm:$0xff]  ;;  %v822_v7 = vld [vmem:[%s11745_s7 + $0x28] sm:$0xff] }
 0x314   :  { %v1049_v34 = vmul.f32 %v9911_v12, %v9911_v12  ;;  %v1050_v32 = vmul.f32 %v9914_v9, %v9914_v9  ;;  %v1041_v30 = vmul.f32 %v9905_v11, %v9905_v11  ;;  %v1042_v33 = vmul.f32 %v9908_v8, %v9908_v8 }
 0x315   :  { %v1043_v35 = vmul.f32 %v9917_v13, %v9917_v13  ;;  %v1044_v36 = vmul.f32 %v9920_v10, %v9920_v10  ;;  %v1045_v37 = vmul.f32 %v9923_v14, %v9923_v14  ;;  %v1046_v38 = vmul.f32 %v9926_v45, %v9926_v45 }
 0x316   :  { %v1110_v39 = vcombine.low %v1049_v34, %v1050_v32  ;;  %v1047_v26 = vmul.f32 %v9929_v24, %v9929_v24  ;;  %v1048_v41 = vmul.f32 %v9932_v28, %v9932_v28  ;;  %v1061_v43 = vcombine.low %v1041_v30, %v1042_v33  ;;  %v824_v34 = vld [vmem:[%s11745_s7 + $0x38] sm:$0xff] }
 0x317   :  { %v1062_v27 = vcombine.low %v1043_v35, %v1044_v36  ;;  %v1063_v44 = vcombine.low %v1045_v37, %v1046_v38  ;;  %v9147_v5 = vpack.c.bf16 %v820_v2, %v818_v1  ;;  %v11764_v32 = vmov 0.0   ;;  %v821_v35 = vld [vmem:[%s11745_s7 + $0x20] sm:$0xff]  ;;  %v823_v36 = vld [vmem:[%s11745_s7 + $0x30] sm:$0xff]  ;;  %v826_v37 = vld [vmem:[%s11745_s7 + $0x48] sm:$0xff] }
 0x318   :  { %v1117_v23 = vrot.slane %v1110_v39, %v9695_v46  ;;  %v1064_v47 = vcombine.low %v1047_v26, %v1048_v41  ;;  %v1071_v48 = vrot.slane %v1061_v43, %v9695_v46  ;;  %1498 = vmatprep.mubr.f32.mxu1 %v11764_v32  ;;  %v9149_v30 = vpack.c.bf16 %v819_v6, %v817_v4  ;;  %v828_v38 = vld [vmem:[%s11745_s7 + $0x58] sm:$0xff]  ;;  %v825_v41 = vld [vmem:[%s11745_s7 + $0x40] sm:$0xff]  ;;  %v827_v43 = vld [vmem:[%s11745_s7 + $0x50] sm:$0xff] }
 0x319   :  { %v1078_v25 = vrot.slane %v1062_v27, %v9695_v46  ;;  %v1085_v49 = vrot.slane %v1063_v44, %v9695_v46  ;;  %v9151_v33 = vpack.c.bf16 %v824_v34, %v822_v7  ;;  %8954 = vmatprep.subr.mxu0 %v11764_v32  ;;  %9148 = vmatprep.subr.bf16.mxu1 %v9147_v5  ;;  %v830_v27 = vld [vmem:[%s11745_s7 + $0x68] sm:$0xff]  ;;  %v832_v44 = vld [vmem:[%s11745_s7 + $0x78] sm:$0xff] }
 0x31a   :  { %v1124_v29 = vrot.slane %v1117_v23, %v9695_v46  ;;  %v1092_v31 = vrot.slane %v1064_v47, %v9695_v46  ;;  %9150 = vmatpush1.bf16.msra.mxu1 %v9149_v30  ;;  %v9153_v39 = vpack.c.bf16 %v823_v36, %v821_v35  ;;  %v9155_v26 = vpack.c.bf16 %v828_v38, %v826_v37 }
 0x31b   :  { %v1093_v50 = vcombine.low %v1071_v48, %v1078_v25  ;;  %9152 = vmatprep.subr.bf16.mxu1 %v9151_v33  ;;  %v9157_v23 = vpack.c.bf16 %v827_v43, %v825_v41  ;;  %v9159_v47 = vpack.c.bf16 %v832_v44, %v830_v27  ;;  %v829_v48 = vld [vmem:[%s11745_s7 + $0x60] sm:$0xff]  ;;  %v831_v25 = vld [vmem:[%s11745_s7 + $0x70] sm:$0xff] }
 0x31c   :  { %v1130_v51 = vsel %vm442_vm1, %v1124_v29, 0.0  ;;  %v1094_v52 = vcombine.low %v1085_v49, %v1092_v31  ;;  %v9161_v49 = vpack.c.bf16 %v831_v25, %v829_v48 }
 0x31d   :  { %1131 = vadd.xlane.f32.xlu1 %v1130_v51  ;;  %v1101_v53 = vrot.slane %v1093_v50, %v9695_v46  ;;  %v8542_v50 = vld [vmem:[%s11743_s5] ss:$0 sm:$0xff] }
 0x31e   :  { %v1108_v54 = vrot.slane %v1094_v52, %v9695_v46  ;;  %9154 = vmatpush1.bf16.msra.mxu1 %v9153_v39  ;;  %v8543_v51 = vld [vmem:[%s11744_s6] ss:$0 sm:$0xff]  ;;  %v1213_v4 = vrot.slane %v8542_v50, %v9695_v46 }
 0x31f   :  { %9156 = vmatprep.subr.bf16.mxu1 %v9155_v26  ;;  %v1285_v6 = vrot.slane %v8543_v51, %v9695_v46 }
 0x320   :  { %v1109_v59 = vcombine.low %v1101_v53, %v1108_v54  ;;  %v1206_v53 = vcombine.high %v8542_v50, %v8542_v50  ;;  %v1278_v54 = vcombine.high %v8543_v51, %v8543_v51  ;;  %v1221_v34 = vcombine.high %v1213_v4, %v1213_v4 }
 0x321   :  { %v1293_v33 = vcombine.high %v1285_v6, %v1285_v6  ;;  %v1229_v26 = vrot.slane %v1213_v4, %v9695_v46 }
 0x322   :  { %v1127_v0 = vsel %vm94_vm0, %v1109_v59, 0.0  ;;  %9158 = vmatpush1.bf16.msra.mxu1 %v9157_v23  ;;  %v1220_v1 = vrot.slane %v1206_v53, %v9695_v46  ;;  %v1292_v5 = vrot.slane %v1278_v54, %v9695_v46  ;;  %v1243_v41 = vrot.slane %v1221_v34, %v9695_v46 }
 0x323   :  { %1128 = vadd.xlane.f32.xlu0 %v1127_v0  ;;  %9160 = vmatprep.subr.bf16.mxu1 %v9159_v47  ;;  %v1301_v47 = vrot.slane %v1285_v6, %v9695_v46  ;;  %v1315_v48 = vrot.slane %v1293_v33, %v9695_v46  ;;  %v1251_v25 = vcombine.high %v1229_v26, %v1229_v26 }
 0x324   :  { %v1222_v7 = vcombine.high %v1220_v1, %v1220_v1  ;;  %v1294_v30 = vcombine.high %v1292_v5, %v1292_v5  ;;  %v1236_v36 = vrot.slane %v1220_v1, %v9695_v46  ;;  %v1308_v43 = vrot.slane %v1292_v5, %v9695_v46 }
 0x325   :  { %v1323_v50 = vcombine.high %v1301_v47, %v1301_v47  ;;  %v1325_v51 = vcombine.high %v1315_v48, %v1315_v48 }
 0x326   :  { %9162 = vmatpush1.bf16.msra.mxu1 %v9161_v49  ;;  %v1250_v39 = vrot.slane %v1222_v7, %v9695_v46  ;;  %v1322_v27 = vrot.slane %v1294_v30, %v9695_v46  ;;  %v1252_v49 = vcombine.high %v1236_v36, %v1236_v36  ;;  %v1324_v53 = vcombine.high %v1308_v43, %v1308_v43 }
 0x327   :  { %8894 = vmatprep.subr.mxu1 %v11764_v32 }
 0x328   :  { %v1326_v54 = vcombine.high %v1322_v27, %v1322_v27 }
 0x3aa   :  { %v1132_v29 = vpop.xlane.xlu1 %1131 }
 0x3ab   :  { %v1134_v31 = vmul.f32 0.015625, %v1132_v29  ;;  %v1253_v29 = vcombine.high %v1243_v41, %v1243_v41 }
 0x3ad   :  { %v1136_v52 = vadd.f32 1e-05, %v1134_v31  ;;  %v1254_v31 = vcombine.high %v1250_v39, %v1250_v39 }
 0x3af   :  { %9337 = vrsqrt.f32 %v1136_v52 }
 0x3b0   :  { %v1129_v59 = vpop.xlane.xlu0 %1128 }
 0x3b1   :  { %v1133_v0 = vmul.f32 0.015625, %v1129_v59 }
 0x3b3   :  { %v1135_v2 = vadd.f32 1e-05, %v1133_v0 }
 0x3b5   :  { %9339 = vrsqrt.f32 %v1135_v2 }
 0x3b9   :  { %v9338_v35 = vpop.eup %9337 }
 0x3ba   :  { %v1176_v37 = vrot.slane %v9338_v35, %v9733_v55  ;;  %v1180_v38 = vrot.slane %v9338_v35, %v9736_v56 }
 0x3bc   :  { %v1199_v44 = vmul.f32 %v1176_v37, %v9911_v12  ;;  %v1200_v23 = vmul.f32 %v1180_v38, %v9914_v9 }
 0x3be   :  { %v1271_v59 = vmul.f32 %v1229_v26, %v1199_v44  ;;  %v1272_v0 = vmul.f32 %v1243_v41, %v1200_v23 }
 0x3bf   :  { %v9340_v52 = vpop.eup %9339 }
 0x3c0   :  { %v1144_v1 = vrot.slane %v9340_v52, %v9733_v55  ;;  %v1148_v12 = vrot.slane %v9340_v52, %v9736_v56  ;;  %v1152_v9 = vrot.slane %v9340_v52, %v9739_v57  ;;  %v1156_v2 = vrot.slane %v9340_v52, %v9742_v58 }
 0x3c1   :  { %v1160_v4 = vrot.slane %v9340_v52, %v9745_v60  ;;  %v1164_v5 = vrot.slane %v9340_v52, %v9748_v61  ;;  %v1168_v6 = vrot.slane %v9340_v52, %v9751_v62  ;;  %v1172_v7 = vrot.slane %v9340_v52, %v9754_v63 }
 0x3c2   :  { %v1191_v34 = vmul.f32 %v1144_v1, %v9905_v11  ;;  %v1192_v30 = vmul.f32 %v1148_v12, %v9908_v8  ;;  %v1193_v33 = vmul.f32 %v1152_v9, %v9917_v13  ;;  %v1194_v35 = vmul.f32 %v1156_v2, %v9920_v10 }
 0x3c3   :  { %v1195_v37 = vmul.f32 %v1160_v4, %v9923_v14  ;;  %v1196_v38 = vmul.f32 %v1164_v5, %v9926_v45  ;;  %v1197_v44 = vmul.f32 %v1168_v6, %v9929_v24  ;;  %v1198_v23 = vmul.f32 %v1172_v7, %v9932_v28 }
 0x3c4   :  { %v1263_v3 = vmul.f32 %v1229_v26, %v1191_v34  ;;  %v1264_v32 = vmul.f32 %v1243_v41, %v1192_v30  ;;  %v1265_v62 = vmul.f32 %v1251_v25, %v1193_v33  ;;  %v1266_v52 = vmul.f32 %v1253_v29, %v1194_v35 }
 0x3c5   :  { %v1267_v63 = vmul.f32 %v1236_v36, %v1195_v37  ;;  %v1268_v11 = vmul.f32 %v1250_v39, %v1196_v38  ;;  %v1269_v1 = vmul.f32 %v1252_v49, %v1197_v44  ;;  %v1270_v8 = vmul.f32 %v1254_v31, %v1198_v23  ;;  %v833_v31 = vld [vmem:[%s11746_s8] sm:$0x3] }
 0x3c6   :  { %v1335_v12 = vadd.f32 %v1301_v47, %v1263_v3  ;;  %v1336_v13 = vadd.f32 %v1315_v48, %v1264_v32  ;;  %v1337_v9 = vadd.f32 %v1323_v50, %v1265_v62  ;;  %v1338_v10 = vadd.f32 %v1325_v51, %v1266_v52 }
 0x3c7   :  { %v1339_v2 = vadd.f32 %v1308_v43, %v1267_v63  ;;  %v1340_v14 = vadd.f32 %v1322_v27, %v1268_v11  ;;  %v1341_v4 = vadd.f32 %v1324_v53, %v1269_v1  ;;  %v1342_v45 = vadd.f32 %v1326_v54, %v1270_v8 }
 0x3c8   :  { %v1366_v5 = vcombine.low %v1335_v12, %v1336_v13  ;;  %v1367_v24 = vcombine.low %v1337_v9, %v1338_v10  ;;  %v1343_v26 = vadd.f32 %v1301_v47, %v1271_v59  ;;  %v1344_v41 = vadd.f32 %v1315_v48, %v1272_v0 }
 0x3c9   :  { %v1368_v6 = vcombine.low %v1339_v2, %v1340_v14  ;;  %v1369_v28 = vcombine.low %v1341_v4, %v1342_v45  ;;  %v11795_v47 = vmov 0.0   ;;  %v1349_v50 = vrot.slane %v833_v31, %v9733_v55 }
 0x3ca   :  { %v1376_v25 = vrot.slane %v1366_v5, %v9695_v46  ;;  %v1383_v36 = vrot.slane %v1367_v24, %v9695_v46  ;;  %v1415_v63 = vcombine.low %v1343_v26, %v1344_v41  ;;  %v1353_v51 = vrot.slane %v833_v31, %v9736_v56  ;;  %8956 = vmatprep.mubr.msk.f32.mxu0 %vm9480_vm2, %v11795_v47 }
 0x3cb   :  { %v1390_v39 = vrot.slane %v1368_v6, %v9695_v46  ;;  %v1397_v3 = vrot.slane %v1369_v28, %v9695_v46 }
 0x3cc   :  { %v1398_v62 = vcombine.low %v1376_v25, %v1383_v36  ;;  %v1422_v29 = vrot.slane %v1415_v63, %v9695_v46 }
 0x3cd   :  { %v1399_v32 = vcombine.low %v1390_v39, %v1397_v3 }
 0x3ce   :  { %v1406_v43 = vrot.slane %v1398_v62, %v9695_v46  ;;  %v1429_v48 = vrot.slane %v1422_v29, %v9695_v46 }
 0x3cf   :  { %v1413_v27 = vrot.slane %v1399_v32, %v9695_v46 }
 0x3d1   :  { %v1414_v49 = vcombine.low %v1406_v43, %v1413_v27 }
 0x3d3   :  { %8544 = vmatmul.mubr.msk.f32.vlgmr.msra.gmra.mrb[0].mxu1 %vm94_vm0, %v1414_v49 }
 0x3d4   :  { %1504 = vmatprep.mubr.f32.mxu1 %v11795_v47 }
 0x3d7   :  { %8545 = vmatmul.mubr.msk.f32.gmra.mrb[2].mxu1 %vm94_vm0, %v1429_v48 }
 0x3d8   :  { %8896 = vmatprep.mubr.msk.f32.mxu1 %vm9480_vm2, %v11795_v47 }
 0x4a6   :  { %v1500_v53 = vpop.f32.mrb[0].mxu1 }
 0x4a7   :  { %v1501_v54 = vadd.f32 %v1500_v53, %v1349_v50  ;;  %v1502_v59 = vpop.f32.mrb[1].mxu1 }
 0x4a8   :  { %v1503_v0 = vadd.f32 %v1502_v59, %v1353_v51 }
 0x4aa   :  { %v1515_v7 = vcombine.low %v1501_v54, %v1503_v0  ;;  %v1516_v34 = vcombine.high %v1501_v54, %v1503_v0  ;;  %v1506_v30 = vpop.f32.mrb[2].mxu1 }
 0x4ab   :  { %v1507_v33 = vadd.f32 %v1506_v30, %v1349_v50  ;;  %v1508_v35 = vpop.f32.mrb[3].mxu1 }
 0x4ac   :  { %v1523_v37 = vrot.slane %v1515_v7, %v9695_v46  ;;  %v1530_v38 = vrot.slane %v1516_v34, %v9695_v46  ;;  %v1509_v44 = vadd.f32 %v1508_v35, %v1353_v51 }
 0x4ae   :  { %v1531_v23 = vcombine.high %v1523_v37, %v1523_v37  ;;  %v1532_v52 = vcombine.high %v1530_v38, %v1530_v38  ;;  %v10072_v11 = vrot.slane %v1530_v38, %v9695_v46  ;;  %v1565_v1 = vcombine.low %v1507_v33, %v1509_v44 }
 0x4af   :  { %v10075_v8 = vrot.slane %v1523_v37, %v9695_v46 }
 0x4b0   :  { %v10078_v12 = vrot.slane %v1531_v23, %v9695_v46  ;;  %v10081_v13 = vrot.slane %v1532_v52, %v9695_v46  ;;  %v10085_v9 = vcombine.high %v10072_v11, %v10072_v11  ;;  %v1572_v10 = vrot.slane %v1565_v1, %v9695_v46 }
 0x4b1   :  { %v1610_v26 = vrot.slane %v10072_v11, %v9695_v46  ;;  %v10136_v50 = vcombine.high %v10075_v8, %v10075_v8  ;;  %v1844_v59 = vrot.slane %v10075_v8, 1  ;;  %v1848_v30 = vrot.slane %v10072_v11, 1 }
 0x4b2   :  { %v10090_v2 = vcombine.high %v10081_v13, %v10081_v13  ;;  %v1588_v14 = vcombine.low %v10075_v8, %v10078_v12  ;;  %v8546_v4 = vcombine.high %v10075_v8, %v10078_v12  ;;  %v1704_v45 = vcombine.low %v10081_v13, %v10085_v9 }
 0x4b3   :  { %v1573_v5 = vcombine.high %v1572_v10, %v1572_v10  ;;  %v10101_v24 = vrot.slane %v1572_v10, %v9695_v46  ;;  %v1625_v63 = vrot.slane %v1610_v26, %v9695_v46  ;;  %v10132_v31 = vcombine.high %v10078_v12, %v10078_v12 }
 0x4b4   :  { %v1596_v6 = vrot.slane %v1588_v14, %v9695_v46  ;;  %v1603_v28 = vrot.slane %v8546_v4, %v9695_v46  ;;  %v1712_v39 = vrot.slane %v1704_v45, %v9695_v46  ;;  %v1845_v53 = vrot.slane %v10078_v12, 1 }
 0x4b5   :  { %v10110_v41 = vrot.slane %v1573_v5, %v9695_v46  ;;  %v1705_v25 = vcombine.low %v10090_v2, %v10101_v24  ;;  %v1847_v51 = vrot.slane %v10132_v31, 1  ;;  %v1846_v54 = vrot.slane %v10136_v50, 1 }
 0x4b6   :  { %v1611_v36 = vcombine.low %v1596_v6, %v1603_v28  ;;  %v1849_v7 = vcombine.low %v1844_v59, %v1845_v53  ;;  %v1871_v38 = vrot.slane %v1848_v30, %v9695_v46  ;;  %v1967_v53 = vrot.slane %v10090_v2, 1 }
 0x4b7   :  { %v1719_v3 = vrot.slane %v1705_v25, %v9695_v46  ;;  %v1726_v62 = vrot.slane %v10110_v41, %v9695_v46  ;;  %v1850_v0 = vcombine.low %v1846_v54, %v1847_v51  ;;  %v1968_v51 = vrot.slane %v10101_v24, 1 }
 0x4b8   :  { %v1618_v32 = vrot.slane %v1611_v36, %v9695_v46  ;;  %v1857_v33 = vrot.slane %v1849_v7, %v9695_v46  ;;  %v1886_v52 = vrot.slane %v1871_v38, %v9695_v46  ;;  %v1965_v54 = vrot.slane %v10081_v13, 1 }
 0x4b9   :  { %v1727_v43 = vcombine.low %v1712_v39, %v1719_v3  ;;  %v1741_v29 = vrot.slane %v1726_v62, %v9695_v46  ;;  %v1864_v34 = vrot.slane %v1850_v0, %v9695_v46  ;;  %v1966_v59 = vrot.slane %v10085_v9, 1 }
 0x4ba   :  { %v10120_v27 = vcombine.low %v1618_v32, %v1625_v63  ;;  %v1971_v0 = vcombine.low %v1967_v53, %v1968_v51 }
 0x4bb   :  { %v1734_v49 = vrot.slane %v1727_v43, %v9695_v46  ;;  %v1872_v35 = vcombine.low %v1857_v33, %v1864_v34  ;;  %v1970_v7 = vcombine.low %v1965_v54, %v1966_v59 }
 0x4bc   :  { %1627 = vrot.lane.b32.xlu0 %v10120_v27, %s9481_s27  ;;  %v1985_v33 = vrot.slane %v1971_v0, %v9695_v46 }
 0x4bd   :  { %v10126_v48 = vcombine.low %v1734_v49, %v1741_v29  ;;  %v1879_v44 = vrot.slane %v1872_v35, %v9695_v46  ;;  %v1969_v35 = vrot.slane %v10110_v41, 1 }
 0x4bf   :  { %1743 = vrot.lane.b32.xlu1 %v10126_v48, %s9481_s27  ;;  %v1887_v1 = vcombine.low %v1879_v44, %v1886_v52 }
 0x52e   :  { %v1628_v37 = vpop.permute.xlu0 %1627 }
 0x52f   :  { %8895 = vmatpush3.xpose.msk.msra.mxu1 %vm1629_vm3, %v1628_v37  ;;  %v1978_v37 = vrot.slane %v1970_v7, %v9695_v46 }
 0x530   :  { %8899 = vmatprep.subr.mxu1 %v11795_v47 }
 0x531   :  { %v1744_v23 = vpop.permute.xlu1 %1743  ;;  %v1993_v44 = vcombine.low %v1978_v37, %v1985_v33 }
 0x532   :  { %8897 = vmatmul.mubr.msk.f32.vlgmr.msra.gmra.mrb[4].mxu1 %vm1629_vm3, %v10120_v27 }
 0x533   :  { %8900 = vmatpush3.xpose.msk.msra.mxu1 %vm1629_vm3, %v1744_v23  ;;  %8901 = vmatprep.mubr.msk.f32.mxu1 %vm9480_vm2, %v11795_v47  ;;  %v1992_v23 = vrot.slane %v1969_v35, %v9695_v46  ;;  %v2000_v52 = vrot.slane %v1993_v44, %v9695_v46 }
 0x534   :  { %8904 = vmatprep.subr.mxu1 %v11795_v47 }
 0x536   :  { %8902 = vmatmul.mubr.msk.f32.vlgmr.msra.gmra.mrb[6].mxu1 %vm1629_vm3, %v10126_v48 }
 0x537   :  { %8905 = vmatpush3.msk.msra.mxu1 %vm1892_vm4, %v1887_v1  ;;  %8906 = vmatprep.mubr.msk.f32.mxu1 %vm9480_vm2, %v11795_v47 }
 0x538   :  { %8909 = vmatprep.subr.mxu1 %v11795_v47 }
 0x605   :  { %v1700_v10 = vpop.f32.mrb[4].mxu1 }
 0x606   :  { %v1819_v14 = vmul.f32 0.25, %v1700_v10  ;;  %v8898_v4 = vpop.f32.mrb[5].mxu1  ;;  %v2007_v10 = vrot.slane %v1992_v23, %v9695_v46 }
 0x608   :  { %v1822_v45 = vsel %vm1821_vm5, %v1819_v14, -inf  ;;  %v2008_v4 = vcombine.low %v2000_v52, %v2007_v10 }
 0x609   :  { %1823 = vmax.xlane.f32.xlu1 %v1822_v45  ;;  %v1815_v5 = vpop.f32.mrb[6].mxu1 }
 0x60a   :  { %v1820_v6 = vmul.f32 0.25, %v1815_v5  ;;  %v8903_v28 = vpop.f32.mrb[7].mxu1 }
 0x60c   :  { %v1825_v26 = vsel %vm1821_vm5, %v1820_v6, -inf }
 0x60d   :  { %1826 = vmax.xlane.f32.xlu0 %v1825_v26 }
 0x61a   :  { %2084 = vrot.lane.b32.xlu1 %v10120_v27, %s9482_s25 }
 0x696   :  { %v1824_v25 = vpop.xlane.xlu1 %1823 }
 0x697   :  { %v1828_v36 = vsub.f32 %v1819_v14, %v1824_v25 }
 0x699   :  { %v1830_v39 = vmul.f32 1.442695, %v1828_v36 }
 0x69a   :  { %v1827_v3 = vpop.xlane.xlu0 %1826  ;;  %v2085_v34 = vpop.permute.xlu1 %2084 }
 0x69b   :  { %9341 = vpow2.f32 %v1830_v39  ;;  %v1829_v62 = vsub.f32 %v1820_v6, %v1827_v3 }
 0x69d   :  { %v1832_v32 = vmul.f32 1.442695, %v1829_v62 }
 0x69f   :  { %9343 = vpow2.f32 %v1832_v32 }
 0x6a5   :  { %v9342_v63 = vpop.eup %9341 }
 0x6a6   :  { %v1834_v43 = vsel %vm1821_vm5, %v9342_v63, 0.0 }
 0x6a7   :  { %1835 = vadd.xlane.f32.xlu0 %v1834_v43 }
 0x6a9   :  { %v9344_v49 = vpop.eup %9343 }
 0x6aa   :  { %v1837_v29 = vsel %vm1821_vm5, %v9344_v49, 0.0 }
 0x6ab   :  { %1838 = vadd.xlane.f32.xlu1 %v1837_v29 }
 0x6bc   :  { %2164 = vrot.lane.b32.xlu1 %v10126_v48, %s9483_s28 }
 0x6bd   :  { %2086 = vrot.lane.b32.xlu0 %v10120_v27, %s9483_s28 }
 0x6c0   :  { %2162 = vrot.lane.b32.xlu1 %v10126_v48, %s9482_s25 }
 0x734   :  { %v1836_v30 = vpop.xlane.xlu0 %1835 }
 0x735   :  { %9345 = vrcp.f32 %v1836_v30 }
 0x738   :  { %v1839_v38 = vpop.xlane.xlu1 %1838  ;;  %v2087_v6 = vpop.permute.xlu0 %2086 }
 0x739   :  { %9347 = vrcp.f32 %v1839_v38 }
 0x73c   :  { %v2165_v28 = vpop.permute.xlu1 %2164 }
 0x73f   :  { %v9346_v1 = vpop.eup %9345 }
 0x740   :  { %v1842_v14 = vmul.f32 %v9346_v1, %v9342_v63  ;;  %v2163_v26 = vpop.permute.xlu1 %2162 }
 0x742   :  { %8907 = vmatmul.mubr.msk.f32.vlgmr.msra.gmra.mrb[8].mxu1 %vm1888_vm6, %v1842_v14 }
 0x743   :  { %v9348_v45 = vpop.eup %9347  ;;  %8910 = vmatpush3.msk.msra.mxu1 %vm1892_vm4, %v2008_v4  ;;  %8911 = vmatprep.mubr.msk.f32.mxu1 %vm9480_vm2, %v11795_v47 }
 0x744   :  { %v1843_v5 = vmul.f32 %v9348_v45, %v9344_v49  ;;  %8914 = vmatprep.subr.mxu1 %v11795_v47 }
 0x746   :  { %8912 = vmatmul.mubr.msk.f32.vlgmr.msra.gmra.mrb[10].mxu1 %vm1888_vm6, %v1843_v5 }
 0x747   :  { %8916 = vmatprep.mubr.msk.f32.mxu1 %vm9480_vm2, %v11795_v47 }
 0x74a   :  { %8915 = vmatpush3.xpose.msk.msra.mxu1 %vm1629_vm3, %v2087_v6 }
 0x74b   :  { %8919 = vmatprep.subr.mxu1 %v11795_v47 }
 0x74d   :  { %8917 = vmatmul.mubr.msk.f32.vlgmr.msra.gmra.mrb[12].mxu1 %vm1629_vm3, %v2085_v34 }
 0x74e   :  { %8920 = vmatpush3.xpose.msk.msra.mxu1 %vm1629_vm3, %v2165_v28  ;;  %8921 = vmatprep.mubr.msk.f32.mxu1 %vm9480_vm2, %v11795_v47 }
 0x74f   :  { %8924 = vmatprep.subr.mxu1 %v11795_v47 }
 0x751   :  { %8922 = vmatmul.mubr.msk.f32.vlgmr.msra.gmra.mrb[14].mxu1 %vm1629_vm3, %v2163_v26 }
 0x752   :  { %8926 = vmatprep.mubr.msk.f32.mxu1 %vm9480_vm2, %v11795_v47 }
 0x815   :  { %v10202_v25 = vpop.f32.mrb[8].mxu1 }
 0x816   :  { %v8908_v36 = vpop.f32.mrb[9].mxu1 }
 0x819   :  { %v10204_v39 = vpop.f32.mrb[10].mxu1 }
 0x81a   :  { %v8913_v3 = vpop.f32.mrb[11].mxu1 }
 0x820   :  { %v2158_v62 = vpop.f32.mrb[12].mxu1 }
 0x821   :  { %v2240_v32 = vmul.f32 0.25, %v2158_v62  ;;  %v8918_v63 = vpop.f32.mrb[13].mxu1 }
 0x823   :  { %v2242_v43 = vsel %vm1821_vm5, %v2240_v32, -inf }
 0x824   :  { %2243 = vmax.xlane.f32.xlu0 %v2242_v43  ;;  %v2236_v49 = vpop.f32.mrb[14].mxu1 }
 0x825   :  { %v2241_v29 = vmul.f32 0.25, %v2236_v49  ;;  %v8923_v51 = vpop.f32.mrb[15].mxu1 }
 0x827   :  { %v2245_v53 = vsel %vm1821_vm5, %v2241_v29, -inf }
 0x828   :  { %2246 = vmax.xlane.f32.xlu1 %v2245_v53 }
 0x839   :  { %2266 = vrot.lane.b32.xlu1 %v10078_v12, %s9482_s25 }
 0x83a   :  { %2264 = vrot.lane.b32.xlu0 %v10075_v8, %s9482_s25 }
 0x83d   :  { %2268 = vrot.lane.b32.xlu1 %v10136_v50, %s9482_s25 }
 0x83e   :  { %2393 = vrot.lane.b32.xlu0 %v10081_v13, %s9482_s25 }
 0x841   :  { %2270 = vrot.lane.b32.xlu1 %v10132_v31, %s9482_s25 }
 0x842   :  { %2397 = vrot.lane.b32.xlu0 %v10090_v2, %s9482_s25 }
 0x845   :  { %2395 = vrot.lane.b32.xlu1 %v10085_v9, %s9482_s25 }
 0x846   :  { %2272 = vrot.lane.b32.xlu0 %v10072_v11, %s9482_s25 }
 0x849   :  { %2399 = vrot.lane.b32.xlu1 %v10101_v24, %s9482_s25 }
 0x84d   :  { %2401 = vrot.lane.b32.xlu1 %v10110_v41, %s9482_s25 }
 0x851   :  { %2522 = vrot.lane.b32.xlu1 %v10120_v27, %s11776_s4 }
 0x855   :  { %2600 = vrot.lane.b32.xlu1 %v10126_v48, %s11776_s4 }
 0x8b1   :  { %v2244_v54 = vpop.xlane.xlu0 %2243 }
 0x8b2   :  { %v2248_v59 = vsub.f32 %v2240_v32, %v2244_v54 }
 0x8b4   :  { %v2250_v0 = vmul.f32 1.442695, %v2248_v59 }
 0x8b5   :  { %v2265_v7 = vpop.permute.xlu0 %2264  ;;  %v2247_v34 = vpop.xlane.xlu1 %2246 }
 0x8b6   :  { %9349 = vpow2.f32 %v2250_v0  ;;  %v2249_v30 = vsub.f32 %v2241_v29, %v2247_v34  ;;  %v2274_v1 = vrot.slane %v2265_v7, 1 }
 0x8b8   :  { %v2252_v33 = vmul.f32 1.442695, %v2249_v30 }
 0x8b9   :  { %v2394_v35 = vpop.permute.xlu0 %2393  ;;  %v2267_v37 = vpop.permute.xlu1 %2266 }
 0x8ba   :  { %9351 = vpow2.f32 %v2252_v33  ;;  %v2275_v23 = vrot.slane %v2267_v37, 1  ;;  %v2403_v34 = vrot.slane %v2394_v35, 1 }
 0x8bc   :  { %v2279_v45 = vcombine.low %v2274_v1, %v2275_v23 }
 0x8bd   :  { %v2398_v38 = vpop.permute.xlu0 %2397  ;;  %v2269_v44 = vpop.permute.xlu1 %2268 }
 0x8be   :  { %v2276_v5 = vrot.slane %v2269_v44, 1  ;;  %v2287_v62 = vrot.slane %v2279_v45, %v9695_v46  ;;  %v2405_v0 = vrot.slane %v2398_v38, 1 }
 0x8c0   :  { %v9350_v52 = vpop.eup %9349 }
 0x8c1   :  { %v2273_v10 = vpop.permute.xlu0 %2272  ;;  %v2271_v14 = vpop.permute.xlu1 %2270  ;;  %v2254_v4 = vsel %vm1821_vm5, %v9350_v52, 0.0 }
 0x8c2   :  { %v2278_v6 = vrot.slane %v2273_v10, 1  ;;  %v2277_v28 = vrot.slane %v2271_v14, 1  ;;  %2255 = vadd.xlane.f32.xlu0 %v2254_v4 }
 0x8c4   :  { %v9352_v26 = vpop.eup %9351  ;;  %v2280_v36 = vcombine.low %v2276_v5, %v2277_v28  ;;  %v2301_v32 = vrot.slane %v2278_v6, %v9695_v46 }
 0x8c5   :  { %v2257_v3 = vsel %vm1821_vm5, %v9352_v26, 0.0  ;;  %v2396_v53 = vpop.permute.xlu1 %2395 }
 0x8c6   :  { %v2294_v63 = vrot.slane %v2280_v36, %v9695_v46  ;;  %2258 = vadd.xlane.f32.xlu0 %v2257_v3  ;;  %v2316_v49 = vrot.slane %v2301_v32, %v9695_v46  ;;  %v2404_v7 = vrot.slane %v2396_v53, 1 }
 0x8c8   :  { %v2302_v43 = vcombine.low %v2287_v62, %v2294_v63  ;;  %v2408_v37 = vcombine.low %v2403_v34, %v2404_v7 }
 0x8c9   :  { %v2400_v54 = vpop.permute.xlu1 %2399 }
 0x8ca   :  { %v2309_v29 = vrot.slane %v2302_v43, %v9695_v46  ;;  %v2406_v59 = vrot.slane %v2400_v54, 1  ;;  %v2416_v10 = vrot.slane %v2408_v37, %v9695_v46 }
 0x8cc   :  { %v2317_v51 = vcombine.low %v2309_v29, %v2316_v49  ;;  %v2409_v30 = vcombine.low %v2405_v0, %v2406_v59 }
 0x8cd   :  { %v2402_v33 = vpop.permute.xlu1 %2401 }
 0x8ce   :  { %8925 = vmatpush3.msk.msra.mxu1 %vm1892_vm4, %v2317_v51  ;;  %v2423_v23 = vrot.slane %v2409_v30, %v9695_v46  ;;  %v2407_v1 = vrot.slane %v2402_v33, 1 }
 0x8cf   :  { %8929 = vmatprep.subr.mxu1 %v11795_v47 }
 0x8d0   :  { %v2431_v4 = vcombine.low %v2416_v10, %v2423_v23  ;;  %v2430_v45 = vrot.slane %v2407_v1, %v9695_v46 }
 0x8d1   :  { %v2523_v32 = vpop.permute.xlu1 %2522 }
 0x8d2   :  { %v2438_v5 = vrot.slane %v2431_v4, %v9695_v46  ;;  %v2445_v38 = vrot.slane %v2430_v45, %v9695_v46 }
 0x8d4   :  { %v2446_v28 = vcombine.low %v2438_v5, %v2445_v38 }
 0x8dc   :  { %2524 = vrot.lane.b32.xlu0 %v10120_v27, %s9485_s29 }
 0x8e0   :  { %2602 = vrot.lane.b32.xlu0 %v10126_v48, %s9485_s29 }
 0x94f   :  { %v2256_v44 = vpop.xlane.xlu0 %2255 }
 0x950   :  { %9353 = vrcp.f32 %v2256_v44 }
 0x953   :  { %v2259_v14 = vpop.xlane.xlu0 %2258 }
 0x954   :  { %9355 = vrcp.f32 %v2259_v14 }
 0x957   :  { %v2525_v62 = vpop.permute.xlu0 %2524 }
 0x95a   :  { %v9354_v35 = vpop.eup %9353 }
 0x95b   :  { %v2262_v6 = vmul.f32 %v9354_v35, %v9350_v52  ;;  %v2603_v52 = vpop.permute.xlu0 %2602 }
 0x95d   :  { %8927 = vmatmul.mubr.msk.f32.vlgmr.msra.gmra.mrb[16].mxu1 %vm1888_vm6, %v2262_v6 }
 0x95e   :  { %v9356_v36 = vpop.eup %9355  ;;  %8930 = vmatpush3.msk.msra.mxu1 %vm1892_vm4, %v2446_v28  ;;  %8931 = vmatprep.mubr.msk.f32.mxu1 %vm9480_vm2, %v11795_v47 }
 0x95f   :  { %v2263_v3 = vmul.f32 %v9356_v36, %v9352_v26  ;;  %8934 = vmatprep.subr.mxu1 %v11795_v47  ;;  %v2601_v26 = vpop.permute.xlu1 %2600 }
 0x961   :  { %8932 = vmatmul.mubr.msk.f32.vlgmr.msra.gmra.mrb[18].mxu1 %vm1888_vm6, %v2263_v3 }
 0x962   :  { %8936 = vmatprep.mubr.msk.f32.mxu1 %vm9480_vm2, %v11795_v47 }
 0x965   :  { %8935 = vmatpush3.xpose.msk.msra.mxu1 %vm1629_vm3, %v2525_v62 }
 0x966   :  { %8939 = vmatprep.subr.mxu1 %v11795_v47 }
 0x968   :  { %8937 = vmatmul.mubr.msk.f32.vlgmr.msra.gmra.mrb[20].mxu1 %vm1629_vm3, %v2523_v32 }
 0x969   :  { %8940 = vmatpush3.xpose.msk.msra.mxu1 %vm1629_vm3, %v2603_v52  ;;  %8941 = vmatprep.mubr.msk.f32.mxu1 %vm9480_vm2, %v11795_v47 }
 0x96a   :  { %8944 = vmatprep.subr.mxu1 %v11795_v47 }
 0x96c   :  { %8942 = vmatmul.mubr.msk.f32.vlgmr.msra.gmra.mrb[22].mxu1 %vm1629_vm3, %v2601_v26 }
 0x96d   :  { %8946 = vmatprep.mubr.msk.f32.mxu1 %vm9480_vm2, %v11795_v47 }
 0xa30   :  { %v10268_v63 = vpop.f32.mrb[16].mxu1 }
 0xa31   :  { %v8928_v43 = vpop.f32.mrb[17].mxu1 }
 0xa34   :  { %v10270_v49 = vpop.f32.mrb[18].mxu1 }
 0xa35   :  { %v8933_v29 = vpop.f32.mrb[19].mxu1 }
 0xa3b   :  { %v2596_v51 = vpop.f32.mrb[20].mxu1 }
 0xa3c   :  { %v2678_v53 = vmul.f32 0.25, %v2596_v51  ;;  %v8938_v54 = vpop.f32.mrb[21].mxu1 }
 0xa3e   :  { %v2680_v59 = vsel %vm1821_vm5, %v2678_v53, -inf }
 0xa3f   :  { %2681 = vmax.xlane.f32.xlu0 %v2680_v59  ;;  %v2674_v0 = vpop.f32.mrb[22].mxu1 }
 0xa40   :  { %v2679_v7 = vmul.f32 0.25, %v2674_v0  ;;  %v8943_v34 = vpop.f32.mrb[23].mxu1 }
 0xa42   :  { %v2683_v30 = vsel %vm1821_vm5, %v2679_v7, -inf }
 0xa43   :  { %2684 = vmax.xlane.f32.xlu1 %v2683_v30 }
 0xa54   :  { %2704 = vrot.lane.b32.xlu1 %v10078_v12, %s11776_s4 }
 0xa55   :  { %2702 = vrot.lane.b32.xlu0 %v10075_v8, %s11776_s4 }
 0xa58   :  { %2706 = vrot.lane.b32.xlu1 %v10136_v50, %s11776_s4 }
 0xa59   :  { %2831 = vrot.lane.b32.xlu0 %v10081_v13, %s11776_s4 }
 0xa5c   :  { %2708 = vrot.lane.b32.xlu1 %v10132_v31, %s11776_s4 }
 0xa5d   :  { %2835 = vrot.lane.b32.xlu0 %v10090_v2, %s11776_s4 }
 0xa60   :  { %2833 = vrot.lane.b32.xlu1 %v10085_v9, %s11776_s4 }
 0xa61   :  { %2710 = vrot.lane.b32.xlu0 %v10072_v11, %s11776_s4 }
 0xa64   :  { %2837 = vrot.lane.b32.xlu1 %v10101_v24, %s11776_s4 }
 0xa68   :  { %2839 = vrot.lane.b32.xlu1 %v10110_v41, %s11776_s4 }
 0xa6c   :  { %3040 = vrot.lane.b32.xlu1 %v10126_v48, %s11772_s30 }
 0xa70   :  { %3038 = vrot.lane.b32.xlu1 %v10126_v48, %s11770_s0 }
 0xacc   :  { %v2682_v33 = vpop.xlane.xlu0 %2681 }
 0xacd   :  { %v2686_v37 = vsub.f32 %v2678_v53, %v2682_v33 }
 0xacf   :  { %v2688_v44 = vmul.f32 1.442695, %v2686_v37 }
 0xad0   :  { %v2703_v23 = vpop.permute.xlu0 %2702  ;;  %v2685_v1 = vpop.xlane.xlu1 %2684 }
 0xad1   :  { %9357 = vpow2.f32 %v2688_v44  ;;  %v2712_v35 = vrot.slane %v2703_v23, 1  ;;  %v2687_v0 = vsub.f32 %v2679_v7, %v2685_v1 }
 0xad3   :  { %v2690_v34 = vmul.f32 1.442695, %v2687_v0 }
 0xad4   :  { %v2832_v10 = vpop.permute.xlu0 %2831  ;;  %v2705_v14 = vpop.permute.xlu1 %2704 }
 0xad5   :  { %v2713_v5 = vrot.slane %v2705_v14, 1  ;;  %9359 = vpow2.f32 %v2690_v34 }
 0xad7   :  { %v2717_v3 = vcombine.low %v2712_v35, %v2713_v5  ;;  %v2841_v5 = vrot.slane %v2832_v10, 1 }
 0xad8   :  { %v2836_v4 = vpop.permute.xlu0 %2835  ;;  %v2707_v45 = vpop.permute.xlu1 %2706 }
 0xad9   :  { %v2714_v62 = vrot.slane %v2707_v45, 1  ;;  %v2725_v26 = vrot.slane %v2717_v3, %v9695_v46  ;;  %v2843_v14 = vrot.slane %v2836_v4, 1 }
 0xadb   :  { %v9358_v38 = vpop.eup %9357 }
 0xadc   :  { %v2711_v6 = vpop.permute.xlu0 %2710  ;;  %v2709_v28 = vpop.permute.xlu1 %2708  ;;  %v2692_v36 = vsel %vm1821_vm5, %v9358_v38, 0.0 }
 0xadd   :  { %v2716_v48 = vrot.slane %v2711_v6, 1  ;;  %v2715_v32 = vrot.slane %v2709_v28, 1  ;;  %2693 = vadd.xlane.f32.xlu0 %v2692_v36 }
 0xadf   :  { %v2718_v52 = vcombine.low %v2714_v62, %v2715_v32  ;;  %v2739_v43 = vrot.slane %v2716_v48, %v9695_v46  ;;  %v9360_v30 = vpop.eup %9359 }
 0xae0   :  { %v2695_v33 = vsel %vm1821_vm5, %v9360_v30, 0.0  ;;  %v2834_v37 = vpop.permute.xlu1 %2833 }
 0xae1   :  { %v2732_v29 = vrot.slane %v2718_v52, %v9695_v46  ;;  %v2754_v53 = vrot.slane %v2739_v43, %v9695_v46  ;;  %v2842_v45 = vrot.slane %v2834_v37, 1 }
 0xae3   :  { %v2740_v51 = vcombine.low %v2725_v26, %v2732_v29  ;;  %v2846_v28 = vcombine.low %v2841_v5, %v2842_v45 }
 0xae4   :  { %v2838_v44 = vpop.permute.xlu1 %2837 }
 0xae5   :  { %v2747_v54 = vrot.slane %v2740_v51, %v9695_v46  ;;  %v2844_v23 = vrot.slane %v2838_v44, 1  ;;  %v2854_v3 = vrot.slane %v2846_v28, %v9695_v46 }
 0xae7   :  { %v2755_v59 = vcombine.low %v2747_v54, %v2754_v53  ;;  %v2847_v35 = vcombine.low %v2843_v14, %v2844_v23 }
 0xae8   :  { %v2840_v6 = vpop.permute.xlu1 %2839 }
 0xae9   :  { %8945 = vmatpush3.msk.msra.mxu1 %vm1892_vm4, %v2755_v59  ;;  %v2861_v7 = vrot.slane %v2847_v35, %v9695_v46  ;;  %v2845_v1 = vrot.slane %v2840_v6, 1 }
 0xaea   :  { %8949 = vmatprep.subr.mxu1 %v11795_v47 }
 0xaeb   :  { %v2869_v48 = vcombine.low %v2854_v3, %v2861_v7 }
 0xaed   :  { %v2876_v10 = vrot.slane %v2869_v48, %v9695_v46 }
 0xaf3   :  { %2962 = vrot.lane.b32.xlu0 %v10120_v27, %s11772_s30 }
 0xb12   :  { %2696 = vadd.xlane.f32.xlu0 %v2695_v33 }
 0xb28   :  { %2960 = vrot.lane.b32.xlu0 %v10120_v27, %s11770_s0  ;;  %v2868_v27 = vrot.slane %v2845_v1, %v9695_v46 }
 0xb2a   :  { %v2883_v4 = vrot.slane %v2868_v27, %v9695_v46 }
 0xb2c   :  { %v2884_v26 = vcombine.low %v2876_v10, %v2883_v4 }
 0xb6a   :  { %v2694_v36 = vpop.xlane.xlu0 %2693 }
 0xb6b   :  { %9361 = vrcp.f32 %v2694_v36 }
 0xb6e   :  { %v2963_v62 = vpop.permute.xlu0 %2962 }
 0xb6f   :  { %8955 = vmatpush3.xpose.msk.msra.mxu0 %vm1629_vm3, %v2963_v62 }
 0xb70   :  { %8964 = vmatprep.subr.mxu0 %v11795_v47 }
 0xb75   :  { %v9362_v32 = vpop.eup %9361 }
 0xb76   :  { %v2700_v52 = vmul.f32 %v9362_v32, %v9358_v38  ;;  %v3041_v38 = vpop.permute.xlu1 %3040 }
 0xb78   :  { %8947 = vmatmul.mubr.msk.f32.vlgmr.msra.gmra.mrb[24].mxu1 %vm1888_vm6, %v2700_v52 }
 0xb79   :  { %8950 = vmatpush3.msk.msra.mxu1 %vm1892_vm4, %v2884_v26  ;;  %8951 = vmatprep.mubr.msk.f32.mxu1 %vm9480_vm2, %v11795_v47 }
 0xb7a   :  { %8959 = vmatprep.subr.mxu1 %v11795_v47  ;;  %v3039_v54 = vpop.permute.xlu1 %3038 }
 0xb9f   :  { %v2697_v43 = vpop.xlane.xlu0 %2696 }
 0xba0   :  { %9363 = vrcp.f32 %v2697_v43 }
 0xba3   :  { %v2961_v29 = vpop.permute.xlu0 %2960 }
 0xba4   :  { %8957 = vmatmul.mubr.msk.f32.vlgmr.msra.gmra.mrb[4].mxu0 %vm1629_vm3, %v2961_v29 }
 0xba5   :  { %8966 = vmatprep.mubr.msk.f32.mxu0 %vm9480_vm2, %v11795_v47 }
 0xbaa   :  { %v9364_v51 = vpop.eup %9363 }
 0xbab   :  { %v2701_v53 = vmul.f32 %v9364_v51, %v9360_v30 }
 0xbad   :  { %8952 = vmatmul.mubr.msk.f32.vlgmr.msra.gmra.mrb[26].mxu1 %vm1888_vm6, %v2701_v53 }
 0xbae   :  { %8960 = vmatpush3.xpose.msk.msra.mxu1 %vm1629_vm3, %v3041_v38  ;;  %8961 = vmatprep.mubr.msk.f32.mxu1 %vm9480_vm2, %v11795_v47 }
 0xbaf   :  { %8969 = vmatprep.subr.mxu1 %v11795_v47 }
 0xbb1   :  { %8962 = vmatmul.mubr.msk.f32.vlgmr.msra.gmra.mrb[28].mxu1 %vm1629_vm3, %v3039_v54 }
 0xbb2   :  { %8971 = vmatprep.mubr.msk.f32.mxu1 %vm9480_vm2, %v11795_v47 }
 0xc4b   :  { %v2827_v59 = vpop.f32.mrb[24].mxu1 }
 0xc4c   :  { %v8948_v0 = vpop.f32.mrb[25].mxu1 }
 0xc77   :  { %v3034_v34 = vpop.f32.mrb[4].mxu0 }
 0xc78   :  { %v3116_v33 = vmul.f32 0.25, %v3034_v34  ;;  %v8958_v30 = vpop.f32.mrb[5].mxu0 }
 0xc7a   :  { %v3118_v37 = vsel %vm1821_vm5, %v3116_v33, -inf }
 0xc7b   :  { %3119 = vmax.xlane.f32.xlu0 %v3118_v37 }
 0xc80   :  { %v2956_v44 = vpop.f32.mrb[26].mxu1 }
 0xc81   :  { %v8953_v23 = vpop.f32.mrb[27].mxu1 }
 0xc84   :  { %v3112_v14 = vpop.f32.mrb[28].mxu1 }
 0xc85   :  { %v3117_v45 = vmul.f32 0.25, %v3112_v14  ;;  %v8963_v5 = vpop.f32.mrb[29].mxu1 }
 0xc87   :  { %v3121_v35 = vsel %vm1821_vm5, %v3117_v45, -inf }
 0xc88   :  { %3122 = vmax.xlane.f32.xlu1 %v3121_v35 }
 0xc99   :  { %3142 = vrot.lane.b32.xlu1 %v10078_v12, %s11770_s0 }
 0xc9d   :  { %3144 = vrot.lane.b32.xlu1 %v10136_v50, %s11770_s0 }
 0xca1   :  { %3146 = vrot.lane.b32.xlu1 %v10132_v31, %s11770_s0 }
 0xca5   :  { %3271 = vrot.lane.b32.xlu1 %v10085_v9, %s11770_s0 }
 0xca9   :  { %3275 = vrot.lane.b32.xlu1 %v10101_v24, %s11770_s0 }
 0xcad   :  { %3277 = vrot.lane.b32.xlu1 %v10110_v41, %s11770_s0 }
 0xcb1   :  { %3402 = vrot.lane.b32.xlu1 %v10270_v49, %s11772_s30 }
 0xcb5   :  { %3410 = vrot.lane.b32.xlu1 %v2956_v44, %s9485_s29 }
 0xd08   :  { %v3120_v12 = vpop.xlane.xlu0 %3119 }
 0xd09   :  { %v3124_v6 = vsub.f32 %v3116_v33, %v3120_v12 }
 0xd0b   :  { %v3126_v50 = vmul.f32 1.442695, %v3124_v6 }
 0xd0d   :  { %9365 = vpow2.f32 %v3126_v50 }
 0xd15   :  { %v3123_v9 = vpop.xlane.xlu1 %3122 }
 0xd16   :  { %v3125_v24 = vsub.f32 %v3117_v45, %v3123_v9 }
 0xd17   :  { %v9366_v28 = vpop.eup %9365 }
 0xd18   :  { %v3130_v31 = vsel %vm1821_vm5, %v9366_v28, 0.0  ;;  %v3128_v41 = vmul.f32 1.442695, %v3125_v24 }
 0xd19   :  { %3131 = vadd.xlane.f32.xlu0 %v3130_v31 }
 0xd1a   :  { %9367 = vpow2.f32 %v3128_v41 }
 0xd24   :  { %v9368_v49 = vpop.eup %9367 }
 0xd25   :  { %v3133_v36 = vsel %vm1821_vm5, %v9368_v49, 0.0 }
 0xd2f   :  { %3140 = vrot.lane.b32.xlu0 %v10075_v8, %s11770_s0  ;;  %v3143_v8 = vpop.permute.xlu1 %3142 }
 0xd30   :  { %v3151_v33 = vrot.slane %v3143_v8, 1 }
 0xd33   :  { %3269 = vrot.lane.b32.xlu0 %v10081_v13, %s11770_s0  ;;  %v3145_v13 = vpop.permute.xlu1 %3144 }
 0xd34   :  { %v3152_v37 = vrot.slane %v3145_v13, 1 }
 0xd37   :  { %3273 = vrot.lane.b32.xlu0 %v10090_v2, %s11770_s0  ;;  %v3147_v7 = vpop.permute.xlu1 %3146 }
 0xd38   :  { %v3153_v30 = vrot.slane %v3147_v7, 1  ;;  %v834_v7 = vld [vmem:[%s11747_s9] sm:$0xff] }
 0xd3a   :  { %v3156_v23 = vcombine.low %v3152_v37, %v3153_v30 }
 0xd3b   :  { %v3272_v2 = vpop.permute.xlu1 %3271 }
 0xd3c   :  { %v3280_v4 = vrot.slane %v3272_v2, 1  ;;  %v3170_v5 = vrot.slane %v3156_v23, %v9695_v46  ;;  %v835_v2 = vld [vmem:[%s11747_s9 + $0x8] sm:$0xff] }
 0xd3f   :  { %v3276_v3 = vpop.permute.xlu1 %3275 }
 0xd40   :  { %v3282_v52 = vrot.slane %v3276_v3, 1 }
 0xd43   :  { %v3278_v10 = vpop.permute.xlu1 %3277 }
 0xd44   :  { %v3283_v26 = vrot.slane %v3278_v10, 1  ;;  %v839_v10 = vld [vmem:[%s11747_s9 + $0x28] sm:$0xff] }
 0xd56   :  { %3134 = vadd.xlane.f32.xlu0 %v3133_v36 }
 0xd6c   :  { %3148 = vrot.lane.b32.xlu0 %v10072_v11, %s11770_s0 }
 0xd70   :  { %3400 = vrot.lane.b32.xlu0 %v10268_v63, %s11772_s30  ;;  %v3306_v63 = vrot.slane %v3283_v26, %v9695_v46 }
 0xd72   :  { %v3321_v54 = vrot.slane %v3306_v63, %v9695_v46 }
 0xd74   :  { %3408 = vrot.lane.b32.xlu0 %v2827_v59, %s9485_s29 }
 0xda6   :  { %v3132_v1 = vpop.xlane.xlu0 %3131 }
 0xda7   :  { %9369 = vrcp.f32 %v3132_v1  ;;  %v9163_v1 = vpack.c.bf16 %v835_v2, %v834_v7 }
 0xdaa   :  { %v3141_v62 = vpop.permute.xlu0 %3140 }
 0xdab   :  { %v3150_v34 = vrot.slane %v3141_v62, 1 }
 0xdad   :  { %v3155_v44 = vcombine.low %v3150_v34, %v3151_v33 }
 0xdae   :  { %v3270_v48 = vpop.permute.xlu0 %3269 }
 0xdaf   :  { %v3279_v27 = vrot.slane %v3270_v48, 1  ;;  %v3163_v45 = vrot.slane %v3155_v44, %v9695_v46 }
 0xdb1   :  { %v3284_v11 = vcombine.low %v3279_v27, %v3280_v4  ;;  %v3178_v12 = vcombine.low %v3163_v45, %v3170_v5  ;;  %v9370_v31 = vpop.eup %9369  ;;  %v838_v27 = vld [vmem:[%s11747_s9 + $0x20] sm:$0xff]  ;;  %v840_v4 = vld [vmem:[%s11747_s9 + $0x30] sm:$0xff] }
 0xdb2   :  { %v3274_v32 = vpop.permute.xlu0 %3273  ;;  %v3138_v13 = vmul.f32 %v9370_v31, %v9366_v28  ;;  %v836_v28 = vld [vmem:[%s11747_s9 + $0x10] sm:$0xff]  ;;  %v9171_v26 = vpack.c.bf16 %v839_v10, %v838_v27 }
 0xdb3   :  { %v3281_v43 = vrot.slane %v3274_v32, 1  ;;  %v3292_v51 = vrot.slane %v3284_v11, %v9695_v46  ;;  %v3185_v9 = vrot.slane %v3178_v12, %v9695_v46  ;;  %v841_v11 = vld [vmem:[%s11747_s9 + $0x38] sm:$0xff] }
 0xdb5   :  { %v3285_v29 = vcombine.low %v3281_v43, %v3282_v52  ;;  %v9175_v43 = vpack.c.bf16 %v841_v11, %v840_v4  ;;  %v8579_v11 = vld [vmem:[%s11748_s10] ss:$0 sm:$0xff] }
 0xdb7   :  { %v3299_v38 = vrot.slane %v3285_v29, %v9695_v46  ;;  %v3403_v29 = vpop.permute.xlu1 %3402 }
 0xdb9   :  { %v3307_v53 = vcombine.low %v3292_v51, %v3299_v38 }
 0xdbb   :  { %v3314_v59 = vrot.slane %v3307_v53, %v9695_v46  ;;  %v3411_v51 = vpop.permute.xlu1 %3410  ;;  %v3423_v53 = vsel %vm1629_vm3, %v10204_v39, %v3403_v29 }
 0xdbd   :  { %v3322_v0 = vcombine.low %v3314_v59, %v3321_v54  ;;  %v3426_v59 = vsel %vm3424_vm7, %v3423_v53, %v3411_v51 }
 0xdbf   :  { %8970 = vmatpush3.msk.msra.mxu1 %vm1892_vm4, %v3322_v0 }
 0xde3   :  { %v3135_v14 = vpop.xlane.xlu0 %3134 }
 0xde4   :  { %9371 = vrcp.f32 %v3135_v14 }
 0xde7   :  { %v3149_v35 = vpop.permute.xlu0 %3148 }
 0xde8   :  { %v3154_v6 = vrot.slane %v3149_v35, 1 }
 0xdea   :  { %v3177_v50 = vrot.slane %v3154_v6, %v9695_v46 }
 0xdeb   :  { %v3401_v63 = vpop.permute.xlu0 %3400 }
 0xdec   :  { %v3192_v24 = vrot.slane %v3177_v50, %v9695_v46  ;;  %v3422_v54 = vsel %vm1629_vm3, %v10202_v25, %v3401_v63 }
 0xdee   :  { %v9372_v41 = vpop.eup %9371  ;;  %v3193_v36 = vcombine.low %v3185_v9, %v3192_v24 }
 0xdef   :  { %v3139_v8 = vmul.f32 %v9372_v41, %v9368_v49  ;;  %v837_v49 = vld [vmem:[%s11747_s9 + $0x18] sm:$0xff]  ;;  %v3409_v38 = vpop.permute.xlu0 %3408 }
 0xdf0   :  { %8965 = vmatpush3.msk.msra.mxu0 %vm1892_vm4, %v3193_v36  ;;  %v9167_v3 = vpack.c.bf16 %v837_v49, %v836_v28  ;;  %v3425_v0 = vsel %vm3424_vm7, %v3422_v54, %v3409_v38 }
 0xdf1   :  { %8967 = vmatmul.mubr.msk.f32.vlgmr.msra.gmra.mrb[6].mxu0 %vm1888_vm6, %v3138_v13  ;;  %8972 = vmatmul.mubr.msk.f32.vlgmr.msra.gmra.mrb[30].mxu1 %vm1888_vm6, %v3139_v8 }
 0xdf2   :  { %4355 = vmatprep.mubr.f32.mxu1 %v11795_v47  ;;  %9164 = vmatprep.subr.bf16.mxu0 %v9163_v1 }
 0xdf3   :  { %9166 = vmatpush3.bf16.msra.mxu0 %v9163_v1 }
 0xdf4   :  { %9168 = vmatprep.subr.bf16.mxu0 %v9167_v3 }
 0xdf7   :  { %9170 = vmatpush3.bf16.msra.mxu0 %v9167_v3 }
 0xdf8   :  { %9172 = vmatprep.subr.bf16.mxu0 %v9171_v26 }
 0xdfb   :  { %9174 = vmatpush3.bf16.msra.mxu0 %v9171_v26 }
 0xdfc   :  { %9176 = vmatprep.subr.bf16.mxu0 %v9175_v43 }
 0xdff   :  { %9178 = vmatpush3.bf16.msra.mxu0 %v9175_v43 }
 0xec4   :  { %v3265_v62 = vpop.f32.mrb[6].mxu0  ;;  %v3394_v48 = vpop.f32.mrb[30].mxu1 }
 0xec5   :  { %3418 = vrot.lane.b32.xlu1 %v3394_v48, %s9483_s28  ;;  %v8973_v32 = vpop.f32.mrb[31].mxu1  ;;  %3416 = vrot.lane.b32.xlu0 %v3265_v62, %s9483_s28  ;;  %v8968_v52 = vpop.f32.mrb[7].mxu0 }
 0xf37   :  { %v3419_v34 = vpop.permute.xlu1 %3418  ;;  %v3417_v33 = vpop.permute.xlu0 %3416 }
 0xf38   :  { %v3429_v30 = vsel %vm3427_vm8, %v3426_v59, %v3419_v34  ;;  %v3428_v37 = vsel %vm3427_vm8, %v3425_v0, %v3417_v33 }
 0xf39   :  { %v3471_v44 = vcombine.high %v3429_v30, %v3429_v30  ;;  %v3478_v23 = vrot.slane %v3429_v30, %v9695_v46  ;;  %v3432_v14 = vcombine.high %v3428_v37, %v3428_v37  ;;  %v3439_v45 = vrot.slane %v3428_v37, %v9695_v46 }
 0xf3b   :  { %v3485_v39 = vrot.slane %v3471_v44, %v9695_v46  ;;  %v3486_v5 = vcombine.high %v3478_v23, %v3478_v23  ;;  %v3493_v25 = vrot.slane %v3478_v23, %v9695_v46  ;;  %v3446_v35 = vrot.slane %v3432_v14, %v9695_v46 }
 0xf3c   :  { %v3447_v12 = vcombine.high %v3439_v45, %v3439_v45  ;;  %v3454_v9 = vrot.slane %v3439_v45, %v9695_v46 }
 0xf3d   :  { %v3507_v6 = vrot.slane %v3486_v5, %v9695_v46  ;;  %v3508_v50 = vcombine.high %v3493_v25, %v3493_v25  ;;  %v3461_v31 = vrot.slane %v3446_v35, %v9695_v46  ;;  %v3500_v41 = vrot.slane %v3485_v39, %v9695_v46 }
 0xf3e   :  { %v3468_v24 = vrot.slane %v3447_v12, %v9695_v46 }
 0xf3f   :  { %v3509_v36 = vcombine.high %v3507_v6, %v3507_v6  ;;  %v3519_v8 = vcombine.low %v3507_v6, %v3508_v50  ;;  %v3518_v13 = vcombine.low %v3461_v31, %v3493_v25 }
 0xf40   :  { %v3516_v7 = vcombine.low %v3454_v9, %v3468_v24  ;;  %v8580_v2 = vcombine.high %v3454_v9, %v3468_v24 }
 0xf41   :  { %v3547_v1 = vrot.slane %v3519_v8, %v9695_v46  ;;  %v3565_v28 = vcombine.low %v3509_v36, %v3500_v41  ;;  %v3540_v49 = vrot.slane %v3518_v13, %v9695_v46 }
 0xf42   :  { %v3526_v3 = vrot.slane %v3516_v7, %v9695_v46  ;;  %v3533_v62 = vrot.slane %v8580_v2, %v9695_v46 }
 0xf43   :  { %v3549_v48 = vcombine.low %v3540_v49, %v3547_v1  ;;  %v3572_v10 = vrot.slane %v3565_v28, %v9695_v46 }
 0xf44   :  { %v3548_v27 = vcombine.low %v3526_v3, %v3533_v62 }
 0xf45   :  { %v3563_v4 = vrot.slane %v3549_v48, %v9695_v46  ;;  %v3579_v26 = vrot.slane %v3572_v10, %v9695_v46 }
 0xf46   :  { %v3556_v32 = vrot.slane %v3548_v27, %v9695_v46 }
 0xf48   :  { %v3564_v52 = vcombine.low %v3556_v32, %v3563_v4 }
 0xf4a   :  { %8990 = vmatprep.mubr.msk.f32.mxu0 %vm94_vm0, %v3564_v52 }
 0xf4b   :  { %8991 = vmatmul.mubr.msk.f32.vlgmr.msra.gmra.mrb[8].mxu0 %vm94_vm0, %v3579_v26 }
0x101e   :  { %v8992_v43 = vpop.f32.mrb[8].mxu0 }
0x101f   :  { %v3656_v29 = vadd.f32 %v8992_v43, %v8579_v11  ;;  %v3650_v63 = vpop.f32.mrb[9].mxu0 }
0x1020   :  { %v3651_v51 = vadd.f32 %v8579_v11, %v3650_v63 }
0x1021   :  { %v3716_v38 = vrot.slane %v3656_v29, %v9695_v46 }
0x1022   :  { %v3661_v53 = vcombine.high %v3651_v51, %v3651_v51  ;;  %v3668_v54 = vrot.slane %v3651_v51, %v9695_v46 }
0x1023   :  { %v3717_v59 = vcombine.high %v3716_v38, %v3716_v38  ;;  %v3724_v0 = vrot.slane %v3716_v38, %v9695_v46 }
0x1024   :  { %v3675_v34 = vrot.slane %v3661_v53, %v9695_v46  ;;  %v3676_v33 = vcombine.high %v3668_v54, %v3668_v54  ;;  %v3684_v30 = vrot.slane %v3668_v54, %v9695_v46 }
0x1025   :  { %v3731_v37 = vrot.slane %v3717_v59, %v9695_v46  ;;  %v10445_v39 = vadd.f32 %v3724_v0, %v9882_v40 }
0x1026   :  { %v3677_v44 = vcombine.high %v3675_v34, %v3675_v34  ;;  %v3691_v23 = vrot.slane %v3675_v34, %v9695_v46  ;;  %v3698_v14 = vrot.slane %v3676_v33, %v9695_v46  ;;  %v3706_v45 = vcombine.high %v3684_v30, %v3684_v30  ;;  %v11796_v34 = vld [vmem:[#allocation6_spill] sm:$0xff] }
0x1027   :  { %v10448_v5 = vadd.f32 %v3731_v37, %v9884_v42  ;;  %v10455_v50 = vadd.f32 %v3684_v30, %v9852_v19  ;;  %v11797_v30 = vld [vmem:[#allocation7_spill] sm:$0xff] }
0x1028   :  { %v3705_v25 = vrot.slane %v3677_v44, %v9695_v46  ;;  %v3707_v35 = vcombine.high %v3691_v23, %v3691_v23  ;;  %v3708_v12 = vcombine.high %v3698_v14, %v3698_v14  ;;  %v10452_v6 = vadd.f32 %v3698_v14, %v9854_v16 }
0x1029   :  { %v10458_v31 = vadd.f32 %v3706_v45, %v9856_v17  ;;  %v3811_v40 = vcombine.low %v10445_v39, %v10448_v5  ;;  %v10466_v24 = vadd.f32 %v3691_v23, %v9860_v21 }
0x102a   :  { %v3709_v9 = vcombine.high %v3705_v25, %v3705_v25  ;;  %v10463_v42 = vadd.f32 %v3708_v12, %v9858_v18  ;;  %v10469_v41 = vadd.f32 %v3705_v25, %v9862_v20  ;;  %v3762_v19 = vcombine.low %v10455_v50, %v10452_v6 }
0x102b   :  { %v3818_v16 = vrot.slane %v3811_v40, %v9695_v46  ;;  %v10475_v17 = vadd.f32 %v3707_v35, %v9864_v15 }
0x102c   :  { %v10478_v36 = vadd.f32 %v3709_v9, %v9866_v22  ;;  %v3763_v18 = vcombine.low %v10458_v31, %v10463_v42  ;;  %v3764_v21 = vcombine.low %v10466_v24, %v10469_v41  ;;  %v3772_v13 = vrot.slane %v3762_v19, %v9695_v46 }
0x102d   :  { %v3825_v20 = vrot.slane %v3818_v16, %v9695_v46 }
0x102e   :  { %v3765_v8 = vcombine.low %v10475_v17, %v10478_v36  ;;  %v3779_v7 = vrot.slane %v3763_v18, %v9695_v46  ;;  %v3786_v22 = vrot.slane %v3764_v21, %v9695_v46 }
0x102f   :  { %v3831_v15 = vsel %vm442_vm1, %v3825_v20, 0.0 }
0x1030   :  { %3832 = vadd.xlane.f32.xlu1 %v3831_v15  ;;  %v3793_v2 = vrot.slane %v3765_v8, %v9695_v46  ;;  %v3794_v1 = vcombine.low %v3772_v13, %v3779_v7 }
0x1032   :  { %v3795_v28 = vcombine.low %v3786_v22, %v3793_v2  ;;  %v3802_v49 = vrot.slane %v3794_v1, %v9695_v46 }
0x1034   :  { %v3809_v3 = vrot.slane %v3795_v28, %v9695_v46 }
0x1036   :  { %v3810_v62 = vcombine.low %v3802_v49, %v3809_v3 }
0x1038   :  { %v3828_v48 = vsel %vm94_vm0, %v3810_v62, 0.0 }
0x1039   :  { %3829 = vadd.xlane.f32.xlu0 %v3828_v48 }
0x10bd   :  { %v3833_v27 = vpop.xlane.xlu1 %3832 }
0x10be   :  { %v3835_v10 = vmul.f32 0.015625, %v3833_v27 }
0x10c0   :  { %v3873_v4 = vrot.slane %v3835_v10, %v9733_v55  ;;  %v3877_v32 = vrot.slane %v3835_v10, %v9736_v56 }
0x10c2   :  { %v10498_v52 = vsub.f32 %v10445_v39, %v3873_v4  ;;  %v10501_v26 = vsub.f32 %v10448_v5, %v3877_v32 }
0x10c4   :  { %v3906_v29 = vmul.f32 %v10498_v52, %v10498_v52  ;;  %v3907_v63 = vmul.f32 %v10501_v26, %v10501_v26 }
0x10c6   :  { %v3830_v11 = vpop.xlane.xlu0 %3829  ;;  %v3967_v62 = vcombine.low %v3906_v29, %v3907_v63  ;;  %v846_v29 = vld [vmem:[%s11751_s13 + $0x8] sm:$0xff]  ;;  %v848_v63 = vld [vmem:[%s11751_s13 + $0x18] sm:$0xff] }
0x10c7   :  { %v3834_v43 = vmul.f32 0.015625, %v3830_v11 }
0x10c8   :  { %v3974_v32 = vrot.slane %v3967_v62, %v9695_v46  ;;  %v8583_v62 = vld [vmem:[%s11749_s11] ss:$0 sm:$0xff] }
0x10c9   :  { %v3841_v51 = vrot.slane %v3834_v43, %v9733_v55  ;;  %v3845_v38 = vrot.slane %v3834_v43, %v9736_v56  ;;  %v3849_v53 = vrot.slane %v3834_v43, %v9739_v57  ;;  %v3853_v54 = vrot.slane %v3834_v43, %v9742_v58 }
0x10ca   :  { %v3857_v59 = vrot.slane %v3834_v43, %v9745_v60  ;;  %v3861_v0 = vrot.slane %v3834_v43, %v9748_v61  ;;  %v3865_v33 = vrot.slane %v3834_v43, %v11796_v34  ;;  %v3869_v37 = vrot.slane %v3834_v43, %v11797_v30 }
0x10cb   :  { %v10516_v44 = vsub.f32 %v10455_v50, %v3841_v51  ;;  %v10519_v23 = vsub.f32 %v10452_v6, %v3845_v38  ;;  %v10522_v14 = vsub.f32 %v10458_v31, %v3849_v53  ;;  %v10525_v45 = vsub.f32 %v10463_v42, %v3853_v54  ;;  %v845_v54 = vld [vmem:[%s11751_s13] sm:$0xff] }
0x10cc   :  { %v10528_v25 = vsub.f32 %v10466_v24, %v3857_v59  ;;  %v10531_v35 = vsub.f32 %v10469_v41, %v3861_v0  ;;  %v10534_v12 = vsub.f32 %v10475_v17, %v3865_v33  ;;  %v10537_v40 = vsub.f32 %v10478_v36, %v3869_v37  ;;  %v847_v59 = vld [vmem:[%s11751_s13 + $0x10] sm:$0xff]  ;;  %v850_v33 = vld [vmem:[%s11751_s13 + $0x28] sm:$0xff]  ;;  %v852_v37 = vld [vmem:[%s11751_s13 + $0x38] sm:$0xff] }
0x10cd   :  { %v3898_v9 = vmul.f32 %v10516_v44, %v10516_v44  ;;  %v3899_v16 = vmul.f32 %v10519_v23, %v10519_v23  ;;  %v3900_v19 = vmul.f32 %v10522_v14, %v10522_v14  ;;  %v3901_v18 = vmul.f32 %v10525_v45, %v10525_v45 }
0x10ce   :  { %v3902_v21 = vmul.f32 %v10528_v25, %v10528_v25  ;;  %v3903_v20 = vmul.f32 %v10531_v35, %v10531_v35  ;;  %v3904_v8 = vmul.f32 %v10534_v12, %v10534_v12  ;;  %v3905_v13 = vmul.f32 %v10537_v40, %v10537_v40 }
0x10cf   :  { %v3918_v7 = vcombine.low %v3898_v9, %v3899_v16  ;;  %v3919_v15 = vcombine.low %v3900_v19, %v3901_v18  ;;  %v3981_v51 = vrot.slane %v3974_v32, %v9695_v46  ;;  %v9179_v53 = vpack.c.bf16 %v848_v63, %v846_v29  ;;  %v849_v9 = vld [vmem:[%s11751_s13 + $0x20] sm:$0xff]  ;;  %v851_v19 = vld [vmem:[%s11751_s13 + $0x30] sm:$0xff]  ;;  %v854_v18 = vld [vmem:[%s11751_s13 + $0x48] sm:$0xff] }
0x10d0   :  { %v3920_v22 = vcombine.low %v3902_v21, %v3903_v20  ;;  %v3921_v2 = vcombine.low %v3904_v8, %v3905_v13  ;;  %v9181_v0 = vpack.c.bf16 %v847_v59, %v845_v54  ;;  %v9183_v16 = vpack.c.bf16 %v852_v37, %v850_v33  ;;  %v856_v21 = vld [vmem:[%s11751_s13 + $0x58] sm:$0xff]  ;;  %v853_v13 = vld [vmem:[%s11751_s13 + $0x40] sm:$0xff] }
0x10d1   :  { %v3928_v1 = vrot.slane %v3918_v7, %v9695_v46  ;;  %v3935_v28 = vrot.slane %v3919_v15, %v9695_v46  ;;  %v3987_v38 = vsel %vm442_vm1, %v3981_v51, 0.0  ;;  %9180 = vmatprep.subr.bf16.mxu1 %v9179_v53  ;;  %v9185_v20 = vpack.c.bf16 %v851_v19, %v849_v9  ;;  %v855_v7 = vld [vmem:[%s11751_s13 + $0x50] sm:$0xff]  ;;  %v858_v15 = vld [vmem:[%s11751_s13 + $0x68] sm:$0xff] }
0x10d2   :  { %v3942_v49 = vrot.slane %v3920_v22, %v9695_v46  ;;  %v3949_v3 = vrot.slane %v3921_v2, %v9695_v46  ;;  %9182 = vmatpush1.bf16.msra.mxu1 %v9181_v0  ;;  %v9187_v8 = vpack.c.bf16 %v856_v21, %v854_v18  ;;  %v860_v22 = vld [vmem:[%s11751_s13 + $0x78] sm:$0xff]  ;;  %v9189_v2 = vpack.c.bf16 %v855_v7, %v853_v13 }
0x10d3   :  { %v3950_v48 = vcombine.low %v3928_v1, %v3935_v28  ;;  %9184 = vmatprep.subr.bf16.mxu1 %v9183_v16  ;;  %v9191_v1 = vpack.c.bf16 %v860_v22, %v858_v15  ;;  %v857_v28 = vld [vmem:[%s11751_s13 + $0x60] sm:$0xff] }
0x10d4   :  { %v3951_v27 = vcombine.low %v3942_v49, %v3949_v3  ;;  %v859_v49 = vld [vmem:[%s11751_s13 + $0x70] sm:$0xff] }
0x10d5   :  { %v3958_v10 = vrot.slane %v3950_v48, %v9695_v46  ;;  %v9193_v3 = vpack.c.bf16 %v859_v49, %v857_v28  ;;  %v8584_v48 = vld [vmem:[%s11750_s12] ss:$0 sm:$0xff] }
0x10d6   :  { %v3965_v4 = vrot.slane %v3951_v27, %v9695_v46  ;;  %9186 = vmatpush1.bf16.msra.mxu1 %v9185_v20  ;;  %v4063_v27 = vcombine.high %v8583_v62, %v8583_v62 }
0x10d7   :  { %9188 = vmatprep.subr.bf16.mxu1 %v9187_v8 }
0x10d8   :  { %v3966_v11 = vcombine.low %v3958_v10, %v3965_v4  ;;  %v4135_v10 = vcombine.high %v8584_v48, %v8584_v48 }
0x10da   :  { %v3984_v43 = vsel %vm94_vm0, %v3966_v11, 0.0  ;;  %9190 = vmatpush1.bf16.msra.mxu1 %v9189_v2  ;;  %v4070_v11 = vrot.slane %v8583_v62, %v9695_v46  ;;  %v4149_v29 = vrot.slane %v4135_v10, %v9695_v46 }
0x10db   :  { %3985 = vadd.xlane.f32.xlu0 %v3984_v43  ;;  %9192 = vmatprep.subr.bf16.mxu1 %v9191_v1  ;;  %v4077_v43 = vrot.slane %v4063_v27, %v9695_v46 }
0x10dc   :  { %v4078_v54 = vcombine.high %v4070_v11, %v4070_v11  ;;  %v4151_v37 = vcombine.high %v4149_v29, %v4149_v29  ;;  %v4086_v9 = vrot.slane %v4070_v11, %v9695_v46  ;;  %v4165_v20 = vrot.slane %v4149_v29, %v9695_v46 }
0x10dd   :  { %v4079_v59 = vcombine.high %v4077_v43, %v4077_v43  ;;  %v4093_v16 = vrot.slane %v4077_v43, %v9695_v46 }
0x10de   :  { %9194 = vmatpush1.bf16.msra.mxu1 %v9193_v3  ;;  %v4100_v19 = vrot.slane %v4078_v54, %v9695_v46  ;;  %v4179_v13 = vrot.slane %v4151_v37, %v9695_v46  ;;  %v4108_v7 = vcombine.high %v4086_v9, %v4086_v9  ;;  %v4181_v49 = vcombine.high %v4165_v20, %v4165_v20 }
0x10df   :  { %3988 = vadd.xlane.f32.xlu0 %v3987_v38  ;;  %v4142_v38 = vrot.slane %v8584_v48, %v9695_v46  ;;  %v4107_v18 = vrot.slane %v4079_v59, %v9695_v46  ;;  %v4109_v15 = vcombine.high %v4093_v16, %v4093_v16 }
0x10e0   :  { %v4110_v22 = vcombine.high %v4100_v19, %v4100_v19  ;;  %v4183_v62 = vcombine.high %v4179_v13, %v4179_v13 }
0x10e1   :  { %v4150_v33 = vcombine.high %v4142_v38, %v4142_v38  ;;  %v4158_v21 = vrot.slane %v4142_v38, %v9695_v46  ;;  %v4111_v2 = vcombine.high %v4107_v18, %v4107_v18 }
0x10e3   :  { %v4172_v8 = vrot.slane %v4150_v33, %v9695_v46  ;;  %v4180_v28 = vcombine.high %v4158_v21, %v4158_v21 }
0x10e5   :  { %v4182_v3 = vcombine.high %v4172_v8, %v4172_v8 }
0x1168   :  { %v3986_v4 = vpop.xlane.xlu0 %3985 }
0x1169   :  { %v3990_v32 = vmul.f32 0.015625, %v3986_v4 }
0x116b   :  { %v3992_v51 = vadd.f32 1e-05, %v3990_v32 }
0x116c   :  { %v3989_v63 = vpop.xlane.xlu0 %3988 }
0x116d   :  { %9373 = vrsqrt.f32 %v3992_v51  ;;  %v3991_v53 = vmul.f32 0.015625, %v3989_v63 }
0x116f   :  { %v3993_v0 = vadd.f32 1e-05, %v3991_v53 }
0x1171   :  { %9375 = vrsqrt.f32 %v3993_v0 }
0x1177   :  { %v9374_v1 = vpop.eup %9373 }
0x1178   :  { %v4001_v48 = vrot.slane %v9374_v1, %v9733_v55  ;;  %v4005_v27 = vrot.slane %v9374_v1, %v9736_v56  ;;  %v4009_v10 = vrot.slane %v9374_v1, %v9739_v57  ;;  %v4013_v4 = vrot.slane %v9374_v1, %v9742_v58 }
0x1179   :  { %v4017_v32 = vrot.slane %v9374_v1, %v9745_v60  ;;  %v4021_v11 = vrot.slane %v9374_v1, %v9748_v61  ;;  %v4025_v43 = vrot.slane %v9374_v1, %v11796_v34  ;;  %v4029_v51 = vrot.slane %v9374_v1, %v11797_v30 }
0x117a   :  { %v4048_v38 = vmul.f32 %v4001_v48, %v10516_v44  ;;  %v4049_v29 = vmul.f32 %v4005_v27, %v10519_v23  ;;  %v4050_v63 = vmul.f32 %v4009_v10, %v10522_v14  ;;  %v4051_v53 = vmul.f32 %v4013_v4, %v10525_v45 }
0x117b   :  { %v9376_v54 = vpop.eup %9375  ;;  %v4052_v59 = vmul.f32 %v4017_v32, %v10528_v25  ;;  %v4053_v0 = vmul.f32 %v4021_v11, %v10531_v35  ;;  %v4054_v33 = vmul.f32 %v4025_v43, %v10534_v12  ;;  %v4055_v37 = vmul.f32 %v4029_v51, %v10537_v40 }
0x117c   :  { %v4033_v34 = vrot.slane %v9376_v54, %v9733_v55  ;;  %v4037_v1 = vrot.slane %v9376_v54, %v9736_v56  ;;  %v4120_v44 = vmul.f32 %v4086_v9, %v4048_v38  ;;  %v4121_v48 = vmul.f32 %v4100_v19, %v4049_v29 }
0x117d   :  { %v4122_v23 = vmul.f32 %v4108_v7, %v4050_v63  ;;  %v4123_v27 = vmul.f32 %v4110_v22, %v4051_v53  ;;  %v4124_v14 = vmul.f32 %v4093_v16, %v4052_v59  ;;  %v4125_v10 = vmul.f32 %v4107_v18, %v4053_v0  ;;  %v862_v53 = vld [vmem:[%s11753_s15] sm:$0xff]  ;;  %v863_v59 = vld [vmem:[%s11753_s15 + $0x8] sm:$0xff] }
0x117e   :  { %v4056_v45 = vmul.f32 %v4033_v34, %v10498_v52  ;;  %v4057_v25 = vmul.f32 %v4037_v1, %v10501_v26  ;;  %v4126_v4 = vmul.f32 %v4109_v15, %v4054_v33  ;;  %v4127_v35 = vmul.f32 %v4111_v2, %v4055_v37  ;;  %v880_v33 = vld [vmem:[%s11753_s15 + $0x90] sm:$0xff]  ;;  %v881_v37 = vld [vmem:[%s11753_s15 + $0x98] sm:$0xff] }
0x117f   :  { %v4192_v32 = vadd.f32 %v4158_v21, %v4120_v44  ;;  %v4193_v12 = vadd.f32 %v4172_v8, %v4121_v48  ;;  %v4194_v11 = vadd.f32 %v4180_v28, %v4122_v23  ;;  %v4195_v40 = vadd.f32 %v4182_v3, %v4123_v27  ;;  %v864_v44 = vld [vmem:[%s11753_s15 + $0x10] sm:$0xff]  ;;  %v865_v48 = vld [vmem:[%s11753_s15 + $0x18] sm:$0xff]  ;;  %v882_v27 = vld [vmem:[%s11753_s15 + $0xa0] sm:$0xff] }
0x1180   :  { %v4196_v43 = vadd.f32 %v4165_v20, %v4124_v14  ;;  %v4197_v51 = vadd.f32 %v4179_v13, %v4125_v10  ;;  %v4198_v30 = vadd.f32 %v4181_v49, %v4126_v4  ;;  %v4199_v54 = vadd.f32 %v4183_v62, %v4127_v35  ;;  %v879_v62 = vld [vmem:[%s11753_s15 + $0x88] sm:$0xff]  ;;  %v884_v35 = vld [vmem:[%s11753_s15 + $0xb0] sm:$0xff] }
0x1181   :  { %v4223_v38 = vcombine.low %v4192_v32, %v4193_v12  ;;  %v4224_v29 = vcombine.low %v4194_v11, %v4195_v40  ;;  %v4128_v7 = vmul.f32 %v4086_v9, %v4056_v45  ;;  %v4129_v22 = vmul.f32 %v4100_v19, %v4057_v25  ;;  %v883_v14 = vld [vmem:[%s11753_s15 + $0xa8] sm:$0xff]  ;;  %v866_v45 = vld [vmem:[%s11753_s15 + $0x20] sm:$0xff]  ;;  %v885_v32 = vld [vmem:[%s11753_s15 + $0xb8] sm:$0xff] }
0x1182   :  { %v4225_v16 = vcombine.low %v4196_v43, %v4197_v51  ;;  %v4226_v18 = vcombine.low %v4198_v30, %v4199_v54  ;;  %v9197_v0 = vpack.c.bf16 %v863_v59, %v862_v53  ;;  %v9199_v1 = vpack.c.bf16 %v881_v37, %v880_v33  ;;  %v867_v25 = vld [vmem:[%s11753_s15 + $0x28] sm:$0xff]  ;;  %v868_v11 = vld [vmem:[%s11753_s15 + $0x30] sm:$0xff]  ;;  %v869_v40 = vld [vmem:[%s11753_s15 + $0x38] sm:$0xff] }
0x1183   :  { %v4233_v52 = vrot.slane %v4223_v38, %v9695_v46  ;;  %v4240_v26 = vrot.slane %v4224_v29, %v9695_v46  ;;  %v4200_v34 = vadd.f32 %v4158_v21, %v4128_v7  ;;  %v4201_v15 = vadd.f32 %v4172_v8, %v4129_v22  ;;  %v878_v8 = vld [vmem:[%s11753_s15 + $0x80] sm:$0xff]  ;;  %v887_v54 = vld [vmem:[%s11753_s15 + $0xc8] sm:$0xff] }
0x1184   :  { %v4247_v2 = vrot.slane %v4225_v16, %v9695_v46  ;;  %v4254_v28 = vrot.slane %v4226_v18, %v9695_v46  ;;  %v9195_v63 = vpack.c.bf16 %v879_v62, %v878_v8  ;;  %v9201_v23 = vpack.c.bf16 %v865_v48, %v864_v44  ;;  %v886_v51 = vld [vmem:[%s11753_s15 + $0xc0] sm:$0xff]  ;;  %v871_v7 = vld [vmem:[%s11753_s15 + $0x48] sm:$0xff]  ;;  %v888_v16 = vld [vmem:[%s11753_s15 + $0xd0] sm:$0xff] }
0x1185   :  { %v4255_v20 = vcombine.low %v4233_v52, %v4240_v26  ;;  %v4272_v49 = vcombine.low %v4200_v34, %v4201_v15  ;;  %v9203_v10 = vpack.c.bf16 %v883_v14, %v882_v27  ;;  %v9205_v4 = vpack.c.bf16 %v867_v25, %v866_v45  ;;  %v870_v29 = vld [vmem:[%s11753_s15 + $0x40] sm:$0xff]  ;;  %v889_v18 = vld [vmem:[%s11753_s15 + $0xd8] sm:$0xff]  ;;  %v872_v26 = vld [vmem:[%s11753_s15 + $0x50] sm:$0xff] }
0x1186   :  { %v4256_v13 = vcombine.low %v4247_v2, %v4254_v28  ;;  %9196 = vmatprep.subr.bf16.mxu0 %v9195_v63  ;;  %v9207_v12 = vpack.c.bf16 %v885_v32, %v884_v35  ;;  %v9209_v43 = vpack.c.bf16 %v869_v40, %v868_v11  ;;  %v9211_v38 = vpack.c.bf16 %v887_v54, %v886_v51  ;;  %v873_v34 = vld [vmem:[%s11753_s15 + $0x58] sm:$0xff]  ;;  %v890_v2 = vld [vmem:[%s11753_s15 + $0xe0] sm:$0xff]  ;;  %v891_v28 = vld [vmem:[%s11753_s15 + $0xe8] sm:$0xff] }
0x1187   :  { %v4263_v3 = vrot.slane %v4255_v20, %v9695_v46  ;;  %v4279_v30 = vrot.slane %v4272_v49, %v9695_v46  ;;  %9198 = vmatpush3.bf16.msra.mxu0 %v9197_v0  ;;  %v9213_v22 = vpack.c.bf16 %v871_v7, %v870_v29  ;;  %v9215_v52 = vpack.c.bf16 %v889_v18, %v888_v16  ;;  %v875_v49 = vld [vmem:[%s11753_s15 + $0x68] sm:$0xff]  ;;  %v877_v8 = vld [vmem:[%s11753_s15 + $0x78] sm:$0xff]  ;;  %v861_v63 = vld [vmem:[%s11752_s14] sm:$0x3] }
0x1188   :  { %v4270_v9 = vrot.slane %v4256_v13, %v9695_v46  ;;  %9200 = vmatprep.subr.bf16.mxu0 %v9199_v1  ;;  %v9217_v15 = vpack.c.bf16 %v873_v34, %v872_v26  ;;  %v9219_v20 = vpack.c.bf16 %v891_v28, %v890_v2  ;;  %v874_v13 = vld [vmem:[%s11753_s15 + $0x60] sm:$0xff]  ;;  %v4206_v53 = vrot.slane %v861_v63, %v9733_v55 }
0x1189   :  { %v4286_v21 = vrot.slane %v4279_v30, %v9695_v46  ;;  %v4210_v59 = vrot.slane %v861_v63, %v9736_v56 }
0x118a   :  { %v4271_v19 = vcombine.low %v4263_v3, %v4270_v9  ;;  %v9221_v3 = vpack.c.bf16 %v875_v49, %v874_v13  ;;  %v892_v9 = vld [vmem:[%s11753_s15 + $0xf0] sm:$0xff] }
0x118b   :  { %9202 = vmatpush3.bf16.msra.mxu0 %v9201_v23 }
0x118c   :  { %8585 = vmatmul.mubr.msk.f32.vlgmr.msra.gmra.mrb[32].mxu1 %vm94_vm0, %v4271_v19  ;;  %9204 = vmatprep.subr.bf16.mxu0 %v9203_v10  ;;  %v893_v19 = vld [vmem:[%s11753_s15 + $0xf8] sm:$0xff] }
0x118d   :  { %4361 = vmatprep.mubr.f32.mxu1 %v11795_v47  ;;  %v9223_v30 = vpack.c.bf16 %v893_v19, %v892_v9 }
0x118f   :  { %9206 = vmatpush3.bf16.msra.mxu0 %v9205_v4 }
0x1190   :  { %8586 = vmatmul.mubr.msk.f32.gmra.mrb[34].mxu1 %vm94_vm0, %v4286_v21  ;;  %9208 = vmatprep.subr.bf16.mxu0 %v9207_v12  ;;  %v876_v21 = vld [vmem:[%s11753_s15 + $0x70] sm:$0xff] }
0x1191   :  { %5269 = vmatprep.mubr.f32.mxu1 %v11795_v47  ;;  %v9225_v62 = vpack.c.bf16 %v877_v8, %v876_v21 }
0x1193   :  { %9210 = vmatpush3.bf16.msra.mxu0 %v9209_v43 }
0x1194   :  { %9212 = vmatprep.subr.bf16.mxu0 %v9211_v38 }
0x1197   :  { %9214 = vmatpush3.bf16.msra.mxu0 %v9213_v22 }
0x1198   :  { %9216 = vmatprep.subr.bf16.mxu0 %v9215_v52 }
0x119b   :  { %9218 = vmatpush3.bf16.msra.mxu0 %v9217_v15 }
0x119c   :  { %9220 = vmatprep.subr.bf16.mxu0 %v9219_v20  ;;  %v8591_v20 = vld [vmem:[%s11754_s16] ss:$0 sm:$0xff] }
0x119f   :  { %9222 = vmatpush3.bf16.msra.mxu0 %v9221_v3 }
0x11a0   :  { %9224 = vmatprep.subr.bf16.mxu0 %v9223_v30 }
0x11a3   :  { %9226 = vmatpush3.bf16.msra.mxu0 %v9225_v62 }
0x11a4   :  { %9013 = vmatprep.subr.mxu0 %v11795_v47 }
0x125f   :  { %v4357_v0 = vpop.f32.mrb[32].mxu1 }
0x1260   :  { %v4358_v33 = vadd.f32 %v4357_v0, %v4206_v53  ;;  %v4359_v37 = vpop.f32.mrb[33].mxu1 }
0x1261   :  { %v4360_v1 = vadd.f32 %v4359_v37, %v4210_v59 }
0x1262   :  { %v8587_v44 = vmul.f32 -1.702, %v4358_v33 }
0x1263   :  { %v8588_v48 = vmul.f32 -1.702, %v4360_v1  ;;  %v4363_v23 = vpop.f32.mrb[34].mxu1 }
0x1264   :  { %v4376_v27 = vmul.f32 1.442695, %v8587_v44  ;;  %v4364_v14 = vadd.f32 %v4363_v23, %v4206_v53  ;;  %v4365_v10 = vpop.f32.mrb[35].mxu1 }
0x1265   :  { %v4378_v45 = vmul.f32 1.442695, %v8588_v48  ;;  %v4366_v25 = vadd.f32 %v4365_v10, %v4210_v59 }
0x1266   :  { %9377 = vpow2.f32 %v4376_v27  ;;  %v8589_v4 = vmul.f32 -1.702, %v4364_v14 }
0x1267   :  { %9379 = vpow2.f32 %v4378_v45  ;;  %v8590_v35 = vmul.f32 -1.702, %v4366_v25 }
0x1268   :  { %v4380_v32 = vmul.f32 1.442695, %v8589_v4 }
0x1269   :  { %v4382_v12 = vmul.f32 1.442695, %v8590_v35 }
0x126a   :  { %9381 = vpow2.f32 %v4380_v32 }
0x126b   :  { %9383 = vpow2.f32 %v4382_v12 }
0x1270   :  { %v9378_v11 = vpop.eup %9377 }
0x1271   :  { %v9380_v40 = vpop.eup %9379  ;;  %v4384_v43 = vadd.f32 1.0, %v9378_v11 }
0x1272   :  { %v4385_v51 = vadd.f32 1.0, %v9380_v40 }
0x1273   :  { %9385 = vrcp.f32 %v4384_v43 }
0x1274   :  { %v9382_v54 = vpop.eup %9381  ;;  %9387 = vrcp.f32 %v4385_v51 }
0x1275   :  { %v9384_v38 = vpop.eup %9383  ;;  %v4386_v29 = vadd.f32 1.0, %v9382_v54 }
0x1276   :  { %v4387_v7 = vadd.f32 1.0, %v9384_v38 }
0x1277   :  { %9389 = vrcp.f32 %v4386_v29 }
0x1278   :  { %9391 = vrcp.f32 %v4387_v7 }
0x127d   :  { %v9386_v22 = vpop.eup %9385 }
0x127e   :  { %v9388_v16 = vpop.eup %9387  ;;  %v4396_v52 = vmul.f32 %v9386_v22, %v4358_v33 }
0x127f   :  { %v4397_v18 = vmul.f32 %v9388_v16, %v4360_v1 }
0x1281   :  { %v9390_v26 = vpop.eup %9389  ;;  %4470 = vmatprep.mubr.f32.mxu0 %v4397_v18 }
0x1282   :  { %v9392_v34 = vpop.eup %9391  ;;  %4471 = vmatmul.mubr.f32.vlgmr.msra.gmra.mrb[10].mxu0 %v4396_v52  ;;  %v4398_v2 = vmul.f32 %v9390_v26, %v4364_v14 }
0x1283   :  { %v4399_v15 = vmul.f32 %v9392_v34, %v4366_v25 }
0x1285   :  { %4475 = vmatprep.mubr.f32.mxu0 %v4399_v15 }
0x1286   :  { %4476 = vmatmul.mubr.f32.gmra.mrb[12].mxu0 %v4398_v2 }
0x1287   :  { %9015 = vmatprep.mubr.msk.f32.mxu0 %vm9480_vm2, %v11795_v47 }
0x1355   :  { %v8799_v28 = vpop.f32.mrb[10].mxu0 }
0x1356   :  { %v8800_v13 = vpop.f32.mrb[11].mxu0 }
0x1357   :  { %v8801_v49 = vadd.f32 %v8800_v13, %v8799_v28 }
0x1359   :  { %v4473_v3 = vadd.f32 %v8801_v49, %v8591_v20  ;;  %v8802_v9 = vpop.f32.mrb[12].mxu0 }
0x135a   :  { %v8803_v19 = vpop.f32.mrb[13].mxu0 }
0x135b   :  { %v4483_v30 = vcombine.high %v4473_v3, %v4473_v3  ;;  %v4490_v21 = vrot.slane %v4473_v3, %v9695_v46  ;;  %v8804_v8 = vadd.f32 %v8803_v19, %v8802_v9 }
0x135d   :  { %v4497_v62 = vrot.slane %v4483_v30, %v9695_v46  ;;  %v4498_v63 = vcombine.high %v4490_v21, %v4490_v21  ;;  %v4506_v53 = vrot.slane %v4490_v21, %v9695_v46  ;;  %v4478_v59 = vadd.f32 %v8804_v8, %v8591_v20 }
0x135f   :  { %v4499_v0 = vcombine.high %v4497_v62, %v4497_v62  ;;  %v4513_v33 = vrot.slane %v4497_v62, %v9695_v46  ;;  %v4520_v37 = vrot.slane %v4498_v63, %v9695_v46  ;;  %v4528_v1 = vcombine.high %v4506_v53, %v4506_v53 }
0x1360   :  { %v4538_v44 = vrot.slane %v4478_v59, %v9695_v46  ;;  %v10781_v10 = vadd.f32 %v4506_v53, %v10455_v50 }
0x1361   :  { %v4527_v48 = vrot.slane %v4499_v0, %v9695_v46  ;;  %v4529_v23 = vcombine.high %v4513_v33, %v4513_v33  ;;  %v4530_v27 = vcombine.high %v4520_v37, %v4520_v37  ;;  %v10778_v14 = vadd.f32 %v4520_v37, %v10452_v6  ;;  %v11798_v0 = vld [vmem:[#allocation6_spill] sm:$0xff]  ;;  %v11799_v37 = vld [vmem:[#allocation7_spill] sm:$0xff] }
0x1362   :  { %v10784_v45 = vadd.f32 %v4528_v1, %v10458_v31  ;;  %v4539_v25 = vcombine.high %v4538_v44, %v4538_v44  ;;  %v4546_v4 = vrot.slane %v4538_v44, %v9695_v46  ;;  %v10791_v12 = vadd.f32 %v4513_v33, %v10466_v24 }
0x1363   :  { %v4531_v35 = vcombine.high %v4527_v48, %v4527_v48  ;;  %v10788_v32 = vadd.f32 %v4530_v27, %v10463_v42  ;;  %v10794_v11 = vadd.f32 %v4527_v48, %v10469_v41  ;;  %v4676_v50 = vcombine.low %v10781_v10, %v10778_v14 }
0x1364   :  { %v4553_v6 = vrot.slane %v4539_v25, %v9695_v46  ;;  %v10800_v31 = vadd.f32 %v4529_v23, %v10475_v17  ;;  %v10810_v41 = vadd.f32 %v4546_v4, %v10445_v39 }
0x1365   :  { %v10803_v40 = vadd.f32 %v4531_v35, %v10478_v36  ;;  %v4677_v42 = vcombine.low %v10784_v45, %v10788_v32  ;;  %v4678_v24 = vcombine.low %v10791_v12, %v10794_v11  ;;  %v4686_v17 = vrot.slane %v4676_v50, %v9695_v46 }
0x1366   :  { %v10813_v43 = vadd.f32 %v4553_v6, %v10448_v5 }
0x1367   :  { %v4679_v51 = vcombine.low %v10800_v31, %v10803_v40  ;;  %v4693_v36 = vrot.slane %v4677_v42, %v9695_v46  ;;  %v4700_v38 = vrot.slane %v4678_v24, %v9695_v46 }
0x1368   :  { %v4725_v54 = vcombine.low %v10810_v41, %v10813_v43 }
0x1369   :  { %v4707_v29 = vrot.slane %v4679_v51, %v9695_v46  ;;  %v4708_v7 = vcombine.low %v4686_v17, %v4693_v36 }
0x136a   :  { %v4732_v39 = vrot.slane %v4725_v54, %v9695_v46 }
0x136b   :  { %v4709_v22 = vcombine.low %v4700_v38, %v4707_v29  ;;  %v4716_v16 = vrot.slane %v4708_v7, %v9695_v46 }
0x136c   :  { %v4739_v5 = vrot.slane %v4732_v39, %v9695_v46 }
0x136d   :  { %v4723_v18 = vrot.slane %v4709_v22, %v9695_v46 }
0x136e   :  { %v4745_v52 = vsel %vm442_vm1, %v4739_v5, 0.0 }
0x136f   :  { %4746 = vadd.xlane.f32.xlu1 %v4745_v52  ;;  %v4724_v26 = vcombine.low %v4716_v16, %v4723_v18 }
0x1371   :  { %v4742_v34 = vsel %vm94_vm0, %v4724_v26, 0.0 }
0x1372   :  { %4743 = vadd.xlane.f32.xlu0 %v4742_v34 }
0x13fc   :  { %v4747_v15 = vpop.xlane.xlu1 %4746 }
0x13fd   :  { %v4749_v2 = vmul.f32 0.015625, %v4747_v15 }
0x13ff   :  { %v4787_v28 = vrot.slane %v4749_v2, %v9733_v55  ;;  %v4791_v20 = vrot.slane %v4749_v2, %v9736_v56  ;;  %v4744_v13 = vpop.xlane.xlu0 %4743 }
0x1400   :  { %v4748_v49 = vmul.f32 0.015625, %v4744_v13 }
0x1401   :  { %v10832_v3 = vsub.f32 %v10810_v41, %v4787_v28  ;;  %v10835_v9 = vsub.f32 %v10813_v43, %v4791_v20 }
0x1402   :  { %v4755_v19 = vrot.slane %v4748_v49, %v9733_v55  ;;  %v4759_v30 = vrot.slane %v4748_v49, %v9736_v56  ;;  %v4763_v21 = vrot.slane %v4748_v49, %v9739_v57  ;;  %v4767_v8 = vrot.slane %v4748_v49, %v9742_v58 }
0x1403   :  { %v4820_v62 = vmul.f32 %v10832_v3, %v10832_v3  ;;  %v4821_v63 = vmul.f32 %v10835_v9, %v10835_v9  ;;  %v4771_v53 = vrot.slane %v4748_v49, %v9745_v60  ;;  %v4775_v59 = vrot.slane %v4748_v49, %v9748_v61 }
0x1404   :  { %v4779_v33 = vrot.slane %v4748_v49, %v11798_v0  ;;  %v4783_v1 = vrot.slane %v4748_v49, %v11799_v37  ;;  %v10850_v44 = vsub.f32 %v10781_v10, %v4755_v19  ;;  %v10853_v48 = vsub.f32 %v10778_v14, %v4759_v30 }
0x1405   :  { %v4881_v23 = vcombine.low %v4820_v62, %v4821_v63  ;;  %v10856_v27 = vsub.f32 %v10784_v45, %v4763_v21  ;;  %v10859_v25 = vsub.f32 %v10788_v32, %v4767_v8  ;;  %v10862_v4 = vsub.f32 %v10791_v12, %v4771_v53  ;;  %v8595_v21 = vld [vmem:[%s11745_s7 + $0x88] sm:$0xff]  ;;  %v8597_v8 = vld [vmem:[%s11745_s7 + $0x98] sm:$0xff]  ;;  %v8594_v62 = vld [vmem:[%s11745_s7 + $0x80] sm:$0xff] }
0x1406   :  { %v10865_v35 = vsub.f32 %v10794_v11, %v4775_v59  ;;  %v10868_v6 = vsub.f32 %v10800_v31, %v4779_v33  ;;  %v10871_v50 = vsub.f32 %v10803_v40, %v4783_v1  ;;  %v4812_v42 = vmul.f32 %v10850_v44, %v10850_v44  ;;  %v8596_v53 = vld [vmem:[%s11745_s7 + $0x90] sm:$0xff]  ;;  %v8599_v59 = vld [vmem:[%s11745_s7 + $0xa8] sm:$0xff]  ;;  %v8601_v33 = vld [vmem:[%s11745_s7 + $0xb8] sm:$0xff] }
0x1407   :  { %v4888_v24 = vrot.slane %v4881_v23, %v9695_v46  ;;  %v4813_v51 = vmul.f32 %v10853_v48, %v10853_v48  ;;  %v4814_v17 = vmul.f32 %v10856_v27, %v10856_v27  ;;  %v4815_v36 = vmul.f32 %v10859_v25, %v10859_v25 }
0x1408   :  { %v4816_v54 = vmul.f32 %v10862_v4, %v10862_v4  ;;  %v4817_v38 = vmul.f32 %v10865_v35, %v10865_v35  ;;  %v4818_v29 = vmul.f32 %v10868_v6, %v10868_v6  ;;  %v4819_v7 = vmul.f32 %v10871_v50, %v10871_v50 }
0x1409   :  { %v4895_v39 = vrot.slane %v4888_v24, %v9695_v46  ;;  %v4832_v22 = vcombine.low %v4812_v42, %v4813_v51  ;;  %v4833_v5 = vcombine.low %v4814_v17, %v4815_v36  ;;  %v9227_v63 = vpack.c.bf16 %v8597_v8, %v8595_v21  ;;  %v8598_v42 = vld [vmem:[%s11745_s7 + $0xa0] sm:$0xff]  ;;  %v8600_v24 = vld [vmem:[%s11745_s7 + $0xb0] sm:$0xff]  ;;  %v8603_v51 = vld [vmem:[%s11745_s7 + $0xc8] sm:$0xff] }
0x140a   :  { %v4834_v16 = vcombine.low %v4816_v54, %v4817_v38  ;;  %v4835_v18 = vcombine.low %v4818_v29, %v4819_v7  ;;  %v9229_v1 = vpack.c.bf16 %v8596_v53, %v8594_v62  ;;  %v9231_v23 = vpack.c.bf16 %v8601_v33, %v8599_v59  ;;  %v8605_v17 = vld [vmem:[%s11745_s7 + $0xd8] sm:$0xff]  ;;  %v8602_v38 = vld [vmem:[%s11745_s7 + $0xc0] sm:$0xff]  ;;  %v8604_v29 = vld [vmem:[%s11745_s7 + $0xd0] sm:$0xff] }
0x140b   :  { %v4901_v52 = vsel %vm442_vm1, %v4895_v39, 0.0  ;;  %v4842_v26 = vrot.slane %v4832_v22, %v9695_v46  ;;  %v4849_v34 = vrot.slane %v4833_v5, %v9695_v46  ;;  %9228 = vmatprep.subr.bf16.mxu1 %v9227_v63  ;;  %v9233_v36 = vpack.c.bf16 %v8600_v24, %v8598_v42  ;;  %v8607_v7 = vld [vmem:[%s11745_s7 + $0xe8] sm:$0xff]  ;;  %v8609_v39 = vld [vmem:[%s11745_s7 + $0xf8] sm:$0xff] }
0x140c   :  { %4902 = vadd.xlane.f32.xlu1 %v4901_v52  ;;  %v4856_v15 = vrot.slane %v4834_v16, %v9695_v46  ;;  %v4863_v2 = vrot.slane %v4835_v18, %v9695_v46  ;;  %9230 = vmatpush1.bf16.msra.mxu1 %v9229_v1  ;;  %v9235_v54 = vpack.c.bf16 %v8605_v17, %v8603_v51  ;;  %v8606_v16 = vld [vmem:[%s11745_s7 + $0xe0] sm:$0xff]  ;;  %v8608_v18 = vld [vmem:[%s11745_s7 + $0xf0] sm:$0xff]  ;;  %s11800_s7 = smov 96  }
0x140d   :  { %v4864_v28 = vcombine.low %v4842_v26, %v4849_v34  ;;  %9232 = vmatprep.subr.bf16.mxu1 %v9231_v23  ;;  %v9237_v22 = vpack.c.bf16 %v8604_v29, %v8602_v38  ;;  %v9239_v5 = vpack.c.bf16 %v8609_v39, %v8607_v7  ;;  %v9241_v52 = vpack.c.bf16 %v8608_v18, %v8606_v16 }
0x140e   :  { %v4865_v20 = vcombine.low %v4856_v15, %v4863_v2  ;;  %v8672_v2 = vld [vmem:[%s11743_s5 + $0x1] ss:$0 sm:$0xff] }
0x140f   :  { %v4872_v13 = vrot.slane %v4864_v28, %v9695_v46  ;;  %v8673_v28 = vld [vmem:[%s11744_s6 + $0x1] ss:$0 sm:$0xff] }
0x1410   :  { %v4879_v49 = vrot.slane %v4865_v20, %v9695_v46  ;;  %9234 = vmatpush1.bf16.msra.mxu1 %v9233_v36  ;;  %v4977_v20 = vcombine.high %v8672_v2, %v8672_v2  ;;  %v5056_v63 = vrot.slane %v8673_v28, %v9695_v46 }
0x1411   :  { %9236 = vmatprep.subr.bf16.mxu1 %v9235_v54 }
0x1412   :  { %v4880_v19 = vcombine.low %v4872_v13, %v4879_v49  ;;  %v5049_v13 = vcombine.high %v8673_v28, %v8673_v28  ;;  %v4991_v21 = vrot.slane %v4977_v20, %v9695_v46  ;;  %v5064_v24 = vcombine.high %v5056_v63, %v5056_v63 }
0x1414   :  { %v4898_v30 = vsel %vm94_vm0, %v4880_v19, 0.0  ;;  %9238 = vmatpush1.bf16.msra.mxu1 %v9237_v22  ;;  %v5063_v62 = vrot.slane %v5049_v13, %v9695_v46  ;;  %v4993_v33 = vcombine.high %v4991_v21, %v4991_v21  ;;  %v5007_v51 = vrot.slane %v4991_v21, %v9695_v46 }
0x1415   :  { %4899 = vadd.xlane.f32.xlu0 %v4898_v30  ;;  %9240 = vmatprep.subr.bf16.mxu1 %v9239_v5  ;;  %v4984_v30 = vrot.slane %v8672_v2, %v9695_v46  ;;  %v5072_v22 = vrot.slane %v5056_v63, %v9695_v46  ;;  %v5086_v5 = vrot.slane %v5064_v24, %v9695_v46 }
0x1416   :  { %v5065_v42 = vcombine.high %v5063_v62, %v5063_v62  ;;  %v5021_v54 = vrot.slane %v4993_v33, %v9695_v46  ;;  %v5079_v7 = vrot.slane %v5063_v62, %v9695_v46  ;;  %v5023_v18 = vcombine.high %v5007_v51, %v5007_v51 }
0x1417   :  { %v4992_v59 = vcombine.high %v4984_v30, %v4984_v30  ;;  %v5000_v17 = vrot.slane %v4984_v30, %v9695_v46 }
0x1418   :  { %9242 = vmatpush1.bf16.msra.mxu1 %v9241_v52  ;;  %v5093_v39 = vrot.slane %v5065_v42, %v9695_v46  ;;  %v5095_v28 = vcombine.high %v5079_v7, %v5079_v7 }
0x1419   :  { %8993 = vmatprep.subr.mxu1 %v11795_v47  ;;  %v5014_v36 = vrot.slane %v4992_v59, %v9695_v46  ;;  %v5022_v16 = vcombine.high %v5000_v17, %v5000_v17 }
0x141a   :  { %v5097_v20 = vcombine.high %v5093_v39, %v5093_v39 }
0x141b   :  { %v5024_v52 = vcombine.high %v5014_v36, %v5014_v36 }
0x1499   :  { %v4903_v26 = vpop.xlane.xlu1 %4902 }
0x149a   :  { %v4905_v34 = vmul.f32 0.015625, %v4903_v26  ;;  %v5025_v26 = vcombine.high %v5021_v54, %v5021_v54 }
0x149c   :  { %v4907_v15 = vadd.f32 1e-05, %v4905_v34  ;;  %v5094_v34 = vcombine.high %v5072_v22, %v5072_v22 }
0x149e   :  { %9393 = vrsqrt.f32 %v4907_v15  ;;  %v5096_v15 = vcombine.high %v5086_v5, %v5086_v5 }
0x14a2   :  { %v4900_v49 = vpop.xlane.xlu0 %4899 }
0x14a3   :  { %v4904_v19 = vmul.f32 0.015625, %v4900_v49 }
0x14a5   :  { %v4906_v8 = vadd.f32 1e-05, %v4904_v19 }
0x14a7   :  { %9395 = vrsqrt.f32 %v4906_v8 }
0x14a8   :  { %v9394_v53 = vpop.eup %9393 }
0x14a9   :  { %v4947_v1 = vrot.slane %v9394_v53, %v9733_v55  ;;  %v4951_v23 = vrot.slane %v9394_v53, %v9736_v56 }
0x14ab   :  { %v4970_v38 = vmul.f32 %v4947_v1, %v10832_v3  ;;  %v4971_v29 = vmul.f32 %v4951_v23, %v10835_v9 }
0x14ad   :  { %v5042_v3 = vmul.f32 %v5000_v17, %v4970_v38  ;;  %v5043_v13 = vmul.f32 %v5014_v36, %v4971_v29 }
0x14b1   :  { %v9396_v2 = vpop.eup %9395 }
0x14b2   :  { %v4915_v9 = vrot.slane %v9396_v2, %v9733_v55  ;;  %v4919_v49 = vrot.slane %v9396_v2, %v9736_v56  ;;  %v4923_v19 = vrot.slane %v9396_v2, %v9739_v57  ;;  %v4927_v30 = vrot.slane %v9396_v2, %v9742_v58 }
0x14b3   :  { %v4931_v21 = vrot.slane %v9396_v2, %v9745_v60  ;;  %v4935_v8 = vrot.slane %v9396_v2, %v9748_v61  ;;  %v4939_v62 = vrot.slane %v9396_v2, %v11798_v0  ;;  %v4943_v63 = vrot.slane %v9396_v2, %v11799_v37 }
0x14b4   :  { %v4962_v53 = vmul.f32 %v4915_v9, %v10850_v44  ;;  %v4963_v59 = vmul.f32 %v4919_v49, %v10853_v48  ;;  %v4964_v33 = vmul.f32 %v4923_v19, %v10856_v27  ;;  %v4965_v1 = vmul.f32 %v4927_v30, %v10859_v25 }
0x14b5   :  { %v4966_v23 = vmul.f32 %v4931_v21, %v10862_v4  ;;  %v4967_v42 = vmul.f32 %v4935_v8, %v10865_v35  ;;  %v4968_v24 = vmul.f32 %v4939_v62, %v10868_v6  ;;  %v4969_v38 = vmul.f32 %v4943_v63, %v10871_v50 }
0x14b6   :  { %v5034_v29 = vmul.f32 %v5000_v17, %v4962_v53  ;;  %v5035_v0 = vmul.f32 %v5014_v36, %v4963_v59  ;;  %v5036_v61 = vmul.f32 %v5022_v16, %v4964_v33  ;;  %v5037_v2 = vmul.f32 %v5024_v52, %v4965_v1 }
0x14b7   :  { %v5038_v37 = vmul.f32 %v5007_v51, %v4966_v23  ;;  %v5039_v44 = vmul.f32 %v5021_v54, %v4967_v42  ;;  %v5040_v9 = vmul.f32 %v5023_v18, %v4968_v24  ;;  %v5041_v48 = vmul.f32 %v5025_v26, %v4969_v38 }
0x14b8   :  { %v5106_v49 = vadd.f32 %v5072_v22, %v5034_v29  ;;  %v5107_v27 = vadd.f32 %v5086_v5, %v5035_v0  ;;  %v5108_v19 = vadd.f32 %v5094_v34, %v5036_v61  ;;  %v5109_v25 = vadd.f32 %v5096_v15, %v5037_v2 }
0x14b9   :  { %v5110_v30 = vadd.f32 %v5079_v7, %v5038_v37  ;;  %v5111_v4 = vadd.f32 %v5093_v39, %v5039_v44  ;;  %v5112_v21 = vadd.f32 %v5095_v28, %v5040_v9  ;;  %v5113_v35 = vadd.f32 %v5097_v20, %v5041_v48 }
0x14ba   :  { %v5137_v8 = vcombine.low %v5106_v49, %v5107_v27  ;;  %v5138_v6 = vcombine.low %v5108_v19, %v5109_v25  ;;  %v5114_v17 = vadd.f32 %v5072_v22, %v5042_v3  ;;  %v5115_v36 = vadd.f32 %v5086_v5, %v5043_v13  ;;  %v8610_v5 = vld [vmem:[%s11746_s8 + $0x2] sm:$0x3]  ;;  %s11801_s8 = smov 16  }
0x14bb   :  { %v5139_v62 = vcombine.low %v5110_v30, %v5111_v4  ;;  %v5140_v50 = vcombine.low %v5112_v21, %v5113_v35  ;;  %v5120_v34 = vrot.slane %v8610_v5, %v9733_v55  ;;  %v5124_v15 = vrot.slane %v8610_v5, %v9736_v56 }
0x14bc   :  { %v5147_v16 = vrot.slane %v5137_v8, %v9695_v46  ;;  %v5154_v51 = vrot.slane %v5138_v6, %v9695_v46  ;;  %v5186_v37 = vcombine.low %v5114_v17, %v5115_v36 }
0x14bd   :  { %v5161_v54 = vrot.slane %v5139_v62, %v9695_v46  ;;  %v5168_v0 = vrot.slane %v5140_v50, %v9695_v46 }
0x14be   :  { %v5169_v61 = vcombine.low %v5147_v16, %v5154_v51  ;;  %v5193_v26 = vrot.slane %v5186_v37, %v9695_v46 }
0x14bf   :  { %v5170_v18 = vcombine.low %v5161_v54, %v5168_v0 }
0x14c0   :  { %v5177_v7 = vrot.slane %v5169_v61, %v9695_v46  ;;  %v5200_v22 = vrot.slane %v5193_v26, %v9695_v46 }
0x14c1   :  { %v5184_v39 = vrot.slane %v5170_v18, %v9695_v46 }
0x14c3   :  { %v5185_v52 = vcombine.low %v5177_v7, %v5184_v39 }
0x14c5   :  { %8674 = vmatmul.mubr.msk.f32.vlgmr.msra.gmra.mrb[36].mxu1 %vm94_vm0, %v5185_v52 }
0x14c6   :  { %5275 = vmatprep.mubr.f32.mxu1 %v11795_v47 }
0x14c9   :  { %8675 = vmatmul.mubr.msk.f32.gmra.mrb[38].mxu1 %vm94_vm0, %v5200_v22 }
0x14ca   :  { %8995 = vmatprep.mubr.msk.f32.mxu1 %vm9480_vm2, %v11795_v47 }
0x1598   :  { %v5271_v28 = vpop.f32.mrb[36].mxu1 }
0x1599   :  { %v5272_v20 = vadd.f32 %v5271_v28, %v5120_v34  ;;  %v5273_v3 = vpop.f32.mrb[37].mxu1 }
0x159a   :  { %v5274_v13 = vadd.f32 %v5273_v3, %v5124_v15 }
0x159c   :  { %v5286_v63 = vcombine.low %v5272_v20, %v5274_v13  ;;  %v5287_v53 = vcombine.high %v5272_v20, %v5274_v13  ;;  %v5277_v59 = vpop.f32.mrb[38].mxu1 }
0x159d   :  { %v5278_v33 = vadd.f32 %v5277_v59, %v5120_v34  ;;  %v5279_v1 = vpop.f32.mrb[39].mxu1 }
0x159e   :  { %v5294_v23 = vrot.slane %v5286_v63, %v9695_v46  ;;  %v5301_v42 = vrot.slane %v5287_v53, %v9695_v46  ;;  %v5280_v24 = vadd.f32 %v5279_v1, %v5124_v15 }
0x15a0   :  { %v5302_v38 = vcombine.high %v5294_v23, %v5294_v23  ;;  %v5303_v29 = vcombine.high %v5301_v42, %v5301_v42  ;;  %v11007_v2 = vrot.slane %v5301_v42, %v9695_v46  ;;  %v5336_v44 = vcombine.low %v5278_v33, %v5280_v24 }
0x15a1   :  { %v11010_v9 = vrot.slane %v5294_v23, %v9695_v46 }
0x15a2   :  { %v11013_v48 = vrot.slane %v5302_v38, %v9695_v46  ;;  %v11016_v49 = vrot.slane %v5303_v29, %v9695_v46  ;;  %v11020_v27 = vcombine.high %v11007_v2, %v11007_v2  ;;  %v5343_v19 = vrot.slane %v5336_v44, %v9695_v46 }
0x15a3   :  { %v5381_v50 = vrot.slane %v11007_v2, %v9695_v46  ;;  %v11067_v5 = vcombine.high %v11010_v9, %v11010_v9  ;;  %v5613_v20 = vrot.slane %v11010_v9, 1  ;;  %v5617_v53 = vrot.slane %v11007_v2, 1 }
0x15a4   :  { %v11025_v25 = vcombine.high %v11016_v49, %v11016_v49  ;;  %v5359_v30 = vcombine.low %v11010_v9, %v11013_v48  ;;  %v8676_v4 = vcombine.high %v11010_v9, %v11013_v48  ;;  %v5474_v21 = vcombine.low %v11016_v49, %v11020_v27 }
0x15a5   :  { %v5344_v35 = vcombine.high %v5343_v19, %v5343_v19  ;;  %v11034_v8 = vrot.slane %v5343_v19, %v9695_v46  ;;  %v5396_v18 = vrot.slane %v5381_v50, %v9695_v46  ;;  %v11063_v22 = vcombine.high %v11013_v48, %v11013_v48 }
0x15a6   :  { %v5367_v6 = vrot.slane %v5359_v30, %v9695_v46  ;;  %v5374_v62 = vrot.slane %v8676_v4, %v9695_v46  ;;  %v5482_v51 = vrot.slane %v5474_v21, %v9695_v46  ;;  %v5614_v15 = vrot.slane %v11013_v48, 1 }
0x15a7   :  { %v11041_v17 = vrot.slane %v5344_v35, %v9695_v46  ;;  %v5475_v36 = vcombine.low %v11025_v25, %v11034_v8  ;;  %v5616_v34 = vrot.slane %v11063_v22, 1  ;;  %v5615_v28 = vrot.slane %v11067_v5, 1 }
0x15a8   :  { %v5382_v16 = vcombine.low %v5367_v6, %v5374_v62  ;;  %v5618_v13 = vcombine.low %v5613_v20, %v5614_v15  ;;  %v5640_v23 = vrot.slane %v5617_v53, %v9695_v46  ;;  %v5733_v20 = vrot.slane %v11020_v27, 1 }
0x15a9   :  { %v5489_v54 = vrot.slane %v5475_v36, %v9695_v46  ;;  %v5496_v0 = vrot.slane %v11041_v17, %v9695_v46  ;;  %v5619_v3 = vcombine.low %v5615_v28, %v5616_v34  ;;  %v5734_v34 = vrot.slane %v11025_v25, 1 }
0x15aa   :  { %v5389_v61 = vrot.slane %v5382_v16, %v9695_v46  ;;  %v5626_v59 = vrot.slane %v5618_v13, %v9695_v46  ;;  %v5655_v38 = vrot.slane %v5640_v23, %v9695_v46  ;;  %v5732_v28 = vrot.slane %v11016_v49, 1 }
0x15ab   :  { %v5497_v37 = vcombine.low %v5482_v51, %v5489_v54  ;;  %v5511_v52 = vrot.slane %v5496_v0, %v9695_v46  ;;  %v5633_v63 = vrot.slane %v5619_v3, %v9695_v46 }
0x15ac   :  { %v11051_v7 = vcombine.low %v5389_v61, %v5396_v18  ;;  %v5737_v13 = vcombine.low %v5732_v28, %v5733_v20 }
0x15ad   :  { %v5504_v39 = vrot.slane %v5497_v37, %v9695_v46  ;;  %v5641_v33 = vcombine.low %v5626_v59, %v5633_v63 }
0x15ae   :  { %5398 = vrot.lane.b32.xlu0 %v11051_v7, %s9481_s27 }
0x15af   :  { %v11057_v26 = vcombine.low %v5504_v39, %v5511_v52  ;;  %v5648_v42 = vrot.slane %v5641_v33, %v9695_v46  ;;  %v5735_v52 = vrot.slane %v11034_v8, 1  ;;  %v5736_v33 = vrot.slane %v11041_v17, 1 }
0x15b1   :  { %5513 = vrot.lane.b32.xlu1 %v11057_v26, %s9481_s27  ;;  %v5656_v29 = vcombine.low %v5648_v42, %v5655_v38  ;;  %v5738_v3 = vcombine.low %v5734_v34, %v5735_v52  ;;  %v5759_v38 = vrot.slane %v5736_v33, %v9695_v46  ;;  %s11802_s27 = smov 80  }
0x15b3   :  { %v5752_v59 = vrot.slane %v5738_v3, %v9695_v46 }
0x1620   :  { %v5399_v1 = vpop.permute.xlu0 %5398 }
0x1621   :  { %8994 = vmatpush3.xpose.msk.msra.mxu1 %vm1629_vm3, %v5399_v1  ;;  %v5745_v1 = vrot.slane %v5737_v13, %v9695_v46 }
0x1622   :  { %8998 = vmatprep.subr.mxu1 %v11795_v47 }
0x1623   :  { %v5514_v24 = vpop.permute.xlu1 %5513 }
0x1624   :  { %8996 = vmatmul.mubr.msk.f32.vlgmr.msra.gmra.mrb[40].mxu1 %vm1629_vm3, %v11051_v7 }
0x1625   :  { %8999 = vmatpush3.xpose.msk.msra.mxu1 %vm1629_vm3, %v5514_v24  ;;  %9000 = vmatprep.mubr.msk.f32.mxu1 %vm9480_vm2, %v11795_v47  ;;  %v5760_v24 = vcombine.low %v5745_v1, %v5752_v59 }
0x1626   :  { %9003 = vmatprep.subr.mxu1 %v11795_v47 }
0x1628   :  { %9001 = vmatmul.mubr.msk.f32.vlgmr.msra.gmra.mrb[42].mxu1 %vm1629_vm3, %v11057_v26 }
0x1629   :  { %9004 = vmatpush3.msk.msra.mxu1 %vm1892_vm4, %v5656_v29  ;;  %9005 = vmatprep.mubr.msk.f32.mxu1 %vm9480_vm2, %v11795_v47  ;;  %v5767_v29 = vrot.slane %v5760_v24, %v9695_v46 }
0x162a   :  { %9008 = vmatprep.subr.mxu1 %v11795_v47 }
0x16f7   :  { %v5470_v44 = vpop.f32.mrb[40].mxu1 }
0x16f8   :  { %v5589_v19 = vmul.f32 0.25, %v5470_v44  ;;  %v8997_v30 = vpop.f32.mrb[41].mxu1 }
0x16fa   :  { %v5591_v4 = vsel %vm1821_vm5, %v5589_v19, -inf }
0x16fb   :  { %5592 = vmax.xlane.f32.xlu1 %v5591_v4  ;;  %v5585_v21 = vpop.f32.mrb[42].mxu1 }
0x16fc   :  { %v5590_v35 = vmul.f32 0.25, %v5585_v21  ;;  %v9002_v6 = vpop.f32.mrb[43].mxu1 }
0x16fe   :  { %v5594_v62 = vsel %vm1821_vm5, %v5590_v35, -inf }
0x16ff   :  { %5595 = vmax.xlane.f32.xlu0 %v5594_v62 }
0x170c   :  { %5931 = vrot.lane.b32.xlu1 %v11057_v26, %s9483_s28 }
0x1710   :  { %5851 = vrot.lane.b32.xlu1 %v11051_v7, %s9482_s25 }
0x1788   :  { %v5593_v50 = vpop.xlane.xlu1 %5592 }
0x1789   :  { %v5597_v36 = vsub.f32 %v5589_v19, %v5593_v50  ;;  %v5774_v19 = vrot.slane %v5759_v38, %v9695_v46 }
0x178b   :  { %v5599_v16 = vmul.f32 1.442695, %v5597_v36  ;;  %v5775_v4 = vcombine.low %v5767_v29, %v5774_v19 }
0x178c   :  { %v5596_v51 = vpop.xlane.xlu0 %5595  ;;  %v5932_v15 = vpop.permute.xlu1 %5931 }
0x178d   :  { %9397 = vpow2.f32 %v5599_v16  ;;  %v5598_v54 = vsub.f32 %v5590_v35, %v5596_v51 }
0x178f   :  { %v5601_v0 = vmul.f32 1.442695, %v5598_v54 }
0x1790   :  { %v5852_v63 = vpop.permute.xlu1 %5851 }
0x1791   :  { %9399 = vpow2.f32 %v5601_v0 }
0x1797   :  { %v9398_v61 = vpop.eup %9397 }
0x1798   :  { %v5603_v18 = vsel %vm1821_vm5, %v9398_v61, 0.0 }
0x1799   :  { %5604 = vadd.xlane.f32.xlu0 %v5603_v18 }
0x179b   :  { %v9400_v37 = vpop.eup %9399 }
0x179c   :  { %v5606_v39 = vsel %vm1821_vm5, %v9400_v37, 0.0 }
0x179d   :  { %5607 = vadd.xlane.f32.xlu1 %v5606_v39 }
0x17ae   :  { %5929 = vrot.lane.b32.xlu1 %v11057_v26, %s9482_s25 }
0x17af   :  { %5853 = vrot.lane.b32.xlu0 %v11051_v7, %s9483_s28 }
0x1826   :  { %v5605_v53 = vpop.xlane.xlu0 %5604 }
0x1827   :  { %9401 = vrcp.f32 %v5605_v53 }
0x182a   :  { %v5608_v23 = vpop.xlane.xlu1 %5607  ;;  %v5854_v42 = vpop.permute.xlu0 %5853 }
0x182b   :  { %9403 = vrcp.f32 %v5608_v23  ;;  %9014 = vmatpush3.xpose.msk.msra.mxu0 %vm1629_vm3, %v5854_v42 }
0x182c   :  { %9023 = vmatprep.subr.mxu0 %v11795_v47 }
0x182e   :  { %9016 = vmatmul.mubr.msk.f32.vlgmr.msra.gmra.mrb[14].mxu0 %vm1629_vm3, %v5852_v63  ;;  %v5930_v6 = vpop.permute.xlu1 %5929 }
0x182f   :  { %9025 = vmatprep.mubr.msk.f32.mxu0 %vm9480_vm2, %v11795_v47 }
0x1831   :  { %v9402_v44 = vpop.eup %9401 }
0x1832   :  { %v5611_v30 = vmul.f32 %v9402_v44, %v9398_v61 }
0x1834   :  { %9006 = vmatmul.mubr.msk.f32.vlgmr.msra.gmra.mrb[44].mxu1 %vm1888_vm6, %v5611_v30 }
0x1835   :  { %v9404_v21 = vpop.eup %9403  ;;  %9009 = vmatpush3.msk.msra.mxu1 %vm1892_vm4, %v5775_v4  ;;  %9010 = vmatprep.mubr.msk.f32.mxu1 %vm9480_vm2, %v11795_v47 }
0x1836   :  { %v5612_v35 = vmul.f32 %v9404_v21, %v9400_v37  ;;  %9018 = vmatprep.subr.mxu1 %v11795_v47 }
0x1838   :  { %9011 = vmatmul.mubr.msk.f32.vlgmr.msra.gmra.mrb[46].mxu1 %vm1888_vm6, %v5612_v35 }
0x1839   :  { %9020 = vmatprep.mubr.msk.f32.mxu1 %vm9480_vm2, %v11795_v47 }
0x183c   :  { %9019 = vmatpush3.xpose.msk.msra.mxu1 %vm1629_vm3, %v5932_v15 }
0x183d   :  { %9028 = vmatprep.subr.mxu1 %v11795_v47 }
0x183f   :  { %9021 = vmatmul.mubr.msk.f32.vlgmr.msra.gmra.mrb[48].mxu1 %vm1629_vm3, %v5930_v6 }
0x1840   :  { %9030 = vmatprep.mubr.msk.f32.mxu1 %vm9480_vm2, %v11795_v47 }
0x1901   :  { %v5925_v62 = vpop.f32.mrb[14].mxu0 }
0x1902   :  { %v6007_v50 = vmul.f32 0.25, %v5925_v62  ;;  %v9017_v36 = vpop.f32.mrb[15].mxu0 }
0x1904   :  { %v6009_v16 = vsel %vm1821_vm5, %v6007_v50, -inf }
0x1905   :  { %6010 = vmax.xlane.f32.xlu0 %v6009_v16 }
0x1907   :  { %v11134_v51 = vpop.f32.mrb[44].mxu1 }
0x1908   :  { %v9007_v54 = vpop.f32.mrb[45].mxu1 }
0x190b   :  { %v11136_v0 = vpop.f32.mrb[46].mxu1 }
0x190c   :  { %v9012_v61 = vpop.f32.mrb[47].mxu1 }
0x1912   :  { %v6003_v18 = vpop.f32.mrb[48].mxu1 }
0x1913   :  { %v6008_v37 = vmul.f32 0.25, %v6003_v18  ;;  %v9022_v39 = vpop.f32.mrb[49].mxu1 }
0x1915   :  { %v6012_v52 = vsel %vm1821_vm5, %v6008_v37, -inf }
0x1916   :  { %6013 = vmax.xlane.f32.xlu1 %v6012_v52 }
0x1927   :  { %6033 = vrot.lane.b32.xlu1 %v11013_v48, %s9482_s25 }
0x192b   :  { %6035 = vrot.lane.b32.xlu1 %v11067_v5, %s9482_s25 }
0x192f   :  { %6037 = vrot.lane.b32.xlu1 %v11063_v22, %s9482_s25 }
0x1933   :  { %6162 = vrot.lane.b32.xlu1 %v11020_v27, %s9482_s25 }
0x1937   :  { %6166 = vrot.lane.b32.xlu1 %v11034_v8, %s9482_s25 }
0x193b   :  { %6168 = vrot.lane.b32.xlu1 %v11041_v17, %s9482_s25 }
0x193f   :  { %6369 = vrot.lane.b32.xlu1 %v11057_v26, %s9485_s29 }
0x1943   :  { %6367 = vrot.lane.b32.xlu1 %v11057_v26, %s11800_s7 }
0x1992   :  { %v6011_v34 = vpop.xlane.xlu0 %6010 }
0x1993   :  { %v6015_v15 = vsub.f32 %v6007_v50, %v6011_v34 }
0x1995   :  { %v6017_v28 = vmul.f32 1.442695, %v6015_v15 }
0x1997   :  { %9405 = vpow2.f32 %v6017_v28 }
0x19a1   :  { %v9406_v20 = vpop.eup %9405 }
0x19a2   :  { %v6021_v3 = vsel %vm1821_vm5, %v9406_v20, 0.0 }
0x19a3   :  { %6022 = vadd.xlane.f32.xlu0 %v6021_v3  ;;  %v6014_v13 = vpop.xlane.xlu1 %6013 }
0x19a4   :  { %v6016_v63 = vsub.f32 %v6008_v37, %v6014_v13 }
0x19a6   :  { %v6019_v53 = vmul.f32 1.442695, %v6016_v63 }
0x19a7   :  { %v6034_v1 = vpop.permute.xlu1 %6033 }
0x19a8   :  { %9407 = vpow2.f32 %v6019_v53  ;;  %v6042_v30 = vrot.slane %v6034_v1, 1 }
0x19ab   :  { %v6036_v23 = vpop.permute.xlu1 %6035 }
0x19ac   :  { %v6043_v35 = vrot.slane %v6036_v23, 1 }
0x19af   :  { %v6038_v42 = vpop.permute.xlu1 %6037 }
0x19b0   :  { %v6044_v4 = vrot.slane %v6038_v42, 1 }
0x19b2   :  { %v9408_v59 = vpop.eup %9407  ;;  %v6047_v36 = vcombine.low %v6043_v35, %v6044_v4 }
0x19b3   :  { %v6024_v33 = vsel %vm1821_vm5, %v9408_v59, 0.0  ;;  %v6163_v24 = vpop.permute.xlu1 %6162 }
0x19b4   :  { %v6171_v16 = vrot.slane %v6163_v24, 1  ;;  %v6061_v34 = vrot.slane %v6047_v36, %v9695_v46 }
0x19b7   :  { %v6167_v29 = vpop.permute.xlu1 %6166 }
0x19b8   :  { %v6173_v18 = vrot.slane %v6167_v29, 1 }
0x19b9   :  { %6031 = vrot.lane.b32.xlu0 %v11010_v9, %s9482_s25 }
0x19bb   :  { %v6169_v6 = vpop.permute.xlu1 %6168 }
0x19bc   :  { %v6174_v54 = vrot.slane %v6169_v6, 1 }
0x19bd   :  { %6160 = vrot.lane.b32.xlu0 %v11016_v49, %s9482_s25 }
0x19be   :  { %v6197_v28 = vrot.slane %v6174_v54, %v9695_v46 }
0x19c0   :  { %v6212_v24 = vrot.slane %v6197_v28, %v9695_v46 }
0x19c1   :  { %6164 = vrot.lane.b32.xlu0 %v11025_v25, %s9482_s25 }
0x19c5   :  { %6039 = vrot.lane.b32.xlu0 %v11007_v2, %s9482_s25 }
0x19c9   :  { %6291 = vrot.lane.b32.xlu0 %v11051_v7, %s9485_s29 }
0x19e8   :  { %6025 = vadd.xlane.f32.xlu0 %v6024_v33 }
0x19fe   :  { %6289 = vrot.lane.b32.xlu0 %v11051_v7, %s11800_s7 }
0x1a30   :  { %v6023_v38 = vpop.xlane.xlu0 %6022 }
0x1a31   :  { %9409 = vrcp.f32 %v6023_v38 }
0x1a34   :  { %v6032_v44 = vpop.permute.xlu0 %6031 }
0x1a35   :  { %v6041_v19 = vrot.slane %v6032_v44, 1 }
0x1a37   :  { %v6046_v62 = vcombine.low %v6041_v19, %v6042_v30 }
0x1a38   :  { %v6161_v21 = vpop.permute.xlu0 %6160 }
0x1a39   :  { %v6170_v50 = vrot.slane %v6161_v21, 1  ;;  %v6054_v37 = vrot.slane %v6046_v62, %v9695_v46  ;;  %v6370_v62 = vpop.permute.xlu1 %6369 }
0x1a3b   :  { %v6175_v39 = vcombine.low %v6170_v50, %v6171_v16  ;;  %v6069_v13 = vcombine.low %v6054_v37, %v6061_v34  ;;  %v9410_v42 = vpop.eup %9409 }
0x1a3c   :  { %v6165_v61 = vpop.permute.xlu0 %6164  ;;  %v6029_v4 = vmul.f32 %v9410_v42, %v9406_v20 }
0x1a3d   :  { %v6172_v52 = vrot.slane %v6165_v61, 1  ;;  %v6183_v63 = vrot.slane %v6175_v39, %v9695_v46  ;;  %v6076_v29 = vrot.slane %v6069_v13, %v9695_v46  ;;  %v6368_v36 = vpop.permute.xlu1 %6367 }
0x1a3f   :  { %v6176_v15 = vcombine.low %v6172_v52, %v6173_v18 }
0x1a40   :  { %v6040_v3 = vpop.permute.xlu0 %6039 }
0x1a41   :  { %v6190_v53 = vrot.slane %v6176_v15, %v9695_v46  ;;  %v6045_v33 = vrot.slane %v6040_v3, 1 }
0x1a43   :  { %v6198_v1 = vcombine.low %v6183_v63, %v6190_v53  ;;  %v6068_v23 = vrot.slane %v6045_v33, %v9695_v46 }
0x1a44   :  { %v6292_v21 = vpop.permute.xlu0 %6291 }
0x1a45   :  { %v6205_v38 = vrot.slane %v6198_v1, %v9695_v46  ;;  %v6083_v44 = vrot.slane %v6068_v23, %v9695_v46 }
0x1a47   :  { %v6213_v19 = vcombine.low %v6205_v38, %v6212_v24  ;;  %v6084_v30 = vcombine.low %v6076_v29, %v6083_v44 }
0x1a49   :  { %9024 = vmatpush3.msk.msra.mxu0 %vm1892_vm4, %v6084_v30  ;;  %9029 = vmatpush3.msk.msra.mxu1 %vm1892_vm4, %v6213_v19 }
0x1a4a   :  { %9026 = vmatmul.mubr.msk.f32.vlgmr.msra.gmra.mrb[16].mxu0 %vm1888_vm6, %v6029_v4  ;;  %9033 = vmatprep.subr.mxu0 %v11795_v47 }
0x1a4b   :  { %9035 = vmatprep.mubr.msk.f32.mxu0 %vm9480_vm2, %v11795_v47  ;;  %9038 = vmatprep.subr.mxu1 %v11795_v47 }
0x1a50   :  { %9034 = vmatpush3.xpose.msk.msra.mxu0 %vm1629_vm3, %v6292_v21 }
0x1a51   :  { %9043 = vmatprep.subr.mxu0 %v11795_v47 }
0x1a75   :  { %v6026_v35 = vpop.xlane.xlu0 %6025 }
0x1a76   :  { %9411 = vrcp.f32 %v6026_v35 }
0x1a79   :  { %v6290_v20 = vpop.permute.xlu0 %6289 }
0x1a7a   :  { %9036 = vmatmul.mubr.msk.f32.vlgmr.msra.gmra.mrb[18].mxu0 %vm1629_vm3, %v6290_v20 }
0x1a7b   :  { %9045 = vmatprep.mubr.msk.f32.mxu0 %vm9480_vm2, %v11795_v47 }
0x1a80   :  { %v9412_v6 = vpop.eup %9411 }
0x1a81   :  { %v6030_v50 = vmul.f32 %v9412_v6, %v9408_v59 }
0x1a83   :  { %9031 = vmatmul.mubr.msk.f32.vlgmr.msra.gmra.mrb[50].mxu1 %vm1888_vm6, %v6030_v50 }
0x1a84   :  { %9039 = vmatpush3.xpose.msk.msra.mxu1 %vm1629_vm3, %v6370_v62  ;;  %9040 = vmatprep.mubr.msk.f32.mxu1 %vm9480_vm2, %v11795_v47 }
0x1a85   :  { %9048 = vmatprep.subr.mxu1 %v11795_v47 }
0x1a87   :  { %9041 = vmatmul.mubr.msk.f32.vlgmr.msra.gmra.mrb[52].mxu1 %vm1629_vm3, %v6368_v36 }
0x1a88   :  { %9050 = vmatprep.mubr.msk.f32.mxu1 %vm9480_vm2, %v11795_v47 }
0x1b1d   :  { %v11199_v16 = vpop.f32.mrb[16].mxu0 }
0x1b1e   :  { %v9027_v54 = vpop.f32.mrb[17].mxu0 }
0x1b4d   :  { %v6363_v61 = vpop.f32.mrb[18].mxu0 }
0x1b4e   :  { %v6445_v59 = vmul.f32 0.25, %v6363_v61  ;;  %v9037_v18 = vpop.f32.mrb[19].mxu0 }
0x1b50   :  { %v6447_v37 = vsel %vm1821_vm5, %v6445_v59, -inf }
0x1b51   :  { %6448 = vmax.xlane.f32.xlu0 %v6447_v37 }
0x1b56   :  { %v11202_v39 = vpop.f32.mrb[50].mxu1 }
0x1b57   :  { %v9032_v52 = vpop.f32.mrb[51].mxu1 }
0x1b5a   :  { %v6441_v34 = vpop.f32.mrb[52].mxu1 }
0x1b5b   :  { %v6446_v15 = vmul.f32 0.25, %v6441_v34  ;;  %v9042_v28 = vpop.f32.mrb[53].mxu1 }
0x1b5d   :  { %v6450_v3 = vsel %vm1821_vm5, %v6446_v15, -inf }
0x1b5e   :  { %6451 = vmax.xlane.f32.xlu1 %v6450_v3 }
0x1b6f   :  { %6471 = vrot.lane.b32.xlu1 %v11013_v48, %s11800_s7 }
0x1b73   :  { %6473 = vrot.lane.b32.xlu1 %v11067_v5, %s11800_s7 }
0x1b77   :  { %6475 = vrot.lane.b32.xlu1 %v11063_v22, %s11800_s7 }
0x1b7b   :  { %6600 = vrot.lane.b32.xlu1 %v11020_v27, %s11800_s7 }
0x1b7f   :  { %6604 = vrot.lane.b32.xlu1 %v11034_v8, %s11800_s7 }
0x1b83   :  { %6606 = vrot.lane.b32.xlu1 %v11041_v17, %s11800_s7 }
0x1b87   :  { %6807 = vrot.lane.b32.xlu1 %v11057_v26, %s11801_s8 }
0x1b8b   :  { %6805 = vrot.lane.b32.xlu1 %v11057_v26, %s11802_s27 }
0x1bde   :  { %v6449_v13 = vpop.xlane.xlu0 %6448 }
0x1bdf   :  { %v6453_v63 = vsub.f32 %v6445_v59, %v6449_v13 }
0x1be1   :  { %v6455_v53 = vmul.f32 1.442695, %v6453_v63 }
0x1be3   :  { %9413 = vpow2.f32 %v6455_v53 }
0x1beb   :  { %v6452_v26 = vpop.xlane.xlu1 %6451 }
0x1bec   :  { %v6454_v23 = vsub.f32 %v6446_v15, %v6452_v26 }
0x1bed   :  { %v9414_v33 = vpop.eup %9413 }
0x1bee   :  { %v6459_v1 = vsel %vm1821_vm5, %v9414_v33, 0.0  ;;  %v6457_v42 = vmul.f32 1.442695, %v6454_v23 }
0x1bef   :  { %6460 = vadd.xlane.f32.xlu0 %v6459_v1  ;;  %v6472_v29 = vpop.permute.xlu1 %6471 }
0x1bf0   :  { %9415 = vpow2.f32 %v6457_v42  ;;  %v6480_v6 = vrot.slane %v6472_v29, 1 }
0x1bf3   :  { %v6474_v44 = vpop.permute.xlu1 %6473 }
0x1bf4   :  { %v6481_v36 = vrot.slane %v6474_v44, 1 }
0x1bf7   :  { %v6476_v19 = vpop.permute.xlu1 %6475 }
0x1bf8   :  { %v6482_v62 = vrot.slane %v6476_v19, 1 }
0x1bfa   :  { %v9416_v24 = vpop.eup %9415  ;;  %v6485_v18 = vcombine.low %v6481_v36, %v6482_v62 }
0x1bfb   :  { %v6462_v38 = vsel %vm1821_vm5, %v9416_v24, 0.0  ;;  %v6601_v30 = vpop.permute.xlu1 %6600 }
0x1bfc   :  { %v6609_v37 = vrot.slane %v6601_v30, 1  ;;  %v6499_v13 = vrot.slane %v6485_v18, %v9695_v46 }
0x1bff   :  { %v6605_v21 = vpop.permute.xlu1 %6604 }
0x1c00   :  { %v6611_v34 = vrot.slane %v6605_v21, 1 }
0x1c03   :  { %v6607_v54 = vpop.permute.xlu1 %6606 }
0x1c04   :  { %v6612_v52 = vrot.slane %v6607_v54, 1 }
0x1c05   :  { %6469 = vrot.lane.b32.xlu0 %v11010_v9, %s11800_s7 }
0x1c06   :  { %v6635_v53 = vrot.slane %v6612_v52, %v9695_v46 }
0x1c08   :  { %v6650_v30 = vrot.slane %v6635_v53, %v9695_v46 }
0x1c09   :  { %6598 = vrot.lane.b32.xlu0 %v11016_v49, %s11800_s7 }
0x1c0d   :  { %6602 = vrot.lane.b32.xlu0 %v11025_v25, %s11800_s7 }
0x1c11   :  { %6477 = vrot.lane.b32.xlu0 %v11007_v2, %s11800_s7 }
0x1c15   :  { %6729 = vrot.lane.b32.xlu0 %v11051_v7, %s11801_s8 }
0x1c34   :  { %6463 = vadd.xlane.f32.xlu0 %v6462_v38 }
0x1c4a   :  { %6727 = vrot.lane.b32.xlu0 %v11051_v7, %s11802_s27 }
0x1c7c   :  { %v6461_v4 = vpop.xlane.xlu0 %6460 }
0x1c7d   :  { %9417 = vrcp.f32 %v6461_v4 }
0x1c80   :  { %v6470_v35 = vpop.permute.xlu0 %6469 }
0x1c81   :  { %v6479_v20 = vrot.slane %v6470_v35, 1 }
0x1c83   :  { %v6484_v61 = vcombine.low %v6479_v20, %v6480_v6 }
0x1c84   :  { %v6599_v50 = vpop.permute.xlu0 %6598 }
0x1c85   :  { %v6608_v59 = vrot.slane %v6599_v50, 1  ;;  %v6492_v15 = vrot.slane %v6484_v61, %v9695_v46  ;;  %v6808_v61 = vpop.permute.xlu1 %6807 }
0x1c87   :  { %v6613_v28 = vcombine.low %v6608_v59, %v6609_v37  ;;  %v6507_v26 = vcombine.low %v6492_v15, %v6499_v13  ;;  %v9418_v19 = vpop.eup %9417 }
0x1c88   :  { %v6603_v7 = vpop.permute.xlu0 %6602  ;;  %v6467_v62 = vmul.f32 %v9418_v19, %v9414_v33 }
0x1c89   :  { %v6610_v3 = vrot.slane %v6603_v7, 1  ;;  %v6621_v23 = vrot.slane %v6613_v28, %v9695_v46  ;;  %v6514_v21 = vrot.slane %v6507_v26, %v9695_v46  ;;  %v6806_v18 = vpop.permute.xlu1 %6805 }
0x1c8b   :  { %v6614_v63 = vcombine.low %v6610_v3, %v6611_v34 }
0x1c8c   :  { %v6478_v1 = vpop.permute.xlu0 %6477 }
0x1c8d   :  { %v6628_v42 = vrot.slane %v6614_v63, %v9695_v46  ;;  %v6483_v38 = vrot.slane %v6478_v1, 1 }
0x1c8f   :  { %v6636_v29 = vcombine.low %v6621_v23, %v6628_v42  ;;  %v6506_v44 = vrot.slane %v6483_v38, %v9695_v46 }
0x1c90   :  { %v6730_v50 = vpop.permute.xlu0 %6729 }
0x1c91   :  { %v6643_v4 = vrot.slane %v6636_v29, %v9695_v46  ;;  %v6521_v35 = vrot.slane %v6506_v44, %v9695_v46 }
0x1c93   :  { %v6651_v20 = vcombine.low %v6643_v4, %v6650_v30  ;;  %v6522_v6 = vcombine.low %v6514_v21, %v6521_v35 }
0x1c95   :  { %9044 = vmatpush3.msk.msra.mxu0 %vm1892_vm4, %v6522_v6  ;;  %9049 = vmatpush3.msk.msra.mxu1 %vm1892_vm4, %v6651_v20 }
0x1c96   :  { %9046 = vmatmul.mubr.msk.f32.vlgmr.msra.gmra.mrb[20].mxu0 %vm1888_vm6, %v6467_v62  ;;  %9053 = vmatprep.subr.mxu0 %v11795_v47 }
0x1c97   :  { %9055 = vmatprep.mubr.msk.f32.mxu0 %vm9480_vm2, %v11795_v47  ;;  %9058 = vmatprep.subr.mxu1 %v11795_v47 }
0x1c9c   :  { %9054 = vmatpush3.xpose.msk.msra.mxu0 %vm1629_vm3, %v6730_v50 }
0x1c9d   :  { %9063 = vmatprep.subr.mxu0 %v11795_v47 }
0x1cc1   :  { %v6464_v36 = vpop.xlane.xlu0 %6463 }
0x1cc2   :  { %9419 = vrcp.f32 %v6464_v36 }
0x1cc5   :  { %v6728_v33 = vpop.permute.xlu0 %6727 }
0x1cc6   :  { %9056 = vmatmul.mubr.msk.f32.vlgmr.msra.gmra.mrb[22].mxu0 %vm1629_vm3, %v6728_v33 }
0x1cc7   :  { %9065 = vmatprep.mubr.msk.f32.mxu0 %vm9480_vm2, %v11795_v47 }
0x1ccc   :  { %v9420_v54 = vpop.eup %9419 }
0x1ccd   :  { %v6468_v59 = vmul.f32 %v9420_v54, %v9416_v24 }
0x1ccf   :  { %9051 = vmatmul.mubr.msk.f32.vlgmr.msra.gmra.mrb[54].mxu1 %vm1888_vm6, %v6468_v59 }
0x1cd0   :  { %9059 = vmatpush3.xpose.msk.msra.mxu1 %vm1629_vm3, %v6808_v61  ;;  %9060 = vmatprep.mubr.msk.f32.mxu1 %vm9480_vm2, %v11795_v47 }
0x1cd1   :  { %9068 = vmatprep.subr.mxu1 %v11795_v47 }
0x1cd3   :  { %9061 = vmatmul.mubr.msk.f32.vlgmr.msra.gmra.mrb[56].mxu1 %vm1629_vm3, %v6806_v18 }
0x1cd4   :  { %9070 = vmatprep.mubr.msk.f32.mxu1 %vm9480_vm2, %v11795_v47 }
0x1d69   :  { %v6594_v37 = vpop.f32.mrb[20].mxu0 }
0x1d6a   :  { %v9047_v52 = vpop.f32.mrb[21].mxu0 }
0x1d99   :  { %v6801_v7 = vpop.f32.mrb[22].mxu0 }
0x1d9a   :  { %v6883_v34 = vmul.f32 0.25, %v6801_v7  ;;  %v9057_v24 = vpop.f32.mrb[23].mxu0 }
0x1d9c   :  { %v6885_v15 = vsel %vm1821_vm5, %v6883_v34, -inf }
0x1d9d   :  { %6886 = vmax.xlane.f32.xlu0 %v6885_v15 }
0x1da2   :  { %v6723_v28 = vpop.f32.mrb[54].mxu1 }
0x1da3   :  { %v9052_v3 = vpop.f32.mrb[55].mxu1 }
0x1da6   :  { %v6879_v13 = vpop.f32.mrb[56].mxu1 }
0x1da7   :  { %v6884_v63 = vmul.f32 0.25, %v6879_v13  ;;  %v9062_v53 = vpop.f32.mrb[57].mxu1 }
0x1da9   :  { %v6888_v1 = vsel %vm1821_vm5, %v6884_v63, -inf }
0x1daa   :  { %6889 = vmax.xlane.f32.xlu1 %v6888_v1 }
0x1dbb   :  { %6909 = vrot.lane.b32.xlu1 %v11013_v48, %s11802_s27 }
0x1dbf   :  { %6911 = vrot.lane.b32.xlu1 %v11067_v5, %s11802_s27 }
0x1dc3   :  { %6913 = vrot.lane.b32.xlu1 %v11063_v22, %s11802_s27 }
0x1dc7   :  { %7038 = vrot.lane.b32.xlu1 %v11020_v27, %s11802_s27 }
0x1dcb   :  { %7042 = vrot.lane.b32.xlu1 %v11034_v8, %s11802_s27 }
0x1dcf   :  { %7044 = vrot.lane.b32.xlu1 %v11041_v17, %s11802_s27 }
0x1dd3   :  { %7169 = vrot.lane.b32.xlu1 %v11202_v39, %s11801_s8 }
0x1dd7   :  { %7177 = vrot.lane.b32.xlu1 %v6723_v28, %s9485_s29 }
0x1e2a   :  { %v6887_v48 = vpop.xlane.xlu0 %6886 }
0x1e2b   :  { %v6891_v26 = vsub.f32 %v6883_v34, %v6887_v48 }
0x1e2d   :  { %v6893_v5 = vmul.f32 1.442695, %v6891_v26 }
0x1e2f   :  { %9421 = vpow2.f32 %v6893_v5 }
0x1e37   :  { %v6890_v27 = vpop.xlane.xlu1 %6889 }
0x1e38   :  { %v6892_v8 = vsub.f32 %v6884_v63, %v6890_v27 }
0x1e39   :  { %v9422_v23 = vpop.eup %9421 }
0x1e3a   :  { %v6897_v22 = vsel %vm1821_vm5, %v9422_v23, 0.0  ;;  %v6895_v17 = vmul.f32 1.442695, %v6892_v8 }
0x1e3b   :  { %6898 = vadd.xlane.f32.xlu0 %v6897_v22 }
0x1e3c   :  { %9423 = vpow2.f32 %v6895_v17 }
0x1e46   :  { %v9424_v39 = vpop.eup %9423 }
0x1e47   :  { %v6900_v42 = vsel %vm1821_vm5, %v9424_v39, 0.0 }
0x1e51   :  { %6907 = vrot.lane.b32.xlu0 %v11010_v9, %s11802_s27  ;;  %v6910_v9 = vpop.permute.xlu1 %6909 }
0x1e52   :  { %v6918_v7 = vrot.slane %v6910_v9, 1 }
0x1e55   :  { %7036 = vrot.lane.b32.xlu0 %v11016_v49, %s11802_s27  ;;  %v6912_v49 = vpop.permute.xlu1 %6911 }
0x1e56   :  { %v6919_v24 = vrot.slane %v6912_v49, 1  ;;  %v8611_v49 = vld [vmem:[%s11747_s9 + $0x40] sm:$0xff] }
0x1e59   :  { %7040 = vrot.lane.b32.xlu0 %v11025_v25, %s11802_s27  ;;  %v6914_v38 = vpop.permute.xlu1 %6913 }
0x1e5a   :  { %v6920_v34 = vrot.slane %v6914_v38, 1  ;;  %v8612_v38 = vld [vmem:[%s11747_s9 + $0x48] sm:$0xff] }
0x1e5c   :  { %v6923_v28 = vcombine.low %v6919_v24, %v6920_v34 }
0x1e5d   :  { %v7039_v25 = vpop.permute.xlu1 %7038 }
0x1e5e   :  { %v7047_v35 = vrot.slane %v7039_v25, 1  ;;  %v6937_v63 = vrot.slane %v6923_v28, %v9695_v46  ;;  %v9243_v25 = vpack.c.bf16 %v8612_v38, %v8611_v49 }
0x1e61   :  { %v7043_v44 = vpop.permute.xlu1 %7042 }
0x1e62   :  { %v7049_v6 = vrot.slane %v7043_v44, 1 }
0x1e65   :  { %v7045_v21 = vpop.permute.xlu1 %7044 }
0x1e66   :  { %v7050_v62 = vrot.slane %v7045_v21, 1  ;;  %v8617_v21 = vld [vmem:[%s11747_s9 + $0x70] sm:$0xff] }
0x1e78   :  { %6901 = vadd.xlane.f32.xlu0 %v6900_v42 }
0x1e8e   :  { %6915 = vrot.lane.b32.xlu0 %v11007_v2, %s11802_s27 }
0x1e92   :  { %7167 = vrot.lane.b32.xlu0 %v11199_v16, %s11801_s8  ;;  %v7073_v16 = vrot.slane %v7050_v62, %v9695_v46  ;;  %v8618_v62 = vld [vmem:[%s11747_s9 + $0x78] sm:$0xff] }
0x1e94   :  { %v7088_v59 = vrot.slane %v7073_v16, %v9695_v46 }
0x1e96   :  { %7175 = vrot.lane.b32.xlu0 %v6594_v37, %s9485_s29 }
0x1ec8   :  { %v6899_v29 = vpop.xlane.xlu0 %6898 }
0x1ec9   :  { %9425 = vrcp.f32 %v6899_v29 }
0x1ecc   :  { %v6908_v19 = vpop.permute.xlu0 %6907 }
0x1ecd   :  { %v6917_v52 = vrot.slane %v6908_v19, 1 }
0x1ecf   :  { %v6922_v15 = vcombine.low %v6917_v52, %v6918_v7 }
0x1ed0   :  { %v7037_v30 = vpop.permute.xlu0 %7036 }
0x1ed1   :  { %v7046_v4 = vrot.slane %v7037_v30, 1  ;;  %v6930_v13 = vrot.slane %v6922_v15, %v9695_v46  ;;  %v8615_v30 = vld [vmem:[%s11747_s9 + $0x60] sm:$0xff] }
0x1ed3   :  { %v7051_v2 = vcombine.low %v7046_v4, %v7047_v35  ;;  %v6945_v1 = vcombine.low %v6930_v13, %v6937_v63  ;;  %v9426_v5 = vpop.eup %9425  ;;  %v8616_v4 = vld [vmem:[%s11747_s9 + $0x68] sm:$0xff] }
0x1ed4   :  { %v7041_v20 = vpop.permute.xlu0 %7040  ;;  %v6905_v42 = vmul.f32 %v9426_v5, %v9422_v23  ;;  %v8613_v23 = vld [vmem:[%s11747_s9 + $0x50] sm:$0xff] }
0x1ed5   :  { %v7048_v50 = vrot.slane %v7041_v20, 1  ;;  %v7059_v33 = vrot.slane %v7051_v2, %v9695_v46  ;;  %v6952_v22 = vrot.slane %v6945_v1, %v9695_v46  ;;  %v9255_v2 = vpack.c.bf16 %v8618_v62, %v8617_v21 }
0x1ed7   :  { %v7052_v36 = vcombine.low %v7048_v50, %v7049_v6  ;;  %v9251_v6 = vpack.c.bf16 %v8616_v4, %v8615_v30  ;;  %v7170_v50 = vpop.permute.xlu1 %7169 }
0x1ed9   :  { %v7066_v54 = vrot.slane %v7052_v36, %v9695_v46 }
0x1edb   :  { %v7074_v61 = vcombine.low %v7059_v33, %v7066_v54  ;;  %v7178_v16 = vpop.permute.xlu1 %7177  ;;  %v7190_v54 = vsel %vm1629_vm3, %v11136_v0, %v7170_v50 }
0x1edd   :  { %v7081_v18 = vrot.slane %v7074_v61, %v9695_v46 }
0x1edf   :  { %v7089_v37 = vcombine.low %v7081_v18, %v7088_v59  ;;  %v7192_v59 = vsel %vm3424_vm7, %v7190_v54, %v7178_v16 }
0x1ee1   :  { %9069 = vmatpush3.msk.msra.mxu1 %vm1892_vm4, %v7089_v37 }
0x1f05   :  { %v6902_v3 = vpop.xlane.xlu0 %6901 }
0x1f06   :  { %9427 = vrcp.f32 %v6902_v3 }
0x1f09   :  { %v6916_v53 = vpop.permute.xlu0 %6915 }
0x1f0a   :  { %v6921_v48 = vrot.slane %v6916_v53, 1 }
0x1f0c   :  { %v6944_v26 = vrot.slane %v6921_v48, %v9695_v46 }
0x1f0d   :  { %v7168_v36 = vpop.permute.xlu0 %7167 }
0x1f0e   :  { %v6959_v27 = vrot.slane %v6944_v26, %v9695_v46  ;;  %v7189_v61 = vsel %vm1629_vm3, %v11134_v51, %v7168_v36 }
0x1f10   :  { %v9428_v8 = vpop.eup %9427  ;;  %v6960_v17 = vcombine.low %v6952_v22, %v6959_v27 }
0x1f11   :  { %v6906_v9 = vmul.f32 %v9428_v8, %v9424_v39  ;;  %v8614_v39 = vld [vmem:[%s11747_s9 + $0x58] sm:$0xff]  ;;  %v7176_v33 = vpop.permute.xlu0 %7175 }
0x1f12   :  { %9064 = vmatpush3.msk.msra.mxu0 %vm1892_vm4, %v6960_v17  ;;  %v9247_v29 = vpack.c.bf16 %v8614_v39, %v8613_v23  ;;  %v7191_v18 = vsel %vm3424_vm7, %v7189_v61, %v7176_v33 }
0x1f13   :  { %9066 = vmatmul.mubr.msk.f32.vlgmr.msra.gmra.mrb[24].mxu0 %vm1888_vm6, %v6905_v42  ;;  %9071 = vmatmul.mubr.msk.f32.vlgmr.msra.gmra.mrb[58].mxu1 %vm1888_vm6, %v6906_v9 }
0x1f14   :  { %8120 = vmatprep.mubr.f32.mxu1 %v11795_v47  ;;  %9244 = vmatprep.subr.bf16.mxu0 %v9243_v25 }
0x1f15   :  { %9246 = vmatpush3.bf16.msra.mxu0 %v9243_v25 }
0x1f16   :  { %9248 = vmatprep.subr.bf16.mxu0 %v9247_v29 }
0x1f19   :  { %9250 = vmatpush3.bf16.msra.mxu0 %v9247_v29 }
0x1f1a   :  { %9252 = vmatprep.subr.bf16.mxu0 %v9251_v6 }
0x1f1d   :  { %9254 = vmatpush3.bf16.msra.mxu0 %v9251_v6  ;;  %v8709_v6 = vld [vmem:[%s11748_s10 + $0x1] ss:$0 sm:$0xff] }
0x1f1e   :  { %9256 = vmatprep.subr.bf16.mxu0 %v9255_v2 }
0x1f21   :  { %9258 = vmatpush3.bf16.msra.mxu0 %v9255_v2 }
0x1fe6   :  { %v7032_v44 = vpop.f32.mrb[24].mxu0  ;;  %v7161_v19 = vpop.f32.mrb[58].mxu1 }
0x1fe7   :  { %7183 = vrot.lane.b32.xlu0 %v7032_v44, %s9483_s28  ;;  %v9067_v35 = vpop.f32.mrb[25].mxu0  ;;  %7185 = vrot.lane.b32.xlu1 %v7161_v19, %s9483_s28  ;;  %v9072_v20 = vpop.f32.mrb[59].mxu1 }
0x2059   :  { %v7184_v37 = vpop.permute.xlu0 %7183  ;;  %v7186_v52 = vpop.permute.xlu1 %7185 }
0x205a   :  { %v7193_v7 = vsel %vm3427_vm8, %v7191_v18, %v7184_v37  ;;  %v7194_v34 = vsel %vm3427_vm8, %v7192_v59, %v7186_v52 }
0x205b   :  { %v7197_v24 = vcombine.high %v7193_v7, %v7193_v7  ;;  %v7204_v15 = vrot.slane %v7193_v7, %v9695_v46  ;;  %v7236_v28 = vcombine.high %v7194_v34, %v7194_v34  ;;  %v7243_v3 = vrot.slane %v7194_v34, %v9695_v46 }
0x205d   :  { %v7211_v0 = vrot.slane %v7197_v24, %v9695_v46  ;;  %v7212_v13 = vcombine.high %v7204_v15, %v7204_v15  ;;  %v7250_v51 = vrot.slane %v7236_v28, %v9695_v46  ;;  %v7251_v63 = vcombine.high %v7243_v3, %v7243_v3 }
0x205e   :  { %v7258_v53 = vrot.slane %v7243_v3, %v9695_v46  ;;  %v7219_v1 = vrot.slane %v7204_v15, %v9695_v46 }
0x205f   :  { %v7226_v48 = vrot.slane %v7211_v0, %v9695_v46  ;;  %v7233_v26 = vrot.slane %v7212_v13, %v9695_v46  ;;  %v7272_v5 = vrot.slane %v7251_v63, %v9695_v46  ;;  %v7265_v42 = vrot.slane %v7250_v51, %v9695_v46 }
0x2060   :  { %v7273_v22 = vcombine.high %v7258_v53, %v7258_v53 }
0x2061   :  { %v7281_v27 = vcombine.low %v7219_v1, %v7233_v26  ;;  %v8710_v8 = vcombine.high %v7219_v1, %v7233_v26  ;;  %v7283_v17 = vcombine.low %v7226_v48, %v7258_v53  ;;  %v7274_v9 = vcombine.high %v7272_v5, %v7272_v5 }
0x2062   :  { %v7284_v49 = vcombine.low %v7272_v5, %v7273_v22 }
0x2063   :  { %v7291_v38 = vrot.slane %v7281_v27, %v9695_v46  ;;  %v7298_v25 = vrot.slane %v8710_v8, %v9695_v46  ;;  %v7305_v23 = vrot.slane %v7283_v17, %v9695_v46  ;;  %v7330_v29 = vcombine.low %v7274_v9, %v7265_v42 }
0x2064   :  { %v7312_v39 = vrot.slane %v7284_v49, %v9695_v46 }
0x2065   :  { %v7313_v44 = vcombine.low %v7291_v38, %v7298_v25  ;;  %v7337_v30 = vrot.slane %v7330_v29, %v9695_v46 }
0x2066   :  { %v7314_v19 = vcombine.low %v7305_v23, %v7312_v39 }
0x2067   :  { %v7321_v4 = vrot.slane %v7313_v44, %v9695_v46  ;;  %v7344_v20 = vrot.slane %v7337_v30, %v9695_v46 }
0x2068   :  { %v7328_v21 = vrot.slane %v7314_v19, %v9695_v46 }
0x206a   :  { %v7329_v35 = vcombine.low %v7321_v4, %v7328_v21 }
0x206c   :  { %9089 = vmatprep.mubr.msk.f32.mxu0 %vm94_vm0, %v7329_v35 }
0x206d   :  { %9090 = vmatmul.mubr.msk.f32.vlgmr.msra.gmra.mrb[26].mxu0 %vm94_vm0, %v7344_v20 }
0x2140   :  { %v9091_v62 = vpop.f32.mrb[26].mxu0 }
0x2141   :  { %v7421_v2 = vadd.f32 %v9091_v62, %v8709_v6  ;;  %v7415_v50 = vpop.f32.mrb[27].mxu0  ;;  %v11803_v62 = vld [vmem:[#allocation5_spill] sm:$0xff] }
0x2142   :  { %v7416_v36 = vadd.f32 %v8709_v6, %v7415_v50  ;;  %v11804_v50 = vld [vmem:[#allocation6_spill] sm:$0xff] }
0x2143   :  { %v7481_v16 = vrot.slane %v7421_v2, %v9695_v46 }
0x2144   :  { %v7426_v33 = vcombine.high %v7416_v36, %v7416_v36  ;;  %v7433_v54 = vrot.slane %v7416_v36, %v9695_v46 }
0x2145   :  { %v7482_v61 = vcombine.high %v7481_v16, %v7481_v16  ;;  %v7489_v51 = vrot.slane %v7481_v16, %v9695_v46  ;;  %v11805_v16 = vld [vmem:[#allocation7_spill] sm:$0xff] }
0x2146   :  { %v7440_v59 = vrot.slane %v7426_v33, %v9695_v46  ;;  %v7441_v18 = vcombine.high %v7433_v54, %v7433_v54  ;;  %v7449_v37 = vrot.slane %v7433_v54, %v9695_v46 }
0x2147   :  { %v7496_v15 = vrot.slane %v7482_v61, %v9695_v46 }
0x2148   :  { %v7442_v52 = vcombine.high %v7440_v59, %v7440_v59  ;;  %v7456_v7 = vrot.slane %v7440_v59, %v9695_v46  ;;  %v7463_v34 = vrot.slane %v7441_v18, %v9695_v46  ;;  %v7471_v24 = vcombine.high %v7449_v37, %v7449_v37 }
0x2149   :  { %v11378_v63 = vadd.f32 %v7449_v37, %v10781_v10  ;;  %v7516_v22 = vadd.f32 %v7496_v15, %v10813_v43 }
0x214a   :  { %v7470_v28 = vrot.slane %v7442_v52, %v9695_v46  ;;  %v7472_v3 = vcombine.high %v7456_v7, %v7456_v7  ;;  %v7473_v0 = vcombine.high %v7463_v34, %v7463_v34  ;;  %v7508_v13 = vadd.f32 %v7463_v34, %v10778_v14 }
0x214b   :  { %v7509_v53 = vadd.f32 %v7471_v24, %v10784_v45  ;;  %v7511_v26 = vadd.f32 %v7456_v7, %v10791_v12  ;;  %v7515_v45 = vadd.f32 %v7489_v51, %v10810_v41 }
0x214c   :  { %v7474_v1 = vcombine.high %v7470_v28, %v7470_v28  ;;  %v7510_v48 = vadd.f32 %v7473_v0, %v10788_v32  ;;  %v11384_v5 = vadd.f32 %v7470_v28, %v10794_v11  ;;  %v7527_v27 = vcombine.low %v11378_v63, %v7508_v13 }
0x214d   :  { %v7513_v14 = vadd.f32 %v7472_v3, %v10800_v31  ;;  %v7576_v49 = vcombine.low %v7515_v45, %v7516_v22 }
0x214e   :  { %v7514_v8 = vadd.f32 %v7474_v1, %v10803_v40  ;;  %v7528_v10 = vcombine.low %v7509_v53, %v7510_v48  ;;  %v7529_v17 = vcombine.low %v7511_v26, %v11384_v5  ;;  %v7537_v32 = vrot.slane %v7527_v27, %v9695_v46 }
0x214f   :  { %v7583_v25 = vrot.slane %v7576_v49, %v9695_v46 }
0x2150   :  { %v7530_v42 = vcombine.low %v7513_v14, %v7514_v8  ;;  %v7544_v12 = vrot.slane %v7528_v10, %v9695_v46  ;;  %v7551_v11 = vrot.slane %v7529_v17, %v9695_v46 }
0x2151   :  { %v7590_v39 = vrot.slane %v7583_v25, %v9695_v46 }
0x2152   :  { %v7558_v43 = vrot.slane %v7530_v42, %v9695_v46  ;;  %v7559_v9 = vcombine.low %v7537_v32, %v7544_v12 }
0x2153   :  { %v7596_v29 = vsel %vm442_vm1, %v7590_v39, 0.0 }
0x2154   :  { %v7560_v38 = vcombine.low %v7551_v11, %v7558_v43  ;;  %v7567_v31 = vrot.slane %v7559_v9, %v9695_v46 }
0x2156   :  { %v7574_v40 = vrot.slane %v7560_v38, %v9695_v46 }
0x2158   :  { %v7575_v23 = vcombine.low %v7567_v31, %v7574_v40 }
0x215a   :  { %v7593_v41 = vsel %vm94_vm0, %v7575_v23, 0.0 }
0x215b   :  { %7594 = vadd.xlane.f32.xlu0 %v7593_v41 }
0x215f   :  { %7597 = vadd.xlane.f32.xlu0 %v7596_v29 }
0x21e8   :  { %v7595_v44 = vpop.xlane.xlu0 %7594 }
0x21e9   :  { %v7599_v19 = vmul.f32 0.015625, %v7595_v44  ;;  %v8623_v44 = vld [vmem:[%s11751_s13 + $0x88] sm:$0xff] }
0x21eb   :  { %v7606_v30 = vrot.slane %v7599_v19, %v9733_v55  ;;  %v7610_v4 = vrot.slane %v7599_v19, %v9736_v56  ;;  %v7614_v21 = vrot.slane %v7599_v19, %v9739_v57  ;;  %v7618_v35 = vrot.slane %v7599_v19, %v9742_v58 }
0x21ec   :  { %v7598_v20 = vpop.xlane.xlu0 %7597  ;;  %v7622_v6 = vrot.slane %v7599_v19, %v9745_v60  ;;  %v7626_v2 = vrot.slane %v7599_v19, %v11803_v62  ;;  %v7630_v36 = vrot.slane %v7599_v19, %v11804_v50  ;;  %v7634_v33 = vrot.slane %v7599_v19, %v11805_v16  ;;  %v8625_v19 = vld [vmem:[%s11751_s13 + $0x98] sm:$0xff] }
0x21ed   :  { %v7600_v54 = vmul.f32 0.015625, %v7598_v20  ;;  %v11411_v61 = vsub.f32 %v11378_v63, %v7606_v30  ;;  %v11413_v59 = vsub.f32 %v7508_v13, %v7610_v4  ;;  %v11415_v18 = vsub.f32 %v7509_v53, %v7614_v21  ;;  %v8622_v30 = vld [vmem:[%s11751_s13 + $0x80] sm:$0xff]  ;;  %v8624_v21 = vld [vmem:[%s11751_s13 + $0x90] sm:$0xff]  ;;  %v8629_v20 = vld [vmem:[%s11751_s13 + $0xb8] sm:$0xff] }
0x21ee   :  { %v11417_v37 = vsub.f32 %v7510_v48, %v7618_v35  ;;  %v11419_v52 = vsub.f32 %v7511_v26, %v7622_v6  ;;  %v11422_v7 = vsub.f32 %v11384_v5, %v7626_v2  ;;  %v11424_v34 = vsub.f32 %v7513_v14, %v7630_v36  ;;  %v8627_v35 = vld [vmem:[%s11751_s13 + $0xa8] sm:$0xff]  ;;  %v8626_v36 = vld [vmem:[%s11751_s13 + $0xa0] sm:$0xff] }
0x21ef   :  { %v7638_v24 = vrot.slane %v7600_v54, %v9733_v55  ;;  %v7642_v15 = vrot.slane %v7600_v54, %v9736_v56  ;;  %v11428_v28 = vsub.f32 %v7514_v8, %v7634_v33  ;;  %v7663_v3 = vmul.f32 %v11411_v61, %v11411_v61  ;;  %v8628_v33 = vld [vmem:[%s11751_s13 + $0xb0] sm:$0xff]  ;;  %v8631_v54 = vld [vmem:[%s11751_s13 + $0xc8] sm:$0xff] }
0x21f0   :  { %v7664_v0 = vmul.f32 %v11413_v59, %v11413_v59  ;;  %v7665_v13 = vmul.f32 %v11415_v18, %v11415_v18  ;;  %v7666_v51 = vmul.f32 %v11417_v37, %v11417_v37  ;;  %v7667_v53 = vmul.f32 %v11419_v52, %v11419_v52 }
0x21f1   :  { %v11440_v1 = vsub.f32 %v7515_v45, %v7638_v24  ;;  %v11442_v48 = vsub.f32 %v7516_v22, %v7642_v15  ;;  %v7668_v26 = vmul.f32 %v11422_v7, %v11422_v7  ;;  %v7669_v27 = vmul.f32 %v11424_v34, %v11424_v34  ;;  %v8633_v24 = vld [vmem:[%s11751_s13 + $0xd8] sm:$0xff] }
0x21f2   :  { %v7670_v14 = vmul.f32 %v11428_v28, %v11428_v28  ;;  %v7683_v8 = vcombine.low %v7663_v3, %v7664_v0  ;;  %v7684_v10 = vcombine.low %v7665_v13, %v7666_v51  ;;  %v9259_v4 = vpack.c.bf16 %v8625_v19, %v8623_v44  ;;  %v8630_v0 = vld [vmem:[%s11751_s13 + $0xc0] sm:$0xff]  ;;  %v8632_v13 = vld [vmem:[%s11751_s13 + $0xd0] sm:$0xff]  ;;  %v8635_v51 = vld [vmem:[%s11751_s13 + $0xe8] sm:$0xff] }
0x21f3   :  { %v7671_v17 = vmul.f32 %v11440_v1, %v11440_v1  ;;  %v7672_v45 = vmul.f32 %v11442_v48, %v11442_v48  ;;  %v7685_v42 = vcombine.low %v7667_v53, %v7668_v26  ;;  %v9261_v6 = vpack.c.bf16 %v8624_v21, %v8622_v30  ;;  %v8637_v53 = vld [vmem:[%s11751_s13 + $0xf8] sm:$0xff] }
0x21f4   :  { %v7686_v22 = vcombine.low %v7669_v27, %v7670_v14  ;;  %v7693_v32 = vrot.slane %v7683_v8, %v9695_v46  ;;  %v7700_v12 = vrot.slane %v7684_v10, %v9695_v46  ;;  %v9263_v2 = vpack.c.bf16 %v8629_v20, %v8627_v35  ;;  %9260 = vmatprep.subr.bf16.mxu1 %v9259_v4  ;;  %v8634_v14 = vld [vmem:[%s11751_s13 + $0xe0] sm:$0xff]  ;;  %v8636_v8 = vld [vmem:[%s11751_s13 + $0xf0] sm:$0xff] }
0x21f5   :  { %v7707_v11 = vrot.slane %v7685_v42, %v9695_v46  ;;  %v7732_v43 = vcombine.low %v7671_v17, %v7672_v45  ;;  %9262 = vmatpush1.bf16.msra.mxu1 %v9261_v6  ;;  %v9265_v15 = vpack.c.bf16 %v8628_v33, %v8626_v36  ;;  %v9267_v3 = vpack.c.bf16 %v8633_v24, %v8631_v54  ;;  %v8713_v45 = vld [vmem:[%s11749_s11 + $0x1] ss:$0 sm:$0xff] }
0x21f6   :  { %v7714_v9 = vrot.slane %v7686_v22, %v9695_v46  ;;  %v7715_v49 = vcombine.low %v7693_v32, %v7700_v12  ;;  %9264 = vmatprep.subr.bf16.mxu1 %v9263_v2  ;;  %v9269_v26 = vpack.c.bf16 %v8632_v13, %v8630_v0  ;;  %v9271_v27 = vpack.c.bf16 %v8637_v53, %v8635_v51  ;;  %v8714_v42 = vld [vmem:[%s11750_s12 + $0x1] ss:$0 sm:$0xff] }
0x21f7   :  { %v7739_v38 = vrot.slane %v7732_v43, %v9695_v46  ;;  %v9273_v10 = vpack.c.bf16 %v8636_v8, %v8634_v14  ;;  %v11806_v17 = vmov 0.0|0.0   ;;  %v7828_v12 = vcombine.high %v8713_v45, %v8713_v45 }
0x21f8   :  { %v7716_v31 = vcombine.low %v7707_v11, %v7714_v9  ;;  %v7723_v40 = vrot.slane %v7715_v49, %v9695_v46  ;;  %v7900_v11 = vcombine.high %v8714_v42, %v8714_v42 }
0x21f9   :  { %v7746_v25 = vrot.slane %v7739_v38, %v9695_v46  ;;  %9266 = vmatpush1.bf16.msra.mxu1 %v9265_v15  ;;  %v7835_v38 = vrot.slane %v8713_v45, %v9695_v46 }
0x21fa   :  { %v7730_v23 = vrot.slane %v7716_v31, %v9695_v46  ;;  %9268 = vmatprep.subr.bf16.mxu1 %v9267_v3  ;;  %v7842_v31 = vrot.slane %v7828_v12, %v9695_v46 }
0x21fb   :  { %v7752_v41 = vsel %vm442_vm1, %v7746_v25, 0.0  ;;  %v7907_v25 = vrot.slane %v8714_v42, %v9695_v46  ;;  %v7851_v19 = vrot.slane %v7835_v38, %v9695_v46 }
0x21fc   :  { %v7731_v39 = vcombine.low %v7723_v40, %v7730_v23  ;;  %7753 = vadd.xlane.f32.xlu0 %v7752_v41  ;;  %v7914_v23 = vrot.slane %v7900_v11, %v9695_v46  ;;  %v7843_v41 = vcombine.high %v7835_v38, %v7835_v38  ;;  %v7858_v30 = vrot.slane %v7842_v31, %v9695_v46 }
0x21fd   :  { %9270 = vmatpush1.bf16.msra.mxu1 %v9269_v26  ;;  %v7923_v35 = vrot.slane %v7907_v25, %v9695_v46  ;;  %v7873_v24 = vcombine.high %v7851_v19, %v7851_v19 }
0x21fe   :  { %v7749_v29 = vsel %vm94_vm0, %v7731_v39, 0.0  ;;  %9272 = vmatprep.subr.bf16.mxu1 %v9271_v27  ;;  %v7844_v39 = vcombine.high %v7842_v31, %v7842_v31  ;;  %v7916_v44 = vcombine.high %v7914_v23, %v7914_v23  ;;  %v7865_v4 = vrot.slane %v7843_v41, %v9695_v46 }
0x21ff   :  { %7750 = vadd.xlane.f32.xlu1 %v7749_v29  ;;  %v7915_v29 = vcombine.high %v7907_v25, %v7907_v25  ;;  %v7930_v20 = vrot.slane %v7914_v23, %v9695_v46  ;;  %v7874_v15 = vcombine.high %v7858_v30, %v7858_v30  ;;  %v7945_v13 = vcombine.high %v7923_v35, %v7923_v35 }
0x2200   :  { %v7872_v21 = vrot.slane %v7844_v39, %v9695_v46  ;;  %v7944_v2 = vrot.slane %v7916_v44, %v9695_v46  ;;  %v7875_v3 = vcombine.high %v7865_v4, %v7865_v4 }
0x2201   :  { %9274 = vmatpush1.bf16.msra.mxu1 %v9273_v10  ;;  %v7937_v6 = vrot.slane %v7915_v29, %v9695_v46  ;;  %v7946_v51 = vcombine.high %v7930_v20, %v7930_v20 }
0x2202   :  { %9307 = vmatprep.subr.bf16.mxu1 %v11806_v17  ;;  %v7876_v0 = vcombine.high %v7872_v21, %v7872_v21  ;;  %v7948_v8 = vcombine.high %v7944_v2, %v7944_v2 }
0x2203   :  { %v7947_v14 = vcombine.high %v7937_v6, %v7937_v6 }
0x2289   :  { %v7754_v22 = vpop.xlane.xlu0 %7753 }
0x228a   :  { %v7756_v32 = vmul.f32 0.015625, %v7754_v22 }
0x228c   :  { %v7751_v43 = vpop.xlane.xlu1 %7750  ;;  %v7758_v9 = vadd.f32 1e-05, %v7756_v32 }
0x228d   :  { %v7755_v49 = vmul.f32 0.015625, %v7751_v43 }
0x228e   :  { %9429 = vrsqrt.f32 %v7758_v9 }
0x228f   :  { %v7757_v40 = vadd.f32 1e-05, %v7755_v49 }
0x2291   :  { %9431 = vrsqrt.f32 %v7757_v40 }
0x2298   :  { %v9430_v36 = vpop.eup %9429 }
0x2299   :  { %v7798_v33 = vrot.slane %v9430_v36, %v9733_v55  ;;  %v7802_v54 = vrot.slane %v9430_v36, %v9736_v56 }
0x229b   :  { %v9432_v53 = vpop.eup %9431  ;;  %v7821_v26 = vmul.f32 %v7798_v33, %v11440_v1  ;;  %v7822_v27 = vmul.f32 %v7802_v54, %v11442_v48 }
0x229c   :  { %v7766_v10 = vrot.slane %v9432_v53, %v9733_v55  ;;  %v7770_v45 = vrot.slane %v9432_v53, %v9736_v56  ;;  %v7774_v42 = vrot.slane %v9432_v53, %v9739_v57  ;;  %v7778_v22 = vrot.slane %v9432_v53, %v9742_v58 }
0x229d   :  { %v7782_v32 = vrot.slane %v9432_v53, %v9745_v60  ;;  %v7786_v12 = vrot.slane %v9432_v53, %v11803_v62  ;;  %v7790_v11 = vrot.slane %v9432_v53, %v11804_v50  ;;  %v7794_v1 = vrot.slane %v9432_v53, %v11805_v16 }
0x229e   :  { %v7813_v48 = vmul.f32 %v7766_v10, %v11411_v61  ;;  %v7814_v43 = vmul.f32 %v7770_v45, %v11413_v59  ;;  %v7815_v9 = vmul.f32 %v7774_v42, %v11415_v18  ;;  %v7816_v49 = vmul.f32 %v7778_v22, %v11417_v37  ;;  %v8658_v45 = vld [vmem:[%s11753_s15 + $0x198] sm:$0xff]  ;;  %v8641_v22 = vld [vmem:[%s11753_s15 + $0x110] sm:$0xff] }
0x229f   :  { %v7817_v57 = vmul.f32 %v7782_v32, %v11419_v52  ;;  %v7818_v58 = vmul.f32 %v7786_v12, %v11422_v7  ;;  %v7819_v60 = vmul.f32 %v7790_v11, %v11424_v34  ;;  %v7820_v62 = vmul.f32 %v7794_v1, %v11428_v28  ;;  %v8642_v32 = vld [vmem:[%s11753_s15 + $0x118] sm:$0xff]  ;;  %v8659_v11 = vld [vmem:[%s11753_s15 + $0x1a0] sm:$0xff]  ;;  %v8660_v1 = vld [vmem:[%s11753_s15 + $0x1a8] sm:$0xff] }
0x22a0   :  { %v7885_v38 = vmul.f32 %v7851_v19, %v7813_v48  ;;  %v7886_v50 = vmul.f32 %v7865_v4, %v7814_v43  ;;  %v7887_v31 = vmul.f32 %v7873_v24, %v7815_v9  ;;  %v7888_v16 = vmul.f32 %v7875_v3, %v7816_v49  ;;  %v8643_v43 = vld [vmem:[%s11753_s15 + $0x120] sm:$0xff]  ;;  %v8644_v9 = vld [vmem:[%s11753_s15 + $0x128] sm:$0xff] }
0x22a1   :  { %v7889_v40 = vmul.f32 %v7858_v30, %v7817_v57  ;;  %v7890_v61 = vmul.f32 %v7872_v21, %v7818_v58  ;;  %v7891_v25 = vmul.f32 %v7874_v15, %v7819_v60  ;;  %v7892_v59 = vmul.f32 %v7876_v0, %v7820_v62  ;;  %v8661_v57 = vld [vmem:[%s11753_s15 + $0x1b0] sm:$0xff]  ;;  %v8662_v58 = vld [vmem:[%s11753_s15 + $0x1b8] sm:$0xff] }
0x22a2   :  { %v7957_v23 = vadd.f32 %v7923_v35, %v7885_v38  ;;  %v7958_v18 = vadd.f32 %v7937_v6, %v7886_v50  ;;  %v7959_v41 = vadd.f32 %v7945_v13, %v7887_v31  ;;  %v7960_v37 = vadd.f32 %v7947_v14, %v7888_v16  ;;  %v8639_v14 = vld [vmem:[%s11753_s15 + $0x100] sm:$0xff]  ;;  %v8645_v62 = vld [vmem:[%s11753_s15 + $0x130] sm:$0xff]  ;;  %v8646_v38 = vld [vmem:[%s11753_s15 + $0x138] sm:$0xff] }
0x22a3   :  { %v7961_v39 = vadd.f32 %v7930_v20, %v7889_v40  ;;  %v7962_v52 = vadd.f32 %v7944_v2, %v7890_v61  ;;  %v7963_v29 = vadd.f32 %v7946_v51, %v7891_v25  ;;  %v7964_v7 = vadd.f32 %v7948_v8, %v7892_v59  ;;  %v8640_v8 = vld [vmem:[%s11753_s15 + $0x108] sm:$0xff]  ;;  %v8663_v31 = vld [vmem:[%s11753_s15 + $0x1c0] sm:$0xff] }
0x22a4   :  { %v7988_v44 = vcombine.low %v7957_v23, %v7958_v18  ;;  %v7989_v34 = vcombine.low %v7959_v41, %v7960_v37  ;;  %v7893_v36 = vmul.f32 %v7851_v19, %v7821_v26  ;;  %v7894_v28 = vmul.f32 %v7865_v4, %v7822_v27  ;;  %v8656_v26 = vld [vmem:[%s11753_s15 + $0x188] sm:$0xff]  ;;  %v8647_v61 = vld [vmem:[%s11753_s15 + $0x140] sm:$0xff]  ;;  %v8665_v23 = vld [vmem:[%s11753_s15 + $0x1d0] sm:$0xff] }
0x22a5   :  { %v7990_v33 = vcombine.low %v7961_v39, %v7962_v52  ;;  %v7991_v54 = vcombine.low %v7963_v29, %v7964_v7  ;;  %v9277_v10 = vpack.c.bf16 %v8640_v8, %v8639_v14  ;;  %v9281_v12 = vpack.c.bf16 %v8642_v32, %v8641_v22  ;;  %v8664_v16 = vld [vmem:[%s11753_s15 + $0x1c8] sm:$0xff]  ;;  %v8666_v18 = vld [vmem:[%s11753_s15 + $0x1d8] sm:$0xff]  ;;  %v8649_v37 = vld [vmem:[%s11753_s15 + $0x150] sm:$0xff] }
0x22a6   :  { %v7998_v24 = vrot.slane %v7988_v44, %v9695_v46  ;;  %v8005_v30 = vrot.slane %v7989_v34, %v9695_v46  ;;  %v7965_v21 = vadd.f32 %v7923_v35, %v7893_v36  ;;  %v7966_v15 = vadd.f32 %v7937_v6, %v7894_v28  ;;  %v8655_v6 = vld [vmem:[%s11753_s15 + $0x180] sm:$0xff]  ;;  %v8648_v25 = vld [vmem:[%s11753_s15 + $0x148] sm:$0xff]  ;;  %v8650_v39 = vld [vmem:[%s11753_s15 + $0x158] sm:$0xff] }
0x22a7   :  { %v8012_v3 = vrot.slane %v7990_v33, %v9695_v46  ;;  %v8019_v0 = vrot.slane %v7991_v54, %v9695_v46  ;;  %v9275_v27 = vpack.c.bf16 %v8656_v26, %v8655_v6  ;;  %v9283_v48 = vpack.c.bf16 %v8660_v1, %v8659_v11  ;;  %v8667_v29 = vld [vmem:[%s11753_s15 + $0x1e0] sm:$0xff]  ;;  %v8668_v7 = vld [vmem:[%s11753_s15 + $0x1e8] sm:$0xff]  ;;  %v8669_v33 = vld [vmem:[%s11753_s15 + $0x1f0] sm:$0xff] }
0x22a8   :  { %v8020_v20 = vcombine.low %v7998_v24, %v8005_v30  ;;  %v8037_v13 = vcombine.low %v7965_v21, %v7966_v15  ;;  %v9285_v49 = vpack.c.bf16 %v8644_v9, %v8643_v43  ;;  %v9287_v60 = vpack.c.bf16 %v8662_v58, %v8661_v57  ;;  %v8651_v34 = vld [vmem:[%s11753_s15 + $0x160] sm:$0xff]  ;;  %v8652_v36 = vld [vmem:[%s11753_s15 + $0x168] sm:$0xff]  ;;  %v8670_v54 = vld [vmem:[%s11753_s15 + $0x1f8] sm:$0xff] }
0x22a9   :  { %v8021_v2 = vcombine.low %v8012_v3, %v8019_v0  ;;  %9276 = vmatprep.subr.bf16.mxu0 %v9275_v27  ;;  %v9289_v50 = vpack.c.bf16 %v8646_v38, %v8645_v62  ;;  %v9291_v40 = vpack.c.bf16 %v8664_v16, %v8663_v31  ;;  %v9293_v59 = vpack.c.bf16 %v8648_v25, %v8647_v61  ;;  %v8653_v30 = vld [vmem:[%s11753_s15 + $0x170] sm:$0xff]  ;;  %v8654_v21 = vld [vmem:[%s11753_s15 + $0x178] sm:$0xff]  ;;  %v8638_v3 = vld [vmem:[%s11752_s14 + $0x2] sm:$0x3] }
0x22aa   :  { %v8028_v51 = vrot.slane %v8020_v20, %v9695_v46  ;;  %v8044_v53 = vrot.slane %v8037_v13, %v9695_v46  ;;  %9278 = vmatpush3.bf16.msra.mxu0 %v9277_v10  ;;  %v9295_v41 = vpack.c.bf16 %v8666_v18, %v8665_v23  ;;  %v9297_v52 = vpack.c.bf16 %v8650_v39, %v8649_v37 }
0x22ab   :  { %v8035_v19 = vrot.slane %v8021_v2, %v9695_v46  ;;  %v9299_v44 = vpack.c.bf16 %v8668_v7, %v8667_v29  ;;  %v9301_v28 = vpack.c.bf16 %v8652_v36, %v8651_v34  ;;  %v9303_v24 = vpack.c.bf16 %v8670_v54, %v8669_v33 }
0x22ac   :  { %v8051_v35 = vrot.slane %v8044_v53, %v9695_v46  ;;  %v9305_v15 = vpack.c.bf16 %v8654_v21, %v8653_v30  ;;  %v7971_v0 = vrot.slane %v8638_v3, %v9733_v55  ;;  %v7975_v20 = vrot.slane %v8638_v3, %v9736_v56 }
0x22ad   :  { %v8036_v4 = vcombine.low %v8028_v51, %v8035_v19 }
0x22af   :  { %8715 = vmatmul.mubr.msk.f32.vlgmr.msra.gmra.mrb[60].mxu1 %vm94_vm0, %v8036_v4 }
0x22b0   :  { %8126 = vmatprep.mubr.f32.mxu1 %v11795_v47 }
0x22b3   :  { %8716 = vmatmul.mubr.msk.f32.gmra.mrb[62].mxu1 %vm94_vm0, %v8051_v35 }
0x22b4   :  { %9108 = vmatprep.mubr.msk.f32.mxu1 %vm9480_vm2, %v11795_v47  ;;  %v8657_v47 = vld [vmem:[%s11753_s15 + $0x190] sm:$0xff] }
0x22b5   :  { %v9279_v42 = vpack.c.bf16 %v8658_v45, %v8657_v47 }
0x22b7   :  { %9280 = vmatprep.subr.bf16.mxu0 %v9279_v42 }
0x22b8   :  { %9282 = vmatpush3.bf16.msra.mxu0 %v9281_v12 }
0x22b9   :  { %9284 = vmatprep.subr.bf16.mxu0 %v9283_v48 }
0x22bc   :  { %9286 = vmatpush3.bf16.msra.mxu0 %v9285_v49 }
0x22bd   :  { %9288 = vmatprep.subr.bf16.mxu0 %v9287_v60 }
0x22c0   :  { %9290 = vmatpush3.bf16.msra.mxu0 %v9289_v50 }
0x22c1   :  { %9292 = vmatprep.subr.bf16.mxu0 %v9291_v40  ;;  %v8721_v40 = vld [vmem:[%s11754_s16 + $0x1] ss:$0 sm:$0xff] }
0x22c4   :  { %9294 = vmatpush3.bf16.msra.mxu0 %v9293_v59 }
0x22c5   :  { %9296 = vmatprep.subr.bf16.mxu0 %v9295_v41 }
0x22c8   :  { %9298 = vmatpush3.bf16.msra.mxu0 %v9297_v52 }
0x22c9   :  { %9300 = vmatprep.subr.bf16.mxu0 %v9299_v44 }
0x22cc   :  { %9302 = vmatpush3.bf16.msra.mxu0 %v9301_v28 }
0x22cd   :  { %9304 = vmatprep.subr.bf16.mxu0 %v9303_v24 }
0x22d0   :  { %9306 = vmatpush3.bf16.msra.mxu0 %v9305_v15 }
0x2382   :  { %v8122_v2 = vpop.f32.mrb[60].mxu1 }
0x2383   :  { %v8123_v13 = vadd.f32 %v8122_v2, %v7971_v0  ;;  %v8124_v51 = vpop.f32.mrb[61].mxu1 }
0x2384   :  { %v8125_v19 = vadd.f32 %v8124_v51, %v7975_v20 }
0x2385   :  { %v8717_v4 = vmul.f32 -1.702, %v8123_v13 }
0x2386   :  { %v8718_v53 = vmul.f32 -1.702, %v8125_v19  ;;  %v8128_v35 = vpop.f32.mrb[62].mxu1 }
0x2387   :  { %v8141_v6 = vmul.f32 1.442695, %v8717_v4  ;;  %v8129_v26 = vadd.f32 %v8128_v35, %v7971_v0  ;;  %v8130_v27 = vpop.f32.mrb[63].mxu1  ;;  %v8419_v4 = vld [vmem:[%s11757_s19 + $0x8] sm:$0xff]  ;;  %v8420_v35 = vld [vmem:[%s11757_s19 + $0x10] sm:$0xff] }
0x2388   :  { %v8143_v14 = vmul.f32 1.442695, %v8718_v53  ;;  %v8131_v8 = vadd.f32 %v8130_v27, %v7975_v20  ;;  %v8422_v27 = vld [vmem:[%s11757_s19 + $0x20] sm:$0xff] }
0x2389   :  { %9433 = vpow2.f32 %v8141_v6  ;;  %v8719_v10 = vmul.f32 -1.702, %v8129_v26  ;;  %v8421_v6 = vld [vmem:[%s11757_s19 + $0x18] sm:$0xff] }
0x238a   :  { %9435 = vpow2.f32 %v8143_v14  ;;  %v8720_v47 = vmul.f32 -1.702, %v8131_v8  ;;  %v8423_v14 = vld [vmem:[%s11757_s19 + $0x28] sm:$0xff] }
0x238b   :  { %v8145_v45 = vmul.f32 1.442695, %v8719_v10  ;;  %v8424_v10 = vld [vmem:[%s11757_s19 + $0x30] sm:$0xff] }
0x238c   :  { %v8147_v42 = vmul.f32 1.442695, %v8720_v47  ;;  %v8425_v47 = vld [vmem:[%s11757_s19 + $0x38] sm:$0xff] }
0x238d   :  { %9437 = vpow2.f32 %v8145_v45  ;;  %v9317_v45 = vpack.c.bf16 %v8425_v47, %v8424_v10 }
0x238e   :  { %9439 = vpow2.f32 %v8147_v42 }
0x2393   :  { %v9434_v22 = vpop.eup %9433 }
0x2394   :  { %v9436_v32 = vpop.eup %9435  ;;  %v8149_v12 = vadd.f32 1.0, %v9434_v22 }
0x2395   :  { %v8150_v11 = vadd.f32 1.0, %v9436_v32 }
0x2396   :  { %9441 = vrcp.f32 %v8149_v12  ;;  %v8722_v12 = vld [vmem:[%s11755_s17] ss:$0 sm:$0xff]  ;;  %s9488_s17 = smov [#allocation2]  }
0x2397   :  { %v9438_v1 = vpop.eup %9437  ;;  %9443 = vrcp.f32 %v8150_v11  ;;  %v8723_v11 = vld [vmem:[%s11756_s18] ss:$0 sm:$0xff]  ;;  %s8530_s18 = sshll.u32 %s9488_s17, 4  ;;  %s8531_s18 = int_to_ptr.vmem [resolvable:$true] %s8530_s18 }
0x2398   :  { %v9440_v48 = vpop.eup %9439  ;;  %v8151_v43 = vadd.f32 1.0, %v9438_v1  ;;  %v8367_v1 = vrot.slane %v8722_v12, %v9695_v46  ;;  %p9458_p1 = scmp.lt.s32.totalorder %s8531_s18, %s8531_s18 }
0x2399   :  { %v8152_v9 = vadd.f32 1.0, %v9440_v48  ;;  %v8398_v48 = vrot.slane %v8723_v11, %v9695_v46 }
0x239a   :  { %9445 = vrcp.f32 %v8151_v43  ;;  %v8368_v43 = vcombine.high %v8367_v1, %v8367_v1 }
0x239b   :  { %9447 = vrcp.f32 %v8152_v9  ;;  %v8399_v9 = vcombine.high %v8398_v48, %v8398_v48 }
0x23a0   :  { %v9442_v49 = vpop.eup %9441 }
0x23a1   :  { %v9444_v57 = vpop.eup %9443  ;;  %v8161_v60 = vmul.f32 %v9442_v49, %v8123_v13  ;;  %v8375_v49 = vrot.slane %v8367_v1, %v9695_v46 }
0x23a2   :  { %v8162_v58 = vmul.f32 %v9444_v57, %v8125_v19  ;;  %v8418_v19 = vld [vmem:[%s11757_s19] sm:$0xff]  ;;  %v8382_v57 = vrot.slane %v8368_v43, %v9695_v46  ;;  %s9453_s19 = scalar_lea.vmem %s8531_s18, 32 }
0x23a3   :  { %v9308_v53 = vpack.c.bf16 %v8419_v4, %v8418_v19  ;;  %p9454_p0 = scmp.ne.s32.totalorder %s8531_s18, %s9453_s19  ;;  %p9459_p2 = scmp.lt.s32.totalorder %s9453_s19, %s9453_s19 }
0x23a4   :  { %v9446_v62 = vpop.eup %9445  ;;  %8235 = vmatprep.mubr.f32.mxu0 %v8162_v58 }
0x23a5   :  { %v9448_v38 = vpop.eup %9447  ;;  %8236 = vmatmul.mubr.f32.vlgmr.msra.gmra.mrb[28].mxu0 %v8161_v60  ;;  %v8163_v31 = vmul.f32 %v9446_v62, %v8129_v26  ;;  %9309 = vmatpush3.bf16.msra.mxu1 %v9308_v53  ;;  %v9311_v26 = vpack.c.bf16 %v8421_v6, %v8420_v35  ;;  %v8406_v62 = vrot.slane %v8398_v48, %v9695_v46  ;;  %p9460_p3 = por %p9459_p2, %p9458_p1 }
0x23a6   :  { %v8164_v50 = vmul.f32 %v9448_v38, %v8131_v8  ;;  %9310 = vmatprep.subr.bf16.mxu1 %v11806_v17  ;;  %v9314_v8 = vpack.c.bf16 %v8423_v14, %v8422_v27  ;;  %v8413_v38 = vrot.slane %v8399_v9, %v9695_v46 }
0x23a7   :  { %p9461_p4 = pnand %p9460_p3, %p9454_p0 }
0x23a8   :  { %8240 = vmatprep.mubr.f32.mxu0 %v8164_v50 }
0x23a9   :  { %8241 = vmatmul.mubr.f32.gmra.mrb[30].mxu0 %v8163_v31  ;;  %9312 = vmatpush3.bf16.msra.mxu1 %v9311_v26 }
0x23aa   :  { %9313 = vmatprep.subr.bf16.mxu1 %v11806_v17 }
0x23ad   :  { %9315 = vmatpush3.bf16.msra.mxu1 %v9314_v8 }
0x23ae   :  { %9316 = vmatprep.subr.bf16.mxu1 %v11806_v17 }
0x23b1   :  { %9318 = vmatpush3.bf16.msra.mxu1 %v9317_v45 }
0x2478   :  { %v8879_v16 = vpop.f32.mrb[28].mxu0 }
0x2479   :  { %v8880_v61 = vpop.f32.mrb[29].mxu0 }
0x247a   :  { %v8881_v25 = vadd.f32 %v8880_v61, %v8879_v16 }
0x247c   :  { %v8238_v59 = vadd.f32 %v8881_v25, %v8721_v40  ;;  %v8882_v23 = vpop.f32.mrb[30].mxu0 }
0x247d   :  { %v8883_v18 = vpop.f32.mrb[31].mxu0 }
0x247e   :  { %v8246_v41 = vcombine.high %v8238_v59, %v8238_v59  ;;  %v8253_v37 = vrot.slane %v8238_v59, %v9695_v46 }
0x2480   :  { %v8260_v39 = vrot.slane %v8246_v41, %v9695_v46  ;;  %v8268_v29 = vrot.slane %v8253_v37, %v9695_v46 }
0x2482   :  { %v8261_v52 = vcombine.high %v8260_v39, %v8260_v39  ;;  %v8278_v44 = vadd.f32 %v8268_v29, %v11378_v63 }
0x2484   :  { %v8275_v7 = vrot.slane %v8261_v52, %v9695_v46 }
0x2486   :  { %v8279_v34 = vadd.f32 %v8275_v7, %v11384_v5 }
0x2488   :  { %v8284_v36 = vcombine.low %v8278_v44, %v8279_v34 }
0x248a   :  { %v8291_v28 = vrot.slane %v8284_v36, %v9695_v46 }
0x248c   :  { %v8298_v33 = vrot.slane %v8291_v28, %v9695_v46 }
0x248e   :  { %v8300_v54 = vsel %vm442_vm1, %v8298_v33, 0.0 }
0x248f   :  { %8301 = vadd.xlane.f32.xlu0 %v8300_v54 }
0x251c   :  { %v8302_v24 = vpop.xlane.xlu0 %8301 }
0x251d   :  { %v8303_v30 = vmul.f32 0.015625, %v8302_v24 }
0x251f   :  { %v8308_v21 = vrot.slane %v8303_v30, %v9733_v55  ;;  %v8312_v15 = vrot.slane %v8303_v30, %v9736_v56 }
0x2521   :  { %v8315_v3 = vsub.f32 %v8278_v44, %v8308_v21  ;;  %v8316_v0 = vsub.f32 %v8279_v34, %v8312_v15 }
0x2523   :  { %v8317_v20 = vmul.f32 %v8315_v3, %v8315_v3  ;;  %v8318_v63 = vmul.f32 %v8316_v0, %v8316_v0 }
0x2525   :  { %v8321_v2 = vcombine.low %v8317_v20, %v8318_v63 }
0x2527   :  { %v8328_v5 = vrot.slane %v8321_v2, %v9695_v46 }
0x2529   :  { %v8335_v13 = vrot.slane %v8328_v5, %v9695_v46 }
0x252b   :  { %v8337_v51 = vsel %vm442_vm1, %v8335_v13, 0.0 }
0x252c   :  { %8338 = vadd.xlane.f32.xlu1 %v8337_v51 }
0x25b9   :  { %v8339_v42 = vpop.xlane.xlu1 %8338 }
0x25ba   :  { %v8340_v22 = vmul.f32 0.015625, %v8339_v42 }
0x25bc   :  { %v8341_v32 = vadd.f32 1e-05, %v8340_v22 }
0x25be   :  { %9449 = vrsqrt.f32 %v8341_v32 }
0x25c8   :  { %v9450_v17 = vpop.eup %9449 }
0x25c9   :  { %v8347_v58 = vrot.slane %v9450_v17, %v9733_v55  ;;  %v8351_v60 = vrot.slane %v9450_v17, %v9736_v56 }
0x25cb   :  { %v8354_v50 = vmul.f32 %v8347_v58, %v8315_v3  ;;  %v8355_v31 = vmul.f32 %v8351_v60, %v8316_v0 }
0x25cd   :  { %v8385_v16 = vmul.f32 %v8375_v49, %v8354_v50  ;;  %v8386_v40 = vmul.f32 %v8382_v57, %v8355_v31 }
0x25cf   :  { %v8416_v61 = vadd.f32 %v8406_v62, %v8385_v16  ;;  %v8417_v25 = vadd.f32 %v8413_v38, %v8386_v40 }
0x25d1   :  { %v8428_v59 = vcombine.low %v8416_v61, %v8417_v25 }
0x25d3   :  { %v8435_v23 = vrot.slane %v8428_v59, %v9695_v46 }
0x25d5   :  { %v8442_v18 = vrot.slane %v8435_v23, %v9695_v46 }
0x25d7   :  { %9109 = vmatmul.mubr.msk.f32.vlgmr.msra.gmra.mrb[64].mxu1 %vm94_vm0, %v8442_v18 }
0x26aa   :  { %v8511_v55 = vpop.f32.mrb[64].mxu1 }
0x26ab   :  { %v8515_v56 = vmul.f32 %v8511_v55, %v8511_v55  ;;  %v9110_v41 = vpop.f32.mrb[65].mxu1 }
0x26ad   :  { %v8517_v37 = vsel %vm8516_vm9, %v8515_v56, 0.0 }
0x26ae   :  { %8518 = vadd.xlane.f32.xlu0 %v8517_v37 }
0x273b   :  { %v8519_v39 = vpop.xlane.xlu0 %8518 }
0x273c   :  { %v8520_v52 = vadd.f32 1e-12, %v8519_v39 }
0x273e   :  { %9451 = vrsqrt.f32 %v8520_v52 }
0x2748   :  { %v9452_v29 = vpop.eup %9451 }
0x2749   :  { %v8522_v7 = vmul.f32 %v9452_v29, %v8511_v55 }
0x274b   :  { %8523 = vst.msk [vmem:[#allocation2] sm:$0x3] %vm8516_vm9, %v8522_v7 }
0x274c   :  { %9464 = shalt.err (!%p9461_p4)
}
0x274d   :  { %s9465_s30 = scalar_lea.hbm %s11758_s20, 32 }
0x274e   :  { %p9466_p5 = scmp.ne.s32.totalorder %s11758_s20, %s9465_s30  ;;  %p9469_p6 = scmp.lt.u32.totalorder %s9465_s30, %s11758_s20 }
0x2750   :  { %p9471_p7 = pnand %p9469_p6, %p9466_p5 }
0x2752   :  { %9474 = shalt.err (!%p9471_p7)
}
0x2753   :  { %8533 = dma.vmem_to_hbm [thread:$0]  %s8531_s18, 32, %s11758_s20, [#allocation3]  }
0x2754   :  { %9475 = dma.done.wait [#allocation3], 32  }
0x2755   :  { %9476 = vsyncadd [#allocation3], 4294967264 }
0x2756   :  { %8537 = vsyncpa [#allocation3], 1 }

</bundles_post_ra>
